<compile_context>
chip_gen: v5e
topology: v5e:2x2
jax: 0.10.0
libtpu: 0.0.40
codegen_flags: <defaults>
</compile_context>

<pallas_src>
import jax
import jax.numpy as jnp
from jax import lax
from jax.experimental import pallas as pl
from jax.experimental.pallas import tpu as pltpu

NZ_M, NX_M = 26, 120                      # fd2d parameter grid (vp0 / vs0)
NBC = 40                                  # pad(x, 40, 2) width
NZ, NX = NZ_M + 2 * NBC, NX_M + 2 * NBC   # 106, 200 logical padded grid
NXP = 256                                 # lane-dense x width (pad 200 -> 256)
SRC_Z, SRC_X = NBC + 2, NX // 2           # source point (42, 100); SRC_X < 128
REC_Z = NBC + 1                           # receiver row (padded coords)


# --------------------------------------------------------------------------- #
# Fused kernel: moduli init + staggered-grid velocity-stress time stepping
# --------------------------------------------------------------------------- #
def _fd2d_kernel(iv_ref, s_ref,                          # SMEM scalar prefetch
                 vp_ref, vs_ref, den_ref, temp_ref,      # VMEM inputs (padded)
                 uu_ref, seis_ref, illum_ref,            # VMEM outputs
                 ca_s, cl_s,                             # dtx-scaled moduli
                 tb_xm, tb_zm, tb_xp, tb_zp,             # taper*b*mask (velocity)
                 cm_xm, cm_zp,                           # dtx*cm*mask (sxz)
                 mxp, mzm,                               # masks kept for dvx/dvz
                 vx, vz, sxx, szz, sxz):                 # wavefield state
    nz, nxp = vp_ref.shape
    nt = seis_ref.shape[0]
    dtx = iv_ref[3]                                      # input_vector[3] = dt/dx

    # ---------------- init phase (runs once: grid == (1,)) ----------------
    den = den_ref[...]
    taper = temp_ref[...]
    ca = vp_ref[...] * vp_ref[...] * den
    cm = vs_ref[...] * vs_ref[...] * den
    cm_dt = dtx * cm
    ca_s[...] = dtx * ca
    cl_s[...] = dtx * (ca - 2.0 * cm)

    # boundary masks at the logical width NX (not NXP); hoisted out of the loop
    iz = lax.broadcasted_iota(jnp.int32, (nz, nxp), 0)
    ix = lax.broadcasted_iota(jnp.int32, (nz, nxp), 1)
    m_zp = (iz < nz - 1).astype(jnp.float32)   # forward z-diff valid
    m_zm = (iz > 0).astype(jnp.float32)        # backward z-diff valid
    m_xp = (ix < NX - 1).astype(jnp.float32)   # forward x-diff valid
    m_xm = (ix > 0).astype(jnp.float32)        # backward x-diff valid

    # fold taper * buoyancy * dt/dx * mask into per-direction velocity coeffs
    tb = taper * (dtx / den)
    tb_xm[...] = tb * m_xm
    tb_zm[...] = tb * m_zm
    tb_xp[...] = tb * m_xp
    tb_zp[...] = tb * m_zp
    # fold dtx*cm * mask into the two shear-stress coefficients
    cm_xm[...] = cm_dt * m_xm
    cm_zp[...] = cm_dt * m_zp
    # the only masks still applied per step (dvxdx / dvzdz are reused 3x each)
    mxp[...] = m_xp
    mzm[...] = m_zm

    zero = jnp.zeros((nz, nxp), jnp.float32)
    vx[...] = zero
    vz[...] = zero
    sxx[...] = zero
    szz[...] = zero
    sxz[...] = zero
    illum_ref[...] = zero

    # one-hot over the single lane tile containing the source column (1 vreg)
    src_row = (lax.broadcasted_iota(jnp.int32, (1, 128), 1)
               == SRC_X).astype(jnp.float32)

    # ------------------------- in-kernel time loop -------------------------
    def step(t, carry):
        taper_v = temp_ref[...]

        # velocity updates: masks + taper + buoyancy pre-folded into tb_*
        sxx_v = sxx[...]
        sxz_v = sxz[...]
        vx_new = (taper_v * vx[...]
                  + tb_xm[...] * (sxx_v - pltpu.roll(sxx_v, 1, 1))
                  + tb_zm[...] * (sxz_v - pltpu.roll(sxz_v, 1, 0)))
        vx[...] = vx_new

        szz_v = szz[...]
        vz_new = (taper_v * vz[...]
                  + tb_xp[...] * (pltpu.roll(sxz_v, nxp - 1, 1) - sxz_v)
                  + tb_zp[...] * (pltpu.roll(szz_v, nz - 1, 0) - szz_v))
        vz[...] = vz_new

        # seismogram: single dynamic-row store at the receiver depth
        seis_ref[pl.ds(t, 1), :] = vz[REC_Z:REC_Z + 1, :]

        # normal-stress derivatives (masked once, reused by sxx/szz/illum)
        dvxdx = (pltpu.roll(vx_new, nxp - 1, 1) - vx_new) * mxp[...]
        dvzdz = (vz_new - pltpu.roll(vz_new, 1, 0)) * mzm[...]
        div = dvxdx + dvzdz
        illum_ref[...] = illum_ref[...] + div * div

        cav = ca_s[...]
        clv = cl_s[...]
        sxx[...] = sxx[...] + cav * dvxdx + clv * dvzdz
        szz[...] = szz[...] + cav * dvzdz + clv * dvxdx

        # source injection: RMW of one (1, 128) lane tile on the source row
        srow = src_row * s_ref[t]
        sxx[SRC_Z:SRC_Z + 1, 0:128] = sxx[SRC_Z:SRC_Z + 1, 0:128] + srow
        szz[SRC_Z:SRC_Z + 1, 0:128] = szz[SRC_Z:SRC_Z + 1, 0:128] + srow

        # shear stress (cm * masks folded into cm_xm / cm_zp)
        sxz[...] = (sxz[...]
                    + cm_xm[...] * (vz_new - pltpu.roll(vz_new, 1, 1))
                    + cm_zp[...] * (pltpu.roll(vx_new, nz - 1, 0) - vx_new))
        return carry

    # unroll=1 on purpose: 28 vregs/field vs 64-vreg file -> unrolling spills
    lax.fori_loop(0, nt, step, 0)

    # final wavefield snapshot, written once (last vz of the loop)
    uu_ref[...] = vz[...]


def fd2d_pallas(input_vector, temp, s, den, vp0, vs0):
    nt = int(s.shape[0])
    xpad = NXP - NX

    # pad(model, 40, 2): edge-replication; then lane-pad x 200 -> 256 (edge)
    vp1 = jnp.pad(jnp.pad(vp0, NBC, mode="edge"),
                  ((0, 0), (0, xpad)), mode="edge")
    vs1 = jnp.pad(jnp.pad(vs0, NBC, mode="edge"),
                  ((0, 0), (0, xpad)), mode="edge")
    denp = jnp.pad(den, ((0, 0), (0, xpad)), mode="edge")
    tempp = jnp.pad(temp, ((0, 0), (0, xpad)), mode="edge")

    def full(shape):
        return pl.BlockSpec(shape, lambda g, iv, sw: (0, 0))

    field_bytes = NZ * NXP * 4
    seis_bytes = nt * NXP * 4
    # 4 inputs (x2 buffers) + uu/illum (x2) + seis (x2) + 15 scratch + headroom
    vmem_bytes = (4 * 2 + 2 * 2 + 15) * field_bytes + 2 * seis_bytes + (4 << 20)

    cost = pl.CostEstimate(
        flops=nt * 35 * NZ * NXP,                     # ~35 VPU ops/elem/step
        transcendentals=0,
        bytes_accessed=6 * field_bytes + seis_bytes + (nt + 8) * 4,
    )

    uu, seis, illum = pl.pallas_call(
        _fd2d_kernel,
        out_shape=(jax.ShapeDtypeStruct((NZ, NXP), jnp.float32),   # uu1
                   jax.ShapeDtypeStruct((nt, NXP), jnp.float32),   # seismo_v_d
                   jax.ShapeDtypeStruct((NZ, NXP), jnp.float32)),  # illum_div1
        grid_spec=pltpu.PrefetchScalarGridSpec(
            num_scalar_prefetch=2,
            grid=(1,),
            in_specs=[full((NZ, NXP)) for _ in range(4)],
            out_specs=(full((NZ, NXP)), full((nt, NXP)), full((NZ, NXP))),
            scratch_shapes=[pltpu.VMEM((NZ, NXP), jnp.float32)
                            for _ in range(15)]),
        compiler_params=pltpu.CompilerParams(
            dimension_semantics=("arbitrary",),
            vmem_limit_bytes=int(vmem_bytes)),
        cost_estimate=cost,
    )(input_vector, s, vp1, vs1, denp, tempp)

    # crop the lane padding back to the logical 200-wide grid
    return uu[:, :NX], seis[:, :NX], illum[:, :NX]


# --------------------------------------------------------------------------- #
# fd2d module equivalent
# --------------------------------------------------------------------------- #
class FD2D:
    def __init__(self, vp0, vs0):
        self.params1 = vp0      # (26, 120)
        self.params2 = vs0      # (26, 120)

    def __call__(self, input_vector, temp, s, den):
        return fd2d_pallas(input_vector, temp, s, den,
                           self.params1, self.params2)


if __name__ == "__main__":
    key = jax.random.PRNGKey(0)
    k1, k2 = jax.random.split(key, 2)

    # deterministic parameter / input construction (synthetic, no checkpoint)
    vp0 = 2500.0 + 500.0 * jax.random.uniform(k1, (NZ_M, NX_M), jnp.float32)
    vs0 = vp0 / 1.732
    den0 = 1800.0 + 400.0 * jax.random.uniform(k2, (NZ_M, NX_M), jnp.float32)
    den = jnp.pad(den0, NBC, mode="edge")       # padded density (106, 200)

    temp = jnp.ones((NZ, NX), jnp.float32)      # sponge taper (identity here)

    nt = 8
    dt, dx = 5e-4, 10.0
    tt = (jnp.arange(nt, dtype=jnp.float32) - 3.0) * dt
    arg = (jnp.pi * 15.0 * tt) ** 2
    s = 1e3 * (1.0 - 2.0 * arg) * jnp.exp(-arg)  # Ricker source wavelet (nt,)

    # input_vector[3] = dt/dx, as used by fd2d.forward
    input_vector = jnp.array([NZ, NX, nt, dt / dx, 0, 0, 0, 0], jnp.float32)

    model = FD2D(vp0, vs0)
    uu1, seismo_v_d, illum_div1 = model(input_vector, temp, s, den)
    jax.block_until_ready((uu1, seismo_v_d, illum_div1))

    assert uu1.shape == (NZ, NX)
    assert seismo_v_d.shape == (nt, NX)
    assert illum_div1.shape == (NZ, NX)
    assert bool(jnp.all(jnp.isfinite(uu1)))
    assert bool(jnp.all(jnp.isfinite(seismo_v_d)))
    assert bool(jnp.all(jnp.isfinite(illum_div1)))
    print("KERNEL_OK")
</pallas_src>

<mosaic_0001>
module attributes {stable_mosaic.version = 11 : i64} {
  func.func @_fd2d_kernel(%arg0: i32, %arg1: memref<8xf32, #tpu.memory_space<smem>>, %arg2: memref<8xf32, #tpu.memory_space<smem>>, %arg3: memref<106x256xf32, #tpu.memory_space<vmem>>, %arg4: memref<106x256xf32, #tpu.memory_space<vmem>>, %arg5: memref<106x256xf32, #tpu.memory_space<vmem>>, %arg6: memref<106x256xf32, #tpu.memory_space<vmem>>, %arg7: memref<106x256xf32, #tpu.memory_space<vmem>>, %arg8: memref<8x256xf32, #tpu.memory_space<vmem>>, %arg9: memref<106x256xf32, #tpu.memory_space<vmem>>, %arg10: memref<106x256xf32, #tpu.memory_space<vmem>>, %arg11: memref<106x256xf32, #tpu.memory_space<vmem>>, %arg12: memref<106x256xf32, #tpu.memory_space<vmem>>, %arg13: memref<106x256xf32, #tpu.memory_space<vmem>>, %arg14: memref<106x256xf32, #tpu.memory_space<vmem>>, %arg15: memref<106x256xf32, #tpu.memory_space<vmem>>, %arg16: memref<106x256xf32, #tpu.memory_space<vmem>>, %arg17: memref<106x256xf32, #tpu.memory_space<vmem>>, %arg18: memref<106x256xf32, #tpu.memory_space<vmem>>, %arg19: memref<106x256xf32, #tpu.memory_space<vmem>>, %arg20: memref<106x256xf32, #tpu.memory_space<vmem>>, %arg21: memref<106x256xf32, #tpu.memory_space<vmem>>, %arg22: memref<106x256xf32, #tpu.memory_space<vmem>>, %arg23: memref<106x256xf32, #tpu.memory_space<vmem>>, %arg24: memref<106x256xf32, #tpu.memory_space<vmem>>) attributes {dimension_semantics = [#tpu.dimension_semantics<arbitrary>], iteration_bounds = array<i64: 1>, scalar_prefetch = 2 : i64, scratch_operands = 15 : i64, tpu.core_type = #tpu.core_type<tc>, window_params = [{pipeline_mode = #tpu.pipeline_mode<synchronous>, transform_indices = @transform_0, window_bounds = array<i64: 106, 256>}, {pipeline_mode = #tpu.pipeline_mode<synchronous>, transform_indices = @transform_1, window_bounds = array<i64: 106, 256>}, {pipeline_mode = #tpu.pipeline_mode<synchronous>, transform_indices = @transform_2, window_bounds = array<i64: 106, 256>}, {pipeline_mode = #tpu.pipeline_mode<synchronous>, transform_indices = @transform_3, window_bounds = array<i64: 106, 256>}, {pipeline_mode = #tpu.pipeline_mode<synchronous>, transform_indices = @transform_4, window_bounds = array<i64: 106, 256>}, {pipeline_mode = #tpu.pipeline_mode<synchronous>, transform_indices = @transform_5, window_bounds = array<i64: 8, 256>}, {pipeline_mode = #tpu.pipeline_mode<synchronous>, transform_indices = @transform_6, window_bounds = array<i64: 106, 256>}]} {
    %c3 = arith.constant 3 : index
    %0 = memref.load %arg1[%c3] : memref<8xf32, #tpu.memory_space<smem>>
    %c0 = arith.constant 0 : index
    %c0_0 = arith.constant 0 : index
    %1 = vector.load %arg5[%c0, %c0_0] : memref<106x256xf32, #tpu.memory_space<vmem>>, vector<106x256xf32>
    %c0_1 = arith.constant 0 : index
    %c0_2 = arith.constant 0 : index
    %2 = vector.load %arg6[%c0_1, %c0_2] : memref<106x256xf32, #tpu.memory_space<vmem>>, vector<106x256xf32>
    %c0_3 = arith.constant 0 : index
    %c0_4 = arith.constant 0 : index
    %3 = vector.load %arg3[%c0_3, %c0_4] : memref<106x256xf32, #tpu.memory_space<vmem>>, vector<106x256xf32>
    %c0_5 = arith.constant 0 : index
    %c0_6 = arith.constant 0 : index
    %4 = vector.load %arg3[%c0_5, %c0_6] : memref<106x256xf32, #tpu.memory_space<vmem>>, vector<106x256xf32>
    %5 = arith.mulf %3, %4 : vector<106x256xf32>
    %6 = arith.mulf %5, %1 : vector<106x256xf32>
    %c0_7 = arith.constant 0 : index
    %c0_8 = arith.constant 0 : index
    %7 = vector.load %arg4[%c0_7, %c0_8] : memref<106x256xf32, #tpu.memory_space<vmem>>, vector<106x256xf32>
    %c0_9 = arith.constant 0 : index
    %c0_10 = arith.constant 0 : index
    %8 = vector.load %arg4[%c0_9, %c0_10] : memref<106x256xf32, #tpu.memory_space<vmem>>, vector<106x256xf32>
    %9 = arith.mulf %7, %8 : vector<106x256xf32>
    %10 = arith.mulf %9, %1 : vector<106x256xf32>
    %11 = vector.broadcast %0 : f32 to vector<106x256xf32>
    %12 = arith.mulf %11, %10 : vector<106x256xf32>
    %13 = vector.broadcast %0 : f32 to vector<106x256xf32>
    %14 = arith.mulf %13, %6 : vector<106x256xf32>
    %c0_11 = arith.constant 0 : index
    %c0_12 = arith.constant 0 : index
    %15 = vector.load %arg10[%c0_11, %c0_12] : memref<106x256xf32, #tpu.memory_space<vmem>>, vector<106x256xf32>
    tpu.vector_store %arg10[%c0_11, %c0_12], %14 {strides = array<i32>} : memref<106x256xf32, #tpu.memory_space<vmem>>, vector<106x256xf32>,
    %cst = arith.constant 2.000000e+00 : f32
    %16 = vector.broadcast %cst : f32 to vector<106x256xf32>
    %17 = arith.mulf %16, %10 : vector<106x256xf32>
    %18 = arith.subf %6, %17 : vector<106x256xf32>
    %19 = vector.broadcast %0 : f32 to vector<106x256xf32>
    %20 = arith.mulf %19, %18 : vector<106x256xf32>
    %c0_13 = arith.constant 0 : index
    %c0_14 = arith.constant 0 : index
    %21 = vector.load %arg11[%c0_13, %c0_14] : memref<106x256xf32, #tpu.memory_space<vmem>>, vector<106x256xf32>
    tpu.vector_store %arg11[%c0_13, %c0_14], %20 {strides = array<i32>} : memref<106x256xf32, #tpu.memory_space<vmem>>, vector<106x256xf32>,
    %22 = tpu.iota {dimensions = array<i32: 0>} : vector<106x256xi32>
    %23 = tpu.iota {dimensions = array<i32: 1>} : vector<106x256xi32>
    %c105_i32 = arith.constant 105 : i32
    %24 = vector.broadcast %c105_i32 : i32 to vector<106x256xi32>
    %25 = arith.cmpi slt, %22, %24 : vector<106x256xi32>
    %26 = arith.extui %25 : vector<106x256xi1> to vector<106x256xi32>
    %27 = arith.sitofp %26 : vector<106x256xi32> to vector<106x256xf32>
    %c0_i32 = arith.constant 0 : i32
    %28 = vector.broadcast %c0_i32 : i32 to vector<106x256xi32>
    %29 = arith.cmpi sgt, %22, %28 : vector<106x256xi32>
    %30 = arith.extui %29 : vector<106x256xi1> to vector<106x256xi32>
    %31 = arith.sitofp %30 : vector<106x256xi32> to vector<106x256xf32>
    %c199_i32 = arith.constant 199 : i32
    %32 = vector.broadcast %c199_i32 : i32 to vector<106x256xi32>
    %33 = arith.cmpi slt, %23, %32 : vector<106x256xi32>
    %34 = arith.extui %33 : vector<106x256xi1> to vector<106x256xi32>
    %35 = arith.sitofp %34 : vector<106x256xi32> to vector<106x256xf32>
    %c0_i32_15 = arith.constant 0 : i32
    %36 = vector.broadcast %c0_i32_15 : i32 to vector<106x256xi32>
    %37 = arith.cmpi sgt, %23, %36 : vector<106x256xi32>
    %38 = arith.extui %37 : vector<106x256xi1> to vector<106x256xi32>
    %39 = arith.sitofp %38 : vector<106x256xi32> to vector<106x256xf32>
    %40 = vector.broadcast %0 : f32 to vector<106x256xf32>
    %41 = arith.divf %40, %1 : vector<106x256xf32>
    %42 = arith.mulf %2, %41 : vector<106x256xf32>
    %43 = arith.mulf %42, %39 : vector<106x256xf32>
    %c0_16 = arith.constant 0 : index
    %c0_17 = arith.constant 0 : index
    %44 = vector.load %arg12[%c0_16, %c0_17] : memref<106x256xf32, #tpu.memory_space<vmem>>, vector<106x256xf32>
    tpu.vector_store %arg12[%c0_16, %c0_17], %43 {strides = array<i32>} : memref<106x256xf32, #tpu.memory_space<vmem>>, vector<106x256xf32>,
    %45 = arith.mulf %42, %31 : vector<106x256xf32>
    %c0_18 = arith.constant 0 : index
    %c0_19 = arith.constant 0 : index
    %46 = vector.load %arg13[%c0_18, %c0_19] : memref<106x256xf32, #tpu.memory_space<vmem>>, vector<106x256xf32>
    tpu.vector_store %arg13[%c0_18, %c0_19], %45 {strides = array<i32>} : memref<106x256xf32, #tpu.memory_space<vmem>>, vector<106x256xf32>,
    %47 = arith.mulf %42, %35 : vector<106x256xf32>
    %c0_20 = arith.constant 0 : index
    %c0_21 = arith.constant 0 : index
    %48 = vector.load %arg14[%c0_20, %c0_21] : memref<106x256xf32, #tpu.memory_space<vmem>>, vector<106x256xf32>
    tpu.vector_store %arg14[%c0_20, %c0_21], %47 {strides = array<i32>} : memref<106x256xf32, #tpu.memory_space<vmem>>, vector<106x256xf32>,
    %49 = arith.mulf %42, %27 : vector<106x256xf32>
    %c0_22 = arith.constant 0 : index
    %c0_23 = arith.constant 0 : index
    %50 = vector.load %arg15[%c0_22, %c0_23] : memref<106x256xf32, #tpu.memory_space<vmem>>, vector<106x256xf32>
    tpu.vector_store %arg15[%c0_22, %c0_23], %49 {strides = array<i32>} : memref<106x256xf32, #tpu.memory_space<vmem>>, vector<106x256xf32>,
    %51 = arith.mulf %12, %39 : vector<106x256xf32>
    %c0_24 = arith.constant 0 : index
    %c0_25 = arith.constant 0 : index
    %52 = vector.load %arg16[%c0_24, %c0_25] : memref<106x256xf32, #tpu.memory_space<vmem>>, vector<106x256xf32>
    tpu.vector_store %arg16[%c0_24, %c0_25], %51 {strides = array<i32>} : memref<106x256xf32, #tpu.memory_space<vmem>>, vector<106x256xf32>,
    %53 = arith.mulf %12, %27 : vector<106x256xf32>
    %c0_26 = arith.constant 0 : index
    %c0_27 = arith.constant 0 : index
    %54 = vector.load %arg17[%c0_26, %c0_27] : memref<106x256xf32, #tpu.memory_space<vmem>>, vector<106x256xf32>
    tpu.vector_store %arg17[%c0_26, %c0_27], %53 {strides = array<i32>} : memref<106x256xf32, #tpu.memory_space<vmem>>, vector<106x256xf32>,
    %c0_28 = arith.constant 0 : index
    %c0_29 = arith.constant 0 : index
    %55 = vector.load %arg18[%c0_28, %c0_29] : memref<106x256xf32, #tpu.memory_space<vmem>>, vector<106x256xf32>
    tpu.vector_store %arg18[%c0_28, %c0_29], %35 {strides = array<i32>} : memref<106x256xf32, #tpu.memory_space<vmem>>, vector<106x256xf32>,
    %c0_30 = arith.constant 0 : index
    %c0_31 = arith.constant 0 : index
    %56 = vector.load %arg19[%c0_30, %c0_31] : memref<106x256xf32, #tpu.memory_space<vmem>>, vector<106x256xf32>
    tpu.vector_store %arg19[%c0_30, %c0_31], %31 {strides = array<i32>} : memref<106x256xf32, #tpu.memory_space<vmem>>, vector<106x256xf32>,
    %cst_32 = arith.constant 0.000000e+00 : f32
    %57 = vector.broadcast %cst_32 : f32 to vector<106x256xf32>
    %c0_33 = arith.constant 0 : index
    %c0_34 = arith.constant 0 : index
    %58 = vector.load %arg20[%c0_33, %c0_34] : memref<106x256xf32, #tpu.memory_space<vmem>>, vector<106x256xf32>
    tpu.vector_store %arg20[%c0_33, %c0_34], %57 {strides = array<i32>} : memref<106x256xf32, #tpu.memory_space<vmem>>, vector<106x256xf32>,
    %c0_35 = arith.constant 0 : index
    %c0_36 = arith.constant 0 : index
    %59 = vector.load %arg21[%c0_35, %c0_36] : memref<106x256xf32, #tpu.memory_space<vmem>>, vector<106x256xf32>
    tpu.vector_store %arg21[%c0_35, %c0_36], %57 {strides = array<i32>} : memref<106x256xf32, #tpu.memory_space<vmem>>, vector<106x256xf32>,
    %c0_37 = arith.constant 0 : index
    %c0_38 = arith.constant 0 : index
    %60 = vector.load %arg22[%c0_37, %c0_38] : memref<106x256xf32, #tpu.memory_space<vmem>>, vector<106x256xf32>
    tpu.vector_store %arg22[%c0_37, %c0_38], %57 {strides = array<i32>} : memref<106x256xf32, #tpu.memory_space<vmem>>, vector<106x256xf32>,
    %c0_39 = arith.constant 0 : index
    %c0_40 = arith.constant 0 : index
    %61 = vector.load %arg23[%c0_39, %c0_40] : memref<106x256xf32, #tpu.memory_space<vmem>>, vector<106x256xf32>
    tpu.vector_store %arg23[%c0_39, %c0_40], %57 {strides = array<i32>} : memref<106x256xf32, #tpu.memory_space<vmem>>, vector<106x256xf32>,
    %c0_41 = arith.constant 0 : index
    %c0_42 = arith.constant 0 : index
    %62 = vector.load %arg24[%c0_41, %c0_42] : memref<106x256xf32, #tpu.memory_space<vmem>>, vector<106x256xf32>
    tpu.vector_store %arg24[%c0_41, %c0_42], %57 {strides = array<i32>} : memref<106x256xf32, #tpu.memory_space<vmem>>, vector<106x256xf32>,
    %c0_43 = arith.constant 0 : index
    %c0_44 = arith.constant 0 : index
    %63 = vector.load %arg9[%c0_43, %c0_44] : memref<106x256xf32, #tpu.memory_space<vmem>>, vector<106x256xf32>
    tpu.vector_store %arg9[%c0_43, %c0_44], %57 {strides = array<i32>} : memref<106x256xf32, #tpu.memory_space<vmem>>, vector<106x256xf32>,
    %64 = tpu.iota {dimensions = array<i32: 1>} : vector<1x128xi32>
    %c100_i32 = arith.constant 100 : i32
    %65 = vector.broadcast %c100_i32 : i32 to vector<1x128xi32>
    %66 = arith.cmpi eq, %64, %65 : vector<1x128xi32>
    %67 = arith.extui %66 : vector<1x128xi1> to vector<1x128xi32>
    %68 = arith.sitofp %67 : vector<1x128xi32> to vector<1x128xf32>
    %c0_i32_45 = arith.constant 0 : i32
    %c8_i32 = arith.constant 8 : i32
    %69 = arith.addi %c0_i32_45, %c8_i32 : i32
    %c1_i32 = arith.constant 1 : i32
    scf.for %arg25 = %c0_i32_45 to %69 step %c1_i32  : i32 {
      %c0_51 = arith.constant 0 : index
      %c0_52 = arith.constant 0 : index
      %72 = vector.load %arg6[%c0_51, %c0_52] : memref<106x256xf32, #tpu.memory_space<vmem>>, vector<106x256xf32>
      %c0_53 = arith.constant 0 : index
      %c0_54 = arith.constant 0 : index
      %73 = vector.load %arg22[%c0_53, %c0_54] : memref<106x256xf32, #tpu.memory_space<vmem>>, vector<106x256xf32>
      %c0_55 = arith.constant 0 : index
      %c0_56 = arith.constant 0 : index
      %74 = vector.load %arg24[%c0_55, %c0_56] : memref<106x256xf32, #tpu.memory_space<vmem>>, vector<106x256xf32>
      %c0_57 = arith.constant 0 : index
      %c0_58 = arith.constant 0 : index
      %75 = vector.load %arg20[%c0_57, %c0_58] : memref<106x256xf32, #tpu.memory_space<vmem>>, vector<106x256xf32>
      %76 = arith.mulf %72, %75 : vector<106x256xf32>
      %c0_59 = arith.constant 0 : index
      %c0_60 = arith.constant 0 : index
      %77 = vector.load %arg12[%c0_59, %c0_60] : memref<106x256xf32, #tpu.memory_space<vmem>>, vector<106x256xf32>
      %c1_i32_61 = arith.constant 1 : i32
      %78 = tpu.dynamic_rotate %73 by %c1_i32_61 dim 1 : vector<106x256xf32>, i32 -> vector<106x256xf32>
      %79 = arith.subf %73, %78 : vector<106x256xf32>
      %80 = arith.mulf %77, %79 : vector<106x256xf32>
      %81 = arith.addf %76, %80 : vector<106x256xf32>
      %c0_62 = arith.constant 0 : index
      %c0_63 = arith.constant 0 : index
      %82 = vector.load %arg13[%c0_62, %c0_63] : memref<106x256xf32, #tpu.memory_space<vmem>>, vector<106x256xf32>
      %c1_i32_64 = arith.constant 1 : i32
      %83 = tpu.dynamic_rotate %74 by %c1_i32_64 dim 0 : vector<106x256xf32>, i32 -> vector<106x256xf32>
      %84 = arith.subf %74, %83 : vector<106x256xf32>
      %85 = arith.mulf %82, %84 : vector<106x256xf32>
      %86 = arith.addf %81, %85 : vector<106x256xf32>
      %c0_65 = arith.constant 0 : index
      %c0_66 = arith.constant 0 : index
      %87 = vector.load %arg20[%c0_65, %c0_66] : memref<106x256xf32, #tpu.memory_space<vmem>>, vector<106x256xf32>
      tpu.vector_store %arg20[%c0_65, %c0_66], %86 {strides = array<i32>} : memref<106x256xf32, #tpu.memory_space<vmem>>, vector<106x256xf32>,
      %c0_67 = arith.constant 0 : index
      %c0_68 = arith.constant 0 : index
      %88 = vector.load %arg23[%c0_67, %c0_68] : memref<106x256xf32, #tpu.memory_space<vmem>>, vector<106x256xf32>
      %c0_69 = arith.constant 0 : index
      %c0_70 = arith.constant 0 : index
      %89 = vector.load %arg21[%c0_69, %c0_70] : memref<106x256xf32, #tpu.memory_space<vmem>>, vector<106x256xf32>
      %90 = arith.mulf %72, %89 : vector<106x256xf32>
      %c0_71 = arith.constant 0 : index
      %c0_72 = arith.constant 0 : index
      %91 = vector.load %arg14[%c0_71, %c0_72] : memref<106x256xf32, #tpu.memory_space<vmem>>, vector<106x256xf32>
      %c255_i32 = arith.constant 255 : i32
      %92 = tpu.dynamic_rotate %74 by %c255_i32 dim 1 : vector<106x256xf32>, i32 -> vector<106x256xf32>
      %93 = arith.subf %92, %74 : vector<106x256xf32>
      %94 = arith.mulf %91, %93 : vector<106x256xf32>
      %95 = arith.addf %90, %94 : vector<106x256xf32>
      %c0_73 = arith.constant 0 : index
      %c0_74 = arith.constant 0 : index
      %96 = vector.load %arg15[%c0_73, %c0_74] : memref<106x256xf32, #tpu.memory_space<vmem>>, vector<106x256xf32>
      %c105_i32_75 = arith.constant 105 : i32
      %97 = tpu.dynamic_rotate %88 by %c105_i32_75 dim 0 : vector<106x256xf32>, i32 -> vector<106x256xf32>
      %98 = arith.subf %97, %88 : vector<106x256xf32>
      %99 = arith.mulf %96, %98 : vector<106x256xf32>
      %100 = arith.addf %95, %99 : vector<106x256xf32>
      %c0_76 = arith.constant 0 : index
      %c0_77 = arith.constant 0 : index
      %101 = vector.load %arg21[%c0_76, %c0_77] : memref<106x256xf32, #tpu.memory_space<vmem>>, vector<106x256xf32>
      tpu.vector_store %arg21[%c0_76, %c0_77], %100 {strides = array<i32>} : memref<106x256xf32, #tpu.memory_space<vmem>>, vector<106x256xf32>,
      %c41 = arith.constant 41 : index
      %c0_78 = arith.constant 0 : index
      %102 = vector.load %arg21[%c41, %c0_78] : memref<106x256xf32, #tpu.memory_space<vmem>>, vector<1x256xf32>
      %103 = arith.index_cast %arg25 : i32 to index
      %c0_79 = arith.constant 0 : index
      %104 = vector.load %arg8[%103, %c0_79] : memref<8x256xf32, #tpu.memory_space<vmem>>, vector<1x256xf32>
      tpu.vector_store %arg8[%103, %c0_79], %102 {strides = array<i32>} : memref<8x256xf32, #tpu.memory_space<vmem>>, vector<1x256xf32>,
      %c255_i32_80 = arith.constant 255 : i32
      %105 = tpu.dynamic_rotate %86 by %c255_i32_80 dim 1 : vector<106x256xf32>, i32 -> vector<106x256xf32>
      %106 = arith.subf %105, %86 : vector<106x256xf32>
      %c0_81 = arith.constant 0 : index
      %c0_82 = arith.constant 0 : index
      %107 = vector.load %arg18[%c0_81, %c0_82] : memref<106x256xf32, #tpu.memory_space<vmem>>, vector<106x256xf32>
      %108 = arith.mulf %106, %107 : vector<106x256xf32>
      %c1_i32_83 = arith.constant 1 : i32
      %109 = tpu.dynamic_rotate %100 by %c1_i32_83 dim 0 : vector<106x256xf32>, i32 -> vector<106x256xf32>
      %110 = arith.subf %100, %109 : vector<106x256xf32>
      %c0_84 = arith.constant 0 : index
      %c0_85 = arith.constant 0 : index
      %111 = vector.load %arg19[%c0_84, %c0_85] : memref<106x256xf32, #tpu.memory_space<vmem>>, vector<106x256xf32>
      %112 = arith.mulf %110, %111 : vector<106x256xf32>
      %113 = arith.addf %108, %112 : vector<106x256xf32>
      %c0_86 = arith.constant 0 : index
      %c0_87 = arith.constant 0 : index
      %114 = vector.load %arg9[%c0_86, %c0_87] : memref<106x256xf32, #tpu.memory_space<vmem>>, vector<106x256xf32>
      %115 = arith.mulf %113, %113 : vector<106x256xf32>
      %116 = arith.addf %114, %115 : vector<106x256xf32>
      %c0_88 = arith.constant 0 : index
      %c0_89 = arith.constant 0 : index
      %117 = vector.load %arg9[%c0_88, %c0_89] : memref<106x256xf32, #tpu.memory_space<vmem>>, vector<106x256xf32>
      tpu.vector_store %arg9[%c0_88, %c0_89], %116 {strides = array<i32>} : memref<106x256xf32, #tpu.memory_space<vmem>>, vector<106x256xf32>,
      %c0_90 = arith.constant 0 : index
      %c0_91 = arith.constant 0 : index
      %118 = vector.load %arg10[%c0_90, %c0_91] : memref<106x256xf32, #tpu.memory_space<vmem>>, vector<106x256xf32>
      %c0_92 = arith.constant 0 : index
      %c0_93 = arith.constant 0 : index
      %119 = vector.load %arg11[%c0_92, %c0_93] : memref<106x256xf32, #tpu.memory_space<vmem>>, vector<106x256xf32>
      %c0_94 = arith.constant 0 : index
      %c0_95 = arith.constant 0 : index
      %120 = vector.load %arg22[%c0_94, %c0_95] : memref<106x256xf32, #tpu.memory_space<vmem>>, vector<106x256xf32>
      %121 = arith.mulf %118, %108 : vector<106x256xf32>
      %122 = arith.addf %120, %121 : vector<106x256xf32>
      %123 = arith.mulf %119, %112 : vector<106x256xf32>
      %124 = arith.addf %122, %123 : vector<106x256xf32>
      %c0_96 = arith.constant 0 : index
      %c0_97 = arith.constant 0 : index
      %125 = vector.load %arg22[%c0_96, %c0_97] : memref<106x256xf32, #tpu.memory_space<vmem>>, vector<106x256xf32>
      tpu.vector_store %arg22[%c0_96, %c0_97], %124 {strides = array<i32>} : memref<106x256xf32, #tpu.memory_space<vmem>>, vector<106x256xf32>,
      %c0_98 = arith.constant 0 : index
      %c0_99 = arith.constant 0 : index
      %126 = vector.load %arg23[%c0_98, %c0_99] : memref<106x256xf32, #tpu.memory_space<vmem>>, vector<106x256xf32>
      %127 = arith.mulf %118, %112 : vector<106x256xf32>
      %128 = arith.addf %126, %127 : vector<106x256xf32>
      %129 = arith.mulf %119, %108 : vector<106x256xf32>
      %130 = arith.addf %128, %129 : vector<106x256xf32>
      %c0_100 = arith.constant 0 : index
      %c0_101 = arith.constant 0 : index
      %131 = vector.load %arg23[%c0_100, %c0_101] : memref<106x256xf32, #tpu.memory_space<vmem>>, vector<106x256xf32>
      tpu.vector_store %arg23[%c0_100, %c0_101], %130 {strides = array<i32>} : memref<106x256xf32, #tpu.memory_space<vmem>>, vector<106x256xf32>,
      %132 = arith.index_cast %arg25 : i32 to index
      %133 = memref.load %arg2[%132] : memref<8xf32, #tpu.memory_space<smem>>
      %134 = vector.broadcast %133 : f32 to vector<1x128xf32>
      %135 = arith.mulf %68, %134 : vector<1x128xf32>
      %c42 = arith.constant 42 : index
      %c0_102 = arith.constant 0 : index
      %136 = vector.load %arg22[%c42, %c0_102] : memref<106x256xf32, #tpu.memory_space<vmem>>, vector<1x128xf32>
      %137 = arith.addf %136, %135 : vector<1x128xf32>
      %c42_103 = arith.constant 42 : index
      %c0_104 = arith.constant 0 : index
      %138 = vector.load %arg22[%c42_103, %c0_104] : memref<106x256xf32, #tpu.memory_space<vmem>>, vector<1x128xf32>
      tpu.vector_store %arg22[%c42_103, %c0_104], %137 {strides = array<i32>} : memref<106x256xf32, #tpu.memory_space<vmem>>, vector<1x128xf32>,
      %c42_105 = arith.constant 42 : index
      %c0_106 = arith.constant 0 : index
      %139 = vector.load %arg23[%c42_105, %c0_106] : memref<106x256xf32, #tpu.memory_space<vmem>>, vector<1x128xf32>
      %140 = arith.addf %139, %135 : vector<1x128xf32>
      %c42_107 = arith.constant 42 : index
      %c0_108 = arith.constant 0 : index
      %141 = vector.load %arg23[%c42_107, %c0_108] : memref<106x256xf32, #tpu.memory_space<vmem>>, vector<1x128xf32>
      tpu.vector_store %arg23[%c42_107, %c0_108], %140 {strides = array<i32>} : memref<106x256xf32, #tpu.memory_space<vmem>>, vector<1x128xf32>,
      %c0_109 = arith.constant 0 : index
      %c0_110 = arith.constant 0 : index
      %142 = vector.load %arg24[%c0_109, %c0_110] : memref<106x256xf32, #tpu.memory_space<vmem>>, vector<106x256xf32>
      %c0_111 = arith.constant 0 : index
      %c0_112 = arith.constant 0 : index
      %143 = vector.load %arg16[%c0_111, %c0_112] : memref<106x256xf32, #tpu.memory_space<vmem>>, vector<106x256xf32>
      %c1_i32_113 = arith.constant 1 : i32
      %144 = tpu.dynamic_rotate %100 by %c1_i32_113 dim 1 : vector<106x256xf32>, i32 -> vector<106x256xf32>
      %145 = arith.subf %100, %144 : vector<106x256xf32>
      %146 = arith.mulf %143, %145 : vector<106x256xf32>
      %147 = arith.addf %142, %146 : vector<106x256xf32>
      %c0_114 = arith.constant 0 : index
      %c0_115 = arith.constant 0 : index
      %148 = vector.load %arg17[%c0_114, %c0_115] : memref<106x256xf32, #tpu.memory_space<vmem>>, vector<106x256xf32>
      %c105_i32_116 = arith.constant 105 : i32
      %149 = tpu.dynamic_rotate %86 by %c105_i32_116 dim 0 : vector<106x256xf32>, i32 -> vector<106x256xf32>
      %150 = arith.subf %149, %86 : vector<106x256xf32>
      %151 = arith.mulf %148, %150 : vector<106x256xf32>
      %152 = arith.addf %147, %151 : vector<106x256xf32>
      %c0_117 = arith.constant 0 : index
      %c0_118 = arith.constant 0 : index
      %153 = vector.load %arg24[%c0_117, %c0_118] : memref<106x256xf32, #tpu.memory_space<vmem>>, vector<106x256xf32>
      tpu.vector_store %arg24[%c0_117, %c0_118], %152 {strides = array<i32>} : memref<106x256xf32, #tpu.memory_space<vmem>>, vector<106x256xf32>,
    }
    %c8_i32_46 = arith.constant 8 : i32
    %c0_47 = arith.constant 0 : index
    %c0_48 = arith.constant 0 : index
    %70 = vector.load %arg21[%c0_47, %c0_48] : memref<106x256xf32, #tpu.memory_space<vmem>>, vector<106x256xf32>
    %c0_49 = arith.constant 0 : index
    %c0_50 = arith.constant 0 : index
    %71 = vector.load %arg7[%c0_49, %c0_50] : memref<106x256xf32, #tpu.memory_space<vmem>>, vector<106x256xf32>
    tpu.vector_store %arg7[%c0_49, %c0_50], %70 {strides = array<i32>} : memref<106x256xf32, #tpu.memory_space<vmem>>, vector<106x256xf32>,
    return
  }
  func.func @transform_0(%arg0: i32, %arg1: memref<8xf32, #tpu.memory_space<smem>>, %arg2: memref<8xf32, #tpu.memory_space<smem>>) -> (i32, i32) {
    %c0_i32 = arith.constant 0 : i32
    %c0_i32_0 = arith.constant 0 : i32
    %c0_i32_1 = arith.constant 0 : i32
    return %c0_i32, %c0_i32_0 : i32, i32
  }
  func.func @transform_1(%arg0: i32, %arg1: memref<8xf32, #tpu.memory_space<smem>>, %arg2: memref<8xf32, #tpu.memory_space<smem>>) -> (i32, i32) {
    %c0_i32 = arith.constant 0 : i32
    %c0_i32_0 = arith.constant 0 : i32
    %c0_i32_1 = arith.constant 0 : i32
    return %c0_i32, %c0_i32_0 : i32, i32
  }
  func.func @transform_2(%arg0: i32, %arg1: memref<8xf32, #tpu.memory_space<smem>>, %arg2: memref<8xf32, #tpu.memory_space<smem>>) -> (i32, i32) {
    %c0_i32 = arith.constant 0 : i32
    %c0_i32_0 = arith.constant 0 : i32
    %c0_i32_1 = arith.constant 0 : i32
    return %c0_i32, %c0_i32_0 : i32, i32
  }
  func.func @transform_3(%arg0: i32, %arg1: memref<8xf32, #tpu.memory_space<smem>>, %arg2: memref<8xf32, #tpu.memory_space<smem>>) -> (i32, i32) {
    %c0_i32 = arith.constant 0 : i32
    %c0_i32_0 = arith.constant 0 : i32
    %c0_i32_1 = arith.constant 0 : i32
    return %c0_i32, %c0_i32_0 : i32, i32
  }
  func.func @transform_4(%arg0: i32, %arg1: memref<8xf32, #tpu.memory_space<smem>>, %arg2: memref<8xf32, #tpu.memory_space<smem>>) -> (i32, i32) {
    %c0_i32 = arith.constant 0 : i32
    %c0_i32_0 = arith.constant 0 : i32
    %c0_i32_1 = arith.constant 0 : i32
    return %c0_i32, %c0_i32_0 : i32, i32
  }
  func.func @transform_5(%arg0: i32, %arg1: memref<8xf32, #tpu.memory_space<smem>>, %arg2: memref<8xf32, #tpu.memory_space<smem>>) -> (i32, i32) {
    %c0_i32 = arith.constant 0 : i32
    %c0_i32_0 = arith.constant 0 : i32
    %c0_i32_1 = arith.constant 0 : i32
    return %c0_i32, %c0_i32_0 : i32, i32
  }
  func.func @transform_6(%arg0: i32, %arg1: memref<8xf32, #tpu.memory_space<smem>>, %arg2: memref<8xf32, #tpu.memory_space<smem>>) -> (i32, i32) {
    %c0_i32 = arith.constant 0 : i32
    %c0_i32_0 = arith.constant 0 : i32
    %c0_i32_1 = arith.constant 0 : i32
    return %c0_i32, %c0_i32_0 : i32, i32
  }
}

</mosaic_0001>

<bundles_post_ra>
// kernel: tpu_custom_call.1
= control target key start
LH: loop header
LB: loop body
LE: loop exit
PB: predicated region body
PF: predicated region fallthrough
CT: control target
= control target key end

     0   :  { %s5088_s11 = smov [#allocation18]   ;;  %s5089_s12 = smov [#allocation19]   ;;  %s9329_s0 = inlined_call_operand.hbm [shape: f32[8], index: 0, kind: input, shape index: {}]   ;;  %s9330_s2 = inlined_call_operand.hbm [shape: f32[106,256], index: 2, kind: input, shape index: {}]   ;;  %s9331_s3 = inlined_call_operand.hbm [shape: f32[106,256], index: 3, kind: input, shape index: {}]   ;;  %s9332_s4 = inlined_call_operand.hbm [shape: f32[106,256], index: 4, kind: input, shape index: {}]   ;;  %s9333_s5 = inlined_call_operand.hbm [shape: f32[106,256], index: 5, kind: input, shape index: {}]   ;;  %s9334_s6 = inlined_call_operand.hbm [shape: f32[106,256], index: 6, kind: output, shape index: {0}]   ;;  %s9335_s7 = inlined_call_operand.hbm [shape: f32[8,256], index: 7, kind: output, shape index: {1}]   ;;  %s9336_s8 = inlined_call_operand.hbm [shape: f32[106,256], index: 8, kind: output, shape index: {2}]   ;;  %s9337_s1 = inlined_call_operand.hbm [shape: f32[8], index: 1, kind: input, shape index: {}]  }
   0x1   :  { %s15_s29 = sshll.u32 %s9329_s0, 4  ;;  %s20_s10 = sshll.u32 %s9337_s1, 4  ;;  %s16_s29 = int_to_ptr.hbm [resolvable:$true] %s15_s29  ;;  %s21_s10 = int_to_ptr.hbm [resolvable:$true] %s20_s10 }
   0x2   :  { %18 = dma.hbm_to_smem %s16_s29, 16, %s5088_s11, [#allocation17] }
   0x3   :  { %23 = dma.hbm_to_smem %s21_s10, 16, %s5089_s12, [#allocation17] }
   0x4   :  { %5072 = dma.done.wait [#allocation17], 32 }
   0x5   :  { %5073 = vsyncadd [#allocation17], 4294967264 }
   0x6   :  { %26 = sfence }
   0x7   :  { %27 = vsyncpa [#allocation21], 0 }
   0x8   :  { %28 = vsyncpa [#allocation24], 0 }
   0x9   :  { %29 = vsyncpa [#allocation27], 0 }
   0xa   :  { %30 = vsyncpa [#allocation22], 0 }
   0xb   :  { %31 = vsyncpa [#allocation30], 0  ;;  %s49_s14 = sshll.u32 %s9331_s3, 4  ;;  %s5090_s1 = smov [#allocation23]   ;;  %s50_s14 = int_to_ptr.hbm [resolvable:$true] %s49_s14 }
   0xc   :  { %s51_s15 = sshll.u32 %s5090_s1, 4  ;;  %s36_s18 = sshll.u32 %s9330_s2, 4  ;;  %s52_s15 = int_to_ptr.vmem [resolvable:$true] %s51_s15  ;;  %s37_s18 = int_to_ptr.hbm [resolvable:$true] %s36_s18 }
   0xd   :  { %s5091_s19 = smov 256   ;;  %s5092_s20 = smov 16  }
   0xe   :  { %57 = dma.hbm_to_vmem [thread:$0]  %s50_s14, 3584, %s52_s15, [#allocation24], %s5091_s19, %s5091_s19, %s5092_s20  }
   0xf   :  { %s5093_s21 = smov [#allocation20]   ;;  %s62_s3 = sshll.u32 %s9332_s4, 4  ;;  %s63_s3 = int_to_ptr.hbm [resolvable:$true] %s62_s3 }
  0x10   :  { %s38_s22 = sshll.u32 %s5093_s21, 4  ;;  %s75_s26 = sshll.u32 %s9333_s5, 4  ;;  %s39_s22 = int_to_ptr.vmem [resolvable:$true] %s38_s22  ;;  %s76_s26 = int_to_ptr.hbm [resolvable:$true] %s75_s26 }
  0x11   :  { %44 = dma.hbm_to_vmem [thread:$0]  %s37_s18, 3584, %s39_s22, [#allocation21], %s5091_s19, %s5091_s19, %s5092_s20  }
  0x12   :  { %s5094_s27 = smov [#allocation25]   ;;  %s5095_s29 = smov [#allocation26]  }
  0x13   :  { %s64_s28 = sshll.u32 %s5094_s27, 4  ;;  %s77_s4 = sshll.u32 %s5095_s29, 4  ;;  %s65_s28 = int_to_ptr.vmem [resolvable:$true] %s64_s28  ;;  %s78_s4 = int_to_ptr.vmem [resolvable:$true] %s77_s4 }
  0x14   :  { %70 = dma.hbm_to_vmem [thread:$0]  %s63_s3, 3584, %s65_s28, [#allocation24], %s5091_s19, %s5091_s19, %s5092_s20  }
  0x15   :  { %83 = dma.hbm_to_vmem [thread:$0]  %s76_s26, 3584, %s78_s4, [#allocation27], %s5091_s19, %s5091_s19, %s5092_s20  }
  0x16   :  { %5074 = dma.done.wait [#allocation21], 3584  }
  0x17   :  { %5075 = vsyncadd [#allocation21], 4294963712 }
  0x18   :  { %5076 = dma.done.wait [#allocation24], 7168  }
  0x19   :  { %5077 = vsyncadd [#allocation24], 4294960128 }
  0x1a   :  { %5078 = dma.done.wait [#allocation27], 3584  }
  0x1b   :  { %5079 = vsyncadd [#allocation27], 4294963712  ;;  %s4625_s5 = sld [smem:[#allocation18 + $0x3]]  ;;  %v157_v0 = vld [vmem:[#allocation20] sm:$0xff]  ;;  %v158_v2 = vld [vmem:[#allocation20 + $0x8] sm:$0xff]  ;;  %s6739_s30 = smov 0  }
  0x1c   :  { %v185_v1 = vmul.f32 %v157_v0, %v157_v0  ;;  %v159_v3 = vld [vmem:[#allocation20 + $0x10] sm:$0xff]  ;;  %v5178_v4 = vld [vmem:[#allocation25] sm:$0xff]  ;;  %v5180_v5 = vld [vmem:[#allocation25 + $0x8] sm:$0xff]  ;;  %v186_v6 = vmul.f32 %v158_v2, %v158_v2 }
  0x1d   :  { %v187_v7 = vmul.f32 %v159_v3, %v159_v3  ;;  %v160_v8 = vld [vmem:[#allocation20 + $0x18] sm:$0xff]  ;;  %v5185_v10 = vld [vmem:[#allocation25 + $0x10] sm:$0xff]  ;;  %v161_v12 = vld [vmem:[#allocation20 + $0x20] sm:$0xff]  ;;  %4657 = vrcp.f32 %v5178_v4  ;;  %vm641_vm0 = vweird.f32 %v5178_v4 }
  0x1e   :  { %v5183_v9 = vmul.f32 %v185_v1, %v5178_v4  ;;  %v188_v11 = vmul.f32 %v160_v8, %v160_v8  ;;  %v162_v13 = vld [vmem:[#allocation20 + $0x28] sm:$0xff]  ;;  %v5190_v15 = vmul.f32 %v186_v6, %v5180_v5  ;;  %v5195_v17 = vld [vmem:[#allocation25 + $0x18] sm:$0xff]  ;;  %v189_v18 = vmul.f32 %v161_v12, %v161_v12  ;;  %v163_v19 = vld [vmem:[#allocation20 + $0x30] sm:$0xff] }
  0x1f   :  { %v5193_v16 = vmul.f32 %v187_v7, %v5185_v10  ;;  %v5202_v22 = vld [vmem:[#allocation25 + $0x20] sm:$0xff]  ;;  %v190_v23 = vmul.f32 %v162_v13, %v162_v13  ;;  %v164_v24 = vld [vmem:[#allocation20 + $0x38] sm:$0xff]  ;;  %v5211_v29 = vld [vmem:[#allocation25 + $0x28] sm:$0xff]  ;;  %v191_v33 = vmul.f32 %v163_v19, %v163_v19  ;;  %4659 = vrcp.f32 %v5185_v10 }
  0x20   :  { %v5200_v21 = vmul.f32 %v188_v11, %v5195_v17  ;;  %v165_v25 = vld [vmem:[#allocation20 + $0x40] sm:$0xff]  ;;  %v5209_v28 = vmul.f32 %v189_v18, %v5202_v22  ;;  %v166_v30 = vld [vmem:[#allocation20 + $0x48] sm:$0xff]  ;;  %v167_v34 = vld [vmem:[#allocation20 + $0x50] sm:$0xff]  ;;  %v192_v37 = vmul.f32 %v164_v24, %v164_v24 }
  0x21   :  { %v5187_v14 = vstv %s4625_s5  ;;  %v5216_v32 = vmul.f32 %v190_v23, %v5211_v29  ;;  %v5220_v36 = vld [vmem:[#allocation25 + $0x30] sm:$0xff]  ;;  %v193_v38 = vmul.f32 %v165_v25, %v165_v25  ;;  %v168_v39 = vld [vmem:[#allocation20 + $0x58] sm:$0xff]  ;;  %v5229_v43 = vld [vmem:[#allocation25 + $0x40] sm:$0xff]  ;;  %v194_v44 = vmul.f32 %v166_v30, %v166_v30 }
  0x22   :  { %v354_v20 = vmul.f32 %v5187_v14, %v5183_v9  ;;  %v355_v26 = vmul.f32 %v5187_v14, %v5190_v15  ;;  %v356_v27 = vmul.f32 %v5187_v14, %v5193_v16  ;;  %v357_v31 = vmul.f32 %v5187_v14, %v5200_v21  ;;  %v5227_v42 = vld [vmem:[#allocation25 + $0x38] sm:$0xff]  ;;  %v5237_v47 = vld [vmem:[#allocation25 + $0x48] sm:$0xff]  ;;  %v169_v49 = vld [vmem:[#allocation20 + $0x60] sm:$0xff] }
  0x23   :  { %v358_v35 = vmul.f32 %v5187_v14, %v5209_v28  ;;  %v359_v40 = vmul.f32 %v5187_v14, %v5216_v32  ;;  %v5225_v41 = vmul.f32 %v191_v33, %v5220_v36  ;;  %v5232_v45 = vmul.f32 %v192_v37, %v5227_v42  ;;  %v5244_v52 = vld [vmem:[#allocation25 + $0x50] sm:$0xff]  ;;  %v170_v54 = vld [vmem:[#allocation20 + $0x68] sm:$0xff]  ;;  %v5253_v59 = vld [vmem:[#allocation25 + $0x58] sm:$0xff] }
  0x24   :  { %382 = vst [vmem:[#allocation2 + $0xb0] sm:$0xff] %v354_v20  ;;  %v5235_v46 = vmul.f32 %v193_v38, %v5229_v43  ;;  %v195_v48 = vmul.f32 %v167_v34, %v167_v34  ;;  %v5242_v51 = vmul.f32 %v194_v44, %v5237_v47  ;;  %v196_v53 = vmul.f32 %v168_v39, %v168_v39  ;;  %v171_v55 = vld [vmem:[#allocation20 + $0x70] sm:$0xff]  ;;  %v172_v60 = vld [vmem:[#allocation20 + $0x78] sm:$0xff]  ;;  %v173_v0 = vld [vmem:[#allocation20 + $0x80] sm:$0xff] }
  0x25   :  { %383 = vst [vmem:[#allocation2] sm:$0xff] %v355_v26  ;;  %v360_v50 = vmul.f32 %v5187_v14, %v5225_v41  ;;  %v361_v56 = vmul.f32 %v5187_v14, %v5232_v45  ;;  %v197_v63 = vmul.f32 %v169_v49, %v169_v49  ;;  %v5262_v2 = vld [vmem:[#allocation25 + $0x60] sm:$0xff]  ;;  %v198_v3 = vmul.f32 %v170_v54, %v170_v54  ;;  %v174_v7 = vld [vmem:[#allocation20 + $0x88] sm:$0xff]  ;;  %v5271_v13 = vld [vmem:[#allocation25 + $0x70] sm:$0xff] }
  0x26   :  { %384 = vst [vmem:[#allocation2 + $0xd8] sm:$0xff] %v356_v27  ;;  %v362_v57 = vmul.f32 %v5187_v14, %v5235_v46  ;;  %v5251_v58 = vmul.f32 %v195_v48, %v5244_v52  ;;  %v363_v61 = vmul.f32 %v5187_v14, %v5242_v51  ;;  %v5258_v62 = vmul.f32 %v196_v53, %v5253_v59  ;;  %v5269_v12 = vld [vmem:[#allocation25 + $0x68] sm:$0xff]  ;;  %v5279_v23 = vld [vmem:[#allocation25 + $0x78] sm:$0xff]  ;;  %v175_v25 = vld [vmem:[#allocation20 + $0x90] sm:$0xff] }
  0x27   :  { %385 = vst [vmem:[#allocation2 + $0x18] sm:$0xff] %v357_v31  ;;  %v199_v6 = vmul.f32 %v171_v55, %v171_v55  ;;  %v5267_v11 = vmul.f32 %v197_v63, %v5262_v2  ;;  %v200_v18 = vmul.f32 %v172_v60, %v172_v60  ;;  %v5274_v19 = vmul.f32 %v198_v3, %v5269_v12  ;;  %v5286_v30 = vld [vmem:[#allocation25 + $0x80] sm:$0xff]  ;;  %v176_v33 = vld [vmem:[#allocation20 + $0x98] sm:$0xff]  ;;  %v5295_v39 = vld [vmem:[#allocation25 + $0x88] sm:$0xff] }
  0x28   :  { %386 = vst [vmem:[#allocation2 + $0x50] sm:$0xff] %v358_v35  ;;  %v364_v1 = vmul.f32 %v5187_v14, %v5251_v58  ;;  %v365_v8 = vmul.f32 %v5187_v14, %v5258_v62  ;;  %v201_v24 = vmul.f32 %v173_v0, %v173_v0  ;;  %v202_v31 = vmul.f32 %v174_v7, %v174_v7  ;;  %v177_v34 = vld [vmem:[#allocation20 + $0xa0] sm:$0xff]  ;;  %v5304_v54 = vld [vmem:[#allocation25 + $0x90] sm:$0xff]  ;;  %v5311_v63 = vld [vmem:[#allocation25 + $0x98] sm:$0xff] }
  0x29   :  { %387 = vst [vmem:[#allocation2 + $0x68] sm:$0xff] %v359_v40  ;;  %v5277_v20 = vmul.f32 %v199_v6, %v5271_v13  ;;  %v366_v26 = vmul.f32 %v5187_v14, %v5267_v11  ;;  %v5284_v27 = vmul.f32 %v200_v18, %v5279_v23  ;;  %v367_v35 = vmul.f32 %v5187_v14, %v5274_v19  ;;  %v178_v40 = vld [vmem:[#allocation20 + $0xa8] sm:$0xff]  ;;  %v5313_v0 = vld [vmem:[#allocation25 + $0xa0] sm:$0xff] }
  0x2a   :  { %388 = vst [vmem:[#allocation2 + $0x30] sm:$0xff] %v360_v50  ;;  %v5293_v38 = vmul.f32 %v201_v24, %v5286_v30  ;;  %v5300_v48 = vmul.f32 %v202_v31, %v5295_v39  ;;  %v203_v49 = vmul.f32 %v175_v25, %v175_v25  ;;  %v179_v50 = vld [vmem:[#allocation20 + $0xb0] sm:$0xff]  ;;  %v204_v55 = vmul.f32 %v176_v33, %v176_v33  ;;  %v5321_v7 = vld [vmem:[#allocation25 + $0xa8] sm:$0xff]  ;;  %v181_v18 = vld [vmem:[#allocation20 + $0xc0] sm:$0xff] }
  0x2b   :  { %389 = vst [vmem:[#allocation2 + $0x48] sm:$0xff] %v361_v56  ;;  %v368_v37 = vmul.f32 %v5187_v14, %v5277_v20  ;;  %v369_v44 = vmul.f32 %v5187_v14, %v5284_v27  ;;  %v205_v56 = vmul.f32 %v177_v34, %v177_v34  ;;  %v182_v33 = vld [vmem:[#allocation20 + $0xc8] sm:$0xff]  ;;  %v183_v34 = vld [vmem:[#allocation20 + $0xd0] sm:$0x3] }
  0x2c   :  { %390 = vst [vmem:[#allocation2 + $0x80] sm:$0xff] %v362_v57  ;;  %v370_v53 = vmul.f32 %v5187_v14, %v5293_v38  ;;  %v180_v57 = vld [vmem:[#allocation20 + $0xb8] sm:$0xff]  ;;  %v371_v60 = vmul.f32 %v5187_v14, %v5300_v48  ;;  %v5316_v3 = vmul.f32 %v204_v55, %v5311_v63  ;;  %v209_v55 = vmul.f32 %v181_v18, %v181_v18  ;;  %v5355_v18 = vld [vmem:[#allocation25 + $0xd0] sm:$0x3] }
  0x2d   :  { %391 = vst [vmem:[#allocation2 + $0x88] sm:$0xff] %v363_v61  ;;  %v5309_v61 = vmul.f32 %v203_v49, %v5304_v54  ;;  %v5319_v6 = vmul.f32 %v205_v56, %v5313_v0  ;;  %v208_v31 = vmul.f32 %v180_v57, %v180_v57  ;;  %v184_v49 = vld [vmem:[#allocation20 + $0xd8] sm:$0x3]  ;;  %v241_v56 = vld [vmem:[#allocation23] sm:$0xff] }
  0x2e   :  { %392 = vst [vmem:[#allocation2 + $0x8] sm:$0xff] %v364_v1  ;;  %v206_v1 = vmul.f32 %v178_v40, %v178_v40 }
  0x2f   :  { %393 = vst [vmem:[#allocation2 + $0x58] sm:$0xff] %v365_v8  ;;  %v207_v8 = vmul.f32 %v179_v50, %v179_v50  ;;  %v372_v24 = vmul.f32 %v5187_v14, %v5309_v61 }
  0x30   :  { %394 = vst [vmem:[#allocation2 + $0x38] sm:$0xff] %v366_v26  ;;  %v5326_v25 = vmul.f32 %v206_v1, %v5321_v7  ;;  %v5328_v26 = vld [vmem:[#allocation25 + $0xb0] sm:$0xff]  ;;  %v210_v1 = vmul.f32 %v182_v33, %v182_v33 }
  0x31   :  { %9575 = vst [vmem:[#allocation38_spill] sm:$0xff] %v5300_v48  ;;  %v5335_v40 = vmul.f32 %v207_v8, %v5328_v26  ;;  %v211_v8 = vmul.f32 %v183_v34, %v183_v34  ;;  %v247_v48 = vld [vmem:[#allocation23 + $0x30] sm:$0xff] }
  0x32   :  { %395 = vst [vmem:[#allocation2 + $0x90] sm:$0xff] %v367_v35  ;;  %v373_v35 = vmul.f32 %v5187_v14, %v5316_v3  ;;  %v375_v50 = vmul.f32 %v5187_v14, %v5326_v25 }
  0x33   :  { %396 = vst [vmem:[#allocation2 + $0x78] sm:$0xff] %v368_v37  ;;  %v374_v37 = vmul.f32 %v5187_v14, %v5319_v6  ;;  %v376_v57 = vmul.f32 %v5187_v14, %v5335_v40  ;;  %v5362_v34 = vmul.f32 %v211_v8, %v5355_v18 }
  0x34   :  { %9576 = vst [vmem:[#allocation39_spill] sm:$0xff] %v5309_v61 }
  0x35   :  { %397 = vst [vmem:[#allocation2 + $0xb8] sm:$0xff] %v369_v44  ;;  %v5337_v44 = vld [vmem:[#allocation25 + $0xb8] sm:$0xff]  ;;  %v380_v8 = vmul.f32 %v5187_v14, %v5362_v34 }
  0x36   :  { %9577 = vst [vmem:[#allocation40_spill] sm:$0xff] %v5316_v3  ;;  %v243_v3 = vld [vmem:[#allocation23 + $0x10] sm:$0xff] }
  0x37   :  { %9578 = vst [vmem:[#allocation41_spill] sm:$0xff] %v5319_v6  ;;  %v242_v6 = vld [vmem:[#allocation23 + $0x8] sm:$0xff]  ;;  %v271_v61 = vmul.f32 %v243_v3, %v243_v3 }
  0x38   :  { %398 = vst [vmem:[#allocation2 + $0x40] sm:$0xff] %v370_v53  ;;  %v5342_v53 = vmul.f32 %v208_v31, %v5337_v44  ;;  %v5353_v31 = vld [vmem:[#allocation25 + $0xc8] sm:$0xff] }
  0x39   :  { %9579 = vst [vmem:[#allocation42_spill] sm:$0xff] %v5326_v25  ;;  %v5359_v33 = vmul.f32 %v210_v1, %v5353_v31 }
  0x3a   :  { %399 = vst [vmem:[#allocation2 + $0x28] sm:$0xff] %v371_v60  ;;  %v5346_v60 = vld [vmem:[#allocation25 + $0xc0] sm:$0xff] }
  0x3b   :  { %9580 = vst [vmem:[#allocation43_spill] sm:$0xff] %v5335_v40  ;;  %v5351_v25 = vmul.f32 %v209_v55, %v5346_v60  ;;  %v245_v55 = vld [vmem:[#allocation23 + $0x20] sm:$0xff]  ;;  %v270_v40 = vmul.f32 %v242_v6, %v242_v6  ;;  %v379_v1 = vmul.f32 %v5187_v14, %v5359_v33  ;;  %v5384_v6 = vmul.f32 %v271_v61, %v5185_v10  ;;  %v5395_v61 = vpop.eup %4657 }
  0x3c   :  { %9581 = vst [vmem:[#allocation44_spill] sm:$0xff] %v5337_v44  ;;  %v244_v44 = vld [vmem:[#allocation23 + $0x18] sm:$0xff]  ;;  %vm642_vm1 = vweird.f32 %v5395_v61 }
  0x3d   :  { %400 = vst [vmem:[#allocation2 + $0xc0] sm:$0xff] %v372_v24  ;;  %v377_v24 = vmul.f32 %v5187_v14, %v5342_v53  ;;  %v5381_v3 = vmul.f32 %v270_v40, %v5180_v5  ;;  %vm5558_vm2 = vmor %vm641_vm0, %vm642_vm1 }
  0x3e   :  { %9582 = vst [vmem:[#allocation45_spill] sm:$0xff] %v5342_v53  ;;  %v269_v53 = vmul.f32 %v241_v56, %v241_v56 }
  0x3f   :  { %401 = vst [vmem:[#allocation2 + $0x60] sm:$0xff] %v373_v35  ;;  %v212_v35 = vmul.f32 %v184_v49, %v184_v49 }
  0x40   :  { %9583 = vst [vmem:[#allocation46_spill] sm:$0xff] %v5346_v60  ;;  %v378_v60 = vmul.f32 %v5187_v14, %v5351_v25  ;;  %v5376_v56 = vmul.f32 %v269_v53, %v5178_v4 }
  0x41   :  { %402 = vst [vmem:[#allocation2 + $0xd0] sm:$0xff] %v374_v37  ;;  %v5364_v37 = vld [vmem:[#allocation25 + $0xd8] sm:$0x3] }
  0x42   :  { %9584 = vst [vmem:[#allocation47_spill] sm:$0xff] %v5355_v18  ;;  %v5369_v49 = vmul.f32 %v212_v35, %v5364_v37  ;;  %v248_v18 = vld [vmem:[#allocation23 + $0x38] sm:$0xff] }
  0x43   :  { %403 = vst [vmem:[#allocation2 + $0xa8] sm:$0xff] %v375_v50  ;;  %v246_v50 = vld [vmem:[#allocation23 + $0x28] sm:$0xff]  ;;  %v276_v40 = vmul.f32 %v248_v18, %v248_v18 }
  0x44   :  { %9585 = vst [vmem:[#allocation48_spill] sm:$0xff] %v5359_v33  ;;  %v381_v35 = vmul.f32 %v5187_v14, %v5369_v49  ;;  %v410_v33 = vmul.f32 2.0, %v5376_v56  ;;  %v274_v53 = vmul.f32 %v246_v50, %v246_v50 }
  0x45   :  { %9586 = vst [vmem:[#allocation49_spill] sm:$0xff] %v5362_v34  ;;  %v5409_v18 = vmul.f32 %v276_v40, %v5227_v42  ;;  %v252_v40 = vld [vmem:[#allocation23 + $0x58] sm:$0xff] }
  0x46   :  { %404 = vst [vmem:[#allocation2 + $0x98] sm:$0xff] %v376_v57  ;;  %v272_v57 = vmul.f32 %v244_v44, %v244_v44  ;;  %v275_v44 = vmul.f32 %v247_v48, %v247_v48 }
  0x47   :  { %9587 = vst [vmem:[#allocation50_spill] sm:$0xff] %v5369_v49  ;;  %v412_v49 = vmul.f32 2.0, %v5384_v6 }
  0x48   :  { %405 = vst [vmem:[#allocation2 + $0xa0] sm:$0xff] %v377_v24  ;;  %v273_v24 = vmul.f32 %v245_v55, %v245_v55  ;;  %v5388_v34 = vmul.f32 %v272_v57, %v5195_v17  ;;  %v438_v55 = vsub.f32 %v5183_v9, %v410_v33  ;;  %v5400_v57 = vmul.f32 %v274_v53, %v5211_v29 }
  0x49   :  { %406 = vst [vmem:[#allocation2 + $0x20] sm:$0xff] %v378_v60  ;;  %v411_v60 = vmul.f32 2.0, %v5381_v3  ;;  %v5403_v48 = vmul.f32 %v275_v44, %v5220_v36  ;;  %v250_v44 = vld [vmem:[#allocation23 + $0x48] sm:$0xff] }
  0x4a   :  { %9588 = vst [vmem:[#allocation51_spill] sm:$0xff] %v5381_v3  ;;  %v5393_v5 = vmul.f32 %v273_v24, %v5202_v22  ;;  %v466_v9 = vmul.f32 %v438_v55, %v5187_v14  ;;  %v415_v53 = vmul.f32 2.0, %v5400_v57  ;;  %v251_v3 = vld [vmem:[#allocation23 + $0x50] sm:$0xff] }
  0x4b   :  { %9589 = vst [vmem:[#allocation52_spill] sm:$0xff] %v5384_v6  ;;  %v439_v50 = vsub.f32 %v5190_v15, %v411_v60  ;;  %v417_v60 = vmul.f32 2.0, %v5409_v18  ;;  %v279_v6 = vmul.f32 %v251_v3, %v251_v3 }
  0x4c   :  { %407 = vst [vmem:[#allocation2 + $0x10] sm:$0xff] %v379_v1  ;;  %v413_v1 = vmul.f32 2.0, %v5388_v34  ;;  %v414_v24 = vmul.f32 2.0, %v5393_v5 }
  0x4d   :  { %9590 = vst [vmem:[#allocation53_spill] sm:$0xff] %v5388_v34  ;;  %v416_v34 = vmul.f32 2.0, %v5403_v48  ;;  %v467_v15 = vmul.f32 %v439_v50, %v5187_v14  ;;  %v445_v50 = vsub.f32 %v5232_v45, %v417_v60  ;;  %v5434_v45 = vmul.f32 %v279_v6, %v5244_v52 }
  0x4e   :  { %408 = vst [vmem:[#allocation2 + $0xc8] sm:$0x3] %v380_v8  ;;  %v440_v8 = vsub.f32 %v5193_v16, %v412_v49  ;;  %v441_v33 = vsub.f32 %v5200_v21, %v413_v1  ;;  %v442_v49 = vsub.f32 %v5209_v28, %v414_v24  ;;  %v443_v21 = vsub.f32 %v5216_v32, %v415_v53  ;;  %v254_v28 = vld [vmem:[#allocation23 + $0x68] sm:$0xff]  ;;  %v255_v24 = vld [vmem:[#allocation23 + $0x70] sm:$0xff] }
  0x4f   :  { %9591 = vst [vmem:[#allocation54_spill] sm:$0xff] %v5393_v5  ;;  %v444_v1 = vsub.f32 %v5225_v41, %v416_v34  ;;  %v280_v41 = vmul.f32 %v252_v40, %v252_v40  ;;  %v256_v34 = vld [vmem:[#allocation23 + $0x78] sm:$0xff]  ;;  %v420_v60 = vmul.f32 2.0, %v5434_v45 }
  0x50   :  { %409 = vst [vmem:[#allocation2 + $0x70] sm:$0x3] %v381_v35  ;;  %v249_v35 = vld [vmem:[#allocation23 + $0x40] sm:$0xff]  ;;  %v468_v16 = vmul.f32 %v440_v8, %v5187_v14  ;;  %v469_v55 = vmul.f32 %v441_v33, %v5187_v14  ;;  %v470_v5 = vmul.f32 %v442_v49, %v5187_v14  ;;  %v278_v8 = vmul.f32 %v250_v44, %v250_v44 }
  0x51   :  { %9592 = vst [vmem:[#allocation55_spill] sm:$0xff] %v5400_v57  ;;  %v277_v57 = vmul.f32 %v249_v35, %v249_v35  ;;  %v472_v33 = vmul.f32 %v444_v1, %v5187_v14  ;;  %v473_v35 = vmul.f32 %v445_v50, %v5187_v14  ;;  %v448_v50 = vsub.f32 %v5251_v58, %v420_v60 }
  0x52   :  { %9593 = vst [vmem:[#allocation56_spill] sm:$0xff] %v5403_v48  ;;  %v253_v48 = vld [vmem:[#allocation23 + $0x60] sm:$0xff]  ;;  %v5431_v53 = vmul.f32 %v278_v8, %v5237_v47 }
  0x53   :  { %494 = vst [vmem:[#allocation3] sm:$0xff] %v466_v9  ;;  %v471_v9 = vmul.f32 %v443_v21, %v5187_v14  ;;  %v5427_v32 = vmul.f32 %v277_v57, %v5229_v43  ;;  %v281_v3 = vmul.f32 %v253_v48, %v253_v48  ;;  %v282_v57 = vmul.f32 %v254_v28, %v254_v28 }
  0x54   :  { %495 = vst [vmem:[#allocation3 + $0xc0] sm:$0xff] %v467_v15  ;;  %v5438_v15 = vmul.f32 %v280_v41, %v5253_v59  ;;  %v419_v49 = vmul.f32 2.0, %v5431_v53  ;;  %v476_v58 = vmul.f32 %v448_v50, %v5187_v14 }
  0x55   :  { %496 = vst [vmem:[#allocation3 + $0x58] sm:$0xff] %v468_v16  ;;  %v418_v44 = vmul.f32 2.0, %v5427_v32  ;;  %v283_v16 = vmul.f32 %v255_v24, %v255_v24  ;;  %v5443_v40 = vmul.f32 %v281_v3, %v5262_v2  ;;  %v5448_v48 = vmul.f32 %v282_v57, %v5269_v12  ;;  %v257_v24 = vld [vmem:[#allocation23 + $0x80] sm:$0xff]  ;;  %v260_v57 = vld [vmem:[#allocation23 + $0x98] sm:$0xff] }
  0x56   :  { %497 = vst [vmem:[#allocation3 + $0x50] sm:$0xff] %v469_v55  ;;  %v284_v55 = vmul.f32 %v256_v34, %v256_v34  ;;  %v447_v1 = vsub.f32 %v5242_v51, %v419_v49  ;;  %v258_v34 = vld [vmem:[#allocation23 + $0x88] sm:$0xff]  ;;  %v285_v60 = vmul.f32 %v257_v24, %v257_v24  ;;  %v264_v24 = vld [vmem:[#allocation23 + $0xb8] sm:$0xff] }
  0x57   :  { %498 = vst [vmem:[#allocation3 + $0xb8] sm:$0xff] %v470_v5  ;;  %v446_v6 = vsub.f32 %v5235_v46, %v418_v44  ;;  %v421_v5 = vmul.f32 2.0, %v5438_v15  ;;  %v5451_v21 = vmul.f32 %v283_v16, %v5271_v13  ;;  %v422_v8 = vmul.f32 2.0, %v5443_v40 }
  0x58   :  { %499 = vst [vmem:[#allocation3 + $0x88] sm:$0xff] %v471_v9  ;;  %v5457_v28 = vmul.f32 %v284_v55, %v5279_v23  ;;  %v475_v51 = vmul.f32 %v447_v1, %v5187_v14  ;;  %v261_v55 = vld [vmem:[#allocation23 + $0xa0] sm:$0xff]  ;;  %v286_v1 = vmul.f32 %v258_v34, %v258_v34 }
  0x59   :  { %500 = vst [vmem:[#allocation3 + $0xb0] sm:$0xff] %v472_v33  ;;  %v474_v46 = vmul.f32 %v446_v6, %v5187_v14  ;;  %v449_v9 = vsub.f32 %v5258_v62, %v421_v5  ;;  %v423_v33 = vmul.f32 2.0, %v5448_v48  ;;  %v424_v41 = vmul.f32 2.0, %v5451_v21 }
  0x5a   :  { %501 = vst [vmem:[#allocation3 + $0x98] sm:$0xff] %v473_v35  ;;  %v259_v35 = vld [vmem:[#allocation23 + $0x90] sm:$0xff]  ;;  %v450_v3 = vsub.f32 %v5267_v11, %v422_v8  ;;  %v425_v44 = vmul.f32 2.0, %v5457_v28  ;;  %v262_v11 = vld [vmem:[#allocation23 + $0xa8] sm:$0xff]  ;;  %v289_v34 = vmul.f32 %v261_v55, %v261_v55 }
  0x5b   :  { %9594 = vst [vmem:[#allocation57_spill] sm:$0xff] %v5457_v28  ;;  %v477_v16 = vmul.f32 %v449_v9, %v5187_v14  ;;  %v451_v62 = vsub.f32 %v5274_v19, %v423_v33  ;;  %v452_v49 = vsub.f32 %v5277_v20, %v424_v41  ;;  %v287_v50 = vmul.f32 %v259_v35, %v259_v35  ;;  %v263_v8 = vld [vmem:[#allocation23 + $0xb0] sm:$0xff] }
  0x5c   :  { %502 = vst [vmem:[#allocation3 + $0xa8] sm:$0xff] %v474_v46  ;;  %v478_v6 = vmul.f32 %v450_v3, %v5187_v14  ;;  %v453_v5 = vsub.f32 %v5284_v27, %v425_v44  ;;  %v5475_v19 = vmul.f32 %v285_v60, %v5286_v30  ;;  %v288_v20 = vmul.f32 %v260_v57, %v260_v57  ;;  %v9602_v60 = vld [vmem:[#allocation38_spill] sm:$0xff] }
  0x5d   :  { %503 = vst [vmem:[#allocation3 + $0x70] sm:$0xff] %v475_v51  ;;  %v479_v46 = vmul.f32 %v451_v62, %v5187_v14  ;;  %v480_v9 = vmul.f32 %v452_v49, %v5187_v14  ;;  %v5479_v41 = vmul.f32 %v286_v1, %v5295_v39  ;;  %v5482_v27 = vmul.f32 %v287_v50, %v5304_v54  ;;  %v9604_v1 = vld [vmem:[#allocation44_spill] sm:$0xff] }
  0x5e   :  { %504 = vst [vmem:[#allocation3 + $0x8] sm:$0xff] %v476_v58  ;;  %v481_v33 = vmul.f32 %v453_v5, %v5187_v14  ;;  %v426_v35 = vmul.f32 2.0, %v5475_v19  ;;  %v5486_v51 = vmul.f32 %v288_v20, %v5311_v63  ;;  %v290_v58 = vmul.f32 %v262_v11, %v262_v11  ;;  %v265_v11 = vld [vmem:[#allocation23 + $0xc0] sm:$0xff]  ;;  %v267_v20 = vld [vmem:[#allocation23 + $0xd0] sm:$0x3] }
  0x5f   :  { %9595 = vst [vmem:[#allocation58_spill] sm:$0xff] %v5475_v19  ;;  %v291_v3 = vmul.f32 %v263_v8, %v263_v8  ;;  %v427_v44 = vmul.f32 2.0, %v5479_v41  ;;  %v428_v57 = vmul.f32 2.0, %v5482_v27  ;;  %v5491_v39 = vmul.f32 %v289_v34, %v5313_v0  ;;  %v9606_v8 = vld [vmem:[#allocation40_spill] sm:$0xff]  ;;  %v9607_v34 = vld [vmem:[#allocation41_spill] sm:$0xff] }
  0x60   :  { %505 = vst [vmem:[#allocation3 + $0x18] sm:$0xff] %v477_v16  ;;  %v292_v16 = vmul.f32 %v264_v24, %v264_v24  ;;  %v454_v54 = vsub.f32 %v5293_v38, %v426_v35  ;;  %v429_v62 = vmul.f32 2.0, %v5486_v51  ;;  %v5496_v49 = vmul.f32 %v290_v58, %v5321_v7 }
  0x61   :  { %9596 = vst [vmem:[#allocation59_spill] sm:$0xff] %v5479_v41  ;;  %v5499_v63 = vmul.f32 %v291_v3, %v5328_v26  ;;  %v455_v55 = vsub.f32 %v9602_v60, %v427_v44  ;;  %v430_v0 = vmul.f32 2.0, %v5491_v39  ;;  %v268_v3 = vld [vmem:[#allocation23 + $0xd8] sm:$0x3]  ;;  %v293_v60 = vmul.f32 %v265_v11, %v265_v11 }
  0x62   :  { %9597 = vst [vmem:[#allocation60_spill] sm:$0xff] %v5482_v27  ;;  %v5505_v50 = vmul.f32 %v292_v16, %v9604_v1  ;;  %v482_v38 = vmul.f32 %v454_v54, %v5187_v14  ;;  %v431_v7 = vmul.f32 2.0, %v5496_v49  ;;  %v9609_v54 = vld [vmem:[#allocation43_spill] sm:$0xff]  ;;  %v9610_v1 = vld [vmem:[#allocation45_spill] sm:$0xff] }
  0x63   :  { %506 = vst [vmem:[#allocation3 + $0x20] sm:$0xff] %v478_v6  ;;  %v9603_v6 = vld [vmem:[#allocation39_spill] sm:$0xff]  ;;  %v432_v26 = vmul.f32 2.0, %v5499_v63  ;;  %v483_v24 = vmul.f32 %v455_v55, %v5187_v14  ;;  %v458_v35 = vsub.f32 %v9607_v34, %v430_v0 }
  0x64   :  { %9598 = vst [vmem:[#allocation61_spill] sm:$0xff] %v5486_v51  ;;  %v456_v5 = vsub.f32 %v9603_v6, %v428_v57  ;;  %v433_v58 = vmul.f32 2.0, %v5505_v50  ;;  %v9608_v57 = vld [vmem:[#allocation42_spill] sm:$0xff] }
  0x65   :  { %507 = vst [vmem:[#allocation3 + $0x68] sm:$0xff] %v479_v46  ;;  %v457_v46 = vsub.f32 %v9606_v8, %v429_v62  ;;  %v459_v16 = vsub.f32 %v9608_v57, %v431_v7  ;;  %v460_v62 = vsub.f32 %v9609_v54, %v432_v26  ;;  %v486_v6 = vmul.f32 %v458_v35, %v5187_v14  ;;  %v9614_v26 = vld [vmem:[#allocation47_spill] sm:$0xff]  ;;  %v9618_v54 = vld [vmem:[#allocation49_spill] sm:$0xff] }
  0x66   :  { %9599 = vst [vmem:[#allocation62_spill] sm:$0xff] %v5491_v39  ;;  %v461_v55 = vsub.f32 %v9610_v1, %v433_v58  ;;  %v637_v35 = vmul.f32 %v5395_v61, %v5178_v4  ;;  %v9619_v1 = vld [vmem:[#allocation50_spill] sm:$0xff] }
  0x67   :  { %508 = vst [vmem:[#allocation3 + $0x28] sm:$0xff] %v480_v9  ;;  %v266_v9 = vld [vmem:[#allocation23 + $0xc8] sm:$0xff]  ;;  %v485_v44 = vmul.f32 %v457_v46, %v5187_v14  ;;  %v487_v0 = vmul.f32 %v459_v16, %v5187_v14  ;;  %v488_v34 = vmul.f32 %v460_v62, %v5187_v14  ;;  %v296_v46 = vmul.f32 %v268_v3, %v268_v3 }
  0x68   :  { %9600 = vst [vmem:[#allocation63_spill] sm:$0xff] %v5496_v49  ;;  %v294_v8 = vmul.f32 %v266_v9, %v266_v9  ;;  %v489_v7 = vmul.f32 %v461_v55, %v5187_v14  ;;  %v638_v57 = vsub.f32 1.0, %v637_v35 }
  0x69   :  { %9601 = vst [vmem:[#allocation64_spill] sm:$0xff] %v5499_v63 }
  0x6a   :  { %509 = vst [vmem:[#allocation3 + $0x40] sm:$0xff] %v481_v33  ;;  %v484_v33 = vmul.f32 %v456_v5, %v5187_v14  ;;  %v295_v5 = vmul.f32 %v267_v20, %v267_v20  ;;  %v5527_v11 = vmul.f32 %v294_v8, %v5353_v31  ;;  %v5534_v20 = vmul.f32 %v296_v46, %v5364_v37  ;;  %v9617_v37 = vld [vmem:[#allocation48_spill] sm:$0xff] }
  0x6b   :  { %9605 = vst [vmem:[#allocation38_spill] sm:$0xff] %v5505_v50  ;;  %v647_v46 = vand.u32 2147483648, %v5178_v4 }
  0x6c   :  { %510 = vst [vmem:[#allocation3 + $0x60] sm:$0xff] %v482_v38  ;;  %v9611_v38 = vld [vmem:[#allocation46_spill] sm:$0xff]  ;;  %v435_v58 = vmul.f32 2.0, %v5527_v11 }
  0x6d   :  { %511 = vst [vmem:[#allocation3 + $0x30] sm:$0xff] %v483_v24  ;;  %v5523_v50 = vmul.f32 %v293_v60, %v9611_v38  ;;  %v5530_v24 = vmul.f32 %v295_v5, %v9614_v26  ;;  %v645_v60 = vand.u32 2147483647, %v5178_v4  ;;  %v5096_v5 = vmov 0.0  }
  0x6e   :  { %512 = vst [vmem:[#allocation3 + $0x38] sm:$0xff] %v484_v33  ;;  %v9358_v33 = vlaneseq  ;;  %v463_v16 = vsub.f32 %v9617_v37, %v435_v58  ;;  %v129_v58 = vld [vmem:[#allocation26] sm:$0xff] }
  0x6f   :  { %9612 = vst [vmem:[#allocation39_spill] sm:$0xff] %v5523_v50  ;;  %v434_v9 = vmul.f32 2.0, %v5523_v50  ;;  %v436_v3 = vmul.f32 2.0, %v5530_v24  ;;  %vm646_vm3 = vcmp.eq.f32.partialorder %v645_v60, 8.507059e+37 }
  0x70   :  { %513 = vst [vmem:[#allocation3 + $0x48] sm:$0xff] %v485_v44  ;;  %v437_v44 = vmul.f32 2.0, %v5534_v20  ;;  %v5550_v8 = vand.u32 127, %v9358_v33  ;;  %v5912_v33 = vld [vmem:[#allocation25 + $0x38] sm:$0xff] }
  0x71   :  { %9613 = vst [vmem:[#allocation44_spill] sm:$0xff] %v5527_v11  ;;  %v462_v31 = vsub.f32 %v5351_v25, %v434_v9  ;;  %v464_v62 = vsub.f32 %v9618_v54, %v436_v3  ;;  %v639_v25 = vmul.f32 %v5395_v61, %v638_v57  ;;  %v648_v9 = vor.u32 1.1754944e-38, %v647_v46  ;;  %v5716_v54 = vld [vmem:[#allocation25 + $0x10] sm:$0xff] }
  0x72   :  { %9615 = vst [vmem:[#allocation40_spill] sm:$0xff] %v5530_v24  ;;  %v465_v55 = vsub.f32 %v9619_v1, %v437_v44  ;;  %vm1644_vm4 = vcmp.eq.s32.totalorder %v5550_v8, 100  ;;  %vm630_vm5 = vcmp.gt.s32.totalorder %v5550_v8, 0  ;;  %vm671_vm6 = vweird.f32 %v5716_v54  ;;  %v5966_v24 = vld [vmem:[#allocation25 + $0xa0] sm:$0xff] }
  0x73   :  { %514 = vst [vmem:[#allocation3 + $0x78] sm:$0xff] %v486_v6  ;;  %v490_v6 = vmul.f32 %v462_v31, %v5187_v14  ;;  %v640_v26 = vadd.f32 %v5395_v61, %v639_v25  ;;  %v5568_v35 = vsel %vm1644_vm4, 1.0, %v5096_v5  ;;  %v5577_v44 = vsel %vm630_vm5, 1.0, %v5096_v5 }
  0x74   :  { %9616 = vst [vmem:[#allocation41_spill] sm:$0xff] %v5534_v20  ;;  %v675_v38 = vand.u32 2147483647, %v5716_v54  ;;  %v677_v46 = vand.u32 2147483648, %v5716_v54  ;;  %v5916_v20 = vld [vmem:[#allocation25 + $0x90] sm:$0xff] }
  0x75   :  { %515 = vst [vmem:[#allocation3 + $0xd0] sm:$0xff] %v487_v0  ;;  %v491_v0 = vmul.f32 %v463_v16, %v5187_v14  ;;  %v644_v4 = vsel %vm5558_vm2, %v5395_v61, %v640_v26  ;;  %v5700_v61 = vld [vmem:[#allocation25 + $0x8] sm:$0xff]  ;;  %v5706_v16 = vpop.eup %4659  ;;  %v750_v63 = vand.u32 2147483647, %v5912_v33 }
  0x76   :  { %516 = vst [vmem:[#allocation3 + $0xc8] sm:$0xff] %v488_v34  ;;  %v492_v34 = vmul.f32 %v464_v62, %v5187_v14  ;;  %v649_v3 = vsel %vm646_vm3, %v648_v9, %v644_v4  ;;  %4661 = vrcp.f32 %v5700_v61  ;;  %v667_v62 = vmul.f32 %v5716_v54, %v5706_v16 }
  0x77   :  { %517 = vst [vmem:[#allocation3 + $0xa0] sm:$0xff] %v489_v7  ;;  %v493_v7 = vmul.f32 %v465_v55, %v5187_v14  ;;  %v650_v31 = vmul.f32 %v649_v3, %v5187_v14  ;;  %4663 = vrcp.f32 %v5202_v22  ;;  %vm672_vm7 = vweird.f32 %v5706_v16 }
  0x78   :  { %1476 = vst [vmem:[#allocation12 + $0xb8] sm:$0xff] %v5096_v5  ;;  %4665 = vrcp.f32 %v5195_v17  ;;  %v668_v60 = vsub.f32 1.0, %v667_v62  ;;  %vm656_vm8 = vweird.f32 %v5700_v61  ;;  %vm5786_vm10 = vmor %vm671_vm6, %vm672_vm7  ;;  %v660_v54 = vand.u32 2147483647, %v5700_v61 }
  0x79   :  { %1477 = vst [vmem:[#allocation12 + $0x70] sm:$0xff] %v5096_v5  ;;  %v1056_v57 = vmul.f32 %v650_v31, %v129_v58  ;;  %4667 = vrcp.f32 %v5211_v29  ;;  %v5790_v58 = vld [vmem:[#allocation25 + $0x28] sm:$0xff]  ;;  %v662_v62 = vand.u32 2147483648, %v5700_v61  ;;  %vm5821_vm12 = vcmp.eq.f32.partialorder %v675_v38, 8.507059e+37 }
  0x7a   :  { %518 = vst [vmem:[#allocation3 + $0xd8] sm:$0xff] %v490_v6  ;;  %4669 = vrcp.f32 %v5220_v36  ;;  %v5739_v6 = vld [vmem:[#allocation25 + $0x20] sm:$0xff]  ;;  %vm5840_vm15 = vcmp.eq.f32.partialorder %v660_v54, 8.507059e+37  ;;  %vm716_vm6 = vweird.f32 %v5790_v58 }
  0x7b   :  { %519 = vst [vmem:[#allocation3 + $0x90] sm:$0xff] %v491_v0  ;;  %v1084_v37 = vmul.f32 %v5577_v44, %v1056_v57  ;;  %4671 = vrcp.f32 %v5227_v42  ;;  %vm701_vm13 = vweird.f32 %v5739_v6 }
  0x7c   :  { %9622 = vst [vmem:[#allocation42_spill] sm:$0xff] %v5568_v35  ;;  %v5712_v10 = vpop.eup %4661  ;;  %4673 = vrcp.f32 %v5229_v43  ;;  %v669_v43 = vmul.f32 %v5706_v16, %v668_v60 }
  0x7d   :  { %520 = vst [vmem:[#allocation3 + $0x80] sm:$0x3] %v492_v34  ;;  %v652_v17 = vmul.f32 %v5700_v61, %v5712_v10  ;;  %v5727_v22 = vpop.eup %4663  ;;  %4675 = vrcp.f32 %v5237_v47  ;;  %vm657_vm9 = vweird.f32 %v5712_v10 }
  0x7e   :  { %521 = vst [vmem:[#allocation3 + $0x10] sm:$0x3] %v493_v7  ;;  %v5733_v29 = vpop.eup %4665  ;;  %4677 = vrcp.f32 %v5244_v52  ;;  %v697_v42 = vmul.f32 %v5739_v6, %v5727_v22  ;;  %v5752_v52 = vld [vmem:[#allocation25 + $0x18] sm:$0xff]  ;;  %v5773_v7 = vld [vmem:[#allocation25 + $0x30] sm:$0xff]  ;;  %vm5814_vm11 = vmor %vm656_vm8, %vm657_vm9  ;;  %vm702_vm14 = vweird.f32 %v5727_v22 }
  0x7f   :  { %1478 = vst [vmem:[#allocation12 + $0x80] sm:$0xff] %v5096_v5  ;;  %v653_v36 = vsub.f32 1.0, %v652_v17  ;;  %v5743_v1 = vpop.eup %4667  ;;  %4679 = vrcp.f32 %v5253_v59  ;;  %v682_v55 = vmul.f32 %v5752_v52, %v5733_v29  ;;  %vm686_vm0 = vweird.f32 %v5752_v52  ;;  %vm5856_vm1 = vmor %vm701_vm13, %vm702_vm14 }
  0x80   :  { %1479 = vst [vmem:[#allocation12 + $0x30] sm:$0xff] %v5096_v5  ;;  %v5748_v47 = vpop.eup %4669  ;;  %4681 = vrcp.f32 %v5262_v2  ;;  %v698_v0 = vsub.f32 1.0, %v697_v42  ;;  %v712_v3 = vmul.f32 %v5790_v58, %v5743_v1  ;;  %vm687_vm2 = vweird.f32 %v5733_v29 }
  0x81   :  { %1480 = vst [vmem:[#allocation12 + $0x78] sm:$0xff] %v5096_v5  ;;  %v5756_v25 = vpop.eup %4671  ;;  %4683 = vrcp.f32 %v5269_v12  ;;  %v654_v2 = vmul.f32 %v5712_v10, %v653_v36  ;;  %v670_v12 = vadd.f32 %v5706_v16, %v669_v43  ;;  %v683_v4 = vsub.f32 1.0, %v682_v55  ;;  %vm5887_vm8 = vmor %vm686_vm0, %vm687_vm2 }
  0x82   :  { %1481 = vst [vmem:[#allocation12 + $0x68] sm:$0xff] %v5096_v5  ;;  %v5762_v59 = vpop.eup %4673  ;;  %4685 = vrcp.f32 %v5271_v13  ;;  %v727_v13 = vmul.f32 %v5773_v7, %v5748_v47  ;;  %v699_v17 = vmul.f32 %v5727_v22, %v698_v0  ;;  %v678_v43 = vor.u32 1.1754944e-38, %v677_v46 }
  0x83   :  { %1224 = vst [vmem:[#allocation6 + $0xc0] sm:$0xff] %v1056_v57  ;;  %v5767_v34 = vpop.eup %4675  ;;  %4687 = vrcp.f32 %v5279_v23  ;;  %v674_v36 = vsel %vm5786_vm10, %v5706_v16, %v670_v12  ;;  %v684_v61 = vmul.f32 %v5733_v29, %v683_v4  ;;  %v713_v0 = vsub.f32 1.0, %v712_v3 }
  0x84   :  { %1280 = vst [vmem:[#allocation7 + $0x38] sm:$0xff] %v1056_v57  ;;  %v5777_v26 = vpop.eup %4677  ;;  %v728_v55 = vsub.f32 1.0, %v727_v13  ;;  %4689 = vrcp.f32 %v5286_v30  ;;  %v705_v16 = vand.u32 2147483647, %v5739_v6  ;;  %v707_v12 = vand.u32 2147483648, %v5739_v6 }
  0x85   :  { %1112 = vst [vmem:[#allocation4 + $0x68] sm:$0xff] %v1084_v37  ;;  %v5794_v31 = vpop.eup %4679  ;;  %v5802_v37 = vadd.f32 %v5712_v10, %v654_v2  ;;  %v663_v13 = vor.u32 1.1754944e-38, %v662_v62  ;;  %v700_v30 = vadd.f32 %v5727_v22, %v699_v17  ;;  %v679_v4 = vsel %vm5821_vm12, %v678_v43, %v674_v36 }
  0x86   :  { %1482 = vst [vmem:[#allocation12 + $0x18] sm:$0xff] %v5096_v5  ;;  %v5798_v57 = vpop.eup %4681  ;;  %v692_v3 = vand.u32 2147483648, %v5752_v52  ;;  %v685_v54 = vadd.f32 %v5733_v29, %v684_v61  ;;  %v690_v62 = vand.u32 2147483647, %v5752_v52  ;;  %v714_v17 = vmul.f32 %v5743_v1, %v713_v0 }
  0x87   :  { %1483 = vst [vmem:[#allocation12 + $0x48] sm:$0xff] %v5096_v5  ;;  %v5807_v60 = vpop.eup %4683  ;;  %v659_v38 = vsel %vm5814_vm11, %v5712_v10, %v5802_v37  ;;  %v729_v37 = vmul.f32 %v5748_v47, %v728_v55  ;;  %vm5867_vm3 = vcmp.eq.f32.partialorder %v705_v16, 8.507059e+37  ;;  %v708_v23 = vor.u32 1.1754944e-38, %v707_v12  ;;  %v5894_v16 = vld [vmem:[#allocation25 + $0x40] sm:$0xff] }
  0x88   :  { %1484 = vst [vmem:[#allocation12 + $0x90] sm:$0xff] %v5096_v5  ;;  %v5825_v2 = vpop.eup %4685  ;;  %vm731_vm4 = vweird.f32 %v5773_v7  ;;  %vm732_vm5 = vweird.f32 %v5748_v47  ;;  %v704_v36 = vsel %vm5856_vm1, %v5727_v22, %v700_v30  ;;  %vm717_vm7 = vweird.f32 %v5743_v1  ;;  %v5898_v30 = vld [vmem:[#allocation25 + $0x88] sm:$0xff]  ;;  %v133_v55 = vld [vmem:[#allocation26 + $0x20] sm:$0xff] }
  0x89   :  { %1485 = vst [vmem:[#allocation12 + $0x50] sm:$0xff] %v5096_v5  ;;  %v5845_v9 = vpop.eup %4687  ;;  %v737_v42 = vand.u32 2147483648, %v5773_v7  ;;  %v722_v22 = vand.u32 2147483648, %v5790_v58  ;;  %v730_v61 = vadd.f32 %v5748_v47, %v729_v37  ;;  %v735_v0 = vand.u32 2147483647, %v5773_v7  ;;  %vm5908_vm9 = vmor %vm731_vm4, %vm732_vm5 }
  0x8a   :  { %1486 = vst [vmem:[#allocation12 + $0xa8] sm:$0xff] %v5096_v5  ;;  %v5880_v43 = vpop.eup %4689  ;;  %v757_v12 = vmul.f32 %v5894_v16, %v5762_v59  ;;  %4691 = vrcp.f32 %v5898_v30  ;;  %v715_v52 = vadd.f32 %v5743_v1, %v714_v17  ;;  %v720_v10 = vand.u32 2147483647, %v5790_v58  ;;  %vm5928_vm10 = vmor %vm716_vm6, %vm717_vm7 }
  0x8b   :  { %1487 = vst [vmem:[#allocation12] sm:$0xff] %v5096_v5  ;;  %v742_v35 = vmul.f32 %v5912_v33, %v5756_v25  ;;  %4693 = vrcp.f32 %v5916_v20  ;;  %v664_v17 = vsel %vm5840_vm15, %v663_v13, %v659_v38  ;;  %v693_v11 = vor.u32 1.1754944e-38, %v692_v3 }
  0x8c   :  { %1488 = vst [vmem:[#allocation12 + $0xb0] sm:$0xff] %v5096_v5  ;;  %v709_v7 = vsel %vm5867_vm3, %v708_v23, %v704_v36  ;;  %v680_v50 = vmul.f32 %v679_v4, %v5187_v14  ;;  %v689_v38 = vsel %vm5887_vm8, %v5733_v29, %v685_v54  ;;  %vm5937_vm11 = vcmp.eq.f32.partialorder %v690_v62, 8.507059e+37  ;;  %v5958_v36 = vld [vmem:[#allocation25 + $0x98] sm:$0xff] }
  0x8d   :  { %1489 = vst [vmem:[#allocation12 + $0x40] sm:$0xff] %v5096_v5  ;;  %v738_v13 = vor.u32 1.1754944e-38, %v737_v42  ;;  %v723_v58 = vor.u32 1.1754944e-38, %v722_v22  ;;  %v734_v3 = vsel %vm5908_vm9, %v5748_v47, %v730_v61  ;;  %vm5945_vm12 = vcmp.eq.f32.partialorder %v735_v0, 8.507059e+37  ;;  %v131_v47 = vld [vmem:[#allocation26 + $0x10] sm:$0xff] }
  0x8e   :  { %1490 = vst [vmem:[#allocation12 + $0xd8] sm:$0xff] %v5096_v5  ;;  %v758_v4 = vsub.f32 1.0, %v757_v12  ;;  %v710_v29 = vmul.f32 %v709_v7, %v5187_v14  ;;  %v719_v54 = vsel %vm5928_vm10, %v5743_v1, %v715_v52  ;;  %vm5954_vm13 = vcmp.eq.f32.partialorder %v720_v10, 8.507059e+37  ;;  %v5972_v1 = vld [vmem:[#allocation25 + $0x48] sm:$0xff] }
  0x8f   :  { %1491 = vst [vmem:[#allocation12 + $0xc8] sm:$0xff] %v5096_v5  ;;  %v743_v23 = vsub.f32 1.0, %v742_v35  ;;  %4695 = vrcp.f32 %v5958_v36  ;;  %v694_v42 = vsel %vm5937_vm11, %v693_v11, %v689_v38  ;;  %v739_v35 = vsel %vm5945_vm12, %v738_v13, %v734_v3  ;;  %v5978_v11 = vld [vmem:[#allocation25 + $0xa8] sm:$0xff]  ;;  %v132_v3 = vld [vmem:[#allocation26 + $0x18] sm:$0xff] }
  0x90   :  { %1492 = vst [vmem:[#allocation12 + $0x98] sm:$0xff] %v5096_v5  ;;  %v5964_v22 = vpop.eup %4691  ;;  %4697 = vrcp.f32 %v5966_v24  ;;  %v772_v61 = vmul.f32 %v5972_v1, %v5767_v34  ;;  %v665_v12 = vmul.f32 %v664_v17, %v5187_v14  ;;  %v724_v52 = vsel %vm5954_vm13, %v723_v58, %v719_v54  ;;  %v130_v13 = vld [vmem:[#allocation26 + $0x8] sm:$0xff]  ;;  %v5997_v58 = vld [vmem:[#allocation25 + $0x50] sm:$0xff] }
  0x91   :  { %1493 = vst [vmem:[#allocation12 + $0x28] sm:$0xff] %v5096_v5  ;;  %v5976_v0 = vpop.eup %4693  ;;  %4699 = vrcp.f32 %v5978_v11  ;;  %v759_v10 = vmul.f32 %v5762_v59, %v758_v4  ;;  %v5987_v37 = vmul.f32 %v680_v50, %v131_v47  ;;  %v695_v7 = vmul.f32 %v694_v42, %v5187_v14  ;;  %v135_v4 = vld [vmem:[#allocation26 + $0x30] sm:$0xff] }
  0x92   :  { %1494 = vst [vmem:[#allocation12 + $0x10] sm:$0xff] %v5096_v5  ;;  %v5990_v38 = vmul.f32 %v710_v29, %v133_v55  ;;  %v744_v46 = vmul.f32 %v5756_v25, %v743_v23  ;;  %v740_v17 = vmul.f32 %v739_v35, %v5187_v14  ;;  %vm761_vm14 = vweird.f32 %v5894_v16  ;;  %v134_v23 = vld [vmem:[#allocation26 + $0x28] sm:$0xff]  ;;  %v6011_v55 = vld [vmem:[#allocation25 + $0x60] sm:$0xff] }
  0x93   :  { %1495 = vst [vmem:[#allocation12 + $0x58] sm:$0xff] %v5096_v5  ;;  %vm762_vm15 = vweird.f32 %v5762_v59  ;;  %v787_v50 = vmul.f32 %v5997_v58, %v5777_v26  ;;  %v725_v6 = vmul.f32 %v724_v52, %v5187_v14  ;;  %vm746_vm0 = vweird.f32 %v5912_v33 }
  0x94   :  { %1496 = vst [vmem:[#allocation12 + $0x38] sm:$0xff] %v5096_v5  ;;  %v767_v29 = vand.u32 2147483648, %v5894_v16  ;;  %v773_v54 = vsub.f32 1.0, %v772_v61  ;;  %vm747_vm1 = vweird.f32 %v5756_v25  ;;  %v760_v47 = vadd.f32 %v5762_v59, %v759_v10  ;;  %vm6028_vm2 = vmor %vm761_vm14, %vm762_vm15 }
  0x95   :  { %1497 = vst [vmem:[#allocation12 + $0xa0] sm:$0xff] %v5096_v5  ;;  %v6005_v62 = vpop.eup %4695  ;;  %v765_v42 = vand.u32 2147483647, %v5894_v16  ;;  %v817_v35 = vmul.f32 %v6011_v55, %v5798_v57  ;;  %v6018_v61 = vmul.f32 %v665_v12, %v130_v13  ;;  %v1086_v49 = vmul.f32 %v5577_v44, %v5987_v37  ;;  %vm6049_vm3 = vmor %vm746_vm0, %vm747_vm1 }
  0x96   :  { %1498 = vst [vmem:[#allocation12 + $0xc0] sm:$0xff] %v5096_v5  ;;  %v6015_v52 = vpop.eup %4697  ;;  %v752_v10 = vand.u32 2147483648, %v5912_v33  ;;  %v6035_v12 = vmul.f32 %v695_v7, %v132_v3  ;;  %v6037_v13 = vmul.f32 %v740_v17, %v135_v4  ;;  %v745_v41 = vadd.f32 %v5756_v25, %v744_v46  ;;  %v6058_v46 = vld [vmem:[#allocation25 + $0x58] sm:$0xff] }
  0x97   :  { %1499 = vst [vmem:[#allocation12 + $0x8] sm:$0xff] %v5096_v5  ;;  %v6032_v39 = vpop.eup %4699  ;;  %v788_v27 = vsub.f32 1.0, %v787_v50  ;;  %v1088_v16 = vmul.f32 %v5577_v44, %v5990_v38  ;;  %v6043_v28 = vmul.f32 %v725_v6, %v134_v23  ;;  %v768_v7 = vor.u32 1.1754944e-38, %v767_v29 }
  0x98   :  { %1500 = vst [vmem:[#allocation12 + $0xd0] sm:$0xff] %v5096_v5  ;;  %v774_v17 = vmul.f32 %v5767_v34, %v773_v54  ;;  %vm766_vm4 = vcmp.eq.f32.partialorder %v765_v42, 8.507059e+37  ;;  %v802_v50 = vmul.f32 %v6058_v46, %v5794_v31  ;;  %v818_v33 = vsub.f32 1.0, %v817_v35  ;;  %v6098_v35 = vld [vmem:[#allocation25 + $0x70] sm:$0xff] }
  0x99   :  { %1501 = vst [vmem:[#allocation12 + $0x60] sm:$0xff] %v5096_v5  ;;  %vm6063_vm5 = vcmp.eq.f32.partialorder %v750_v63, 8.507059e+37  ;;  %v753_v6 = vor.u32 1.1754944e-38, %v752_v10  ;;  %vm776_vm6 = vweird.f32 %v5972_v1  ;;  %vm777_vm7 = vweird.f32 %v5767_v34 }
  0x9a   :  { %1502 = vst [vmem:[#allocation12 + $0x20] sm:$0x3] %v5096_v5  ;;  %v6071_v51 = vmul.f32 %v5577_v44, %v6037_v13  ;;  %v780_v4 = vand.u32 2147483647, %v5972_v1  ;;  %v789_v63 = vmul.f32 %v5777_v26, %v788_v27  ;;  %v775_v54 = vadd.f32 %v5767_v34, %v774_v17  ;;  %vm6083_vm9 = vmor %vm776_vm6, %vm777_vm7  ;;  %v6089_v27 = vld [vmem:[#allocation25 + $0x68] sm:$0xff] }
  0x9b   :  { %1503 = vst [vmem:[#allocation12 + $0x88] sm:$0x3] %v5096_v5  ;;  %v782_v23 = vand.u32 2147483648, %v5972_v1  ;;  %vm791_vm8 = vweird.f32 %v5997_v58  ;;  %vm792_vm10 = vweird.f32 %v5777_v26  ;;  %v803_v19 = vsub.f32 1.0, %v802_v50 }
  0x9c   :  { %1504 = vst [vmem:[#allocation13] sm:$0xff] %v5096_v5  ;;  %v797_v42 = vand.u32 2147483648, %v5997_v58  ;;  %v847_v10 = vmul.f32 %v6098_v35, %v5825_v2  ;;  %v790_v17 = vadd.f32 %v5777_v26, %v789_v63  ;;  %vm821_vm11 = vweird.f32 %v6011_v55  ;;  %vm6119_vm14 = vmor %vm791_vm8, %vm792_vm10 }
  0x9d   :  { %1505 = vst [vmem:[#allocation13 + $0x8] sm:$0xff] %v5096_v5  ;;  %vm822_vm12 = vweird.f32 %v5798_v57  ;;  %vm6111_vm13 = vcmp.eq.f32.partialorder %v780_v4, 8.507059e+37  ;;  %v783_v50 = vor.u32 1.1754944e-38, %v782_v23  ;;  %v827_v3 = vand.u32 2147483648, %v6011_v55 }
  0x9e   :  { %1506 = vst [vmem:[#allocation13 + $0x10] sm:$0xff] %v5096_v5  ;;  %v825_v4 = vand.u32 2147483647, %v6011_v55  ;;  %vm6137_vm0 = vmor %vm821_vm11, %vm822_vm12  ;;  %vm806_vm1 = vweird.f32 %v6058_v46  ;;  %vm836_vm6 = vweird.f32 %v6089_v27  ;;  %vm837_vm7 = vweird.f32 %v5807_v60 }
  0x9f   :  { %1507 = vst [vmem:[#allocation13 + $0x18] sm:$0xff] %v5096_v5  ;;  %vm851_vm8 = vweird.f32 %v6098_v35  ;;  %vm6207_vm10 = vmor %vm836_vm6, %vm837_vm7  ;;  %vm911_vm6 = vweird.f32 %v5916_v20  ;;  %vm912_vm7 = vweird.f32 %v5976_v0 }
  0xa0   :  { %1508 = vst [vmem:[#allocation13 + $0x20] sm:$0xff] %v5096_v5 }
  0xa1   :  { %1509 = vst [vmem:[#allocation13 + $0x28] sm:$0xff] %v5096_v5 }
  0xa2   :  { %1510 = vst [vmem:[#allocation13 + $0x30] sm:$0xff] %v5096_v5 }
  0xa3   :  { %1511 = vst [vmem:[#allocation13 + $0x38] sm:$0xff] %v5096_v5 }
  0xa4   :  { %1512 = vst [vmem:[#allocation13 + $0x40] sm:$0xff] %v5096_v5 }
  0xa5   :  { %1513 = vst [vmem:[#allocation13 + $0x48] sm:$0xff] %v5096_v5 }
  0xa6   :  { %1514 = vst [vmem:[#allocation13 + $0x50] sm:$0xff] %v5096_v5 }
  0xa7   :  { %1515 = vst [vmem:[#allocation13 + $0x58] sm:$0xff] %v5096_v5 }
  0xa8   :  { %1516 = vst [vmem:[#allocation13 + $0x60] sm:$0xff] %v5096_v5 }
  0xa9   :  { %1517 = vst [vmem:[#allocation13 + $0x68] sm:$0xff] %v5096_v5 }
  0xaa   :  { %1518 = vst [vmem:[#allocation13 + $0x70] sm:$0xff] %v5096_v5 }
  0xab   :  { %1519 = vst [vmem:[#allocation13 + $0x78] sm:$0xff] %v5096_v5 }
  0xac   :  { %1520 = vst [vmem:[#allocation13 + $0x80] sm:$0xff] %v5096_v5 }
  0xad   :  { %1521 = vst [vmem:[#allocation13 + $0x88] sm:$0xff] %v5096_v5 }
  0xae   :  { %1522 = vst [vmem:[#allocation13 + $0x90] sm:$0xff] %v5096_v5 }
  0xaf   :  { %1523 = vst [vmem:[#allocation13 + $0x98] sm:$0xff] %v5096_v5 }
  0xb0   :  { %1524 = vst [vmem:[#allocation13 + $0xa0] sm:$0xff] %v5096_v5 }
  0xb1   :  { %1525 = vst [vmem:[#allocation13 + $0xa8] sm:$0xff] %v5096_v5 }
  0xb2   :  { %1526 = vst [vmem:[#allocation13 + $0xb0] sm:$0xff] %v5096_v5 }
  0xb3   :  { %1527 = vst [vmem:[#allocation13 + $0xb8] sm:$0xff] %v5096_v5 }
  0xb4   :  { %1528 = vst [vmem:[#allocation13 + $0xc0] sm:$0xff] %v5096_v5 }
  0xb5   :  { %1529 = vst [vmem:[#allocation13 + $0xc8] sm:$0xff] %v5096_v5 }
  0xb6   :  { %1530 = vst [vmem:[#allocation13 + $0xd0] sm:$0x3] %v5096_v5 }
  0xb7   :  { %1531 = vst [vmem:[#allocation13 + $0xd8] sm:$0x3] %v5096_v5 }
  0xb8   :  { %1532 = vst [vmem:[#allocation14] sm:$0xff] %v5096_v5 }
  0xb9   :  { %1533 = vst [vmem:[#allocation14 + $0x8] sm:$0xff] %v5096_v5 }
  0xba   :  { %1534 = vst [vmem:[#allocation14 + $0x10] sm:$0xff] %v5096_v5 }
  0xbb   :  { %1535 = vst [vmem:[#allocation14 + $0x18] sm:$0xff] %v5096_v5 }
  0xbc   :  { %1536 = vst [vmem:[#allocation14 + $0x20] sm:$0xff] %v5096_v5 }
  0xbd   :  { %1537 = vst [vmem:[#allocation14 + $0x28] sm:$0xff] %v5096_v5 }
  0xbe   :  { %1538 = vst [vmem:[#allocation14 + $0x30] sm:$0xff] %v5096_v5 }
  0xbf   :  { %1539 = vst [vmem:[#allocation14 + $0x38] sm:$0xff] %v5096_v5 }
  0xc0   :  { %1540 = vst [vmem:[#allocation14 + $0x40] sm:$0xff] %v5096_v5 }
  0xc1   :  { %1541 = vst [vmem:[#allocation14 + $0x48] sm:$0xff] %v5096_v5 }
  0xc2   :  { %1542 = vst [vmem:[#allocation14 + $0x50] sm:$0xff] %v5096_v5 }
  0xc3   :  { %1543 = vst [vmem:[#allocation14 + $0x58] sm:$0xff] %v5096_v5 }
  0xc4   :  { %1544 = vst [vmem:[#allocation14 + $0x60] sm:$0xff] %v5096_v5 }
  0xc5   :  { %1545 = vst [vmem:[#allocation14 + $0x68] sm:$0xff] %v5096_v5 }
  0xc6   :  { %1546 = vst [vmem:[#allocation14 + $0x70] sm:$0xff] %v5096_v5 }
  0xc7   :  { %1547 = vst [vmem:[#allocation14 + $0x78] sm:$0xff] %v5096_v5 }
  0xc8   :  { %1548 = vst [vmem:[#allocation14 + $0x80] sm:$0xff] %v5096_v5 }
  0xc9   :  { %1549 = vst [vmem:[#allocation14 + $0x88] sm:$0xff] %v5096_v5 }
  0xca   :  { %1550 = vst [vmem:[#allocation14 + $0x90] sm:$0xff] %v5096_v5 }
  0xcb   :  { %1551 = vst [vmem:[#allocation14 + $0x98] sm:$0xff] %v5096_v5 }
  0xcc   :  { %1552 = vst [vmem:[#allocation14 + $0xa0] sm:$0xff] %v5096_v5 }
  0xcd   :  { %1553 = vst [vmem:[#allocation14 + $0xa8] sm:$0xff] %v5096_v5 }
  0xce   :  { %1554 = vst [vmem:[#allocation14 + $0xb0] sm:$0xff] %v5096_v5 }
  0xcf   :  { %1555 = vst [vmem:[#allocation14 + $0xb8] sm:$0xff] %v5096_v5 }
  0xd0   :  { %1556 = vst [vmem:[#allocation14 + $0xc0] sm:$0xff] %v5096_v5 }
  0xd1   :  { %1557 = vst [vmem:[#allocation14 + $0xc8] sm:$0xff] %v5096_v5 }
  0xd2   :  { %1558 = vst [vmem:[#allocation14 + $0xd0] sm:$0x3] %v5096_v5 }
  0xd3   :  { %1559 = vst [vmem:[#allocation14 + $0xd8] sm:$0x3] %v5096_v5 }
  0xd4   :  { %1560 = vst [vmem:[#allocation15] sm:$0xff] %v5096_v5 }
  0xd5   :  { %1561 = vst [vmem:[#allocation15 + $0x8] sm:$0xff] %v5096_v5 }
  0xd6   :  { %1562 = vst [vmem:[#allocation15 + $0x10] sm:$0xff] %v5096_v5 }
  0xd7   :  { %1563 = vst [vmem:[#allocation15 + $0x18] sm:$0xff] %v5096_v5 }
  0xd8   :  { %1564 = vst [vmem:[#allocation15 + $0x20] sm:$0xff] %v5096_v5 }
  0xd9   :  { %1565 = vst [vmem:[#allocation15 + $0x28] sm:$0xff] %v5096_v5 }
  0xda   :  { %1566 = vst [vmem:[#allocation15 + $0x30] sm:$0xff] %v5096_v5 }
  0xdb   :  { %1567 = vst [vmem:[#allocation15 + $0x38] sm:$0xff] %v5096_v5 }
  0xdc   :  { %1568 = vst [vmem:[#allocation15 + $0x40] sm:$0xff] %v5096_v5 }
  0xdd   :  { %1569 = vst [vmem:[#allocation15 + $0x48] sm:$0xff] %v5096_v5 }
  0xde   :  { %1570 = vst [vmem:[#allocation15 + $0x50] sm:$0xff] %v5096_v5 }
  0xdf   :  { %1571 = vst [vmem:[#allocation15 + $0x58] sm:$0xff] %v5096_v5 }
  0xe0   :  { %1572 = vst [vmem:[#allocation15 + $0x60] sm:$0xff] %v5096_v5 }
  0xe1   :  { %1573 = vst [vmem:[#allocation15 + $0x68] sm:$0xff] %v5096_v5 }
  0xe2   :  { %1574 = vst [vmem:[#allocation15 + $0x70] sm:$0xff] %v5096_v5 }
  0xe3   :  { %1575 = vst [vmem:[#allocation15 + $0x78] sm:$0xff] %v5096_v5 }
  0xe4   :  { %1576 = vst [vmem:[#allocation15 + $0x80] sm:$0xff] %v5096_v5 }
  0xe5   :  { %1577 = vst [vmem:[#allocation15 + $0x88] sm:$0xff] %v5096_v5 }
  0xe6   :  { %1578 = vst [vmem:[#allocation15 + $0x90] sm:$0xff] %v5096_v5 }
  0xe7   :  { %1579 = vst [vmem:[#allocation15 + $0x98] sm:$0xff] %v5096_v5 }
  0xe8   :  { %1580 = vst [vmem:[#allocation15 + $0xa0] sm:$0xff] %v5096_v5 }
  0xe9   :  { %1581 = vst [vmem:[#allocation15 + $0xa8] sm:$0xff] %v5096_v5 }
  0xea   :  { %1582 = vst [vmem:[#allocation15 + $0xb0] sm:$0xff] %v5096_v5 }
  0xeb   :  { %1583 = vst [vmem:[#allocation15 + $0xb8] sm:$0xff] %v5096_v5 }
  0xec   :  { %1584 = vst [vmem:[#allocation15 + $0xc0] sm:$0xff] %v5096_v5 }
  0xed   :  { %1585 = vst [vmem:[#allocation15 + $0xc8] sm:$0xff] %v5096_v5 }
  0xee   :  { %1586 = vst [vmem:[#allocation15 + $0xd0] sm:$0x3] %v5096_v5 }
  0xef   :  { %1587 = vst [vmem:[#allocation15 + $0xd8] sm:$0x3] %v5096_v5 }
  0xf0   :  { %1588 = vst [vmem:[#allocation16 + $0x98] sm:$0xff] %v5096_v5 }
  0xf1   :  { %1589 = vst [vmem:[#allocation16 + $0x10] sm:$0xff] %v5096_v5 }
  0xf2   :  { %1590 = vst [vmem:[#allocation16 + $0x80] sm:$0xff] %v5096_v5 }
  0xf3   :  { %1591 = vst [vmem:[#allocation16 + $0x50] sm:$0xff] %v5096_v5 }
  0xf4   :  { %1592 = vst [vmem:[#allocation16 + $0x68] sm:$0xff] %v5096_v5 }
  0xf5   :  { %1593 = vst [vmem:[#allocation16 + $0x38] sm:$0xff] %v5096_v5 }
  0xf6   :  { %1594 = vst [vmem:[#allocation16 + $0xc8] sm:$0xff] %v5096_v5 }
  0xf7   :  { %1595 = vst [vmem:[#allocation16 + $0x90] sm:$0xff] %v5096_v5 }
  0xf8   :  { %1596 = vst [vmem:[#allocation16 + $0xc0] sm:$0xff] %v5096_v5 }
  0xf9   :  { %1597 = vst [vmem:[#allocation16 + $0x30] sm:$0xff] %v5096_v5 }
  0xfa   :  { %1598 = vst [vmem:[#allocation16 + $0x78] sm:$0xff] %v5096_v5 }
  0xfb   :  { %1599 = vst [vmem:[#allocation16 + $0x28] sm:$0xff] %v5096_v5 }
  0xfc   :  { %1600 = vst [vmem:[#allocation16 + $0x88] sm:$0xff] %v5096_v5 }
  0xfd   :  { %1601 = vst [vmem:[#allocation16 + $0xd0] sm:$0xff] %v5096_v5 }
  0xfe   :  { %1602 = vst [vmem:[#allocation16 + $0x20] sm:$0xff] %v5096_v5 }
  0xff   :  { %1603 = vst [vmem:[#allocation16 + $0x60] sm:$0xff] %v5096_v5 }
 0x100   :  { %1604 = vst [vmem:[#allocation16 + $0xa0] sm:$0xff] %v5096_v5 }
 0x101   :  { %1605 = vst [vmem:[#allocation16 + $0x58] sm:$0xff] %v5096_v5 }
 0x102   :  { %1606 = vst [vmem:[#allocation16 + $0xd8] sm:$0xff] %v5096_v5 }
 0x103   :  { %1607 = vst [vmem:[#allocation16 + $0xb0] sm:$0xff] %v5096_v5 }
 0x104   :  { %1608 = vst [vmem:[#allocation16 + $0x40] sm:$0xff] %v5096_v5 }
 0x105   :  { %1609 = vst [vmem:[#allocation16 + $0xa8] sm:$0xff] %v5096_v5 }
 0x106   :  { %1610 = vst [vmem:[#allocation16 + $0xb8] sm:$0xff] %v5096_v5 }
 0x107   :  { %1611 = vst [vmem:[#allocation16 + $0x18] sm:$0xff] %v5096_v5 }
 0x108   :  { %1612 = vst [vmem:[#allocation16 + $0x8] sm:$0xff] %v5096_v5 }
 0x109   :  { %1613 = vst [vmem:[#allocation16 + $0x70] sm:$0xff] %v5096_v5 }
 0x10a   :  { %1614 = vst [vmem:[#allocation16] sm:$0x3] %v5096_v5 }
 0x10b   :  { %1615 = vst [vmem:[#allocation16 + $0x48] sm:$0x3] %v5096_v5 }
 0x10c   :  { %1616 = vst [vmem:[#allocation31] sm:$0xff] %v5096_v5 }
 0x10d   :  { %1617 = vst [vmem:[#allocation31 + $0x8] sm:$0xff] %v5096_v5 }
 0x10e   :  { %1618 = vst [vmem:[#allocation31 + $0x10] sm:$0xff] %v5096_v5 }
 0x10f   :  { %1619 = vst [vmem:[#allocation31 + $0x18] sm:$0xff] %v5096_v5 }
 0x110   :  { %1620 = vst [vmem:[#allocation31 + $0x20] sm:$0xff] %v5096_v5 }
 0x111   :  { %1621 = vst [vmem:[#allocation31 + $0x28] sm:$0xff] %v5096_v5 }
 0x112   :  { %1622 = vst [vmem:[#allocation31 + $0x30] sm:$0xff] %v5096_v5 }
 0x113   :  { %1623 = vst [vmem:[#allocation31 + $0x38] sm:$0xff] %v5096_v5 }
 0x114   :  { %1624 = vst [vmem:[#allocation31 + $0x40] sm:$0xff] %v5096_v5 }
 0x115   :  { %1625 = vst [vmem:[#allocation31 + $0x48] sm:$0xff] %v5096_v5 }
 0x116   :  { %1626 = vst [vmem:[#allocation31 + $0x50] sm:$0xff] %v5096_v5 }
 0x117   :  { %1627 = vst [vmem:[#allocation31 + $0x58] sm:$0xff] %v5096_v5 }
 0x118   :  { %1628 = vst [vmem:[#allocation31 + $0x60] sm:$0xff] %v5096_v5 }
 0x119   :  { %1629 = vst [vmem:[#allocation31 + $0x68] sm:$0xff] %v5096_v5 }
 0x11a   :  { %1630 = vst [vmem:[#allocation31 + $0x70] sm:$0xff] %v5096_v5 }
 0x11b   :  { %1631 = vst [vmem:[#allocation31 + $0x78] sm:$0xff] %v5096_v5 }
 0x11c   :  { %1632 = vst [vmem:[#allocation31 + $0x80] sm:$0xff] %v5096_v5 }
 0x11d   :  { %1633 = vst [vmem:[#allocation31 + $0x88] sm:$0xff] %v5096_v5 }
 0x11e   :  { %1634 = vst [vmem:[#allocation31 + $0x90] sm:$0xff] %v5096_v5 }
 0x11f   :  { %1635 = vst [vmem:[#allocation31 + $0x98] sm:$0xff] %v5096_v5 }
 0x120   :  { %1636 = vst [vmem:[#allocation31 + $0xa0] sm:$0xff] %v5096_v5 }
 0x121   :  { %1637 = vst [vmem:[#allocation31 + $0xa8] sm:$0xff] %v5096_v5 }
 0x122   :  { %1638 = vst [vmem:[#allocation31 + $0xb0] sm:$0xff] %v5096_v5 }
 0x123   :  { %1639 = vst [vmem:[#allocation31 + $0xb8] sm:$0xff] %v5096_v5 }
 0x124   :  { %1640 = vst [vmem:[#allocation31 + $0xc0] sm:$0xff] %v5096_v5 }
 0x125   :  { %1641 = vst [vmem:[#allocation31 + $0xc8] sm:$0xff] %v5096_v5 }
 0x126   :  { %1642 = vst [vmem:[#allocation31 + $0xd0] sm:$0x3] %v5096_v5 }
 0x127   :  { %1643 = vst [vmem:[#allocation31 + $0xd8] sm:$0x3] %v5096_v5  ;;  %v764_v5 = vsel %vm6028_vm2, %v5762_v59, %v760_v47  ;;  %v749_v59 = vsel %vm6049_vm3, %v5756_v25, %v745_v41  ;;  %v819_v41 = vmul.f32 %v5798_v57, %v818_v33  ;;  %v832_v25 = vmul.f32 %v6089_v27, %v5807_v60  ;;  %v136_v33 = vld [vmem:[#allocation26 + $0x38] sm:$0xff] }
 0x128   :  { %1113 = vst [vmem:[#allocation4 + $0x50] sm:$0xff] %v6018_v61  ;;  %v769_v29 = vsel %vm766_vm4, %v768_v7, %v764_v5  ;;  %v754_v1 = vsel %vm6063_vm5, %v753_v6, %v749_v59  ;;  %v795_v47 = vand.u32 2147483647, %v5997_v58  ;;  %v137_v6 = vld [vmem:[#allocation26 + $0x40] sm:$0xff]  ;;  %v798_v58 = vor.u32 1.1754944e-38, %v797_v42 }
 0x129   :  { %1281 = vst [vmem:[#allocation7 + $0x98] sm:$0xff] %v6018_v61  ;;  %v770_v7 = vmul.f32 %v769_v29, %v5187_v14  ;;  %v820_v59 = vadd.f32 %v5798_v57, %v819_v41  ;;  %v833_v63 = vsub.f32 1.0, %v832_v25  ;;  %vm807_vm2 = vweird.f32 %v5794_v31  ;;  %v6199_v29 = vld [vmem:[#allocation25 + $0xb0] sm:$0xff] }
 0x12a   :  { %1114 = vst [vmem:[#allocation4 + $0x70] sm:$0xff] %v1086_v49  ;;  %vm6128_vm15 = vcmp.eq.f32.partialorder %v795_v47, 8.507059e+37  ;;  %v848_v49 = vsub.f32 1.0, %v847_v10  ;;  %v755_v55 = vmul.f32 %v754_v1, %v5187_v14  ;;  %v828_v47 = vor.u32 1.1754944e-38, %v827_v3  ;;  %vm6169_vm4 = vmor %vm806_vm1, %vm807_vm2  ;;  %v141_v10 = vld [vmem:[#allocation26 + $0x60] sm:$0xff] }
 0x12b   :  { %1170 = vst [vmem:[#allocation5 + $0x88] sm:$0xff] %v5987_v37  ;;  %v6150_v41 = vmul.f32 %v770_v7, %v137_v6  ;;  %v824_v42 = vsel %vm6137_vm0, %v5798_v57, %v820_v59  ;;  %vm6159_vm3 = vcmp.eq.f32.partialorder %v825_v4, 8.507059e+37  ;;  %v834_v1 = vmul.f32 %v5807_v60, %v833_v63 }
 0x12c   :  { %1226 = vst [vmem:[#allocation6] sm:$0xff] %v5987_v37  ;;  %v849_v57 = vmul.f32 %v5825_v2, %v848_v49  ;;  %v829_v3 = vsel %vm6159_vm3, %v828_v47, %v824_v42  ;;  %v840_v6 = vand.u32 2147483647, %v6089_v27  ;;  %v855_v4 = vand.u32 2147483647, %v6098_v35 }
 0x12d   :  { %1282 = vst [vmem:[#allocation7 + $0xa8] sm:$0xff] %v5987_v37  ;;  %v779_v37 = vsel %vm6083_vm9, %v5767_v34, %v775_v54  ;;  %v804_v34 = vmul.f32 %v5794_v31, %v803_v19  ;;  %v812_v54 = vand.u32 2147483648, %v6058_v46  ;;  %v810_v19 = vand.u32 2147483647, %v6058_v46 }
 0x12e   :  { %1115 = vst [vmem:[#allocation4 + $0x60] sm:$0xff] %v6035_v12  ;;  %v784_v25 = vsel %vm6111_vm13, %v783_v50, %v779_v37  ;;  %v6174_v37 = vld [vmem:[#allocation25 + $0x80] sm:$0xff]  ;;  %v842_v46 = vand.u32 2147483648, %v6089_v27  ;;  %vm852_vm9 = vweird.f32 %v5825_v2  ;;  %v835_v59 = vadd.f32 %v5807_v60, %v834_v1 }
 0x12f   :  { %1171 = vst [vmem:[#allocation5 + $0x78] sm:$0xff] %v6035_v12  ;;  %v877_v5 = vmul.f32 %v6174_v37, %v5880_v43  ;;  %vm6179_vm5 = vcmp.eq.f32.partialorder %v810_v19, 8.507059e+37  ;;  %v857_v63 = vand.u32 2147483648, %v6098_v35  ;;  %4701 = vrcp.f32 %v6199_v29  ;;  %vm6227_vm11 = vmor %vm851_vm8, %vm852_vm9  ;;  %v138_v35 = vld [vmem:[#allocation26 + $0x48] sm:$0xff] }
 0x130   :  { %1283 = vst [vmem:[#allocation7 + $0x70] sm:$0xff] %v6035_v12  ;;  %v6217_v49 = vmul.f32 %v755_v55, %v136_v33  ;;  %v830_v19 = vmul.f32 %v829_v3, %v5187_v14  ;;  %v785_v55 = vmul.f32 %v784_v25, %v5187_v14  ;;  %vm6235_vm12 = vcmp.eq.f32.partialorder %v840_v6, 8.507059e+37 }
 0x131   :  { %1116 = vst [vmem:[#allocation4 + $0xd0] sm:$0xff] %v1088_v16  ;;  %v794_v16 = vsel %vm6119_vm14, %v5777_v26, %v790_v17  ;;  %v805_v26 = vadd.f32 %v5794_v31, %v804_v34  ;;  %v813_v17 = vor.u32 1.1754944e-38, %v812_v54  ;;  %v878_v23 = vsub.f32 1.0, %v877_v5 }
 0x132   :  { %1172 = vst [vmem:[#allocation5 + $0xb8] sm:$0xff] %v5990_v38  ;;  %v799_v7 = vsel %vm6128_vm15, %v798_v58, %v794_v16  ;;  %v6212_v58 = vld [vmem:[#allocation25 + $0x78] sm:$0xff]  ;;  %v1092_v16 = vmul.f32 %v5577_v44, %v6150_v41  ;;  %vm6243_vm13 = vcmp.eq.f32.partialorder %v855_v4, 8.507059e+37  ;;  %v858_v25 = vor.u32 1.1754944e-38, %v857_v63 }
 0x133   :  { %1228 = vst [vmem:[#allocation6 + $0xd0] sm:$0xff] %v5990_v38  ;;  %v809_v34 = vsel %vm6169_vm4, %v5794_v31, %v805_v26  ;;  %v850_v31 = vadd.f32 %v5825_v2, %v849_v57  ;;  %v862_v54 = vmul.f32 %v6212_v58, %v5845_v9  ;;  %v800_v27 = vmul.f32 %v799_v7, %v5187_v14  ;;  %v139_v26 = vld [vmem:[#allocation26 + $0x50] sm:$0xff] }
 0x134   :  { %1284 = vst [vmem:[#allocation7 + $0x88] sm:$0xff] %v5990_v38  ;;  %v814_v42 = vsel %vm6179_vm5, %v813_v17, %v809_v34  ;;  %v843_v7 = vor.u32 1.1754944e-38, %v842_v46  ;;  %v839_v38 = vsel %vm6207_vm10, %v5807_v60, %v835_v59  ;;  %v907_v17 = vmul.f32 %v5916_v20, %v5976_v0  ;;  %v6256_v46 = vld [vmem:[#allocation25 + $0xb8] sm:$0xff]  ;;  %vm6343_vm10 = vmor %vm911_vm6, %vm912_vm7 }
 0x135   :  { %1117 = vst [vmem:[#allocation4 + $0xd8] sm:$0xff] %v6043_v28  ;;  %v854_v57 = vsel %vm6227_vm11, %v5825_v2, %v850_v31  ;;  %v863_v5 = vsub.f32 1.0, %v862_v54  ;;  %v879_v50 = vmul.f32 %v5880_v43, %v878_v23  ;;  %v892_v60 = vmul.f32 %v5898_v30, %v5964_v22  ;;  %v6263_v34 = vpop.eup %4701  ;;  %v140_v59 = vld [vmem:[#allocation26 + $0x58] sm:$0xff] }
 0x136   :  { %1173 = vst [vmem:[#allocation5 + $0x68] sm:$0xff] %v6043_v28  ;;  %4703 = vrcp.f32 %v6256_v46  ;;  %v1066_v33 = vmul.f32 %v800_v27, %v139_v26  ;;  %v815_v3 = vmul.f32 %v814_v42, %v5187_v14  ;;  %v6261_v6 = vmul.f32 %v830_v19, %v141_v10 }
 0x137   :  { %1285 = vst [vmem:[#allocation7 + $0x10] sm:$0xff] %v6043_v28  ;;  %v6265_v2 = vmul.f32 %v785_v55, %v138_v35  ;;  %v872_v4 = vand.u32 2147483648, %v6212_v58  ;;  %vm881_vm14 = vweird.f32 %v6174_v37  ;;  %vm882_vm15 = vweird.f32 %v5880_v43  ;;  %v143_v35 = vld [vmem:[#allocation26 + $0x70] sm:$0xff] }
 0x138   :  { %1118 = vst [vmem:[#allocation4 + $0x28] sm:$0xff] %v6071_v51  ;;  %v844_v63 = vsel %vm6235_vm12, %v843_v7, %v839_v38  ;;  %v859_v51 = vsel %vm6243_vm13, %v858_v25, %v854_v57  ;;  %v887_v31 = vand.u32 2147483648, %v6174_v37  ;;  %v908_v54 = vsub.f32 1.0, %v907_v17  ;;  %vm6291_vm0 = vmor %vm881_vm14, %vm882_vm15 }
 0x139   :  { %1174 = vst [vmem:[#allocation5 + $0x48] sm:$0xff] %v6037_v13  ;;  %v864_v23 = vmul.f32 %v5845_v9, %v863_v5  ;;  %v885_v27 = vand.u32 2147483647, %v6174_v37  ;;  %v893_v19 = vsub.f32 1.0, %v892_v60  ;;  %v1094_v47 = vmul.f32 %v5577_v44, %v1066_v33 }
 0x13a   :  { %1230 = vst [vmem:[#allocation6 + $0xb8] sm:$0xff] %v6037_v13  ;;  %v6282_v55 = vmul.f32 %v815_v3, %v140_v59  ;;  %v1096_v26 = vmul.f32 %v5577_v44, %v6261_v6  ;;  %v870_v42 = vand.u32 2147483647, %v6212_v58  ;;  %v860_v1 = vmul.f32 %v859_v51, %v5187_v14  ;;  %v142_v59 = vld [vmem:[#allocation26 + $0x68] sm:$0xff] }
 0x13b   :  { %1286 = vst [vmem:[#allocation7 + $0x28] sm:$0xff] %v6037_v13  ;;  %vm866_vm1 = vweird.f32 %v6212_v58  ;;  %vm867_vm2 = vweird.f32 %v5845_v9  ;;  %v873_v37 = vor.u32 1.1754944e-38, %v872_v4  ;;  %v888_v38 = vor.u32 1.1754944e-38, %v887_v31 }
 0x13c   :  { %1119 = vst [vmem:[#allocation4 + $0x40] sm:$0xff] %v6217_v49  ;;  %v6300_v7 = vpop.eup %4703  ;;  %v909_v13 = vmul.f32 %v5976_v0, %v908_v54  ;;  %v937_v25 = vmul.f32 %v5966_v24, %v6015_v52  ;;  %v865_v17 = vadd.f32 %v5845_v9, %v864_v23  ;;  %vm886_vm3 = vcmp.eq.f32.partialorder %v885_v27, 8.507059e+37  ;;  %vm6314_vm4 = vmor %vm866_vm1, %vm867_vm2 }
 0x13d   :  { %1175 = vst [vmem:[#allocation5 + $0x98] sm:$0xff] %v6217_v49  ;;  %v894_v5 = vmul.f32 %v5964_v22, %v893_v19  ;;  %vm6318_vm5 = vcmp.eq.f32.partialorder %v870_v42, 8.507059e+37  ;;  %v6326_v3 = vmul.f32 %v860_v1, %v143_v35  ;;  %vm896_vm8 = vweird.f32 %v5898_v30  ;;  %v145_v35 = vld [vmem:[#allocation26 + $0x80] sm:$0xff]  ;;  %v6418_v19 = vld [vmem:[#allocation25 + $0xd0] sm:$0x3] }
 0x13e   :  { %1287 = vst [vmem:[#allocation7 + $0xb8] sm:$0xff] %v6217_v49  ;;  %vm897_vm9 = vweird.f32 %v5964_v22  ;;  %v917_v58 = vand.u32 2147483648, %v5916_v20  ;;  %v915_v51 = vand.u32 2147483647, %v5916_v20  ;;  %v938_v31 = vsub.f32 1.0, %v937_v25 }
 0x13f   :  { %1120 = vst [vmem:[#allocation4 + $0x48] sm:$0xff] %v1092_v16  ;;  %v880_v16 = vadd.f32 %v5880_v43, %v879_v50  ;;  %v869_v54 = vsel %vm6314_vm4, %v5845_v9, %v865_v17  ;;  %v895_v23 = vadd.f32 %v5964_v22, %v894_v5  ;;  %v902_v27 = vand.u32 2147483648, %v5898_v30  ;;  %vm6355_vm11 = vmor %vm896_vm8, %vm897_vm9 }
 0x140   :  { %1176 = vst [vmem:[#allocation5 + $0xc8] sm:$0xff] %v6150_v41  ;;  %v1098_v42 = vmul.f32 %v5577_v44, %v6326_v3  ;;  %v918_v1 = vor.u32 1.1754944e-38, %v917_v58  ;;  %vm916_vm12 = vcmp.eq.f32.partialorder %v915_v51, 8.507059e+37  ;;  %vm941_vm14 = vweird.f32 %v5966_v24 }
 0x141   :  { %1232 = vst [vmem:[#allocation6 + $0x50] sm:$0xff] %v6150_v41  ;;  %v884_v57 = vsel %vm6291_vm0, %v5880_v43, %v880_v16  ;;  %v922_v43 = vmul.f32 %v5958_v36, %v6005_v62  ;;  %v900_v16 = vand.u32 2147483647, %v5898_v30  ;;  %v874_v30 = vsel %vm6318_vm5, %v873_v37, %v869_v54 }
 0x142   :  { %1288 = vst [vmem:[#allocation7 + $0x18] sm:$0xff] %v6150_v41  ;;  %v845_v41 = vmul.f32 %v844_v63, %v5187_v14  ;;  %v889_v4 = vsel %vm886_vm3, %v888_v38, %v884_v57  ;;  %v910_v63 = vadd.f32 %v5976_v0, %v909_v13  ;;  %v899_v13 = vsel %vm6355_vm11, %v5964_v22, %v895_v23 }
 0x143   :  { %1121 = vst [vmem:[#allocation4 + $0x78] sm:$0xff] %v6265_v2  ;;  %v890_v10 = vmul.f32 %v889_v4, %v5187_v14  ;;  %vm6375_vm13 = vcmp.eq.f32.partialorder %v900_v16, 8.507059e+37  ;;  %v903_v17 = vor.u32 1.1754944e-38, %v902_v27  ;;  %v967_v37 = vmul.f32 %v6199_v29, %v6263_v34  ;;  %v144_v4 = vld [vmem:[#allocation26 + $0x78] sm:$0xff] }
 0x144   :  { %1177 = vst [vmem:[#allocation5 + $0xc0] sm:$0xff] %v6265_v2  ;;  %v6360_v20 = vmul.f32 %v845_v41, %v142_v59  ;;  %v914_v38 = vsel %vm6343_vm10, %v5976_v0, %v910_v63  ;;  %v939_v41 = vmul.f32 %v6015_v52, %v938_v31  ;;  %vm942_vm15 = vweird.f32 %v6015_v52  ;;  %v6399_v59 = vld [vmem:[#allocation25 + $0xc8] sm:$0xff] }
 0x145   :  { %1289 = vst [vmem:[#allocation7 + $0x60] sm:$0xff] %v6265_v2  ;;  %v875_v22 = vmul.f32 %v874_v30, %v5187_v14  ;;  %v6389_v57 = vmul.f32 %v890_v10, %v145_v35  ;;  %v919_v5 = vsel %vm916_vm12, %v918_v1, %v914_v38  ;;  %v947_v50 = vand.u32 2147483648, %v5966_v24  ;;  %vm6410_vm2 = vmor %vm941_vm14, %vm942_vm15 }
 0x146   :  { %1122 = vst [vmem:[#allocation4] sm:$0xff] %v1094_v47  ;;  %v6347_v47 = vld [vmem:[#allocation25 + $0xc0] sm:$0xff]  ;;  %vm926_vm0 = vweird.f32 %v5958_v36  ;;  %vm927_vm1 = vweird.f32 %v6005_v62  ;;  %v945_v58 = vand.u32 2147483647, %v5966_v24  ;;  %v904_v63 = vsel %vm6375_vm13, %v903_v17, %v899_v13  ;;  %v147_v24 = vld [vmem:[#allocation26 + $0x90] sm:$0xff] }
 0x147   :  { %1178 = vst [vmem:[#allocation5 + $0x50] sm:$0xff] %v1066_v33  ;;  %4705 = vrcp.f32 %v6347_v47  ;;  %v968_v31 = vsub.f32 1.0, %v967_v37  ;;  %v920_v54 = vmul.f32 %v919_v5, %v5187_v14  ;;  %v930_v16 = vand.u32 2147483647, %v5958_v36  ;;  %vm6426_vm3 = vmor %vm926_vm0, %vm927_vm1 }
 0x148   :  { %1234 = vst [vmem:[#allocation6 + $0x68] sm:$0xff] %v1066_v33  ;;  %4707 = vrcp.f32 %v6399_v59  ;;  %v6430_v10 = vmul.f32 %v875_v22, %v144_v4  ;;  %v1100_v1 = vmul.f32 %v5577_v44, %v6389_v57  ;;  %vm946_vm4 = vcmp.eq.f32.partialorder %v945_v58, 8.507059e+37 }
 0x149   :  { %1290 = vst [vmem:[#allocation7] sm:$0xff] %v1066_v33  ;;  %v923_v33 = vsub.f32 1.0, %v922_v43  ;;  %v940_v43 = vadd.f32 %v6015_v52, %v939_v41  ;;  %4709 = vrcp.f32 %v6418_v19  ;;  %v969_v38 = vmul.f32 %v6263_v34, %v968_v31  ;;  %v6484_v31 = vld [vmem:[#allocation25 + $0xd8] sm:$0x3] }
 0x14a   :  { %1123 = vst [vmem:[#allocation4 + $0xc0] sm:$0xff] %v6282_v55  ;;  %v6443_v41 = vmul.f32 %v920_v54, %v147_v24  ;;  %vm6448_vm5 = vcmp.eq.f32.partialorder %v930_v16, 8.507059e+37  ;;  %vm971_vm6 = vweird.f32 %v6199_v29  ;;  %vm972_vm7 = vweird.f32 %v6263_v34 }
 0x14b   :  { %1179 = vst [vmem:[#allocation5 + $0x70] sm:$0xff] %v6282_v55  ;;  %v924_v0 = vmul.f32 %v6005_v62, %v923_v33  ;;  %v948_v33 = vor.u32 1.1754944e-38, %v947_v50  ;;  %v944_v30 = vsel %vm6410_vm2, %v6015_v52, %v940_v43  ;;  %vm956_vm8 = vweird.f32 %v5978_v11  ;;  %vm6480_vm10 = vmor %vm971_vm6, %vm972_vm7 }
 0x14c   :  { %1291 = vst [vmem:[#allocation7 + $0x50] sm:$0xff] %v6282_v55  ;;  %vm957_vm9 = vweird.f32 %v6032_v39  ;;  %v977_v22 = vand.u32 2147483648, %v6199_v29  ;;  %v970_v50 = vadd.f32 %v6263_v34, %v969_v38  ;;  %v975_v43 = vand.u32 2147483647, %v6199_v29 }
 0x14d   :  { %1124 = vst [vmem:[#allocation4 + $0x58] sm:$0xff] %v1096_v26  ;;  %v952_v26 = vmul.f32 %v5978_v11, %v6032_v39  ;;  %v6392_v60 = vpop.eup %4705  ;;  %v925_v23 = vadd.f32 %v6005_v62, %v924_v0  ;;  %v949_v37 = vsel %vm946_vm4, %v948_v33, %v944_v30  ;;  %v982_v0 = vmul.f32 %v6256_v46, %v6300_v7  ;;  %vm6493_vm11 = vmor %vm956_vm8, %vm957_vm9 }
 0x14e   :  { %1180 = vst [vmem:[#allocation5 + $0x18] sm:$0xff] %v6261_v6  ;;  %v6453_v17 = vpop.eup %4707  ;;  %v950_v4 = vmul.f32 %v949_v37, %v5187_v14  ;;  %4711 = vrcp.f32 %v6484_v31  ;;  %v978_v9 = vor.u32 1.1754944e-38, %v977_v22  ;;  %vm976_vm12 = vcmp.eq.f32.partialorder %v975_v43, 8.507059e+37 }
 0x14f   :  { %1236 = vst [vmem:[#allocation6 + $0xb0] sm:$0xff] %v6261_v6  ;;  %v953_v27 = vsub.f32 1.0, %v952_v26  ;;  %v929_v13 = vsel %vm6426_vm3, %v6005_v62, %v925_v23  ;;  %v146_v62 = vld [vmem:[#allocation26 + $0x88] sm:$0xff]  ;;  %v962_v26 = vand.u32 2147483648, %v5978_v11  ;;  %v149_v23 = vld [vmem:[#allocation26 + $0xa0] sm:$0xff]  ;;  %v983_v29 = vsub.f32 1.0, %v982_v0 }
 0x150   :  { %1292 = vst [vmem:[#allocation7 + $0xc0] sm:$0xff] %v6261_v6  ;;  %v932_v6 = vand.u32 2147483648, %v5958_v36  ;;  %v905_v36 = vmul.f32 %v904_v63, %v5187_v14  ;;  %v1012_v38 = vmul.f32 %v6399_v59, %v6453_v17  ;;  %vm1001_vm14 = vweird.f32 %v6347_v47 }
 0x151   :  { %1125 = vst [vmem:[#allocation4 + $0x8] sm:$0xff] %v6360_v20  ;;  %v954_v25 = vmul.f32 %v6032_v39, %v953_v27  ;;  %v1102_v27 = vmul.f32 %v5577_v44, %v6443_v41  ;;  %vm1002_vm15 = vweird.f32 %v6392_v60  ;;  %vm986_vm0 = vweird.f32 %v6256_v46 }
 0x152   :  { %1181 = vst [vmem:[#allocation5 + $0x38] sm:$0xff] %v6360_v20  ;;  %v933_v35 = vor.u32 1.1754944e-38, %v932_v6  ;;  %v960_v6 = vand.u32 2147483647, %v5978_v11  ;;  %v6487_v54 = vmul.f32 %v905_v36, %v146_v62  ;;  %v974_v11 = vsel %vm6480_vm10, %v6263_v34, %v970_v50  ;;  %vm6535_vm2 = vmor %vm1001_vm14, %vm1002_vm15 }
 0x153   :  { %1293 = vst [vmem:[#allocation7 + $0x8] sm:$0xff] %v6360_v20  ;;  %v955_v63 = vadd.f32 %v6032_v39, %v954_v25  ;;  %v6509_v36 = vmul.f32 %v950_v4, %v149_v23  ;;  %v992_v34 = vand.u32 2147483648, %v6256_v46  ;;  %vm987_vm1 = vweird.f32 %v6300_v7 }
 0x154   :  { %1126 = vst [vmem:[#allocation4 + $0x88] sm:$0xff] %v1098_v42  ;;  %v997_v42 = vmul.f32 %v6347_v47, %v6392_v60  ;;  %v934_v5 = vsel %vm6448_vm5, %v933_v35, %v929_v13  ;;  %vm961_vm13 = vcmp.eq.f32.partialorder %v960_v6, 8.507059e+37  ;;  %v979_v13 = vsel %vm976_vm12, %v978_v9, %v974_v11  ;;  %vm6552_vm3 = vmor %vm986_vm0, %vm987_vm1 }
 0x155   :  { %1182 = vst [vmem:[#allocation5 + $0xa8] sm:$0xff] %v6326_v3  ;;  %v935_v24 = vmul.f32 %v934_v5, %v5187_v14  ;;  %v959_v35 = vsel %vm6493_vm11, %v6032_v39, %v955_v63  ;;  %v1007_v39 = vand.u32 2147483648, %v6347_v47  ;;  %v1005_v62 = vand.u32 2147483647, %v6347_v47  ;;  %v151_v63 = vld [vmem:[#allocation26 + $0xb0] sm:$0xff] }
 0x156   :  { %1238 = vst [vmem:[#allocation6 + $0x30] sm:$0xff] %v6326_v3  ;;  %v998_v58 = vsub.f32 1.0, %v997_v42  ;;  %v984_v42 = vmul.f32 %v6300_v7, %v983_v29  ;;  %v1013_v5 = vsub.f32 1.0, %v1012_v38  ;;  %v980_v43 = vmul.f32 %v979_v13, %v5187_v14 }
 0x157   :  { %1294 = vst [vmem:[#allocation7 + $0x48] sm:$0xff] %v6326_v3  ;;  %v6465_v3 = vpop.eup %4709  ;;  %v1104_v4 = vmul.f32 %v5577_v44, %v6509_v36  ;;  %v1008_v51 = vor.u32 1.1754944e-38, %v1007_v39  ;;  %v993_v16 = vor.u32 1.1754944e-38, %v992_v34  ;;  %vm1006_vm4 = vcmp.eq.f32.partialorder %v1005_v62, 8.507059e+37 }
 0x158   :  { %1127 = vst [vmem:[#allocation4 + $0x90] sm:$0xff] %v6430_v10  ;;  %v1027_v33 = vmul.f32 %v6418_v19, %v6465_v3  ;;  %v999_v30 = vmul.f32 %v6392_v60, %v998_v58  ;;  %v6524_v25 = vpop.eup %4711  ;;  %v985_v58 = vadd.f32 %v6300_v7, %v984_v42  ;;  %vm1031_vm6 = vweird.f32 %v6418_v19 }
 0x159   :  { %1183 = vst [vmem:[#allocation5 + $0x8] sm:$0xff] %v6430_v10  ;;  %vm1032_vm7 = vweird.f32 %v6465_v3  ;;  %vm1016_vm8 = vweird.f32 %v6399_v59  ;;  %v1037_v9 = vand.u32 2147483648, %v6418_v19  ;;  %vm1017_vm9 = vweird.f32 %v6453_v17 }
 0x15a   :  { %1295 = vst [vmem:[#allocation7 + $0x68] sm:$0xff] %v6430_v10  ;;  %v1028_v52 = vsub.f32 1.0, %v1027_v33  ;;  %v1000_v0 = vadd.f32 %v6392_v60, %v999_v30  ;;  %v150_v33 = vld [vmem:[#allocation26 + $0xa8] sm:$0xff]  ;;  %v1035_v30 = vand.u32 2147483647, %v6418_v19  ;;  %vm6581_vm10 = vmor %vm1031_vm6, %vm1032_vm7  ;;  %v1022_v34 = vand.u32 2147483648, %v6399_v59 }
 0x15b   :  { %1128 = vst [vmem:[#allocation4 + $0x10] sm:$0xff] %v1100_v1  ;;  %v963_v1 = vor.u32 1.1754944e-38, %v962_v26  ;;  %v990_v26 = vand.u32 2147483647, %v6256_v46  ;;  %v1020_v42 = vand.u32 2147483647, %v6399_v59  ;;  %vm6597_vm11 = vmor %vm1016_vm8, %vm1017_vm9  ;;  %vm1046_vm14 = vweird.f32 %v6484_v31 }
 0x15c   :  { %1184 = vst [vmem:[#allocation5 + $0xd8] sm:$0xff] %v6389_v57  ;;  %v1029_v23 = vmul.f32 %v6465_v3, %v1028_v52  ;;  %v1004_v29 = vsel %vm6535_vm2, %v6392_v60, %v1000_v0  ;;  %v989_v60 = vsel %vm6552_vm3, %v6300_v7, %v985_v58  ;;  %v1038_v52 = vor.u32 1.1754944e-38, %v1037_v9  ;;  %v153_v0 = vld [vmem:[#allocation26 + $0xc0] sm:$0xff]  ;;  %v154_v46 = vld [vmem:[#allocation26 + $0xc8] sm:$0xff] }
 0x15d   :  { %1240 = vst [vmem:[#allocation6 + $0x88] sm:$0xff] %v6389_v57  ;;  %v964_v37 = vsel %vm961_vm13, %v963_v1, %v959_v35  ;;  %vm6564_vm5 = vcmp.eq.f32.partialorder %v990_v26, 8.507059e+37  ;;  %v1009_v1 = vsel %vm1006_vm4, %v1008_v51, %v1004_v29  ;;  %vm1036_vm12 = vcmp.eq.f32.partialorder %v1035_v30, 8.507059e+37  ;;  %v156_v30 = vld [vmem:[#allocation26 + $0xd8] sm:$0x3]  ;;  %v9716_v51 = vld [vmem:[#allocation56_spill] sm:$0xff] }
 0x15e   :  { %1296 = vst [vmem:[#allocation7 + $0x78] sm:$0xff] %v6389_v57  ;;  %v148_v57 = vld [vmem:[#allocation26 + $0x98] sm:$0xff]  ;;  %v965_v47 = vmul.f32 %v964_v37, %v5187_v14  ;;  %v1030_v11 = vadd.f32 %v6465_v3, %v1029_v23  ;;  %v994_v19 = vsel %vm6564_vm5, %v993_v16, %v989_v60  ;;  %v1010_v13 = vmul.f32 %v1009_v1, %v5187_v14  ;;  %v155_v16 = vld [vmem:[#allocation26 + $0xd0] sm:$0x3] }
 0x15f   :  { %1129 = vst [vmem:[#allocation4 + $0xa8] sm:$0xff] %v6487_v54  ;;  %v6540_v50 = vmul.f32 %v935_v24, %v148_v57  ;;  %v1014_v24 = vmul.f32 %v6453_v17, %v1013_v5  ;;  %v995_v59 = vmul.f32 %v994_v19, %v5187_v14  ;;  %vm1021_vm13 = vcmp.eq.f32.partialorder %v1020_v42, 8.507059e+37  ;;  %v152_v5 = vld [vmem:[#allocation26 + $0xb8] sm:$0xff]  ;;  %v4741_v42 = vld [vmem:[#allocation6 + $0xc0] sm:$0xff] }
 0x160   :  { %1185 = vst [vmem:[#allocation5 + $0x28] sm:$0xff] %v6487_v54  ;;  %v6590_v57 = vmul.f32 %v965_v47, %v150_v33  ;;  %v1034_v62 = vsel %vm6581_vm10, %v6465_v3, %v1030_v11  ;;  %v1023_v22 = vor.u32 1.1754944e-38, %v1022_v34  ;;  %vm1047_vm15 = vweird.f32 %v6524_v25  ;;  %v4740_v35 = vld [vmem:[#allocation12 + $0xb8] sm:$0xff] }
 0x161   :  { %1297 = vst [vmem:[#allocation7 + $0x58] sm:$0xff] %v6487_v54  ;;  %v1015_v38 = vadd.f32 %v6453_v17, %v1014_v24  ;;  %v1039_v3 = vsel %vm1036_vm12, %v1038_v52, %v1034_v62  ;;  %v1052_v58 = vand.u32 2147483648, %v6484_v31  ;;  %v1050_v47 = vand.u32 2147483647, %v6484_v31  ;;  %vm6622_vm0 = vmor %vm1046_vm14, %vm1047_vm15 }
 0x162   :  { %1130 = vst [vmem:[#allocation4 + $0xc8] sm:$0xff] %v1102_v27  ;;  %v1042_v27 = vmul.f32 %v6484_v31, %v6524_v25  ;;  %v1040_v6 = vmul.f32 %v1039_v3, %v5187_v14  ;;  %v539_v1 = vadd.s32 128, %v5550_v8  ;;  %v9713_v3 = vld [vmem:[#allocation51_spill] sm:$0xff] }
 0x163   :  { %1186 = vst [vmem:[#allocation5 + $0xa0] sm:$0xff] %v6443_v41  ;;  %v1053_v29 = vor.u32 1.1754944e-38, %v1052_v58  ;;  %vm1051_vm1 = vcmp.eq.f32.partialorder %v1050_v47, 8.507059e+37 }
 0x164   :  { %1242 = vst [vmem:[#allocation6 + $0x98] sm:$0xff] %v6443_v41  ;;  %v1043_v7 = vsub.f32 1.0, %v1042_v27  ;;  %v6634_v24 = vmul.f32 %v1040_v6, %v155_v16  ;;  %vm625_vm3 = vcmp.lt.s32.totalorder %v539_v1, 199  ;;  %v9717_v16 = vld [vmem:[#allocation55_spill] sm:$0xff]  ;;  %v9718_v1 = vld [vmem:[#allocation58_spill] sm:$0xff] }
 0x165   :  { %1298 = vst [vmem:[#allocation7 + $0x20] sm:$0xff] %v6443_v41  ;;  %v1078_v41 = vmul.f32 %v980_v43, %v151_v63  ;;  %v1080_v43 = vmul.f32 %v1010_v13, %v153_v0  ;;  %v4628_v19 = vsel %vm625_vm3, 1.0, %v4740_v35 }
 0x166   :  { %1131 = vst [vmem:[#allocation4 + $0x18] sm:$0xff] %v6540_v50  ;;  %v1044_v26 = vmul.f32 %v6524_v25, %v1043_v7  ;;  %v1197_v39 = vmul.f32 %v4628_v19, %v6018_v61  ;;  %v1199_v52 = vmul.f32 %v4628_v19, %v6035_v12  ;;  %v1205_v0 = vmul.f32 %v4628_v19, %v6265_v2 }
 0x167   :  { %1187 = vst [vmem:[#allocation5 + $0x80] sm:$0xff] %v6540_v50  ;;  %v1106_v37 = vmul.f32 %v5577_v44, %v1078_v41  ;;  %v1108_v23 = vmul.f32 %v5577_v44, %v1080_v43  ;;  %v1213_v12 = vmul.f32 %v4628_v19, %v6487_v54 }
 0x168   :  { %1299 = vst [vmem:[#allocation7 + $0xc8] sm:$0xff] %v6540_v50 }
 0x169   :  { %1132 = vst [vmem:[#allocation4 + $0x20] sm:$0xff] %v1104_v4  ;;  %v1045_v4 = vadd.f32 %v6524_v25, %v1044_v26  ;;  %v1207_v26 = vmul.f32 %v4628_v19, %v6282_v55 }
 0x16a   :  { %1188 = vst [vmem:[#allocation5 + $0x90] sm:$0xff] %v6509_v36 }
 0x16b   :  { %1244 = vst [vmem:[#allocation6 + $0x90] sm:$0xff] %v6509_v36  ;;  %v1049_v27 = vsel %vm6622_vm0, %v6524_v25, %v1045_v4  ;;  %v1110_v25 = vmul.f32 %v5577_v44, %v6634_v24  ;;  %v9714_v4 = vld [vmem:[#allocation54_spill] sm:$0xff] }
 0x16c   :  { %1300 = vst [vmem:[#allocation7 + $0xd8] sm:$0xff] %v6509_v36  ;;  %v1019_v36 = vsel %vm6597_vm11, %v6453_v17, %v1015_v38  ;;  %v6619_v17 = vmul.f32 %v995_v59, %v152_v5  ;;  %v1054_v9 = vsel %vm1051_vm1, %v1053_v29, %v1049_v27  ;;  %v1209_v59 = vmul.f32 %v4628_v19, %v6360_v20  ;;  %v9712_v5 = vld [vmem:[#allocation52_spill] sm:$0xff] }
 0x16d   :  { %1133 = vst [vmem:[#allocation4 + $0xa0] sm:$0xff] %v6590_v57  ;;  %v1024_v63 = vsel %vm1021_vm13, %v1023_v22, %v1019_v36  ;;  %v1055_v11 = vmul.f32 %v1054_v9, %v5187_v14  ;;  %v1211_v36 = vmul.f32 %v4628_v19, %v6430_v10  ;;  %v326_v10 = vmul.f32 %v5187_v14, %v5376_v56 }
 0x16e   :  { %1189 = vst [vmem:[#allocation5 + $0x20] sm:$0xff] %v6590_v57  ;;  %v1025_v31 = vmul.f32 %v1024_v63, %v5187_v14  ;;  %v1219_v2 = vmul.f32 %v4628_v19, %v6619_v17  ;;  %v327_v56 = vmul.f32 %v5187_v14, %v9713_v3  ;;  %v330_v47 = vmul.f32 %v5187_v14, %v9714_v4 }
 0x16f   :  { %1301 = vst [vmem:[#allocation7 + $0x30] sm:$0xff] %v6590_v57  ;;  %v1083_v38 = vmul.f32 %v1055_v11, %v156_v30  ;;  %v1308_v22 = vmul.f32 %v5577_v44, %v326_v10  ;;  %v331_v29 = vmul.f32 %v5187_v14, %v9717_v16  ;;  %v334_v27 = vmul.f32 %v5187_v14, %v5427_v32  ;;  %v9720_v30 = vld [vmem:[#allocation60_spill] sm:$0xff] }
 0x170   :  { %1134 = vst [vmem:[#allocation4 + $0x30] sm:$0xff] %v1106_v37  ;;  %v6637_v33 = vmul.f32 %v1025_v31, %v154_v46  ;;  %v1203_v37 = vmul.f32 %v4628_v19, %v6217_v49  ;;  %v1217_v49 = vmul.f32 %v4628_v19, %v6590_v57  ;;  %v1312_v6 = vmul.f32 %v5577_v44, %v330_v47 }
 0x171   :  { %1190 = vst [vmem:[#allocation5 + $0xb0] sm:$0xff] %v1078_v41  ;;  %v1223_v54 = vmul.f32 %v4628_v19, %v1083_v38  ;;  %v333_v46 = vmul.f32 %v5187_v14, %v5409_v18  ;;  %v338_v9 = vmul.f32 %v5187_v14, %v5443_v40  ;;  %v337_v18 = vmul.f32 %v5187_v14, %v5438_v15  ;;  %v9719_v15 = vld [vmem:[#allocation57_spill] sm:$0xff] }
 0x172   :  { %1246 = vst [vmem:[#allocation6 + $0x78] sm:$0xff] %v1078_v41  ;;  %v1221_v20 = vmul.f32 %v4628_v19, %v6637_v33  ;;  %v341_v11 = vmul.f32 %v5187_v14, %v9719_v15 }
 0x173   :  { %1302 = vst [vmem:[#allocation7 + $0x40] sm:$0xff] %v1078_v41  ;;  %v9711_v41 = vlaneseq }
 0x174   :  { %1135 = vst [vmem:[#allocation4 + $0x38] sm:$0xff] %v6619_v17 }
 0x175   :  { %1191 = vst [vmem:[#allocation5 + $0x30] sm:$0xff] %v6619_v17  ;;  %v523_v60 = vshrl.u32 %v9711_v41, 7  ;;  %v336_v41 = vmul.f32 %v5187_v14, %v5434_v45  ;;  %v1320_v45 = vmul.f32 %v5577_v44, %v338_v9 }
 0x176   :  { %1303 = vst [vmem:[#allocation7 + $0xa0] sm:$0xff] %v6619_v17  ;;  %v9715_v17 = vld [vmem:[#allocation53_spill] sm:$0xff] }
 0x177   :  { %1136 = vst [vmem:[#allocation4 + $0xb8] sm:$0xff] %v1108_v23  ;;  %vm582_vm2 = vcmp.gt.s32.totalorder %v523_v60, 0  ;;  %v536_v62 = vadd.s32 104, %v523_v60  ;;  %v329_v63 = vmul.f32 %v5187_v14, %v9715_v17  ;;  %v332_v23 = vmul.f32 %v5187_v14, %v9716_v51 }
 0x178   :  { %1192 = vst [vmem:[#allocation5 + $0xd0] sm:$0xff] %v1080_v43  ;;  %v4627_v7 = vsel %vm582_vm2, 1.0, %v4740_v35  ;;  %v335_v60 = vmul.f32 %v5187_v14, %v5431_v53  ;;  %v1318_v32 = vmul.f32 %v5577_v44, %v336_v41  ;;  %v339_v53 = vmul.f32 %v5187_v14, %v5448_v48  ;;  %v9721_v48 = vld [vmem:[#allocation59_spill] sm:$0xff] }
 0x179   :  { %1248 = vst [vmem:[#allocation6 + $0x8] sm:$0xff] %v1080_v43  ;;  %v1140_v34 = vmul.f32 %v4741_v42, %v4627_v7  ;;  %v1141_v13 = vmul.f32 %v4627_v7, %v6018_v61  ;;  %v1201_v61 = vmul.f32 %v4628_v19, %v6043_v28  ;;  %vm553_vm4 = vcmp.lt.s32.totalorder %v536_v62, 105  ;;  %v9722_v42 = vld [vmem:[#allocation62_spill] sm:$0xff] }
 0x17a   :  { %1304 = vst [vmem:[#allocation7 + $0x80] sm:$0xff] %v1080_v43  ;;  %v1215_v28 = vmul.f32 %v4628_v19, %v6540_v50  ;;  %v6661_v55 = vsel %vm553_vm4, 1.0, %v4740_v35  ;;  %v328_v43 = vmul.f32 %v5187_v14, %v9712_v5  ;;  %v1314_v31 = vmul.f32 %v5577_v44, %v332_v23 }
 0x17b   :  { %1137 = vst [vmem:[#allocation4 + $0x80] sm:$0xff] %v6637_v33  ;;  %v1278_v50 = vmul.f32 %v6661_v55, %v6634_v24  ;;  %v1279_v57 = vmul.f32 %v6661_v55, %v1083_v38  ;;  %v344_v35 = vmul.f32 %v5187_v14, %v9720_v30 }
 0x17c   :  { %1193 = vst [vmem:[#allocation5 + $0x10] sm:$0xff] %v6637_v33  ;;  %v1310_v58 = vmul.f32 %v5577_v44, %v328_v43 }
 0x17d   :  { %1305 = vst [vmem:[#allocation7 + $0xd0] sm:$0xff] %v6637_v33  ;;  %v340_v33 = vmul.f32 %v5187_v14, %v5451_v21 }
 0x17e   :  { %1138 = vst [vmem:[#allocation4 + $0xb0] sm:$0x3] %v1110_v25  ;;  %v342_v25 = vmul.f32 %v5187_v14, %v9718_v1 }
 0x17f   :  { %1194 = vst [vmem:[#allocation5 + $0x40] sm:$0x3] %v6634_v24  ;;  %v1322_v40 = vmul.f32 %v5577_v44, %v340_v33 }
 0x180   :  { %1250 = vst [vmem:[#allocation6 + $0x48] sm:$0x3] %v6634_v24  ;;  %v1316_v24 = vmul.f32 %v5577_v44, %v334_v27  ;;  %v1324_v21 = vmul.f32 %v5577_v44, %v342_v25 }
 0x181   :  { %1139 = vst [vmem:[#allocation4 + $0x98] sm:$0x3] %v1083_v38 }
 0x182   :  { %1195 = vst [vmem:[#allocation5 + $0x60] sm:$0x3] %v1083_v38  ;;  %v1326_v38 = vmul.f32 %v5577_v44, %v344_v35 }
 0x183   :  { %1168 = vst [vmem:[#allocation5] sm:$0xff] %v1140_v34  ;;  %v346_v34 = vmul.f32 %v5187_v14, %v9722_v42 }
 0x184   :  { %1448 = vst [vmem:[#allocation11 + $0x48] sm:$0xff] %v4627_v7 }
 0x185   :  { %1449 = vst [vmem:[#allocation11 + $0xc0] sm:$0xff] %v4627_v7  ;;  %v343_v7 = vmul.f32 %v5187_v14, %v9721_v48 }
 0x186   :  { %1169 = vst [vmem:[#allocation5 + $0x58] sm:$0xff] %v1141_v13 }
 0x187   :  { %1225 = vst [vmem:[#allocation6 + $0x38] sm:$0xff] %v1197_v39  ;;  %v1328_v39 = vmul.f32 %v5577_v44, %v346_v34 }
 0x188   :  { %1421 = vst [vmem:[#allocation10 + $0x10] sm:$0xff] %v4628_v19 }
 0x189   :  { %1423 = vst [vmem:[#allocation10 + $0x90] sm:$0xff] %v4628_v19 }
 0x18a   :  { %1425 = vst [vmem:[#allocation10 + $0xd8] sm:$0xff] %v4628_v19 }
 0x18b   :  { %1427 = vst [vmem:[#allocation10 + $0x30] sm:$0xff] %v4628_v19 }
 0x18c   :  { %1429 = vst [vmem:[#allocation10 + $0x28] sm:$0xff] %v4628_v19 }
 0x18d   :  { %1431 = vst [vmem:[#allocation10 + $0x68] sm:$0xff] %v4628_v19 }
 0x18e   :  { %1433 = vst [vmem:[#allocation10 + $0xb8] sm:$0xff] %v4628_v19 }
 0x18f   :  { %1435 = vst [vmem:[#allocation10 + $0x48] sm:$0xff] %v4628_v19 }
 0x190   :  { %1437 = vst [vmem:[#allocation10 + $0x78] sm:$0xff] %v4628_v19 }
 0x191   :  { %1439 = vst [vmem:[#allocation10 + $0xb0] sm:$0xff] %v4628_v19 }
 0x192   :  { %1441 = vst [vmem:[#allocation10 + $0x98] sm:$0xff] %v4628_v19 }
 0x193   :  { %1443 = vst [vmem:[#allocation10 + $0x8] sm:$0xff] %v4628_v19 }
 0x194   :  { %1445 = vst [vmem:[#allocation10 + $0x18] sm:$0xff] %v4628_v19 }
 0x195   :  { %1447 = vst [vmem:[#allocation10] sm:$0x3] %v4628_v19  ;;  %v9723_v19 = vld [vmem:[#allocation61_spill] sm:$0xff] }
 0x196   :  { %1227 = vst [vmem:[#allocation6 + $0xc8] sm:$0xff] %v1199_v52  ;;  %v345_v13 = vmul.f32 %v5187_v14, %v9723_v19  ;;  %v9724_v52 = vld [vmem:[#allocation64_spill] sm:$0xff] }
 0x197   :  { %1229 = vst [vmem:[#allocation6 + $0x60] sm:$0xff] %v1201_v61  ;;  %v348_v61 = vmul.f32 %v5187_v14, %v9724_v52 }
 0x198   :  { %1231 = vst [vmem:[#allocation6 + $0x58] sm:$0xff] %v1203_v37  ;;  %v9725_v37 = vld [vmem:[#allocation63_spill] sm:$0xff] }
 0x199   :  { %1233 = vst [vmem:[#allocation6 + $0x70] sm:$0xff] %v1205_v0  ;;  %v347_v0 = vmul.f32 %v5187_v14, %v9725_v37  ;;  %v1330_v62 = vmul.f32 %v5577_v44, %v348_v61 }
 0x19a   :  { %1235 = vst [vmem:[#allocation6 + $0x40] sm:$0xff] %v1207_v26  ;;  %v9726_v26 = vld [vmem:[#allocation39_spill] sm:$0xff] }
 0x19b   :  { %1237 = vst [vmem:[#allocation6 + $0x18] sm:$0xff] %v1209_v59  ;;  %v350_v59 = vmul.f32 %v5187_v14, %v9726_v26 }
 0x19c   :  { %1239 = vst [vmem:[#allocation6 + $0x28] sm:$0xff] %v1211_v36  ;;  %v9727_v36 = vld [vmem:[#allocation38_spill] sm:$0xff] }
 0x19d   :  { %1241 = vst [vmem:[#allocation6 + $0xa0] sm:$0xff] %v1213_v12  ;;  %v349_v12 = vmul.f32 %v5187_v14, %v9727_v36 }
 0x19e   :  { %1243 = vst [vmem:[#allocation6 + $0xa8] sm:$0xff] %v1215_v28  ;;  %v1332_v28 = vmul.f32 %v5577_v44, %v350_v59 }
 0x19f   :  { %1245 = vst [vmem:[#allocation6 + $0x80] sm:$0xff] %v1217_v49  ;;  %v9728_v49 = vld [vmem:[#allocation40_spill] sm:$0xff] }
 0x1a0   :  { %1247 = vst [vmem:[#allocation6 + $0xd8] sm:$0xff] %v1219_v2  ;;  %v352_v2 = vmul.f32 %v5187_v14, %v9728_v49 }
 0x1a1   :  { %1249 = vst [vmem:[#allocation6 + $0x10] sm:$0xff] %v1221_v20  ;;  %v9729_v20 = vld [vmem:[#allocation44_spill] sm:$0xff] }
 0x1a2   :  { %1251 = vst [vmem:[#allocation6 + $0x20] sm:$0x3] %v1223_v54  ;;  %v9730_v54 = vld [vmem:[#allocation41_spill] sm:$0xff] }
 0x1a3   :  { %1306 = vst [vmem:[#allocation7 + $0x90] sm:$0x3] %v1278_v50  ;;  %v353_v50 = vmul.f32 %v5187_v14, %v9730_v54 }
 0x1a4   :  { %1307 = vst [vmem:[#allocation7 + $0xb0] sm:$0x3] %v1279_v57  ;;  %v1334_v57 = vmul.f32 %v5577_v44, %v352_v2 }
 0x1a5   :  { %1336 = vst [vmem:[#allocation8 + $0x40] sm:$0xff] %v1308_v22  ;;  %v1390_v22 = vmul.f32 %v6661_v55, %v352_v2  ;;  %v1391_v5 = vmul.f32 %v6661_v55, %v353_v50 }
 0x1a6   :  { %1392 = vst [vmem:[#allocation9 + $0x60] sm:$0xff] %v326_v10  ;;  %v351_v10 = vmul.f32 %v5187_v14, %v9729_v20 }
 0x1a7   :  { %1337 = vst [vmem:[#allocation8 + $0xd8] sm:$0xff] %v327_v56 }
 0x1a8   :  { %1393 = vst [vmem:[#allocation9 + $0xa8] sm:$0xff] %v327_v56 }
 0x1a9   :  { %1338 = vst [vmem:[#allocation8 + $0x70] sm:$0xff] %v1310_v58 }
 0x1aa   :  { %1394 = vst [vmem:[#allocation9 + $0xd0] sm:$0xff] %v328_v43  ;;  %v5097_v43 = vmov 1.0  }
 0x1ab   :  { %1339 = vst [vmem:[#allocation8 + $0x18] sm:$0xff] %v329_v63 }
 0x1ac   :  { %1395 = vst [vmem:[#allocation9 + $0x78] sm:$0xff] %v329_v63 }
 0x1ad   :  { %1340 = vst [vmem:[#allocation8 + $0x38] sm:$0xff] %v1312_v6 }
 0x1ae   :  { %1396 = vst [vmem:[#allocation9 + $0x68] sm:$0xff] %v330_v47 }
 0x1af   :  { %1341 = vst [vmem:[#allocation8 + $0xc8] sm:$0xff] %v331_v29 }
 0x1b0   :  { %1397 = vst [vmem:[#allocation9] sm:$0xff] %v331_v29 }
 0x1b1   :  { %1342 = vst [vmem:[#allocation8] sm:$0xff] %v1314_v31 }
 0x1b2   :  { %1398 = vst [vmem:[#allocation9 + $0x90] sm:$0xff] %v332_v23 }
 0x1b3   :  { %1343 = vst [vmem:[#allocation8 + $0x20] sm:$0xff] %v333_v46 }
 0x1b4   :  { %1399 = vst [vmem:[#allocation9 + $0x20] sm:$0xff] %v333_v46 }
 0x1b5   :  { %1344 = vst [vmem:[#allocation8 + $0x90] sm:$0xff] %v1316_v24 }
 0x1b6   :  { %1400 = vst [vmem:[#allocation9 + $0xb8] sm:$0xff] %v334_v27 }
 0x1b7   :  { %1345 = vst [vmem:[#allocation8 + $0xd0] sm:$0xff] %v335_v60 }
 0x1b8   :  { %1401 = vst [vmem:[#allocation9 + $0x80] sm:$0xff] %v335_v60 }
 0x1b9   :  { %1346 = vst [vmem:[#allocation8 + $0x88] sm:$0xff] %v1318_v32 }
 0x1ba   :  { %1402 = vst [vmem:[#allocation9 + $0xc8] sm:$0xff] %v336_v41 }
 0x1bb   :  { %1347 = vst [vmem:[#allocation8 + $0xa0] sm:$0xff] %v337_v18 }
 0x1bc   :  { %1403 = vst [vmem:[#allocation9 + $0x40] sm:$0xff] %v337_v18 }
 0x1bd   :  { %1348 = vst [vmem:[#allocation8 + $0x28] sm:$0xff] %v1320_v45 }
 0x1be   :  { %1404 = vst [vmem:[#allocation9 + $0x10] sm:$0xff] %v338_v9 }
 0x1bf   :  { %1349 = vst [vmem:[#allocation8 + $0x50] sm:$0xff] %v339_v53 }
 0x1c0   :  { %1405 = vst [vmem:[#allocation9 + $0xb0] sm:$0xff] %v339_v53 }
 0x1c1   :  { %1350 = vst [vmem:[#allocation8 + $0xc0] sm:$0xff] %v1322_v40 }
 0x1c2   :  { %1406 = vst [vmem:[#allocation9 + $0x58] sm:$0xff] %v340_v33 }
 0x1c3   :  { %1351 = vst [vmem:[#allocation8 + $0x48] sm:$0xff] %v341_v11 }
 0x1c4   :  { %1407 = vst [vmem:[#allocation9 + $0x38] sm:$0xff] %v341_v11 }
 0x1c5   :  { %1352 = vst [vmem:[#allocation8 + $0x30] sm:$0xff] %v1324_v21 }
 0x1c6   :  { %1408 = vst [vmem:[#allocation9 + $0xd8] sm:$0xff] %v342_v25 }
 0x1c7   :  { %1353 = vst [vmem:[#allocation8 + $0x60] sm:$0xff] %v343_v7 }
 0x1c8   :  { %1409 = vst [vmem:[#allocation9 + $0x88] sm:$0xff] %v343_v7 }
 0x1c9   :  { %1354 = vst [vmem:[#allocation8 + $0xa8] sm:$0xff] %v1326_v38 }
 0x1ca   :  { %1410 = vst [vmem:[#allocation9 + $0x30] sm:$0xff] %v344_v35 }
 0x1cb   :  { %1355 = vst [vmem:[#allocation8 + $0x98] sm:$0xff] %v345_v13 }
 0x1cc   :  { %1411 = vst [vmem:[#allocation9 + $0x48] sm:$0xff] %v345_v13 }
 0x1cd   :  { %1356 = vst [vmem:[#allocation8 + $0xb0] sm:$0xff] %v1328_v39 }
 0x1ce   :  { %1412 = vst [vmem:[#allocation9 + $0x28] sm:$0xff] %v346_v34 }
 0x1cf   :  { %1357 = vst [vmem:[#allocation8 + $0xb8] sm:$0xff] %v347_v0 }
 0x1d0   :  { %1413 = vst [vmem:[#allocation9 + $0x18] sm:$0xff] %v347_v0 }
 0x1d1   :  { %1358 = vst [vmem:[#allocation8 + $0x58] sm:$0xff] %v1330_v62 }
 0x1d2   :  { %1414 = vst [vmem:[#allocation9 + $0xc0] sm:$0xff] %v348_v61 }
 0x1d3   :  { %1359 = vst [vmem:[#allocation8 + $0x10] sm:$0xff] %v349_v12 }
 0x1d4   :  { %1415 = vst [vmem:[#allocation9 + $0x8] sm:$0xff] %v349_v12 }
 0x1d5   :  { %1360 = vst [vmem:[#allocation8 + $0x80] sm:$0xff] %v1332_v28 }
 0x1d6   :  { %1416 = vst [vmem:[#allocation9 + $0x50] sm:$0xff] %v350_v59 }
 0x1d7   :  { %1361 = vst [vmem:[#allocation8 + $0x8] sm:$0xff] %v351_v10 }
 0x1d8   :  { %1417 = vst [vmem:[#allocation9 + $0xa0] sm:$0xff] %v351_v10 }
 0x1d9   :  { %1362 = vst [vmem:[#allocation8 + $0x78] sm:$0x3] %v1334_v57 }
 0x1da   :  { %1363 = vst [vmem:[#allocation8 + $0x68] sm:$0x3] %v353_v50 }
 0x1db   :  { %1418 = vst [vmem:[#allocation9 + $0x70] sm:$0x3] %v1390_v22 }
 0x1dc   :  { %1419 = vst [vmem:[#allocation9 + $0x98] sm:$0x3] %v1391_v5 }
 0x1dd   :  { %1420 = vst [vmem:[#allocation10 + $0x50] sm:$0xff] %v5097_v43 }
 0x1de   :  { %1422 = vst [vmem:[#allocation10 + $0xa0] sm:$0xff] %v5097_v43 }
 0x1df   :  { %1424 = vst [vmem:[#allocation10 + $0x70] sm:$0xff] %v5097_v43 }
 0x1e0   :  { %1426 = vst [vmem:[#allocation10 + $0x60] sm:$0xff] %v5097_v43 }
 0x1e1   :  { %1428 = vst [vmem:[#allocation10 + $0x58] sm:$0xff] %v5097_v43 }
 0x1e2   :  { %1430 = vst [vmem:[#allocation10 + $0x20] sm:$0xff] %v5097_v43 }
 0x1e3   :  { %1432 = vst [vmem:[#allocation10 + $0x80] sm:$0xff] %v5097_v43 }
 0x1e4   :  { %1434 = vst [vmem:[#allocation10 + $0x88] sm:$0xff] %v5097_v43 }
 0x1e5   :  { %1436 = vst [vmem:[#allocation10 + $0xc8] sm:$0xff] %v5097_v43 }
 0x1e6   :  { %1438 = vst [vmem:[#allocation10 + $0x40] sm:$0xff] %v5097_v43 }
 0x1e7   :  { %1440 = vst [vmem:[#allocation10 + $0x38] sm:$0xff] %v5097_v43 }
 0x1e8   :  { %1442 = vst [vmem:[#allocation10 + $0xa8] sm:$0xff] %v5097_v43 }
 0x1e9   :  { %1444 = vst [vmem:[#allocation10 + $0xd0] sm:$0xff] %v5097_v43 }
 0x1ea   :  { %1446 = vst [vmem:[#allocation10 + $0xc0] sm:$0x3] %v5097_v43 }
 0x1eb   :  { %1450 = vst [vmem:[#allocation11 + $0xb0] sm:$0xff] %v5097_v43 }
 0x1ec   :  { %1451 = vst [vmem:[#allocation11 + $0x20] sm:$0xff] %v5097_v43 }
 0x1ed   :  { %1452 = vst [vmem:[#allocation11 + $0x88] sm:$0xff] %v5097_v43 }
 0x1ee   :  { %1453 = vst [vmem:[#allocation11 + $0x38] sm:$0xff] %v5097_v43 }
 0x1ef   :  { %1454 = vst [vmem:[#allocation11 + $0xa0] sm:$0xff] %v5097_v43 }
 0x1f0   :  { %1455 = vst [vmem:[#allocation11 + $0xd0] sm:$0xff] %v5097_v43 }
 0x1f1   :  { %1456 = vst [vmem:[#allocation11 + $0xc8] sm:$0xff] %v5097_v43 }
 0x1f2   :  { %1457 = vst [vmem:[#allocation11 + $0x28] sm:$0xff] %v5097_v43 }
 0x1f3   :  { %1458 = vst [vmem:[#allocation11 + $0x10] sm:$0xff] %v5097_v43 }
 0x1f4   :  { %1459 = vst [vmem:[#allocation11 + $0x78] sm:$0xff] %v5097_v43 }
 0x1f5   :  { %1460 = vst [vmem:[#allocation11 + $0x8] sm:$0xff] %v5097_v43 }
 0x1f6   :  { %1461 = vst [vmem:[#allocation11] sm:$0xff] %v5097_v43 }
 0x1f7   :  { %1462 = vst [vmem:[#allocation11 + $0x30] sm:$0xff] %v5097_v43 }
 0x1f8   :  { %1463 = vst [vmem:[#allocation11 + $0x68] sm:$0xff] %v5097_v43 }
 0x1f9   :  { %1464 = vst [vmem:[#allocation11 + $0x80] sm:$0xff] %v5097_v43 }
 0x1fa   :  { %1465 = vst [vmem:[#allocation11 + $0x50] sm:$0xff] %v5097_v43 }
 0x1fb   :  { %1466 = vst [vmem:[#allocation11 + $0x18] sm:$0xff] %v5097_v43 }
 0x1fc   :  { %1467 = vst [vmem:[#allocation11 + $0x70] sm:$0xff] %v5097_v43 }
 0x1fd   :  { %1468 = vst [vmem:[#allocation11 + $0x58] sm:$0xff] %v5097_v43 }
 0x1fe   :  { %1469 = vst [vmem:[#allocation11 + $0x40] sm:$0xff] %v5097_v43 }
 0x1ff   :  { %1470 = vst [vmem:[#allocation11 + $0xb8] sm:$0xff] %v5097_v43 }
 0x200   :  { %1471 = vst [vmem:[#allocation11 + $0x98] sm:$0xff] %v5097_v43 }
 0x201   :  { %1472 = vst [vmem:[#allocation11 + $0x60] sm:$0xff] %v5097_v43 }
 0x202   :  { %1473 = vst [vmem:[#allocation11 + $0xa8] sm:$0xff] %v5097_v43 }
 0x203   :  { %1474 = vst [vmem:[#allocation11 + $0xd8] sm:$0x3] %v5097_v43 }
 0x204   :  { %1475 = vst [vmem:[#allocation11 + $0x90] sm:$0x3] %v5097_v43 }
 0x205 LB: > { %v1689_v14 = vld [vmem:[#allocation14 + $0x40] sm:$0xff]  ;;  %s5098_s9 = smov 1   ;;  %v6753_v3 = vld [vmem:[#allocation14 + $0x50] sm:$0xff]  ;;  %v6777_v16 = vld [vmem:[#allocation14 + $0x8] sm:$0xff]  ;;  %s5099_s10 = smov 127   ;;  %vm2018_vm5 = vcmask 1047554   ;;  %s5086_s30 = sphi %s6739_s30, %s1652_s30  }
 0x206   : > { %v6744_v44 = vld [vmem:[#allocation14 + $0x20] sm:$0xff]  ;;  %1829 = vrot.lane.b32.xlu2 %v1689_v14, %s5098_s9  ;;  %9732 = vst [vmem:[#allocation66_spill] sm:$0xff] %v6753_v3  ;;  %v6755_v56 = vld [vmem:[#allocation14 + $0x30] sm:$0xff]  ;;  %v6786_v31 = vld [vmem:[#allocation14 + $0x28] sm:$0xff]  ;;  %vm2103_vm6 = vcmask 1046528   ;;  %vm1877_vm7 = vcmp.lt.s32.totalorder %v5550_v8, 1 }
 0x207   : > { %9731 = vst [vmem:[#allocation65_spill] sm:$0xff] %v6744_v44  ;;  %v6746_v55 = vld [vmem:[#allocation14] sm:$0xff]  ;;  %1825 = vrot.lane.b32.xlu1 %v6744_v44, %s5098_s9  ;;  %v6757_v58 = vld [vmem:[#allocation14 + $0x10] sm:$0xff]  ;;  %v6788_v27 = vld [vmem:[#allocation14 + $0x38] sm:$0xff]  ;;  %vm2639_vm8 = vcmask 1040384   ;;  %vm2466_vm9 = vcmp.lt.s32.totalorder %v5550_v8, 127 }
 0x208   : > { %1821 = vrot.lane.b32.xlu0 %v6746_v55, %s5098_s9  ;;  %9733 = vst [vmem:[#allocation67_spill] sm:$0xff] %v6757_v58  ;;  %v1697_v4 = vld [vmem:[#allocation14 + $0x80] sm:$0xff]  ;;  %v1695_v47 = vld [vmem:[#allocation14 + $0x70] sm:$0xff]  ;;  %v6790_v46 = vld [vmem:[#allocation14 + $0x18] sm:$0xff]  ;;  %s2950_s11 = sshra.s32 %s5086_s30, 3  ;;  %s2953_s12 = sand.u32 7, %s5086_s30 }
 0x209   : > { %v6765_v17 = vld [vmem:[#allocation14 + $0x60] sm:$0xff]  ;;  %v1703_v63 = vld [vmem:[#allocation14 + $0xb0] sm:$0xff]  ;;  %9737 = vst [vmem:[#allocation71_spill] sm:$0xff] %v6786_v31  ;;  %v6798_v24 = vld [vmem:[#allocation14 + $0x58] sm:$0xff]  ;;  %s4633_s13 = sshll.u32 %s2950_s11, 4  ;;  %s8718_s14 = sld [smem:[#allocation19 + %s5086_s30]] }
 0x20a   : > { %9734 = vst [vmem:[#allocation68_spill] sm:$0xff] %v6765_v17  ;;  %v1701_v6 = vld [vmem:[#allocation14 + $0xa0] sm:$0xff]  ;;  %v6771_v51 = vld [vmem:[#allocation14 + $0x90] sm:$0xff]  ;;  %v6800_v41 = vld [vmem:[#allocation14 + $0x68] sm:$0xff]  ;;  %s8698_s0 = sadd.s32 %s4633_s13, %s2953_s12  ;;  %s1652_s30 = sadd.s32 1, %s5086_s30  }
 0x20b   : > { %9735 = vst [vmem:[#allocation69_spill] sm:$0xff] %v6771_v51  ;;  %v1707_v23 = vld [vmem:[#allocation14 + $0xd0] sm:$0x3]  ;;  %v6779_v29 = vld [vmem:[#allocation14 + $0xc0] sm:$0xff]  ;;  %v6802_v60 = vld [vmem:[#allocation14 + $0x48] sm:$0xff]  ;;  %s2957_s1 = scalar_lea.vmem [#allocation29], %s8698_s0 }
 0x20c   : > { %9736 = vst [vmem:[#allocation70_spill] sm:$0xff] %v6779_v29  ;;  %v1698_v32 = vld [vmem:[#allocation14 + $0x88] sm:$0xff]  ;;  %v6810_v9 = vld [vmem:[#allocation14 + $0x98] sm:$0xff]  ;;  %v6824_v1 = vld [vmem:[#allocation16 + $0x80] sm:$0xff]  ;;  %p1649_p0 = scmp.ge.s32.totalorder %s1652_s30, 8  }
 0x20d   : > { %9738 = vst [vmem:[#allocation72_spill] sm:$0xff] %v6790_v46  ;;  %v1696_v18 = vld [vmem:[#allocation14 + $0x78] sm:$0xff]  ;;  %v6816_v33 = vld [vmem:[#allocation14 + $0xc8] sm:$0xff]  ;;  %v6833_v11 = vld [vmem:[#allocation16 + $0xc0] sm:$0xff]  ;;  %v2023_v13 = vrot.slane %v6824_v1, 6  ;;  %s4583_s17 = sshll.u32 (%p1649_p0), %s9335_s7, 4  ;;  %s4584_s17 = int_to_ptr.hbm [resolvable:$true] %s4583_s17 }
 0x20e   : > { %1831 = vrot.lane.b32.xlu2 %v6753_v3, %s5098_s9  ;;  %9739 = vst [vmem:[#allocation73_spill] sm:$0xff] %v6798_v24  ;;  %v1704_v45 = vld [vmem:[#allocation14 + $0xb8] sm:$0xff]  ;;  %v1702_v53 = vld [vmem:[#allocation14 + $0xa8] sm:$0xff]  ;;  %v6845_v35 = vld [vmem:[#allocation16 + $0x20] sm:$0xff]  ;;  %v2029_v62 = vrot.slane %v6833_v11, 6  ;;  %s5100_s18 = smov (%p1649_p0), [#allocation29]  }
 0x20f   : > { %1827 = vrot.lane.b32.xlu1 %v6755_v56, %s5098_s9  ;;  %9740 = vst [vmem:[#allocation74_spill] sm:$0xff] %v6800_v41  ;;  %v6822_v40 = vld [vmem:[#allocation16 + $0x98] sm:$0xff]  ;;  %v6831_v15 = vld [vmem:[#allocation16 + $0xc8] sm:$0xff]  ;;  %v6859_v42 = vld [vmem:[#allocation16 + $0x40] sm:$0xff]  ;;  %v2035_v22 = vrot.slane %v6845_v35, 6  ;;  %s4581_s21 = sshll.u32 (%p1649_p0), %s5100_s18, 4  ;;  %s4582_s21 = int_to_ptr.vmem [resolvable:$true] %s4581_s21 }
 0x210   : > { %1823 = vrot.lane.b32.xlu0 %v6757_v58, %s5098_s9  ;;  %9741 = vst [vmem:[#allocation75_spill] sm:$0xff] %v6802_v60  ;;  %v1708_v25 = vld [vmem:[#allocation14 + $0xd8] sm:$0x3]  ;;  %v6835_v21 = vld [vmem:[#allocation16 + $0x68] sm:$0xff]  ;;  %v6861_v34 = vld [vmem:[#allocation16 + $0xa0] sm:$0xff]  ;;  %v2019_v19 = vrot.slane %v6822_v40, 6 }
 0x211   : > { %9742 = vst [vmem:[#allocation76_spill] sm:$0xff] %v6810_v9  ;;  %v6843_v30 = vld [vmem:[#allocation16 + $0x88] sm:$0xff]  ;;  %v6847_v48 = vld [vmem:[#allocation16 + $0x78] sm:$0xff]  ;;  %v2027_v39 = vrot.slane %v6831_v15, 6  ;;  %v2025_v52 = vrot.slane %v6835_v21, 6  ;;  %v2037_v10 = vrot.slane %v6861_v34, 6 }
 0x212   : > { %9743 = vst [vmem:[#allocation77_spill] sm:$0xff] %v6816_v33  ;;  %v6857_v38 = vld [vmem:[#allocation16 + $0xd8] sm:$0xff]  ;;  %v6879_v0 = vsel %vm2018_vm5, %v2023_v13, %v2019_v19  ;;  %v2031_v59 = vrot.slane %v6847_v48, 6  ;;  %v2033_v12 = vrot.slane %v6843_v30, 6  ;;  %v6888_v28 = vld [vmem:[#allocation16 + $0x8] sm:$0xff]  ;;  %v2041_v43 = vrot.slane %v6859_v42, 6 }
 0x213   : > { %9744 = vst [vmem:[#allocation78_spill] sm:$0xff] %v6824_v1  ;;  %v6874_v61 = vsel %vm2018_vm5, %v2025_v52, %v2023_v13  ;;  %v6883_v26 = vsel %vm2018_vm5, %v2027_v39, %v2025_v52  ;;  %v6890_v49 = vld [vmem:[#allocation16] sm:$0x3]  ;;  %v2039_v20 = vrot.slane %v6857_v38, 6  ;;  %v6897_v54 = vld [vmem:[#allocation16 + $0xb8] sm:$0xff]  ;;  %v6903_v5 = vsel %vm2018_vm5, %v2029_v62, %v2027_v39  ;;  %v6943_v52 = vld [vmem:[#allocation16 + $0x10] sm:$0xff] }
 0x214   : > { %9745 = vst [vmem:[#allocation79_spill] sm:$0xff] %v6833_v11  ;;  %v9371_v36 = vrot.slane %v6874_v61, 1  ;;  %v6893_v2 = vsel %vm2018_vm5, %v2031_v59, %v2029_v62  ;;  %v9372_v57 = vrot.slane %v6883_v26, 1  ;;  %v2045_v14 = vrot.slane %v6888_v28, 6  ;;  %v6945_v62 = vld [vmem:[#allocation16 + $0x30] sm:$0xff]  ;;  %s4593_s7 = sshll.u32 (%p1649_p0), %s9336_s8, 4  ;;  %s4594_s7 = int_to_ptr.hbm [resolvable:$true] %s4593_s7 }
 0x215   : > { %9746 = vst [vmem:[#allocation80_spill] sm:$0xff] %v6845_v35  ;;  %v6965_v3 = vld [vmem:[#allocation16 + $0x48] sm:$0x3]  ;;  %s5101_s24 = smov (%p1649_p0), [#allocation31]   ;;  %s5102_s8 = smov (%p1649_p0), [#allocation28]  }
 0x216   : > { %1837 = vrot.lane.b32.xlu2 %v1697_v4, %s5098_s9  ;;  %9747 = vst [vmem:[#allocation81_spill] sm:$0xff] %v6847_v48  ;;  %v2043_v4 = vrot.slane %v6897_v54, 6  ;;  %s4591_s3 = sshll.u32 (%p1649_p0), %s5101_s24, 4  ;;  %s4567_s2 = sshll.u32 (%p1649_p0), %s5102_s8, 4  ;;  %s4592_s3 = int_to_ptr.vmem [resolvable:$true] %s4591_s3  ;;  %s4568_s2 = int_to_ptr.vmem [resolvable:$true] %s4567_s2 }
 0x217   : > { %1835 = vrot.lane.b32.xlu1 %v1695_v47, %s5098_s9  ;;  %9749 = vst [vmem:[#allocation83_spill] sm:$0xff] %v6859_v42  ;;  %v6917_v47 = vsel %vm2103_vm6, %v9371_v36, %v9372_v57  ;;  %s4569_s27 = sshll.u32 (%p1649_p0), %s9334_s6, 4  ;;  %s4570_s27 = int_to_ptr.hbm [resolvable:$true] %s4569_s27 }
 0x218   : > { %1833 = vrot.lane.b32.xlu0 %v6765_v17, %s5098_s9  ;;  %9750 = vst [vmem:[#allocation84_spill] sm:$0xff] %v6861_v34 }
 0x219   : > { %9752 = vst [vmem:[#allocation86_spill] sm:$0xff] %v6893_v2 }
 0x21a   : > { %9753 = vst [vmem:[#allocation87_spill] sm:$0xff] %v6897_v54 }
 0x21b   : > { %9754 = vst [vmem:[#allocation88_spill] sm:$0xff] %v6903_v5 }
 0x21c   : > { %9755 = vst [vmem:[#allocation89_spill] sm:$0xff] %v6917_v47  ;;  %v1991_v47 = vld [vmem:[#allocation5 + $0x58] sm:$0xff] }
 0x21d   : > { %9760 = vst [vmem:[#allocation94_spill] sm:$0xff] %v6945_v62 }
 0x21e   : > { %1843 = vrot.lane.b32.xlu2 %v1703_v63, %s5098_s9  ;;  %v6920_v63 = vsel %vm2018_vm5, %v2033_v12, %v2031_v59  ;;  %v6947_v59 = vld [vmem:[#allocation16 + $0x90] sm:$0xff]  ;;  %9761 = vst [vmem:[#allocation95_spill] sm:$0xff] %v6965_v3 }
 0x21f   : > { %1841 = vrot.lane.b32.xlu1 %v1701_v6, %s5098_s9  ;;  %v9382_v50 = vrot.slane %v6920_v63, 1  ;;  %v9762_v6 = vrot.slane %v6893_v2, 1 }
 0x220   : > { %1839 = vrot.lane.b32.xlu0 %v6771_v51, %s5098_s9 }
 0x226   : > { %1849 = vrot.lane.b32.xlu2 %v6777_v16, %s5098_s9 }
 0x227   : > { %1847 = vrot.lane.b32.xlu1 %v1707_v23, %s5098_s9  ;;  %v6924_v23 = vsel %vm2018_vm5, %v2037_v10, %v2035_v22 }
 0x228   : > { %1845 = vrot.lane.b32.xlu0 %v6779_v29, %s5098_s9  ;;  %9756 = vst [vmem:[#allocation90_spill] sm:$0xff] %v6924_v23 }
 0x22e   : > { %1855 = vrot.lane.b32.xlu2 %v6788_v27, %s5098_s9 }
 0x22f   : > { %1853 = vrot.lane.b32.xlu1 %v6786_v31, %s5098_s9 }
 0x230   : > { %1851 = vrot.lane.b32.xlu0 %v6790_v46, %s5098_s9  ;;  %v9764_v46 = vrot.slane %v6945_v62, 6 }
 0x236   : > { %1861 = vrot.lane.b32.xlu2 %v6800_v41, %s5098_s9 }
 0x237   : > { %1859 = vrot.lane.b32.xlu1 %v6798_v24, %s5098_s9  ;;  %v6962_v24 = vsel %vm2018_vm5, %v2035_v22, %v2033_v12 }
 0x238   : > { %1857 = vrot.lane.b32.xlu0 %v6802_v60, %s5098_s9 }
 0x23e   : > { %1867 = vrot.lane.b32.xlu2 %v6810_v9, %s5098_s9 }
 0x23f   : > { %1865 = vrot.lane.b32.xlu1 %v1698_v32, %s5098_s9  ;;  %v6928_v32 = vld [vmem:[#allocation16 + $0x50] sm:$0xff] }
 0x240   : > { %1863 = vrot.lane.b32.xlu0 %v1696_v18, %s5098_s9  ;;  %9757 = vst [vmem:[#allocation91_spill] sm:$0xff] %v6928_v32  ;;  %v6930_v18 = vld [vmem:[#allocation16 + $0x38] sm:$0xff]  ;;  %v2024_v39 = vrot.slane %v6928_v32, 6 }
 0x241   : > { %v2026_v36 = vrot.slane %v6930_v18, 6 }
 0x243   : > { %v7052_v51 = vsel %vm2018_vm5, %v2026_v36, %v2024_v39 }
 0x246   : > { %1873 = vrot.lane.b32.xlu2 %v6816_v33, %s5098_s9 }
 0x247   : > { %1871 = vrot.lane.b32.xlu1 %v1704_v45, %s5098_s9  ;;  %v6933_v45 = vsel %vm2018_vm5, %v2039_v20, %v2037_v10  ;;  %v2021_v10 = vrot.slane %v6943_v52, 6 }
 0x248   : > { %1869 = vrot.lane.b32.xlu0 %v1702_v53, %s5098_s9  ;;  %v2020_v53 = vsel %vm2018_vm5, %v2019_v19, %v6890_v49  ;;  %v2028_v19 = vrot.slane %v6947_v59, 6  ;;  %v9383_v60 = vrot.slane %v6933_v45, 1 }
 0x249   : > { %v6980_v22 = vsel %vm2018_vm5, %v2024_v39, %v2021_v10 }
 0x24a   : > { %v6983_v57 = vsel %vm2018_vm5, %v2028_v19, %v2026_v36  ;;  %v6988_v58 = vsel %vm2018_vm5, %v9764_v46, %v2028_v19  ;;  %v7005_v46 = vld [vmem:[#allocation16 + $0x28] sm:$0xff]  ;;  %v7007_v19 = vld [vmem:[#allocation16 + $0x60] sm:$0xff] }
 0x24b   : > { %9765 = vst [vmem:[#allocation97_spill] sm:$0xff] %v6988_v58  ;;  %v9775_v2 = vrot.slane %v7007_v19, 6  ;;  %v9778_v39 = vrot.slane %v6988_v58, 1  ;;  %v1997_v58 = vld [vmem:[#allocation5 + $0x98] sm:$0xff] }
 0x24c   : > { %9768 = vst [vmem:[#allocation99_spill] sm:$0xff] %v7005_v46 }
 0x24e   : > { %2412 = vrot.lane.b32.xlu2 %v6824_v1, %s5099_s10 }
 0x24f   : > { %2410 = vrot.lane.b32.xlu1 %v6822_v40, %s5099_s10 }
 0x250   : > { %1875 = vrot.lane.b32.xlu0 %v1708_v25, %s5098_s9  ;;  %v6938_v25 = vsel %vm2018_vm5, %v2043_v4, %v2041_v43 }
 0x251   : > { %9758 = vst [vmem:[#allocation92_spill] sm:$0xff] %v6938_v25 }
 0x256   : > { %2418 = vrot.lane.b32.xlu2 %v6833_v11, %s5099_s10  ;;  %v1737_v11 = vld [vmem:[#allocation12 + $0xb8] sm:$0xff] }
 0x257   : > { %2416 = vrot.lane.b32.xlu1 %v6831_v15, %s5099_s10 }
 0x258   : > { %2414 = vrot.lane.b32.xlu0 %v6835_v21, %s5099_s10 }
 0x25e   : > { %2424 = vrot.lane.b32.xlu2 %v6845_v35, %s5099_s10  ;;  %v7037_v35 = vld [vmem:[#allocation16 + $0x58] sm:$0xff] }
 0x25f   : > { %2422 = vrot.lane.b32.xlu1 %v6843_v30, %s5099_s10  ;;  %v2038_v29 = vrot.slane %v7037_v35, 6 }
 0x260   : > { %2420 = vrot.lane.b32.xlu0 %v6847_v48, %s5099_s10  ;;  %v6855_v7 = vpop.permute.xlu2 %1829 }
 0x261   : > { %9748 = vst [vmem:[#allocation82_spill] sm:$0xff] %v6855_v7  ;;  %v2104_v7 = vrot.slane %v2020_v53, 1 }
 0x266   : > { %2430 = vrot.lane.b32.xlu2 %v6859_v42, %s5099_s10  ;;  %v6956_v42 = vsel %vm2018_vm5, %v2045_v14, %v2043_v4  ;;  %v6975_v4 = vsel %vm2018_vm5, %v2041_v43, %v2039_v20  ;;  %v9766_v20 = vrot.slane %v6924_v23, 1  ;;  %v7039_v23 = vld [vmem:[#allocation16 + $0xa8] sm:$0xff] }
 0x267   : > { %2428 = vrot.lane.b32.xlu1 %v6857_v38, %s5099_s10  ;;  %v9388_v12 = vrot.slane %v6956_v42, 1  ;;  %9774 = vst [vmem:[#allocation103_spill] sm:$0xff] %v7039_v23  ;;  %v9782_v36 = vrot.slane %v7039_v23, 6 }
 0x268   : > { %2426 = vrot.lane.b32.xlu0 %v6861_v34, %s5099_s10  ;;  %v6876_v37 = vpop.permute.xlu2 %1831  ;;  %v6996_v43 = vsel %vm2103_vm6, %v9766_v20, %v9383_v60  ;;  %v2032_v20 = vrot.slane %v7005_v46, 6  ;;  %v7041_v60 = vld [vmem:[#allocation16 + $0xb0] sm:$0xff] }
 0x269   : > { %9751 = vst [vmem:[#allocation85_spill] sm:$0xff] %v6876_v37  ;;  %v6972_v37 = vsel %vm2103_vm6, %v9762_v6, %v9382_v50  ;;  %v7009_v50 = vld [vmem:[#allocation16 + $0xd0] sm:$0xff]  ;;  %v7013_v6 = vsel %vm2018_vm5, %v2021_v10, %v6965_v3 }
 0x26a   : > { %9763 = vst [vmem:[#allocation96_spill] sm:$0xff] %v6972_v37  ;;  %v2034_v33 = vrot.slane %v7009_v50, 6 }
 0x26b   : > { %9767 = vst [vmem:[#allocation98_spill] sm:$0xff] %v6996_v43  ;;  %v1653_v43 = vld [vmem:[#allocation26] sm:$0xff] }
 0x26c   : > { %v7063_v41 = vsel %vm2018_vm5, %v9775_v2, %v2034_v33  ;;  %v9781_v2 = vrot.slane %v6883_v26, 1  ;;  %v9784_v26 = vrot.slane %v6945_v62, 6 }
 0x26d   : > { %9776 = vst [vmem:[#allocation104_spill] sm:$0xff] %v7063_v41 }
 0x26e   : > { %2436 = vrot.lane.b32.xlu2 %v6890_v49, %s5099_s10 }
 0x26f   : > { %2434 = vrot.lane.b32.xlu1 %v6888_v28, %s5099_s10 }
 0x270   : > { %2432 = vrot.lane.b32.xlu0 %v6897_v54, %s5099_s10  ;;  %v6940_v13 = vpop.permute.xlu2 %1837 }
 0x271   : > { %9759 = vst [vmem:[#allocation93_spill] sm:$0xff] %v6940_v13  ;;  %v2047_v13 = vrot.slane %v2020_v53, 6 }
 0x273   : > { %v6999_v53 = vsel %vm2018_vm5, %v2047_v13, %v2045_v14  ;;  %v9769_v14 = vrot.slane %v6938_v25, 1  ;;  %v2107_v25 = vrot.slane %v7013_v6, 1 }
 0x275   : > { %v7020_v13 = vsel %vm2103_vm6, %v9769_v14, %v9388_v12  ;;  %v9773_v12 = vrot.slane %v6879_v0, 1 }
 0x276   : > { %2442 = vrot.lane.b32.xlu2 %v6930_v18, %s5099_s10  ;;  %9770 = vst [vmem:[#allocation100_spill] sm:$0xff] %v7020_v13  ;;  %v1765_v13 = vmul.f32 %v1737_v11, %v1653_v43  ;;  %v1793_v11 = vld [vmem:[#allocation4 + $0x68] sm:$0xff]  ;;  %v1794_v43 = vld [vmem:[#allocation4 + $0x50] sm:$0xff] }
 0x277   : > { %2440 = vrot.lane.b32.xlu1 %v6928_v32, %s5099_s10  ;;  %v2106_v44 = vsel %vm2103_vm6, %v2104_v7, %v9773_v12  ;;  %v9403_v12 = vrot.slane %v6999_v53, 1  ;;  %v1990_v7 = vld [vmem:[#allocation5] sm:$0xff] }
 0x278   : > { %2438 = vrot.lane.b32.xlu0 %v6943_v52, %s5099_s10  ;;  %v7028_v10 = vpop.permute.xlu2 %1843  ;;  %v2186_v3 = vsub.f32 %v6822_v40, %v2106_v44  ;;  %v9779_v44 = vrot.slane %v6983_v57, 1 }
 0x279   : > { %9771 = vst [vmem:[#allocation101_spill] sm:$0xff] %v7028_v10  ;;  %v7030_v31 = vpop.permute.xlu1 %1825  ;;  %v7058_v10 = vsel %vm2018_vm5, %v2034_v33, %v2032_v20  ;;  %v7068_v14 = vsub.f32 %v6890_v49, %v9403_v12  ;;  %v9780_v33 = vrot.slane %v6903_v5, 1  ;;  %v1659_v5 = vld [vmem:[#allocation26 + $0x30] sm:$0xff] }
 0x27a   : > { %9772 = vst [vmem:[#allocation102_spill] sm:$0xff] %v7030_v31  ;;  %v1822_v9 = vpop.permute.xlu0 %1821  ;;  %v2040_v31 = vrot.slane %v7041_v60, 6  ;;  %v2121_v40 = vsel %vm2103_vm6, %v9779_v44, %v9778_v39  ;;  %v9783_v39 = vrot.slane %v6980_v22, 1  ;;  %v9787_v32 = vrot.slane %v7058_v10, 1 }
 0x27b   : > { %9777 = vst [vmem:[#allocation105_spill] sm:$0xff] %v7068_v14  ;;  %v2119_v34 = vsel %vm2103_vm6, %v9781_v2, %v9780_v33  ;;  %v7099_v33 = vsel %vm2018_vm5, %v2032_v20, %v9784_v26  ;;  %v1738_v2 = vld [vmem:[#allocation12 + $0x70] sm:$0xff]  ;;  %v1743_v20 = vld [vmem:[#allocation12 + $0x18] sm:$0xff]  ;;  %v1996_v26 = vld [vmem:[#allocation5 + $0x48] sm:$0xff] }
 0x27c   : > { %v7084_v12 = vsel %vm2018_vm5, %v2040_v31, %v2038_v29  ;;  %v7089_v14 = vsel %vm2018_vm5, %v9782_v36, %v2040_v31  ;;  %v2109_v44 = vsel %vm2103_vm6, %v2107_v25, %v9783_v39  ;;  %v1654_v31 = vld [vmem:[#allocation26 + $0x8] sm:$0xff]  ;;  %v2193_v25 = vsub.f32 %v6947_v59, %v2121_v40 }
 0x27d   : > { %v2214_v39 = vmul.f32 %v2186_v3, %v1990_v7  ;;  %v2192_v54 = vsub.f32 %v6831_v15, %v2119_v34  ;;  %v7116_v3 = vld [vmem:[#allocation16 + $0x70] sm:$0xff]  ;;  %v1766_v17 = vmul.f32 %v1738_v2, %v1654_v31  ;;  %v7142_v2 = vmul.f32 %v1743_v20, %v1659_v5  ;;  %v1744_v31 = vld [vmem:[#allocation12 + $0x48] sm:$0xff] }
 0x27e   : > { %2448 = vrot.lane.b32.xlu2 %v7005_v46, %s5099_s10  ;;  %v2048_v46 = vrot.slane %v7013_v6, 6  ;;  %v2046_v49 = vrot.slane %v7116_v3, 6 }
 0x27f   : > { %2446 = vrot.lane.b32.xlu1 %v6945_v62, %s5099_s10  ;;  %v7110_v62 = vld [vmem:[#allocation16 + $0x18] sm:$0xff]  ;;  %v7138_v6 = vmul.f32 %v2192_v54, %v1996_v26  ;;  %v2008_v26 = vld [vmem:[#allocation5 + $0xa0] sm:$0xff] }
 0x280   : > { %2444 = vrot.lane.b32.xlu0 %v6947_v59, %s5099_s10  ;;  %v1850_v48 = vpop.permute.xlu2 %1849  ;;  %v2044_v36 = vrot.slane %v7110_v62, 6  ;;  %v2187_v59 = vsub.f32 %v6943_v52, %v2109_v44  ;;  %v9786_v44 = vrot.slane %v7063_v41, 1  ;;  %v9791_v41 = vrot.slane %v6962_v24, 1 }
 0x281   : > { %v1828_v37 = vpop.permute.xlu1 %1827  ;;  %v1878_v15 = vsel %vm1877_vm7, %v1822_v9, %v1850_v48  ;;  %v1892_v34 = vsel %vm1877_vm7, %v1850_v48, %v1822_v9  ;;  %v9788_v9 = vrot.slane %v7007_v19, 6 }
 0x282   : > { %v7122_v7 = vpop.permute.xlu0 %1823  ;;  %v1906_v40 = vsub.f32 %v6746_v55, %v1892_v34  ;;  %v1907_v52 = vsub.f32 %v6777_v16, %v1878_v15  ;;  %v2133_v1 = vsel %vm2103_vm6, %v9787_v32, %v9786_v44  ;;  %v1660_v15 = vld [vmem:[#allocation26 + $0x38] sm:$0xff]  ;;  %v9789_v34 = vrot.slane %v7089_v14, 1 }
 0x283   : > { %9785 = vst [vmem:[#allocation106_spill] sm:$0xff] %v7122_v7  ;;  %v7136_v48 = vsel %vm2018_vm5, %v2038_v29, %v9788_v9  ;;  %v7140_v7 = vmul.f32 %v2193_v25, %v1997_v58  ;;  %v9790_v32 = vrot.slane %v7084_v12, 1  ;;  %v9792_v29 = vrot.slane %v6920_v63, 1 }
 0x284   : > { %v1934_v55 = vmul.f32 %v1906_v40, %v1793_v11  ;;  %v1935_v16 = vmul.f32 %v1907_v52, %v1794_v43  ;;  %v2199_v58 = vsub.f32 %v7009_v50, %v2133_v1  ;;  %v7156_v5 = vsel %vm2018_vm5, %v2046_v49, %v2044_v36 }
 0x285   : > { %v2145_v44 = vsel %vm2103_vm6, %v9790_v32, %v9789_v34  ;;  %v2131_v54 = vsel %vm2103_vm6, %v9792_v29, %v9791_v41  ;;  %v7159_v25 = vsel %vm2018_vm5, %v2048_v46, %v2046_v49  ;;  %v2215_v20 = vmul.f32 %v2187_v59, %v1991_v47  ;;  %v2003_v41 = vld [vmem:[#allocation5 + $0x38] sm:$0xff]  ;;  %v1749_v49 = vld [vmem:[#allocation12 + $0xb0] sm:$0xff]  ;;  %v1750_v59 = vld [vmem:[#allocation12 + $0x40] sm:$0xff] }
 0x286   : > { %9793 = vst [vmem:[#allocation107_spill] sm:$0xff] %v7159_v25  ;;  %v1962_v40 = vadd.f32 %v1934_v55, %v1765_v13  ;;  %v1963_v11 = vadd.f32 %v1935_v16, %v1766_v17  ;;  %2454 = vrot.lane.b32.xlu2 %v7037_v35, %s5099_s10  ;;  %v9794_v1 = vrot.slane %v6975_v4, 1  ;;  %v9795_v63 = vrot.slane %v6933_v45, 1  ;;  %v2002_v16 = vld [vmem:[#allocation5 + $0x18] sm:$0xff]  ;;  %v1665_v34 = vld [vmem:[#allocation26 + $0x60] sm:$0xff]  ;;  %v1799_v29 = vld [vmem:[#allocation4 + $0x28] sm:$0xff] }
 0x287   : > { %2452 = vrot.lane.b32.xlu1 %v7007_v19, %s5099_s10  ;;  %v1772_v47 = vmul.f32 %v1744_v31, %v1660_v15  ;;  %v9796_v46 = vrot.slane %v7039_v23, 6  ;;  %v2205_v13 = vsub.f32 %v7041_v60, %v2145_v44  ;;  %v2198_v52 = vsub.f32 %v6843_v30, %v2131_v54  ;;  %v1800_v30 = vld [vmem:[#allocation4 + $0x40] sm:$0xff]  ;;  %v1671_v31 = vld [vmem:[#allocation26 + $0x90] sm:$0xff] }
 0x288   : > { %v2143_v43 = vsel %vm2103_vm6, %v9795_v63, %v9794_v1  ;;  %2450 = vrot.lane.b32.xlu0 %v7009_v50, %s5099_s10  ;;  %v7180_v9 = vadd.f32 %v2214_v39, %v1962_v40  ;;  %v1856_v55 = vpop.permute.xlu2 %1855  ;;  %v1666_v50 = vld [vmem:[#allocation26 + $0x68] sm:$0xff]  ;;  %v9799_v32 = vrot.slane %v7052_v51, 1  ;;  %v7195_v1 = vmul.f32 %v2199_v58, %v2003_v41  ;;  %v2009_v63 = vld [vmem:[#allocation5 + $0x80] sm:$0xff] }
 0x289   : > { %v7176_v17 = vsel %vm2018_vm5, %v2044_v36, %v9796_v46  ;;  %v7182_v45 = vpop.permute.xlu1 %1835  ;;  %v9798_v36 = vrot.slane %v6983_v57, 1  ;;  %v1881_v39 = vsel %vm1877_vm7, %v1828_v37, %v1856_v55  ;;  %v1895_v54 = vsel %vm1877_vm7, %v1856_v55, %v1828_v37 }
 0x28a   : > { %9797 = vst [vmem:[#allocation108_spill] sm:$0xff] %v7182_v45  ;;  %v1834_v40 = vpop.permute.xlu0 %1833  ;;  %v2204_v46 = vsub.f32 %v6857_v38, %v2143_v43  ;;  %v1912_v57 = vsub.f32 %v6755_v56, %v1895_v54  ;;  %v9800_v15 = vrot.slane %v6999_v53, 1  ;;  %v9801_v45 = vrot.slane %v6956_v42, 1  ;;  %v1756_v56 = vld [vmem:[#allocation12 + $0x58] sm:$0xff] }
 0x28b   : > { %v2117_v44 = vsel %vm2103_vm6, %v9799_v32, %v9798_v36  ;;  %2270 = vst [vmem:[#allocation12 + $0xb8] sm:$0xff] %v7180_v9  ;;  %v1913_v36 = vsub.f32 %v6788_v27, %v1881_v39  ;;  %v1755_v32 = vld [vmem:[#allocation12 + $0x10] sm:$0xff]  ;;  %v7206_v58 = vadd.f32 %v2215_v20, %v1963_v11  ;;  %v7208_v41 = vmul.f32 %v2198_v52, %v2002_v16  ;;  %v1672_v20 = vld [vmem:[#allocation26 + $0x98] sm:$0xff]  ;;  %v1995_v52 = vld [vmem:[#allocation5 + $0x68] sm:$0xff] }
 0x28c   : > { %v2155_v37 = vsel %vm2103_vm6, %v9801_v45, %v9800_v15  ;;  %v7210_v38 = vmul.f32 %v1749_v49, %v1665_v34  ;;  %v7212_v43 = vmul.f32 %v1750_v59, %v1666_v50  ;;  %v2191_v27 = vsub.f32 %v6930_v18, %v2117_v44  ;;  %v1994_v11 = vld [vmem:[#allocation5 + $0xb8] sm:$0xff] }
 0x28d   : > { %9802 = vst [vmem:[#allocation109_spill] sm:$0xff] %v7206_v58  ;;  %v1940_v55 = vmul.f32 %v1912_v57, %v1799_v29  ;;  %v1941_v39 = vmul.f32 %v1913_v36, %v1800_v30  ;;  %v9803_v54 = vrot.slane %v7159_v25, 1  ;;  %v9804_v53 = vrot.slane %v7156_v5, 1  ;;  %v1741_v18 = vld [vmem:[#allocation12 + $0x78] sm:$0xff]  ;;  %v9811_v57 = vld [vmem:[#allocation89_spill] sm:$0xff]  ;;  %v2000_v25 = vld [vmem:[#allocation5 + $0x50] sm:$0xff] }
 0x28e   : > { %v7220_v45 = vmul.f32 %v2205_v13, %v2009_v63  ;;  %2271 = vst [vmem:[#allocation12 + $0x70] sm:$0xff] %v7206_v58  ;;  %v7223_v49 = vmul.f32 %v2204_v46, %v2008_v26  ;;  %v7225_v59 = vmul.f32 %v1755_v32, %v1671_v31  ;;  %v2210_v16 = vsub.f32 %v6888_v28, %v2155_v37  ;;  %v1742_v26 = vld [vmem:[#allocation12 + $0x68] sm:$0xff]  ;;  %v7239_v31 = vld [vmem:[#allocation26 + $0x20] sm:$0xff] }
 0x28f   : > { %v2157_v42 = vsel %vm2103_vm6, %v9804_v53, %v9803_v54  ;;  %v9805_v34 = vrot.slane %v6874_v61, 1  ;;  %v9806_v50 = vrot.slane %v6879_v0, 1  ;;  %v1968_v44 = vadd.f32 %v1940_v55, %v7142_v2  ;;  %2458 = vrot.lane.b32.xlu1 %v7039_v23, %s5099_s10  ;;  %2460 = vrot.lane.b32.xlu2 %v7110_v62, %s5099_s10  ;;  %9807 = vst [vmem:[#allocation110_spill] sm:$0xff] %v7239_v31  ;;  %v7241_v28 = vld [vmem:[#allocation26 + $0x28] sm:$0xff]  ;;  %v1805_v2 = vld [vmem:[#allocation4 + $0x58] sm:$0xff]  ;;  %v2014_v55 = vld [vmem:[#allocation5 + $0xd0] sm:$0xff] }
 0x290   : > { %v1969_v29 = vadd.f32 %v1941_v39, %v1772_v47  ;;  %9808 = vst [vmem:[#allocation111_spill] sm:$0xff] %v7241_v28  ;;  %v9809_v61 = vrot.slane %v7052_v51, 1  ;;  %v9810_v0 = vrot.slane %v6980_v22, 1  ;;  %2456 = vrot.lane.b32.xlu0 %v7041_v60, %s5099_s10  ;;  %v1806_v47 = vld [vmem:[#allocation4 + $0x8] sm:$0xff]  ;;  %v2211_v63 = vsub.f32 %v7116_v3, %v2157_v42  ;;  %v1761_v51 = vld [vmem:[#allocation12 + $0xd0] sm:$0xff]  ;;  %v1762_v22 = vld [vmem:[#allocation12 + $0x60] sm:$0xff] }
 0x291   : > { %v2111_v15 = vsel %vm2103_vm6, %v9806_v50, %v9805_v34  ;;  %v7251_v46 = vmul.f32 %v1756_v56, %v1672_v20  ;;  %v9812_v36 = vsub.f32 %v6835_v21, %v9811_v57  ;;  %v7258_v37 = vmul.f32 %v2191_v27, %v1995_v52  ;;  %v7266_v54 = vpop.permute.xlu1 %1841  ;;  %v1862_v56 = vpop.permute.xlu2 %1861  ;;  %v2015_v53 = vld [vmem:[#allocation5 + $0x10] sm:$0xff]  ;;  %v1677_v42 = vld [vmem:[#allocation26 + $0xc0] sm:$0xff]  ;;  %v1678_v20 = vld [vmem:[#allocation26 + $0xc8] sm:$0xff] }
 0x292   : > { %v2113_v30 = vsel %vm2103_vm6, %v9810_v0, %v9809_v61  ;;  %v7261_v39 = vadd.f32 %v7138_v6, %v1968_v44  ;;  %v7264_v60 = vadd.f32 %v7140_v7, %v1969_v29  ;;  %9815 = vst [vmem:[#allocation113_spill] sm:$0xff] %v7266_v54  ;;  %v9816_v21 = vld [vmem:[#allocation78_spill] sm:$0xff]  ;;  %v9817_v27 = vrot.slane %v7058_v10, 1  ;;  %v1840_v50 = vpop.permute.xlu0 %1839  ;;  %v1739_v29 = vld [vmem:[#allocation12 + $0x80] sm:$0xff]  ;;  %v1992_v0 = vld [vmem:[#allocation5 + $0x88] sm:$0xff] }
 0x293   : > { %v7256_v32 = vmul.f32 %v9812_v36, %v1994_v11  ;;  %v2188_v11 = vsub.f32 %v9816_v21, %v2111_v15  ;;  %v9818_v52 = vrot.slane %v7099_v33, 1  ;;  %v1884_v6 = vsel %vm1877_vm7, %v1834_v40, %v1862_v56  ;;  %v1740_v61 = vld [vmem:[#allocation12 + $0x30] sm:$0xff]  ;;  %v9819_v15 = vld [vmem:[#allocation91_spill] sm:$0xff]  ;;  %v9820_v10 = vld [vmem:[#allocation68_spill] sm:$0xff] }
 0x294   : > { %9813 = vst [vmem:[#allocation89_spill] sm:$0xff] %v7261_v39  ;;  %v1898_v7 = vsel %vm1877_vm7, %v1862_v56, %v1834_v40  ;;  %v7279_v44 = vmul.f32 %v1741_v18, %v7239_v31  ;;  %v2189_v57 = vsub.f32 %v9819_v15, %v2113_v30  ;;  %v9821_v21 = vld [vmem:[#allocation74_spill] sm:$0xff]  ;;  %v7288_v13 = vmul.f32 %v2210_v16, %v2014_v55  ;;  %v1993_v40 = vld [vmem:[#allocation5 + $0x78] sm:$0xff] }
 0x295   : > { %9814 = vst [vmem:[#allocation112_spill] sm:$0xff] %v7264_v60  ;;  %v2129_v34 = vsel %vm2103_vm6, %v9818_v52, %v9817_v27  ;;  %v1918_v36 = vsub.f32 %v9820_v10, %v1898_v7  ;;  %v1919_v27 = vsub.f32 %v9821_v21, %v1884_v6  ;;  %v7286_v52 = vmul.f32 %v1742_v26, %v7241_v28  ;;  %v7290_v56 = vld [vmem:[#allocation26 + $0x10] sm:$0xff]  ;;  %v7292_v18 = vld [vmem:[#allocation26 + $0x18] sm:$0xff]  ;;  %v9827_v21 = vld [vmem:[#allocation88_spill] sm:$0xff] }
 0x296   : > { %2276 = vst [vmem:[#allocation12 + $0x18] sm:$0xff] %v7261_v39  ;;  %v7295_v58 = vmul.f32 %v2211_v63, %v2015_v53  ;;  %v7297_v30 = vmul.f32 %v1761_v51, %v1677_v42  ;;  %v9824_v15 = vld [vmem:[#allocation99_spill] sm:$0xff]  ;;  %v9825_v10 = vld [vmem:[#allocation86_spill] sm:$0xff]  ;;  %v9828_v26 = vrot.slane %v9827_v21, 1  ;;  %v7305_v31 = vmul.f32 %v1762_v22, %v1678_v20  ;;  %v1747_v42 = vld [vmem:[#allocation12 + $0xa8] sm:$0xff] }
 0x297   : > { %9822 = vst [vmem:[#allocation78_spill] sm:$0xff] %v7290_v56  ;;  %v2197_v7 = vsub.f32 %v9824_v15, %v2129_v34  ;;  %v9826_v6 = vrot.slane %v9825_v10, 1  ;;  %v1946_v55 = vmul.f32 %v1918_v36, %v1805_v2  ;;  %v1947_v28 = vmul.f32 %v1919_v27, %v1806_v47  ;;  %v2001_v23 = vld [vmem:[#allocation5 + $0x70] sm:$0xff]  ;;  %v9831_v47 = vld [vmem:[#allocation97_spill] sm:$0xff]  ;;  %2960 = vrot.lane.b32.xlu2 %v7180_v9, %s5099_s10  ;;  %v7331_v36 = vld [vmem:[#allocation26 + $0x58] sm:$0xff] }
 0x298   : > { %9823 = vst [vmem:[#allocation91_spill] sm:$0xff] %v7292_v18  ;;  %v7307_v54 = vmul.f32 %v2188_v11, %v1992_v0  ;;  %v7309_v63 = vmul.f32 %v2189_v57, %v1993_v40  ;;  %v7312_v51 = vmul.f32 %v1739_v29, %v7290_v56  ;;  %v7315_v53 = vmul.f32 %v1740_v61, %v7292_v18  ;;  %v7317_v34 = vld [vmem:[#allocation26 + $0x50] sm:$0xff]  ;;  %v9833_v29 = vld [vmem:[#allocation95_spill] sm:$0xff]  ;;  %v1748_v61 = vld [vmem:[#allocation12] sm:$0xff] }
 0x299   : > { %2277 = vst [vmem:[#allocation12 + $0x48] sm:$0xff] %v7264_v60  ;;  %v2123_v16 = vsel %vm2103_vm6, %v9828_v26, %v9826_v6  ;;  %v9830_v2 = vrot.slane %v7099_v33, 1  ;;  %v9832_v22 = vrot.slane %v9831_v47, 1  ;;  %v1974_v0 = vadd.f32 %v1946_v55, %v7210_v38  ;;  %2464 = vrot.lane.b32.xlu1 %v9833_v29, %s5099_s10  ;;  %v9835_v33 = vld [vmem:[#allocation79_spill] sm:$0xff]  ;;  %2462 = vrot.lane.b32.xlu0 %v7116_v3, %s5099_s10  ;;  %v1811_v38 = vld [vmem:[#allocation4 + $0xc8] sm:$0xff]  ;;  %v1745_v9 = vld [vmem:[#allocation12 + $0x90] sm:$0xff]  ;;  %v7351_v47 = vpop.permute.xlu1 %1847 }
 0x29a   : > { %9829 = vst [vmem:[#allocation68_spill] sm:$0xff] %v7317_v34  ;;  %v1975_v57 = vadd.f32 %v1947_v28, %v7212_v43  ;;  %v2194_v27 = vsub.f32 %v9835_v33, %v2123_v16  ;;  %v9836_v43 = vld [vmem:[#allocation81_spill] sm:$0xff]  ;;  %v9837_v28 = vld [vmem:[#allocation96_spill] sm:$0xff]  ;;  %v7343_v21 = vmul.f32 %v2197_v7, %v2001_v23  ;;  %v1812_v3 = vld [vmem:[#allocation4 + $0x18] sm:$0xff]  ;;  %v7354_v33 = vmul.f32 %v1747_v42, %v7317_v34 }
 0x29b   : > { %v2125_v20 = vsel %vm2103_vm6, %v9832_v22, %v9830_v2  ;;  %9834 = vst [vmem:[#allocation74_spill] sm:$0xff] %v7331_v36  ;;  %v9838_v10 = vsub.f32 %v9836_v43, %v9837_v28  ;;  %v1998_v26 = vld [vmem:[#allocation5 + $0xc8] sm:$0xff]  ;;  %v1661_v55 = vld [vmem:[#allocation26 + $0x40] sm:$0xff]  ;;  %v7346_v16 = vadd.f32 %v7208_v41, %v1974_v0  ;;  %v1868_v22 = vpop.permute.xlu2 %1867  ;;  %v9842_v23 = vrot.slane %v7084_v12, 1  ;;  %v1846_v0 = vpop.permute.xlu0 %1845  ;;  %v1753_v40 = vld [vmem:[#allocation12 + $0x98] sm:$0xff] }
 0x29c   : > { %v7349_v2 = vadd.f32 %v7195_v1, %v1975_v57  ;;  %9841 = vst [vmem:[#allocation88_spill] sm:$0xff] %v7351_v47  ;;  %v1662_v43 = vld [vmem:[#allocation26 + $0x48] sm:$0xff]  ;;  %v9843_v7 = vrot.slane %v7136_v48, 1  ;;  %v1887_v41 = vsel %vm1877_vm7, %v1840_v50, %v1868_v22  ;;  %v1901_v1 = vsel %vm1877_vm7, %v1868_v22, %v1840_v50  ;;  %v1999_v42 = vld [vmem:[#allocation5 + $0xc0] sm:$0xff]  ;;  %v2006_v50 = vld [vmem:[#allocation5 + $0xd8] sm:$0xff] }
 0x29d   : > { %v7341_v6 = vmul.f32 %v9838_v10, %v2000_v25  ;;  %9839 = vst [vmem:[#allocation99_spill] sm:$0xff] %v7346_v16  ;;  %v1746_v25 = vld [vmem:[#allocation12 + $0x50] sm:$0xff]  ;;  %v7366_v57 = vmul.f32 %v1748_v61, %v7331_v36  ;;  %v1754_v11 = vld [vmem:[#allocation12 + $0x28] sm:$0xff]  ;;  %v7372_v56 = vmul.f32 %v2194_v27, %v1998_v26  ;;  %v7374_v60 = vmul.f32 %v1745_v9, %v1661_v55  ;;  %v7376_v22 = vld [vmem:[#allocation26 + $0x80] sm:$0xff] }
 0x29e   : > { %9840 = vst [vmem:[#allocation86_spill] sm:$0xff] %v7349_v2  ;;  %v2141_v28 = vsel %vm2103_vm6, %v9843_v7, %v9842_v23  ;;  %v9844_v10 = vld [vmem:[#allocation94_spill] sm:$0xff]  ;;  %v9845_v12 = vld [vmem:[#allocation69_spill] sm:$0xff]  ;;  %v9846_v23 = vld [vmem:[#allocation76_spill] sm:$0xff]  ;;  %v9854_v27 = vrot.slane %v6962_v24, 1  ;;  %v9855_v26 = vrot.slane %v7136_v48, 1  ;;  %v7404_v48 = vmul.f32 %v1753_v40, %v7376_v22 }
 0x29f   : > { %v2195_v15 = vsub.f32 %v9844_v10, %v2125_v20  ;;  %2282 = vst [vmem:[#allocation12 + $0xb0] sm:$0xff] %v7346_v16  ;;  %v1924_v18 = vsub.f32 %v9845_v12, %v1901_v1  ;;  %v1925_v7 = vsub.f32 %v9846_v23, %v1887_v41  ;;  %v7378_v61 = vld [vmem:[#allocation26 + $0x88] sm:$0xff]  ;;  %v7381_v20 = vmul.f32 %v1746_v25, %v1662_v43  ;;  %v1751_v34 = vld [vmem:[#allocation12 + $0xd8] sm:$0xff]  ;;  %v9852_v1 = vld [vmem:[#allocation90_spill] sm:$0xff] }
 0x2a0   : > { %9847 = vst [vmem:[#allocation97_spill] sm:$0xff] %v7372_v56  ;;  %v2007_v10 = vld [vmem:[#allocation5 + $0x28] sm:$0xff]  ;;  %v2203_v36 = vsub.f32 %v7037_v35, %v2141_v28  ;;  %v9853_v12 = vrot.slane %v9852_v1, 1  ;;  %v9856_v55 = vld [vmem:[#allocation104_spill] sm:$0xff]  ;;  %v1667_v28 = vld [vmem:[#allocation26 + $0x70] sm:$0xff]  ;;  %2966 = vrot.lane.b32.xlu2 %v7261_v39, %s5099_s10 }
 0x2a1   : > { %9848 = vst [vmem:[#allocation79_spill] sm:$0xff] %v7374_v60  ;;  %v9857_v41 = vrot.slane %v9856_v55, 1  ;;  %v1952_v47 = vmul.f32 %v1924_v18, %v1811_v38  ;;  %v1953_v29 = vmul.f32 %v1925_v7, %v1812_v3  ;;  %v1752_v25 = vld [vmem:[#allocation12 + $0xc8] sm:$0xff]  ;;  %v9858_v43 = vld [vmem:[#allocation80_spill] sm:$0xff]  ;;  %v7396_v1 = vmul.f32 %v2195_v15, %v1999_v42  ;;  %v9860_v60 = vld [vmem:[#allocation98_spill] sm:$0xff] }
 0x2a2   : > { %9849 = vst [vmem:[#allocation81_spill] sm:$0xff] %v7376_v22  ;;  %v2135_v9 = vsel %vm2103_vm6, %v9854_v27, %v9853_v12  ;;  %v9859_v24 = vld [vmem:[#allocation84_spill] sm:$0xff]  ;;  %v7407_v18 = vmul.f32 %v1754_v11, %v7378_v61  ;;  %v2004_v38 = vld [vmem:[#allocation5 + $0xa8] sm:$0xff]  ;;  %v7417_v40 = vmul.f32 %v1751_v34, %v1667_v28  ;;  %v9862_v11 = vrot.slane %v7156_v5, 1  ;;  %v1817_v28 = vld [vmem:[#allocation4 + $0xb8] sm:$0xff] }
 0x2a3   : > { %9850 = vst [vmem:[#allocation96_spill] sm:$0xff] %v7378_v61  ;;  %v2137_v23 = vsel %vm2103_vm6, %v9857_v41, %v9855_v26  ;;  %v2200_v56 = vsub.f32 %v9858_v43, %v2135_v9  ;;  %v9861_v12 = vsub.f32 %v9859_v24, %v9860_v60  ;;  %v2005_v3 = vld [vmem:[#allocation5 + $0x8] sm:$0xff]  ;;  %v1980_v15 = vadd.f32 %v1952_v47, %v7225_v59  ;;  %v1797_v47 = vld [vmem:[#allocation4 + $0xd0] sm:$0xff]  ;;  %v9868_v43 = vld [vmem:[#allocation71_spill] sm:$0xff] }
 0x2a4   : > { %2283 = vst [vmem:[#allocation12 + $0x40] sm:$0xff] %v7349_v2  ;;  %v2201_v35 = vsub.f32 %v7007_v19, %v2137_v23  ;;  %v1981_v42 = vadd.f32 %v1953_v29, %v7251_v46  ;;  %v7415_v60 = vmul.f32 %v2203_v36, %v2007_v10  ;;  %v9863_v9 = vrot.slane %v7176_v17, 1  ;;  %v1854_v46 = vpop.permute.xlu1 %1853  ;;  %v1874_v29 = vpop.permute.xlu2 %1873  ;;  %v9866_v10 = vld [vmem:[#allocation102_spill] sm:$0xff]  ;;  %v9867_v23 = vld [vmem:[#allocation65_spill] sm:$0xff]  ;;  %v1818_v24 = vld [vmem:[#allocation4 + $0x80] sm:$0xff] }
 0x2a5   : > { %9851 = vst [vmem:[#allocation94_spill] sm:$0xff] %v7381_v20  ;;  %v1668_v20 = vld [vmem:[#allocation26 + $0x78] sm:$0xff]  ;;  %v7401_v27 = vmul.f32 %v9861_v12, %v2006_v50  ;;  %v7427_v55 = vadd.f32 %v7223_v49, %v1980_v15  ;;  %v7432_v36 = vmul.f32 %v2200_v56, %v2004_v38  ;;  %v1880_v5 = vsel %vm1877_vm7, %v9866_v10, %v1854_v46  ;;  %v1852_v56 = vpop.permute.xlu0 %1851  ;;  %v2012_v12 = vld [vmem:[#allocation5 + $0xb0] sm:$0xff]  ;;  %v1759_v19 = vld [vmem:[#allocation12 + $0xc0] sm:$0xff] }
 0x2a6   : > { %v7419_v50 = vmul.f32 %v1752_v25, %v1668_v20  ;;  %v2153_v26 = vsel %vm2103_vm6, %v9863_v9, %v9862_v11  ;;  %v7430_v59 = vadd.f32 %v7220_v45, %v1981_v42  ;;  %v7434_v34 = vmul.f32 %v2201_v35, %v2005_v3  ;;  %v1798_v20 = vld [vmem:[#allocation4 + $0xd8] sm:$0xff]  ;;  %v9869_v3 = vld [vmem:[#allocation92_spill] sm:$0xff] }
 0x2a7   : > { %9864 = vst [vmem:[#allocation69_spill] sm:$0xff] %v7427_v55  ;;  %v1894_v49 = vsel %vm1877_vm7, %v1854_v46, %v9866_v10  ;;  %v1890_v45 = vsel %vm1877_vm7, %v1846_v0, %v1874_v29  ;;  %v1904_v41 = vsel %vm1877_vm7, %v1874_v29, %v1846_v0  ;;  %v1911_v35 = vsub.f32 %v9868_v43, %v1880_v5  ;;  %v9872_v0 = vld [vmem:[#allocation70_spill] sm:$0xff]  ;;  %v9873_v46 = vld [vmem:[#allocation77_spill] sm:$0xff]  ;;  %v1796_v5 = vld [vmem:[#allocation4 + $0x60] sm:$0xff] }
 0x2a8   : > { %9865 = vst [vmem:[#allocation76_spill] sm:$0xff] %v7430_v59  ;;  %v1910_v25 = vsub.f32 %v9867_v23, %v1894_v49  ;;  %v2209_v38 = vsub.f32 %v7110_v62, %v2153_v26  ;;  %v9870_v15 = vrot.slane %v9869_v3, 1  ;;  %v9871_v42 = vrot.slane %v6975_v4, 1  ;;  %v1795_v10 = vld [vmem:[#allocation4 + $0x70] sm:$0xff]  ;;  %v9875_v43 = vld [vmem:[#allocation67_spill] sm:$0xff]  ;;  %v9878_v2 = vld [vmem:[#allocation100_spill] sm:$0xff]  ;;  %2972 = vrot.lane.b32.xlu2 %v7346_v16, %s5099_s10 }
 0x2a9   : > { %2288 = vst [vmem:[#allocation12 + $0x10] sm:$0xff] %v7427_v55  ;;  %v1930_v9 = vsub.f32 %v9872_v0, %v1904_v41  ;;  %v1931_v29 = vsub.f32 %v9873_v46, %v1890_v45  ;;  %v9874_v49 = vld [vmem:[#allocation106_spill] sm:$0xff]  ;;  %v1939_v26 = vmul.f32 %v1911_v35, %v1798_v20  ;;  %v9877_v39 = vld [vmem:[#allocation87_spill] sm:$0xff] }
 0x2aa   : > { %v7455_v11 = vsel %vm2103_vm6, %v9871_v42, %v9870_v15  ;;  %2289 = vst [vmem:[#allocation12 + $0x58] sm:$0xff] %v7430_v59  ;;  %v1879_v23 = vsel %vm1877_vm7, %v9874_v49, %v1852_v56  ;;  %v1893_v62 = vsel %vm1877_vm7, %v1852_v56, %v9874_v49  ;;  %v1938_v4 = vmul.f32 %v1910_v25, %v1797_v47  ;;  %v9876_v15 = vld [vmem:[#allocation72_spill] sm:$0xff]  ;;  %v2013_v41 = vld [vmem:[#allocation5 + $0x30] sm:$0xff] }
 0x2ab   : > { %v1908_v3 = vsub.f32 %v9875_v43, %v1893_v62  ;;  %v1909_v42 = vsub.f32 %v9876_v15, %v1879_v23  ;;  %v7468_v0 = vld [vmem:[#allocation26 + $0xb0] sm:$0xff]  ;;  %v1958_v46 = vmul.f32 %v1930_v9, %v1817_v28  ;;  %v1959_v7 = vmul.f32 %v1931_v29, %v1818_v24  ;;  %v1760_v28 = vld [vmem:[#allocation12 + $0x8] sm:$0xff]  ;;  %v7484_v9 = vld [vmem:[#allocation26 + $0xb8] sm:$0xff] }
 0x2ac   : > { %v9879_v61 = vsub.f32 %v9877_v39, %v9878_v2  ;;  %v1966_v47 = vadd.f32 %v1938_v4, %v7279_v44  ;;  %v1967_v20 = vadd.f32 %v1939_v26, %v7286_v52  ;;  %v7482_v24 = vmul.f32 %v2209_v38, %v2013_v41  ;;  %v1804_v29 = vld [vmem:[#allocation4 + $0xc0] sm:$0xff]  ;;  %v9887_v62 = vld [vmem:[#allocation66_spill] sm:$0xff]  ;;  %v9888_v4 = vld [vmem:[#allocation73_spill] sm:$0xff] }
 0x2ad   : > { %v1936_v56 = vmul.f32 %v1908_v3, %v1795_v10  ;;  %v1937_v25 = vmul.f32 %v1909_v42, %v1796_v5  ;;  %v1986_v35 = vadd.f32 %v1958_v46, %v7297_v30  ;;  %v1987_v49 = vadd.f32 %v1959_v7, %v7305_v31  ;;  %v7497_v31 = vpop.permute.xlu2 %2412  ;;  %v1802_v15 = vld [vmem:[#allocation4 + $0x78] sm:$0xff]  ;;  %v9889_v42 = vld [vmem:[#allocation82_spill] sm:$0xff] }
 0x2ae   : > { %v7474_v22 = vmul.f32 %v9879_v61, %v2012_v12  ;;  %v7487_v39 = vmul.f32 %v1759_v19, %v7468_v0  ;;  %v7490_v44 = vadd.f32 %v7256_v32, %v1966_v47  ;;  %v7493_v52 = vadd.f32 %v7258_v37, %v1967_v20  ;;  %v1860_v61 = vpop.permute.xlu1 %1859  ;;  %v9884_v19 = vld [vmem:[#allocation85_spill] sm:$0xff]  ;;  %v1757_v47 = vld [vmem:[#allocation12 + $0x38] sm:$0xff]  ;;  %v1758_v20 = vld [vmem:[#allocation12 + $0xa0] sm:$0xff] }
 0x2af   : > { %v1964_v2 = vadd.f32 %v1936_v56, %v7312_v51  ;;  %v1965_v30 = vadd.f32 %v1937_v25, %v7315_v53  ;;  %v7500_v7 = vadd.f32 %v7288_v13, %v1986_v35  ;;  %v7503_v12 = vadd.f32 %v7295_v58, %v1987_v49  ;;  %v1858_v51 = vpop.permute.xlu0 %1857  ;;  %v1803_v58 = vld [vmem:[#allocation4] sm:$0xff]  ;;  %v4744_v53 = vld [vmem:[#allocation14 + $0x88] sm:$0xff] }
 0x2b0   : > { %9880 = vst [vmem:[#allocation90_spill] sm:$0xff] %v7490_v44  ;;  %v1883_v32 = vsel %vm1877_vm7, %v9884_v19, %v1860_v61  ;;  %v1897_v37 = vsel %vm1877_vm7, %v1860_v61, %v9884_v19  ;;  %2964 = vrot.lane.b32.xlu1 %v7490_v44, %s5099_s10  ;;  %v7522_v10 = vmul.f32 %v1760_v28, %v7484_v9  ;;  %v4742_v35 = vld [vmem:[#allocation14 + $0x40] sm:$0xff]  ;;  %v9890_v28 = vld [vmem:[#allocation75_spill] sm:$0xff]  ;;  %v1674_v19 = vld [vmem:[#allocation26 + $0xa8] sm:$0xff] }
 0x2b1   : > { %9881 = vst [vmem:[#allocation104_spill] sm:$0xff] %v7493_v52  ;;  %v7514_v38 = vadd.f32 %v7307_v54, %v1964_v2  ;;  %v7517_v13 = vadd.f32 %v7309_v63, %v1965_v30  ;;  %v1916_v54 = vsub.f32 %v9887_v62, %v1897_v37  ;;  %v1917_v26 = vsub.f32 %v9888_v4, %v1883_v32  ;;  %v1801_v63 = vld [vmem:[#allocation4 + $0x48] sm:$0xff]  ;;  %v2010_v30 = vld [vmem:[#allocation5 + $0x90] sm:$0xff]  ;;  %v1673_v61 = vld [vmem:[#allocation26 + $0xa0] sm:$0xff] }
 0x2b2   : > { %9882 = vst [vmem:[#allocation80_spill] sm:$0xff] %v7500_v7  ;;  %v1882_v41 = vsel %vm1877_vm7, %v9889_v42, %v1858_v51  ;;  %v1896_v46 = vsel %vm1877_vm7, %v1858_v51, %v9889_v42  ;;  %2978 = vrot.lane.b32.xlu2 %v7427_v55, %s5099_s10  ;;  %v9891_v51 = vrot.slane %v7176_v17, 1  ;;  %v9893_v62 = vld [vmem:[#allocation83_spill] sm:$0xff] }
 0x2b3   : > { %9883 = vst [vmem:[#allocation84_spill] sm:$0xff] %v7503_v12  ;;  %2962 = vrot.lane.b32.xlu0 %v7514_v38, %s5099_s10  ;;  %v1944_v56 = vmul.f32 %v1916_v54, %v1803_v58  ;;  %v1945_v25 = vmul.f32 %v1917_v26, %v1804_v29  ;;  %v1914_v49 = vsub.f32 %v4742_v35, %v1896_v46  ;;  %v9892_v58 = vrot.slane %v7089_v14, 1  ;;  %v1680_v32 = vld [vmem:[#allocation26 + $0xd8] sm:$0x3] }
 0x2b4   : > { %2274 = vst [vmem:[#allocation12 + $0x78] sm:$0xff] %v7490_v44  ;;  %v1915_v2 = vsub.f32 %v9890_v28, %v1882_v41  ;;  %v2206_v54 = vsub.f32 %v9893_v62, %v7455_v11  ;;  %v9894_v28 = vld [vmem:[#allocation103_spill] sm:$0xff]  ;;  %v7562_v14 = vmul.f32 %v1757_v47, %v1673_v61  ;;  %v1763_v62 = vld [vmem:[#allocation12 + $0x20] sm:$0x3]  ;;  %v2386_v44 = vld [vmem:[#allocation6 + $0xd0] sm:$0xff] }
 0x2b5   : > { %9885 = vst [vmem:[#allocation98_spill] sm:$0xff] %v7514_v38  ;;  %v2149_v29 = vsel %vm2103_vm6, %v9892_v58, %v9891_v51  ;;  %v1972_v4 = vadd.f32 %v1944_v56, %v7354_v33  ;;  %v1973_v26 = vadd.f32 %v1945_v25, %v7366_v57  ;;  %v1942_v42 = vmul.f32 %v1914_v49, %v1801_v63  ;;  %v7557_v35 = vpop.permute.xlu2 %2418  ;;  %v9897_v57 = vld [vmem:[#allocation79_spill] sm:$0xff]  ;;  %v1809_v25 = vld [vmem:[#allocation4 + $0x10] sm:$0xff]  ;;  %v1810_v49 = vld [vmem:[#allocation4 + $0xa8] sm:$0xff] }
 0x2b6   : > { %9886 = vst [vmem:[#allocation102_spill] sm:$0xff] %v7517_v13  ;;  %v1943_v41 = vmul.f32 %v1915_v2, %v1802_v15  ;;  %v1866_v46 = vpop.permute.xlu1 %1865  ;;  %v2207_v17 = vsub.f32 %v9894_v28, %v2149_v29  ;;  %v7560_v3 = vmul.f32 %v2206_v54, %v2010_v30  ;;  %v7564_v51 = vmul.f32 %v1758_v20, %v1674_v19  ;;  %v9898_v15 = vld [vmem:[#allocation94_spill] sm:$0xff]  ;;  %v1807_v2 = vld [vmem:[#allocation4 + $0x88] sm:$0xff]  ;;  %v9900_v20 = vld [vmem:[#allocation108_spill] sm:$0xff] }
 0x2b7   : > { %2275 = vst [vmem:[#allocation12 + $0x68] sm:$0xff] %v7493_v52  ;;  %v7567_v11 = vadd.f32 %v7341_v6, %v1972_v4  ;;  %v7570_v33 = vadd.f32 %v7343_v21, %v1973_v26  ;;  %v1970_v63 = vadd.f32 %v1942_v42, %v9897_v57  ;;  %v1808_v58 = vld [vmem:[#allocation4 + $0x90] sm:$0xff]  ;;  %v1864_v30 = vpop.permute.xlu0 %1863  ;;  %v9899_v29 = vld [vmem:[#allocation93_spill] sm:$0xff]  ;;  %v2011_v19 = vld [vmem:[#allocation5 + $0x20] sm:$0xff] }
 0x2b8   : > { %2294 = vst [vmem:[#allocation12 + $0xd0] sm:$0xff] %v7500_v7  ;;  %v1971_v56 = vadd.f32 %v1943_v41, %v9898_v15  ;;  %v1886_v47 = vsel %vm1877_vm7, %v9899_v29, %v1866_v46  ;;  %v1900_v6 = vsel %vm1877_vm7, %v1866_v46, %v9899_v29  ;;  %v1885_v21 = vsel %vm1877_vm7, %v9900_v20, %v1864_v30  ;;  %v1764_v54 = vld [vmem:[#allocation12 + $0x88] sm:$0x3]  ;;  %v2016_v46 = vld [vmem:[#allocation5 + $0x40] sm:$0x3]  ;;  %v9904_v57 = vld [vmem:[#allocation107_spill] sm:$0xff] }
 0x2b9   : > { %2295 = vst [vmem:[#allocation12 + $0x60] sm:$0xff] %v7503_v12  ;;  %v1899_v61 = vsel %vm1877_vm7, %v1864_v30, %v9900_v20  ;;  %v9901_v26 = vld [vmem:[#allocation97_spill] sm:$0xff]  ;;  %2970 = vrot.lane.b32.xlu1 %v7567_v11, %s5099_s10  ;;  %v2017_v28 = vld [vmem:[#allocation5 + $0x60] sm:$0x3]  ;;  %v9905_v15 = vrot.slane %v9904_v57, 1  ;;  %v9906_v30 = vld [vmem:[#allocation95_spill] sm:$0xff]  ;;  %v1923_v45 = vsub.f32 %v4744_v53, %v1886_v47 }
 0x2ba   : > { %2272 = vst [vmem:[#allocation12 + $0x80] sm:$0xff] %v7514_v38  ;;  %v7589_v42 = vadd.f32 %v9901_v26, %v1970_v63  ;;  %v7592_v41 = vadd.f32 %v7396_v1, %v1971_v56  ;;  %v4743_v20 = vld [vmem:[#allocation14 + $0x80] sm:$0xff]  ;;  %v4745_v63 = vld [vmem:[#allocation14 + $0x70] sm:$0xff]  ;;  %v4746_v4 = vld [vmem:[#allocation14 + $0x78] sm:$0xff]  ;;  %2984 = vrot.lane.b32.xlu2 %v7500_v7, %s5099_s10 }
 0x2bb   : > { %2273 = vst [vmem:[#allocation12 + $0x30] sm:$0xff] %v7517_v13  ;;  %v2213_v29 = vsub.f32 %v9906_v30, %v9905_v15  ;;  %v1922_v43 = vsub.f32 %v4743_v20, %v1900_v6  ;;  %v1920_v26 = vsub.f32 %v4745_v63, %v1899_v61  ;;  %v1921_v1 = vsub.f32 %v4746_v4, %v1885_v21  ;;  %v1679_v56 = vld [vmem:[#allocation26 + $0xd0] sm:$0x3]  ;;  %v7611_v30 = vld [vmem:[#allocation15 + $0x18] sm:$0xff]  ;;  %v9907_v20 = vld [vmem:[#allocation105_spill] sm:$0xff] }
 0x2bc   : > { %9895 = vst [vmem:[#allocation65_spill] sm:$0xff] %v7567_v11  ;;  %2968 = vrot.lane.b32.xlu0 %v7589_v42, %s5099_s10  ;;  %v7606_v6 = vmul.f32 %v2207_v17, %v2011_v19  ;;  %v1951_v47 = vmul.f32 %v1923_v45, %v1810_v49  ;;  %v7609_v4 = vld [vmem:[#allocation15 + $0x10] sm:$0xff]  ;;  %v7616_v63 = vmul.f32 %v9907_v20, %v2016_v46  ;;  %v9918_v57 = vld [vmem:[#allocation88_spill] sm:$0xff] }
 0x2bd   : > { %9896 = vst [vmem:[#allocation71_spill] sm:$0xff] %v7570_v33  ;;  %v1950_v53 = vmul.f32 %v1922_v43, %v1809_v25  ;;  %v1948_v21 = vmul.f32 %v1920_v26, %v1807_v2  ;;  %v1949_v61 = vmul.f32 %v1921_v1, %v1808_v58  ;;  %v7618_v23 = vmul.f32 %v2213_v29, %v2017_v28  ;;  %v7628_v58 = vpop.permute.xlu2 %2424  ;;  %v1815_v46 = vld [vmem:[#allocation4 + $0x30] sm:$0xff]  ;;  %v9909_v26 = vld [vmem:[#allocation101_spill] sm:$0xff]  ;;  %v1816_v1 = vld [vmem:[#allocation4 + $0x38] sm:$0xff] }
 0x2be   : > { %2280 = vst [vmem:[#allocation12 + $0xa8] sm:$0xff] %v7567_v11  ;;  %v7620_v17 = vmul.f32 %v1763_v62, %v1679_v56  ;;  %v7622_v19 = vmul.f32 %v1764_v54, %v1680_v32  ;;  %v1979_v43 = vadd.f32 %v1951_v47, %v7407_v18  ;;  %v1872_v2 = vpop.permute.xlu1 %1871  ;;  %v9440_v18 = vrot.slane %v7611_v30, 7  ;;  %v1813_v56 = vld [vmem:[#allocation4 + $0x20] sm:$0xff]  ;;  %v4747_v47 = vld [vmem:[#allocation14 + $0xb0] sm:$0xff] }
 0x2bf   : > { %9902 = vst [vmem:[#allocation92_spill] sm:$0xff] %v7589_v42  ;;  %v1978_v45 = vadd.f32 %v1950_v53, %v7404_v48  ;;  %v1976_v25 = vadd.f32 %v1948_v21, %v7417_v40  ;;  %v1977_v49 = vadd.f32 %v1949_v61, %v7419_v50  ;;  %v1889_v62 = vsel %vm1877_vm7, %v9909_v26, %v1872_v2  ;;  %v1870_v54 = vpop.permute.xlu0 %1869  ;;  %v7650_v53 = vld [vmem:[#allocation15 + $0x20] sm:$0xff]  ;;  %v4748_v61 = vld [vmem:[#allocation14 + $0xb8] sm:$0xff]  ;;  %v2590_v38 = vld [vmem:[#allocation7 + $0x50] sm:$0xff] }
 0x2c0   : > { %9903 = vst [vmem:[#allocation70_spill] sm:$0xff] %v7592_v41  ;;  %v1903_v32 = vsel %vm1877_vm7, %v1872_v2, %v9909_v26  ;;  %v9441_v48 = vrot.slane %v7609_v4, 7  ;;  %v7642_v50 = vadd.f32 %v7415_v60, %v1979_v43  ;;  %v1929_v20 = vsub.f32 %v4748_v61, %v1889_v62  ;;  %v9914_v2 = vld [vmem:[#allocation113_spill] sm:$0xff]  ;;  %v1814_v62 = vld [vmem:[#allocation4 + $0xa0] sm:$0xff] }
 0x2c1   : > { %2281 = vst [vmem:[#allocation12] sm:$0xff] %v7570_v33  ;;  %v7639_v40 = vadd.f32 %v7401_v27, %v1978_v45  ;;  %v7645_v28 = vadd.f32 %v7432_v36, %v1976_v25  ;;  %v7648_v29 = vadd.f32 %v7434_v34, %v1977_v49  ;;  %v1928_v21 = vsub.f32 %v4747_v47, %v1903_v32  ;;  %v7658_v36 = vld [vmem:[#allocation15 + $0x28] sm:$0xff]  ;;  %v7660_v34 = vld [vmem:[#allocation15 + $0x30] sm:$0xff]  ;;  %v7662_v45 = vld [vmem:[#allocation15 + $0x38] sm:$0xff] }
 0x2c2   : > { %2278 = vst [vmem:[#allocation12 + $0x90] sm:$0xff] %v7589_v42  ;;  %v1888_v27 = vsel %vm1877_vm7, %v9914_v2, %v1870_v54  ;;  %v1902_v60 = vsel %vm1877_vm7, %v1870_v54, %v9914_v2  ;;  %v1957_v54 = vmul.f32 %v1929_v20, %v1816_v1  ;;  %v4749_v47 = vld [vmem:[#allocation14 + $0xa0] sm:$0xff]  ;;  %v4750_v2 = vld [vmem:[#allocation14 + $0xa8] sm:$0xff]  ;;  %v2646_v25 = vrot.slane %v7650_v53, 7  ;;  %2990 = vrot.lane.b32.xlu2 %v7517_v13, %s5099_s10 }
 0x2c3   : > { %2279 = vst [vmem:[#allocation12 + $0x50] sm:$0xff] %v7592_v41  ;;  %2976 = vrot.lane.b32.xlu1 %v7639_v40, %s5099_s10  ;;  %v1956_v32 = vmul.f32 %v1928_v21, %v1815_v46  ;;  %v1926_v61 = vsub.f32 %v4749_v47, %v1902_v60  ;;  %v1927_v15 = vsub.f32 %v4750_v2, %v1888_v27  ;;  %v2648_v43 = vrot.slane %v7658_v36, 7 }
 0x2c4   : > { %9908 = vst [vmem:[#allocation77_spill] sm:$0xff] %v7628_v58  ;;  %2974 = vrot.lane.b32.xlu0 %v7645_v28, %s5099_s10  ;;  %v9439_v26 = vrot.slane %v7660_v34, 7  ;;  %v9438_v49 = vrot.slane %v7662_v45, 7  ;;  %v1985_v1 = vadd.f32 %v1957_v54, %v7522_v10  ;;  %v2647_v47 = vsel %vm2639_vm8, %v9441_v48, %v2646_v25  ;;  %v2343_v58 = vld [vmem:[#allocation13 + $0x88] sm:$0xff] }
 0x2c5   : > { %9910 = vst [vmem:[#allocation106_spill] sm:$0xff] %v7639_v40  ;;  %v1984_v46 = vadd.f32 %v1956_v32, %v7487_v39  ;;  %v1954_v21 = vmul.f32 %v1926_v61, %v1813_v56  ;;  %v1955_v20 = vmul.f32 %v1927_v15, %v1814_v62  ;;  %v7686_v60 = vpop.permute.xlu2 %2430  ;;  %v2649_v2 = vsel %vm2639_vm8, %v9440_v18, %v2648_v43  ;;  %v1819_v61 = vld [vmem:[#allocation4 + $0xb0] sm:$0x3] }
 0x2c6   : > { %9911 = vst [vmem:[#allocation67_spill] sm:$0xff] %v7642_v50  ;;  %v7684_v27 = vpop.permute.xlu1 %2410  ;;  %v2651_v39 = vsel %vm2639_vm8, %v2646_v25, %v9439_v26  ;;  %v2653_v10 = vsel %vm2639_vm8, %v2648_v43, %v9438_v49  ;;  %v7704_v56 = vadd.f32 %v7482_v24, %v1985_v1  ;;  %v9923_v49 = vld [vmem:[#allocation111_spill] sm:$0xff] }
 0x2c7   : > { %9912 = vst [vmem:[#allocation72_spill] sm:$0xff] %v7645_v28  ;;  %v7701_v15 = vadd.f32 %v7474_v22, %v1984_v46  ;;  %v1982_v62 = vadd.f32 %v1954_v21, %v7562_v14  ;;  %v1983_v32 = vadd.f32 %v1955_v20, %v7564_v51  ;;  %v1876_v54 = vpop.permute.xlu0 %1875  ;;  %v2726_v22 = vsub.f32 %v7650_v53, %v2647_v47  ;;  %v1820_v21 = vld [vmem:[#allocation4 + $0x98] sm:$0x3]  ;;  %v2330_v20 = vld [vmem:[#allocation13 + $0x20] sm:$0xff] }
 0x2c8   : > { %9913 = vst [vmem:[#allocation87_spill] sm:$0xff] %v7648_v29  ;;  %v1891_v25 = vsel %vm1877_vm7, %v9918_v57, %v1876_v54  ;;  %v1905_v43 = vsel %vm1877_vm7, %v1876_v54, %v9918_v57  ;;  %v2727_v46 = vsub.f32 %v7658_v36, %v2649_v2  ;;  %v4751_v57 = vld [vmem:[#allocation14 + $0xd0] sm:$0x3]  ;;  %v4752_v47 = vld [vmem:[#allocation14 + $0xd8] sm:$0x3]  ;;  %v2331_v2 = vld [vmem:[#allocation13 + $0x28] sm:$0xff]  ;;  %v2728_v54 = vsub.f32 %v7660_v34, %v2651_v39 }
 0x2c9   : > { %2286 = vst [vmem:[#allocation12 + $0x98] sm:$0xff] %v7639_v40  ;;  %v7720_v51 = vadd.f32 %v7560_v3, %v1982_v62  ;;  %v7723_v1 = vadd.f32 %v7606_v6, %v1983_v32  ;;  %v1932_v53 = vsub.f32 %v4751_v57, %v1905_v43  ;;  %v1933_v36 = vsub.f32 %v4752_v47, %v1891_v25  ;;  %v7731_v3 = vld [vmem:[#allocation15 + $0x40] sm:$0xff]  ;;  %v7733_v6 = vld [vmem:[#allocation15 + $0x48] sm:$0xff]  ;;  %v2308_v57 = vld [vmem:[#allocation15 + $0x50] sm:$0xff] }
 0x2ca   : > { %2287 = vst [vmem:[#allocation12 + $0x28] sm:$0xff] %v7642_v50  ;;  %v7729_v14 = vrot.slane %v2726_v22, 1  ;;  %v2729_v25 = vsub.f32 %v7662_v45, %v2653_v10  ;;  %v7739_v43 = vrot.slane %v2727_v46, 1  ;;  %v2583_v47 = vld [vmem:[#allocation7 + $0x88] sm:$0xff]  ;;  %v7745_v24 = vrot.slane %v2728_v54, 1  ;;  %v9921_v62 = vld [vmem:[#allocation110_spill] sm:$0xff]  ;;  %2996 = vrot.lane.b32.xlu2 %v7592_v41, %s5099_s10 }
 0x2cb   : > { %2284 = vst [vmem:[#allocation12 + $0xd8] sm:$0xff] %v7645_v28  ;;  %2982 = vrot.lane.b32.xlu1 %v7701_v15, %s5099_s10  ;;  %v1960_v39 = vmul.f32 %v1932_v53, %v1819_v61  ;;  %v1961_v22 = vmul.f32 %v1933_v36, %v1820_v21  ;;  %v7748_v5 = vmul.f32 %v2330_v20, %v9921_v62  ;;  %v2309_v32 = vld [vmem:[#allocation15 + $0x58] sm:$0xff]  ;;  %v7750_v10 = vld [vmem:[#allocation15 + $0x60] sm:$0xff]  ;;  %v2584_v46 = vld [vmem:[#allocation7 + $0x10] sm:$0xff]  ;;  %v9929_v7 = vrot.slane %v7731_v3, 7 }
 0x2cc   : > { %2285 = vst [vmem:[#allocation12 + $0xc8] sm:$0xff] %v7648_v29  ;;  %2980 = vrot.lane.b32.xlu0 %v7720_v51, %s5099_s10  ;;  %v7752_v37 = vrot.slane %v2729_v25, 1  ;;  %v7755_v61 = vmul.f32 %v2331_v2, %v9923_v49  ;;  %v2789_v49 = vsel %vm2103_vm6, %v7729_v14, %v7745_v24  ;;  %v7770_v2 = vld [vmem:[#allocation15 + $0x68] sm:$0xff]  ;;  %v2658_v25 = vrot.slane %v2308_v57, 7  ;;  %v2336_v21 = vld [vmem:[#allocation13 + $0x50] sm:$0xff] }
 0x2cd   : > { %9915 = vst [vmem:[#allocation100_spill] sm:$0xff] %v7686_v60  ;;  %v1988_v36 = vadd.f32 %v1960_v39, %v7620_v17  ;;  %v1989_v54 = vadd.f32 %v1961_v22, %v7622_v19  ;;  %v7765_v62 = vpop.permute.xlu2 %2436  ;;  %v7775_v19 = vmul.f32 %v2789_v49, %v2583_v47  ;;  %v2660_v39 = vrot.slane %v2309_v32, 7  ;;  %v9936_v40 = vld [vmem:[#allocation74_spill] sm:$0xff] }
 0x2ce   : > { %9916 = vst [vmem:[#allocation85_spill] sm:$0xff] %v7701_v15  ;;  %v7763_v20 = vpop.permute.xlu1 %2416  ;;  %v2791_v17 = vsel %vm2103_vm6, %v7739_v43, %v7752_v37  ;;  %v9452_v22 = vrot.slane %v7750_v10, 7  ;;  %v9930_v47 = vrot.slane %v7733_v6, 7 }
 0x2cf   : > { %9917 = vst [vmem:[#allocation66_spill] sm:$0xff] %v7704_v56  ;;  %v2415_v26 = vpop.permute.xlu0 %2414  ;;  %v7779_v18 = vadd.f32 %v7616_v63, %v1988_v36  ;;  %v7782_v48 = vadd.f32 %v7618_v23, %v1989_v54  ;;  %v7784_v53 = vmul.f32 %v2791_v17, %v2584_v46  ;;  %v7796_v54 = vld [vmem:[#allocation15 + $0x70] sm:$0xff]  ;;  %v7798_v46 = vld [vmem:[#allocation15 + $0x78] sm:$0xff]  ;;  %v2314_v17 = vld [vmem:[#allocation15 + $0x80] sm:$0xff] }
 0x2d0   : > { %2292 = vst [vmem:[#allocation12 + $0xc0] sm:$0xff] %v7701_v15  ;;  %v2337_v15 = vld [vmem:[#allocation13 + $0x58] sm:$0xff]  ;;  %v2661_v49 = vsel %vm2639_vm8, %v9930_v47, %v2660_v39  ;;  %v2663_v63 = vsel %vm2639_vm8, %v2658_v25, %v9452_v22  ;;  %v9933_v47 = vld [vmem:[#allocation109_spill] sm:$0xff]  ;;  %v7806_v36 = vld [vmem:[#allocation15 + $0x90] sm:$0xff]  ;;  %v9942_v60 = vrot.slane %v7796_v54, 7 }
 0x2d1   : > { %9919 = vst [vmem:[#allocation73_spill] sm:$0xff] %v7720_v51  ;;  %v2733_v55 = vsub.f32 %v2309_v32, %v2661_v49  ;;  %v2315_v22 = vld [vmem:[#allocation15 + $0x88] sm:$0xff]  ;;  %v7818_v16 = vmul.f32 %v2337_v15, %v9936_v40  ;;  %v7820_v32 = vld [vmem:[#allocation15 + $0x98] sm:$0xff]  ;;  %v2342_v49 = vld [vmem:[#allocation13 + $0x80] sm:$0xff] }
 0x2d2   : > { %9920 = vst [vmem:[#allocation82_spill] sm:$0xff] %v7723_v1  ;;  %v2672_v40 = vrot.slane %v2315_v22, 7  ;;  %3002 = vrot.lane.b32.xlu2 %v7648_v29, %s5099_s10  ;;  %v2387_v15 = vld [vmem:[#allocation6 + $0x60] sm:$0xff] }
 0x2d3   : > { %2293 = vst [vmem:[#allocation12 + $0x8] sm:$0xff] %v7704_v56  ;;  %2988 = vrot.lane.b32.xlu1 %v9933_v47, %s5099_s10  ;;  %v7825_v41 = vrot.slane %v2733_v55, 1 }
 0x2d4   : > { %2290 = vst [vmem:[#allocation12 + $0x38] sm:$0xff] %v7720_v51  ;;  %v2659_v51 = vsel %vm2639_vm8, %v9929_v7, %v2658_v25  ;;  %v2734_v25 = vsub.f32 %v7750_v10, %v2663_v63  ;;  %v9935_v7 = vld [vmem:[#allocation68_spill] sm:$0xff]  ;;  %2986 = vrot.lane.b32.xlu0 %v7779_v18, %s5099_s10 }
 0x2d5   : > { %2291 = vst [vmem:[#allocation12 + $0xa0] sm:$0xff] %v7723_v1  ;;  %v2732_v23 = vsub.f32 %v2308_v57, %v2659_v51  ;;  %v9934_v51 = vrot.slane %v7770_v2, 7  ;;  %v7815_v11 = vmul.f32 %v2336_v21, %v9935_v7  ;;  %v2589_v63 = vld [vmem:[#allocation7] sm:$0xff]  ;;  %v2670_v7 = vrot.slane %v2314_v17, 7  ;;  %v2443_v42 = vpop.permute.xlu2 %2442  ;;  %v9941_v21 = vld [vmem:[#allocation81_spill] sm:$0xff] }
 0x2d6   : > { %9922 = vst [vmem:[#allocation75_spill] sm:$0xff] %v7750_v10  ;;  %v2469_v29 = vsel %vm2466_vm9, %v2415_v26, %v2443_v42  ;;  %v2483_v13 = vsel %vm2466_vm9, %v2443_v42, %v2415_v26  ;;  %v7860_v26 = vld [vmem:[#allocation15] sm:$0xff] }
 0x2d7   : > { %9924 = vst [vmem:[#allocation83_spill] sm:$0xff] %v7763_v20  ;;  %v2665_v57 = vsel %vm2639_vm8, %v2660_v39, %v9934_v51  ;;  %v7812_v28 = vrot.slane %v2732_v23, 1  ;;  %v7827_v39 = vrot.slane %v2734_v25, 1  ;;  %v7834_v51 = vpop.permute.xlu1 %2422  ;;  %v7843_v23 = vmul.f32 %v2342_v49, %v9941_v21  ;;  %v9946_v10 = vld [vmem:[#allocation112_spill] sm:$0xff] }
 0x2d8   : > { %9925 = vst [vmem:[#allocation103_spill] sm:$0xff] %v7765_v62  ;;  %v2735_v47 = vsub.f32 %v7770_v2, %v2665_v57 }
 0x2d9   : > { %9926 = vst [vmem:[#allocation79_spill] sm:$0xff] %v7770_v2  ;;  %v2801_v55 = vsel %vm2103_vm6, %v7812_v28, %v7827_v39  ;;  %v9943_v2 = vrot.slane %v7798_v46, 7 }
 0x2da   : > { %9927 = vst [vmem:[#allocation94_spill] sm:$0xff] %v7779_v18  ;;  %v7839_v25 = vrot.slane %v2735_v47, 1  ;;  %v7849_v62 = vmul.f32 %v2801_v55, %v2589_v63  ;;  %v2671_v47 = vsel %vm2639_vm8, %v9942_v60, %v2670_v7  ;;  %v9944_v55 = vrot.slane %v7806_v36, 7  ;;  %3008 = vrot.lane.b32.xlu2 %v7723_v1, %s5099_s10 }
 0x2db   : > { %9928 = vst [vmem:[#allocation93_spill] sm:$0xff] %v7782_v48  ;;  %v2673_v42 = vsel %vm2639_vm8, %v9943_v2, %v2672_v40  ;;  %2994 = vrot.lane.b32.xlu1 %v9946_v10, %s5099_s10  ;;  %v9955_v10 = vrot.slane %v7611_v30, 7 }
 0x2dc   : > { %9931 = vst [vmem:[#allocation108_spill] sm:$0xff] %v7796_v54  ;;  %v2803_v21 = vsel %vm2103_vm6, %v7825_v41, %v7839_v25  ;;  %v2675_v60 = vsel %vm2639_vm8, %v2670_v7, %v9944_v55  ;;  %v7873_v54 = vld [vmem:[#allocation15 + $0x8] sm:$0xff]  ;;  %v9947_v7 = vld [vmem:[#allocation96_spill] sm:$0xff]  ;;  %2992 = vrot.lane.b32.xlu0 %v7493_v52, %s5099_s10  ;;  %v7931_v52 = vld [vmem:[#allocation15 + $0xb8] sm:$0xff] }
 0x2dd   : > { %9932 = vst [vmem:[#allocation97_spill] sm:$0xff] %v7798_v46  ;;  %v7862_v63 = vmul.f32 %v2803_v21, %v2590_v38  ;;  %v2739_v46 = vsub.f32 %v2315_v22, %v2673_v42  ;;  %v2740_v2 = vsub.f32 %v7806_v36, %v2675_v60  ;;  %v2328_v38 = vld [vmem:[#allocation13 + $0x10] sm:$0xff]  ;;  %v7879_v55 = vmul.f32 %v2343_v58, %v9947_v7  ;;  %v2595_v22 = vld [vmem:[#allocation7 + $0x78] sm:$0xff] }
 0x2de   : > { %2296 = vst [vmem:[#allocation12 + $0x20] sm:$0x3] %v7779_v18  ;;  %v2421_v18 = vpop.permute.xlu0 %2420  ;;  %v9950_v58 = vrot.slane %v7609_v4, 7  ;;  %v9951_v42 = vld [vmem:[#allocation78_spill] sm:$0xff] }
 0x2df   : > { %2297 = vst [vmem:[#allocation12 + $0x88] sm:$0x3] %v7782_v48  ;;  %v7909_v60 = vpop.permute.xlu1 %2428 }
 0x2e0   : > { %9937 = vst [vmem:[#allocation107_spill] sm:$0xff] %v7820_v32 }
 0x2e1   : > { %9938 = vst [vmem:[#allocation95_spill] sm:$0xff] %v7827_v39  ;;  %v4754_v39 = vld [vmem:[#allocation16 + $0x38] sm:$0xff] }
 0x2e2   : > { %9939 = vst [vmem:[#allocation105_spill] sm:$0xff] %v7834_v51  ;;  %v4753_v51 = vld [vmem:[#allocation16 + $0x68] sm:$0xff]  ;;  %v2500_v49 = vsub.f32 %v2483_v13, %v4754_v39  ;;  %v2738_v39 = vsub.f32 %v2314_v17, %v2671_v47  ;;  %v9486_v17 = vrot.slane %v7860_v26, 7  ;;  %3014 = vrot.lane.b32.xlu2 %v7782_v48, %s5099_s10  ;;  %v4758_v48 = vld [vmem:[#allocation16 + $0x58] sm:$0xff] }
 0x2e3   : > { %9940 = vst [vmem:[#allocation101_spill] sm:$0xff] %v7839_v25  ;;  %v2499_v57 = vsub.f32 %v2469_v29, %v4753_v51  ;;  %v9945_v29 = vrot.slane %v7820_v32, 7 }
 0x2e4   : > { %v2528_v25 = vmul.f32 %v2500_v49, %v2387_v15  ;;  %v7876_v20 = vrot.slane %v2738_v39, 1  ;;  %v7886_v15 = vrot.slane %v2739_v46, 1  ;;  %9954 = vst [vmem:[#allocation109_spill] sm:$0xff] %v7909_v60  ;;  %v4756_v49 = vld [vmem:[#allocation16 + $0x28] sm:$0xff]  ;;  %2998 = vrot.lane.b32.xlu0 %v7570_v33, %s5099_s10 }
 0x2e5   : > { %v2677_v13 = vsel %vm2639_vm8, %v2672_v40, %v9945_v29  ;;  %v2527_v51 = vmul.f32 %v2499_v57, %v2386_v44  ;;  %v7888_v57 = vrot.slane %v2740_v2, 1  ;;  %v2449_v29 = vpop.permute.xlu2 %2448 }
 0x2e6   : > { %v2741_v21 = vsub.f32 %v7820_v32, %v2677_v13  ;;  %v2556_v40 = vadd.f32 %v2528_v25, %v7755_v61  ;;  %v7899_v61 = vmul.f32 %v2328_v38, %v9951_v42  ;;  %v2596_v13 = vld [vmem:[#allocation7 + $0x58] sm:$0xff]  ;;  %v2392_v38 = vld [vmem:[#allocation6 + $0x68] sm:$0xff]  ;;  %v2427_v7 = vpop.permute.xlu0 %2426 }
 0x2e7   : > { %v2555_v44 = vadd.f32 %v2527_v51, %v7748_v5  ;;  %9948 = vst [vmem:[#allocation113_spill] sm:$0xff] %v7888_v57  ;;  %v2643_v5 = vsel %vm2639_vm8, %v9486_v17, %v9950_v58  ;;  %v2813_v39 = vsel %vm2103_vm6, %v7876_v20, %v7888_v57  ;;  %v2329_v51 = vld [vmem:[#allocation13 + $0x18] sm:$0xff]  ;;  %v7924_v58 = vld [vmem:[#allocation15 + $0xa0] sm:$0xff] }
 0x2e8   : > { %v7890_v47 = vrot.slane %v2741_v21, 1  ;;  %v7905_v46 = vadd.f32 %v7784_v53, %v2556_v40  ;;  %v2724_v2 = vsub.f32 %v7609_v4, %v2643_v5  ;;  %v2472_v53 = vsel %vm2466_vm9, %v2421_v18, %v2449_v29  ;;  %v4755_v42 = vld [vmem:[#allocation16 + $0x78] sm:$0xff] }
 0x2e9   : > { %v7902_v25 = vadd.f32 %v7775_v19, %v2555_v44  ;;  %v2393_v19 = vld [vmem:[#allocation6 + $0x40] sm:$0xff]  ;;  %v2486_v21 = vsel %vm2466_vm9, %v2449_v29, %v2421_v18  ;;  %v7922_v40 = vmul.f32 %v2813_v39, %v2595_v22  ;;  %v2505_v17 = vsub.f32 %v2472_v53, %v4755_v42  ;;  %v7929_v18 = vld [vmem:[#allocation15 + $0xa8] sm:$0xff]  ;;  %v2320_v29 = vld [vmem:[#allocation15 + $0xb0] sm:$0xff] }
 0x2ea   : > { %9949 = vst [vmem:[#allocation88_spill] sm:$0xff] %v7890_v47  ;;  %v2815_v44 = vsel %vm2103_vm6, %v7886_v15, %v7890_v47  ;;  %v2506_v1 = vsub.f32 %v2486_v21, %v4756_v49  ;;  %v2581_v39 = vld [vmem:[#allocation7 + $0xa8] sm:$0xff]  ;;  %v9956_v4 = vrot.slane %v7873_v54, 7  ;;  %v7941_v60 = vrot.slane %v2724_v2, 1  ;;  %v9957_v53 = vld [vmem:[#allocation91_spill] sm:$0xff]  ;;  %v9958_v47 = vld [vmem:[#allocation86_spill] sm:$0xff] }
 0x2eb   : > { %9952 = vst [vmem:[#allocation110_spill] sm:$0xff] %v7902_v25  ;;  %v7934_v22 = vmul.f32 %v2815_v44, %v2596_v13  ;;  %v7944_v49 = vmul.f32 %v2329_v51, %v9957_v53  ;;  %v2533_v21 = vmul.f32 %v2505_v17, %v2392_v38  ;;  %3000 = vrot.lane.b32.xlu1 %v9958_v47, %s5099_s10  ;;  %v7949_v44 = vld [vmem:[#allocation15 + $0xc0] sm:$0xff]  ;;  %v9497_v57 = vrot.slane %v7924_v58, 7 }
 0x2ec   : > { %9953 = vst [vmem:[#allocation111_spill] sm:$0xff] %v7905_v46  ;;  %v2645_v5 = vsel %vm2639_vm8, %v9956_v4, %v9955_v10  ;;  %v2534_v42 = vmul.f32 %v2506_v1, %v2393_v19  ;;  %v2785_v10 = vsel %vm2103_vm6, %v7941_v60, %v7729_v14  ;;  %v9496_v51 = vrot.slane %v7929_v18, 7  ;;  %3004 = vrot.lane.b32.xlu0 %v7642_v50, %s5099_s10 }
 0x2ed   : > { %2920 = vst [vmem:[#allocation13 + $0x20] sm:$0xff] %v7902_v25  ;;  %v2725_v13 = vsub.f32 %v7611_v30, %v2645_v5  ;;  %v2682_v2 = vrot.slane %v2320_v29, 7  ;;  %v2684_v1 = vrot.slane %v7931_v52, 7  ;;  %v2561_v17 = vadd.f32 %v2533_v21, %v7815_v11  ;;  %v2582_v30 = vld [vmem:[#allocation7 + $0x70] sm:$0xff]  ;;  %3979 = vrot.lane.b32.xlu2 %v7902_v25, %s5098_s9  ;;  %v2580_v25 = vld [vmem:[#allocation7 + $0x98] sm:$0xff] }
 0x2ee   : > { %2921 = vst [vmem:[#allocation13 + $0x28] sm:$0xff] %v7905_v46  ;;  %v7951_v46 = vld [vmem:[#allocation15 + $0xc8] sm:$0xff]  ;;  %v2562_v38 = vadd.f32 %v2534_v42, %v7818_v16  ;;  %v7965_v4 = vmul.f32 %v2785_v10, %v2581_v39  ;;  %v9503_v11 = vrot.slane %v7949_v44, 7  ;;  %v7983_v39 = vpop.permute.xlu1 %2434  ;;  %v2455_v42 = vpop.permute.xlu2 %2454  ;;  %v2348_v16 = vld [vmem:[#allocation13 + $0xb0] sm:$0xff] }
 0x2ef   : > { %v7963_v19 = vrot.slane %v2725_v13, 1  ;;  %v2683_v14 = vsel %vm2639_vm8, %v9497_v57, %v2682_v2  ;;  %v2685_v5 = vsel %vm2639_vm8, %v9496_v51, %v2684_v1  ;;  %v7976_v53 = vadd.f32 %v7849_v62, %v2561_v17  ;;  %9961 = vst [vmem:[#allocation81_spill] sm:$0xff] %v7983_v39  ;;  %v2398_v51 = vld [vmem:[#allocation6 + $0x88] sm:$0xff]  ;;  %v2399_v57 = vld [vmem:[#allocation6 + $0xa0] sm:$0xff]  ;;  %v7992_v17 = vpop.permute.xlu0 %2432 }
 0x2f0   : > { %v7979_v21 = vadd.f32 %v7862_v63, %v2562_v38  ;;  %v2744_v10 = vsub.f32 %v2320_v29, %v2683_v14  ;;  %v2475_v62 = vsel %vm2466_vm9, %v2427_v7, %v2455_v42  ;;  %v2489_v63 = vsel %vm2466_vm9, %v2455_v42, %v2427_v7  ;;  %v4757_v14 = vld [vmem:[#allocation16 + $0xa0] sm:$0xff]  ;;  %v2349_v7 = vld [vmem:[#allocation13 + $0xb8] sm:$0xff] }
 0x2f1   : > { %9959 = vst [vmem:[#allocation68_spill] sm:$0xff] %v7976_v53  ;;  %v2787_v13 = vsel %vm2103_vm6, %v7963_v19, %v7739_v43  ;;  %v2687_v33 = vsel %vm2639_vm8, %v2682_v2, %v9503_v11  ;;  %v2511_v47 = vsub.f32 %v2475_v62, %v4757_v14  ;;  %v2512_v39 = vsub.f32 %v2489_v63, %v4758_v48  ;;  %v2326_v63 = vld [vmem:[#allocation13] sm:$0xff]  ;;  %v2327_v14 = vld [vmem:[#allocation13 + $0x8] sm:$0xff] }
 0x2f2   : > { %9960 = vst [vmem:[#allocation74_spill] sm:$0xff] %v7979_v21  ;;  %v7994_v38 = vmul.f32 %v2787_v13, %v2582_v30  ;;  %v9962_v30 = vrot.slane %v7951_v46, 7  ;;  %v2745_v13 = vsub.f32 %v7931_v52, %v2685_v5  ;;  %v2746_v2 = vsub.f32 %v7949_v44, %v2687_v33  ;;  %v2601_v29 = vld [vmem:[#allocation7 + $0x40] sm:$0xff] }
 0x2f3   : > { %2926 = vst [vmem:[#allocation13 + $0x50] sm:$0xff] %v7976_v53  ;;  %v8008_v11 = vrot.slane %v2744_v10, 1  ;;  %v2539_v43 = vmul.f32 %v2511_v47, %v2398_v51  ;;  %v2540_v32 = vmul.f32 %v2512_v39, %v2399_v57  ;;  %3006 = vrot.lane.b32.xlu1 %v7430_v59, %s5099_s10  ;;  %v8014_v62 = vmul.f32 %v2348_v16, %v7468_v0  ;;  %v2602_v0 = vld [vmem:[#allocation7 + $0xa0] sm:$0xff]  ;;  %v2404_v59 = vld [vmem:[#allocation6 + $0x78] sm:$0xff] }
 0x2f4   : > { %2927 = vst [vmem:[#allocation13 + $0x58] sm:$0xff] %v7979_v21  ;;  %v2689_v42 = vsel %vm2639_vm8, %v2684_v1, %v9962_v30  ;;  %v8016_v1 = vrot.slane %v2745_v13, 1  ;;  %v8018_v52 = vrot.slane %v2746_v2, 1  ;;  %v8021_v33 = vmul.f32 %v2349_v7, %v7484_v9  ;;  %v4759_v30 = vld [vmem:[#allocation26] sm:$0xff]  ;;  %3010 = vrot.lane.b32.xlu0 %v7704_v56, %s5099_s10 }
 0x2f5   : > { %v2747_v48 = vsub.f32 %v7951_v46, %v2689_v42  ;;  %v9964_v57 = vrot.slane %v7860_v26, 7  ;;  %v2567_v51 = vadd.f32 %v2539_v43, %v7843_v23  ;;  %v2568_v5 = vadd.f32 %v2540_v32, %v7879_v55  ;;  %v4760_v23 = vld [vmem:[#allocation26 + $0x8] sm:$0xff]  ;;  %3985 = vrot.lane.b32.xlu2 %v7976_v53, %s5098_s9 }
 0x2f6   : > { %9963 = vst [vmem:[#allocation96_spill] sm:$0xff] %v8018_v52  ;;  %v9966_v39 = vrot.slane %v7873_v54, 7  ;;  %v2825_v9 = vsel %vm2103_vm6, %v8008_v11, %v8018_v52  ;;  %v8038_v42 = vmul.f32 %v4759_v30, %v2326_v63  ;;  %v8040_v32 = vmul.f32 %v4760_v23, %v2327_v14  ;;  %v2441_v13 = vpop.permute.xlu1 %2440  ;;  %v2461_v63 = vpop.permute.xlu2 %2460  ;;  %v4762_v23 = vld [vmem:[#allocation16 + $0x50] sm:$0xff] }
 0x2f7   : > { %v2722_v47 = vsub.f32 %v7860_v26, %v9964_v57  ;;  %v8030_v16 = vrot.slane %v2747_v48, 1  ;;  %v8043_v55 = vadd.f32 %v7922_v40, %v2567_v51  ;;  %v8046_v43 = vadd.f32 %v7934_v22, %v2568_v5  ;;  %v2384_v57 = vld [vmem:[#allocation6] sm:$0xff]  ;;  %v2579_v5 = vld [vmem:[#allocation7 + $0x38] sm:$0xff]  ;;  %v2439_v21 = vpop.permute.xlu0 %2438 }
 0x2f8   : > { %v2723_v10 = vsub.f32 %v7873_v54, %v9966_v39  ;;  %v2882_v48 = vmul.f32 %v2825_v9, %v2601_v29  ;;  %v2468_v40 = vsel %vm2466_vm9, %v7497_v31, %v2441_v13  ;;  %v2482_v22 = vsel %vm2466_vm9, %v2441_v13, %v7497_v31  ;;  %v4761_v9 = vld [vmem:[#allocation16 + $0x80] sm:$0xff]  ;;  %v2405_v31 = vld [vmem:[#allocation6 + $0xd8] sm:$0xff] }
 0x2f9   : > { %9965 = vst [vmem:[#allocation78_spill] sm:$0xff] %v8030_v16  ;;  %v2778_v7 = vrot.slane %v2722_v47, 1  ;;  %v2827_v2 = vsel %vm2103_vm6, %v8016_v1, %v8030_v16  ;;  %v2385_v47 = vld [vmem:[#allocation6 + $0xc8] sm:$0xff]  ;;  %v2478_v51 = vsel %vm2466_vm9, %v7992_v17, %v2461_v63  ;;  %v2497_v30 = vsub.f32 %v2468_v40, %v4761_v9  ;;  %v4763_v13 = vld [vmem:[#allocation16 + $0xb8] sm:$0xff] }
 0x2fa   : > { %9967 = vst [vmem:[#allocation91_spill] sm:$0xff] %v8043_v55  ;;  %v2883_v14 = vmul.f32 %v2827_v2, %v2602_v0  ;;  %v2498_v50 = vsub.f32 %v2482_v22, %v4762_v23  ;;  %v2492_v0 = vsel %vm2466_vm9, %v2461_v63, %v7992_v17  ;;  %v2517_v2 = vsub.f32 %v2478_v51, %v4763_v13  ;;  %v4764_v9 = vld [vmem:[#allocation16 + $0x18] sm:$0xff]  ;;  %v2382_v63 = vld [vmem:[#allocation6 + $0xc0] sm:$0xff] }
 0x2fb   : > { %9968 = vst [vmem:[#allocation114_spill] sm:$0xff] %v8046_v43  ;;  %v2780_v29 = vsel %vm2103_vm6, %v2778_v7, %v7941_v60  ;;  %v2781_v39 = vrot.slane %v2723_v10, 1  ;;  %v2525_v16 = vmul.f32 %v2497_v30, %v2384_v57  ;;  %v2518_v22 = vsub.f32 %v2492_v0, %v4764_v9  ;;  %3012 = vrot.lane.b32.xlu1 %v7503_v12, %s5099_s10  ;;  %v2383_v57 = vld [vmem:[#allocation6 + $0x38] sm:$0xff] }
 0x2fc   : > { %2932 = vst [vmem:[#allocation13 + $0x80] sm:$0xff] %v8043_v55  ;;  %v2526_v40 = vmul.f32 %v2498_v50, %v2385_v47  ;;  %v2860_v23 = vmul.f32 %v2780_v29, %v2579_v5  ;;  %v2467_v17 = vsel %vm2466_vm9, %v7684_v27, %v2439_v21  ;;  %v2481_v60 = vsel %vm2466_vm9, %v2439_v21, %v7684_v27  ;;  %v4766_v5 = vld [vmem:[#allocation16 + $0x10] sm:$0xff] }
 0x2fd   : > { %2933 = vst [vmem:[#allocation13 + $0x88] sm:$0xff] %v8046_v43  ;;  %v2545_v43 = vmul.f32 %v2517_v2, %v2404_v59  ;;  %v2783_v52 = vsel %vm2103_vm6, %v2781_v39, %v7963_v19  ;;  %v2553_v50 = vadd.f32 %v2525_v16, %v7899_v61  ;;  %v2546_v7 = vmul.f32 %v2518_v22, %v2405_v31  ;;  %v4765_v19 = vld [vmem:[#allocation16 + $0x98] sm:$0xff]  ;;  %v2334_v31 = vld [vmem:[#allocation13 + $0x40] sm:$0xff] }
 0x2fe   : > { %v2554_v10 = vadd.f32 %v2526_v40, %v7944_v49  ;;  %v2861_v47 = vmul.f32 %v2783_v52, %v2580_v25  ;;  %v2495_v51 = vsub.f32 %v2467_v17, %v4765_v19  ;;  %v2496_v29 = vsub.f32 %v2481_v60, %v4766_v5  ;;  %v2332_v5 = vld [vmem:[#allocation13 + $0x30] sm:$0xff]  ;;  %3991 = vrot.lane.b32.xlu2 %v8043_v55, %s5098_s9 }
 0x2ff   : > { %v2573_v59 = vadd.f32 %v2545_v43, %v8014_v62  ;;  %v9969_v39 = vrot.slane %v7731_v3, 7  ;;  %v9970_v27 = vrot.slane %v7660_v34, 7  ;;  %v8092_v49 = vadd.f32 %v7965_v4, %v2553_v50  ;;  %v8105_v34 = vpop.permute.xlu2 %2960  ;;  %v2588_v50 = vld [vmem:[#allocation7 + $0x60] sm:$0xff]  ;;  %v4782_v60 = vld [vmem:[#allocation16 + $0xd0] sm:$0xff] }
 0x300   : > { %v8095_v25 = vadd.f32 %v7994_v38, %v2554_v10  ;;  %v2574_v21 = vadd.f32 %v2546_v7, %v8021_v33  ;;  %v9971_v62 = vrot.slane %v7733_v6, 7  ;;  %v9972_v52 = vrot.slane %v7662_v45, 7  ;;  %v2335_v38 = vld [vmem:[#allocation13 + $0x48] sm:$0xff]  ;;  %v2447_v33 = vpop.permute.xlu1 %2446 }
 0x301   : > { %v2655_v61 = vsel %vm2639_vm8, %v9970_v27, %v9969_v39  ;;  %v8107_v43 = vadd.f32 %v2882_v48, %v2573_v59  ;;  %v2523_v4 = vmul.f32 %v2495_v51, %v2382_v63  ;;  %v2524_v30 = vmul.f32 %v2496_v29, %v2383_v57  ;;  %2918 = vst [vmem:[#allocation13 + $0x10] sm:$0xff] %v8092_v49  ;;  %v4768_v63 = vld [vmem:[#allocation26 + $0x48] sm:$0xff]  ;;  %v2390_v57 = vld [vmem:[#allocation6 + $0x50] sm:$0xff] }
 0x302   : > { %v2657_v16 = vsel %vm2639_vm8, %v9972_v52, %v9971_v62  ;;  %v2730_v0 = vsub.f32 %v7731_v3, %v2655_v61  ;;  %v3132_v13 = vrot.slane %v8092_v49, 6  ;;  %v3133_v2 = vrot.slane %v8095_v25, 6  ;;  %2919 = vst [vmem:[#allocation13 + $0x18] sm:$0xff] %v8095_v25  ;;  %v2587_v3 = vld [vmem:[#allocation7 + $0x18] sm:$0xff]  ;;  %v2391_v59 = vld [vmem:[#allocation6 + $0x70] sm:$0xff] }
 0x303   : > { %9973 = vst [vmem:[#allocation115_spill] sm:$0xff] %v8107_v43  ;;  %v8113_v45 = vadd.f32 %v2883_v14, %v2574_v21  ;;  %v2731_v40 = vsub.f32 %v7733_v6, %v2657_v16  ;;  %v2551_v9 = vadd.f32 %v2523_v4, %v8038_v42  ;;  %v2552_v22 = vadd.f32 %v2524_v30, %v8040_v32  ;;  %v4767_v14 = vld [vmem:[#allocation26 + $0x40] sm:$0xff]  ;;  %v2333_v61 = vld [vmem:[#allocation13 + $0x38] sm:$0xff]  ;;  %v2585_v21 = vld [vmem:[#allocation7 + $0x28] sm:$0xff] }
 0x304   : > { %v2792_v17 = vrot.slane %v2730_v0, 1  ;;  %2938 = vst [vmem:[#allocation13 + $0xb0] sm:$0xff] %v8107_v43  ;;  %v2362_v7 = vmul.f32 %v4767_v14, %v2334_v31  ;;  %v2363_v6 = vmul.f32 %v4768_v63, %v2335_v38  ;;  %3977 = vrot.lane.b32.xlu1 %v8092_v49, %s5098_s9  ;;  %v2471_v51 = vsel %vm2466_vm9, %v7557_v35, %v2447_v33  ;;  %v2586_v62 = vld [vmem:[#allocation7 + $0xb8] sm:$0xff]  ;;  %v4770_v4 = vld [vmem:[#allocation16 + $0x30] sm:$0xff] }
 0x305   : > { %9974 = vst [vmem:[#allocation116_spill] sm:$0xff] %v8113_v45  ;;  %v2794_v10 = vrot.slane %v2731_v40, 1  ;;  %v8125_v42 = vadd.f32 %v2860_v23, %v2551_v9  ;;  %v8127_v32 = vadd.f32 %v2861_v47, %v2552_v22  ;;  %v2485_v23 = vsel %vm2466_vm9, %v2447_v33, %v7557_v35  ;;  %v4769_v47 = vld [vmem:[#allocation16 + $0xc0] sm:$0xff]  ;;  %v4771_v0 = vld [vmem:[#allocation26 + $0x30] sm:$0xff] }
 0x306   : > { %2939 = vst [vmem:[#allocation13 + $0xb8] sm:$0xff] %v8113_v45  ;;  %v2797_v19 = vsel %vm2103_vm6, %v2792_v17, %v7812_v28  ;;  %v2503_v27 = vsub.f32 %v2471_v51, %v4769_v47  ;;  %v2504_v30 = vsub.f32 %v2485_v23, %v4770_v4  ;;  %v2793_v31 = vsel %vm2103_vm6, %v7745_v24, %v2792_v17  ;;  %v2340_v63 = vld [vmem:[#allocation13 + $0x70] sm:$0xff]  ;;  %v2389_v51 = vld [vmem:[#allocation6 + $0x58] sm:$0xff]  ;;  %v9981_v4 = vld [vmem:[#allocation97_spill] sm:$0xff] }
 0x307   : > { %v2799_v29 = vsel %vm2103_vm6, %v2794_v10, %v7825_v41  ;;  %v2868_v39 = vmul.f32 %v2797_v19, %v2587_v3  ;;  %2916 = vst [vmem:[#allocation13] sm:$0xff] %v8125_v42  ;;  %v3128_v28 = vrot.slane %v8125_v42, 6  ;;  %v3130_v52 = vrot.slane %v8127_v32, 6  ;;  %v2445_v41 = vpop.permute.xlu0 %2444  ;;  %3975 = vrot.lane.b32.xlu0 %v8125_v42, %s5098_s9  ;;  %v8149_v40 = vpop.permute.xlu2 %2966  ;;  %v2388_v19 = vld [vmem:[#allocation6 + $0xb8] sm:$0xff]  ;;  %3997 = vrot.lane.b32.xlu2 %v8107_v43, %s5098_s9  ;;  %v3074_v42 = vld [vmem:[#allocation10 + $0xa0] sm:$0xff] }
 0x308   : > { %v2869_v16 = vmul.f32 %v2799_v29, %v2588_v50  ;;  %2917 = vst [vmem:[#allocation13 + $0x8] sm:$0xff] %v8127_v32  ;;  %v2531_v35 = vmul.f32 %v2503_v27, %v2390_v57  ;;  %v2795_v38 = vsel %vm2103_vm6, %v7752_v37, %v2794_v10  ;;  %v2360_v33 = vmul.f32 %v4771_v0, %v2332_v5  ;;  %v4772_v50 = vld [vmem:[#allocation26 + $0x38] sm:$0xff]  ;;  %v2453_v0 = vpop.permute.xlu1 %2452 }
 0x309   : > { %9975 = vst [vmem:[#allocation117_spill] sm:$0xff] %v8149_v40  ;;  %v2532_v9 = vmul.f32 %v2504_v30, %v2391_v59  ;;  %v2866_v22 = vmul.f32 %v2793_v31, %v2585_v21  ;;  %v2867_v3 = vmul.f32 %v2795_v38, %v2586_v62  ;;  %v2361_v14 = vmul.f32 %v4772_v50, %v2333_v61  ;;  %v9976_v24 = vld [vmem:[#allocation83_spill] sm:$0xff]  ;;  %v9977_v59 = vld [vmem:[#allocation108_spill] sm:$0xff]  ;;  %v4773_v61 = vld [vmem:[#allocation16 + $0xc8] sm:$0xff] }
 0x30a   : > { %v2559_v57 = vadd.f32 %v2531_v35, %v2362_v7  ;;  %v2470_v37 = vsel %vm2466_vm9, %v9976_v24, %v2445_v41  ;;  %v2484_v17 = vsel %vm2466_vm9, %v2445_v41, %v9976_v24  ;;  %v2341_v10 = vld [vmem:[#allocation13 + $0x78] sm:$0xff]  ;;  %v9978_v5 = vrot.slane %v9977_v59, 7  ;;  %v4774_v21 = vld [vmem:[#allocation16 + $0x90] sm:$0xff] }
 0x30b   : > { %v9979_v29 = vld [vmem:[#allocation75_spill] sm:$0xff]  ;;  %v2560_v27 = vadd.f32 %v2532_v9, %v2363_v6  ;;  %v2501_v7 = vsub.f32 %v2470_v37, %v4773_v61  ;;  %v2502_v62 = vsub.f32 %v2484_v17, %v4774_v21  ;;  %v9982_v30 = vrot.slane %v9981_v4, 7  ;;  %v2593_v21 = vld [vmem:[#allocation7 + $0x48] sm:$0xff]  ;;  %v2324_v61 = vld [vmem:[#allocation15 + $0xd0] sm:$0x3] }
 0x30c   : > { %v9980_v23 = vrot.slane %v9979_v29, 7  ;;  %v9983_v35 = vld [vmem:[#allocation79_spill] sm:$0xff]  ;;  %v8169_v41 = vadd.f32 %v2868_v39, %v2559_v57  ;;  %v4775_v29 = vld [vmem:[#allocation26 + $0x70] sm:$0xff] }
 0x30d   : > { %v9984_v31 = vrot.slane %v9983_v35, 7  ;;  %v8173_v6 = vadd.f32 %v2869_v16, %v2560_v27  ;;  %v2529_v9 = vmul.f32 %v2501_v7, %v2388_v19  ;;  %v2530_v37 = vmul.f32 %v2502_v62, %v2389_v51  ;;  %v4776_v17 = vld [vmem:[#allocation26 + $0x78] sm:$0xff]  ;;  %v9985_v35 = vld [vmem:[#allocation77_spill] sm:$0xff]  ;;  %v2396_v51 = vld [vmem:[#allocation6 + $0x30] sm:$0xff] }
 0x30e   : > { %v2667_v47 = vsel %vm2639_vm8, %v9980_v23, %v9978_v5  ;;  %v2368_v5 = vmul.f32 %v4775_v29, %v2340_v63  ;;  %v2369_v23 = vmul.f32 %v4776_v17, %v2341_v10  ;;  %2924 = vst [vmem:[#allocation13 + $0x40] sm:$0xff] %v8169_v41  ;;  %3983 = vrot.lane.b32.xlu1 %v8169_v41, %s5098_s9  ;;  %v2397_v10 = vld [vmem:[#allocation6 + $0x28] sm:$0xff]  ;;  %v4777_v62 = vld [vmem:[#allocation16 + $0x20] sm:$0xff] }
 0x30f   : > { %v2669_v38 = vsel %vm2639_vm8, %v9984_v31, %v9982_v30  ;;  %v2736_v50 = vsub.f32 %v9977_v59, %v2667_v47  ;;  %v2594_v30 = vld [vmem:[#allocation7 + $0x68] sm:$0xff]  ;;  %v2474_v59 = vsel %vm2466_vm9, %v9985_v35, %v2453_v0  ;;  %2925 = vst [vmem:[#allocation13 + $0x48] sm:$0xff] %v8173_v6  ;;  %v2557_v63 = vadd.f32 %v2529_v9, %v2360_v33  ;;  %v4778_v31 = vld [vmem:[#allocation16 + $0x60] sm:$0xff]  ;;  %v8191_v33 = vpop.permute.xlu2 %2972 }
 0x310   : > { %v2737_v24 = vsub.f32 %v9981_v4, %v2669_v38  ;;  %v2558_v19 = vadd.f32 %v2530_v37, %v2361_v14  ;;  %v2488_v47 = vsel %vm2466_vm9, %v2453_v0, %v9985_v35  ;;  %v2509_v4 = vsub.f32 %v2474_v59, %v4777_v62  ;;  %9986 = vst [vmem:[#allocation83_spill] sm:$0xff] %v8191_v33  ;;  %v2338_v37 = vld [vmem:[#allocation13 + $0x60] sm:$0xff]  ;;  %v2339_v17 = vld [vmem:[#allocation13 + $0x68] sm:$0xff]  ;;  %v9988_v35 = vld [vmem:[#allocation95_spill] sm:$0xff] }
 0x311   : > { %v2804_v39 = vrot.slane %v2736_v50, 1  ;;  %v2510_v38 = vsub.f32 %v2488_v47, %v4778_v31  ;;  %v2591_v50 = vld [vmem:[#allocation7 + $0xc0] sm:$0xff]  ;;  %v8193_v14 = vadd.f32 %v2866_v22, %v2557_v63  ;;  %v9989_v47 = vld [vmem:[#allocation101_spill] sm:$0xff]  ;;  %v2451_v31 = vpop.permute.xlu0 %2450  ;;  %4003 = vrot.lane.b32.xlu2 %v8127_v32, %s5098_s9 }
 0x312   : > { %v2806_v57 = vrot.slane %v2737_v24, 1  ;;  %v2592_v24 = vld [vmem:[#allocation7 + $0x8] sm:$0xff]  ;;  %v8195_v29 = vadd.f32 %v2867_v3, %v2558_v19  ;;  %v4779_v19 = vld [vmem:[#allocation26 + $0x60] sm:$0xff] }
 0x313   : > { %v2809_v27 = vsel %vm2103_vm6, %v2804_v39, %v7876_v20  ;;  %v2537_v20 = vmul.f32 %v2509_v4, %v2396_v51  ;;  %v2805_v59 = vsel %vm2103_vm6, %v9988_v35, %v2804_v39  ;;  %2922 = vst [vmem:[#allocation13 + $0x30] sm:$0xff] %v8193_v14  ;;  %v9519_v22 = vrot.slane %v8193_v14, 6  ;;  %3981 = vrot.lane.b32.xlu0 %v8193_v14, %s5098_s9  ;;  %v2394_v4 = vld [vmem:[#allocation6 + $0xb0] sm:$0xff]  ;;  %v9990_v35 = vld [vmem:[#allocation105_spill] sm:$0xff] }
 0x314   : > { %v2811_v7 = vsel %vm2103_vm6, %v2806_v57, %v7886_v15  ;;  %9987 = vst [vmem:[#allocation108_spill] sm:$0xff] %v8195_v29  ;;  %v2874_v9 = vmul.f32 %v2809_v27, %v2593_v21  ;;  %v2538_v15 = vmul.f32 %v2510_v38, %v2397_v10  ;;  %v2807_v62 = vsel %vm2103_vm6, %v9989_v47, %v2806_v57  ;;  %v4780_v57 = vld [vmem:[#allocation26 + $0x68] sm:$0xff]  ;;  %v2346_v27 = vld [vmem:[#allocation13 + $0xa0] sm:$0xff]  ;;  %v2395_v38 = vld [vmem:[#allocation6 + $0x18] sm:$0xff] }
 0x315   : > { %v2875_v0 = vmul.f32 %v2811_v7, %v2594_v30  ;;  %v8206_v21 = vmul.f32 %v2805_v59, %v2591_v50  ;;  %v2873_v30 = vmul.f32 %v2807_v62, %v2592_v24  ;;  %2923 = vst [vmem:[#allocation13 + $0x38] sm:$0xff] %v8195_v29  ;;  %v2565_v63 = vadd.f32 %v2537_v20, %v2368_v5  ;;  %v2347_v7 = vld [vmem:[#allocation13 + $0xa8] sm:$0xff] }
 0x316   : > { %v2566_v39 = vadd.f32 %v2538_v15, %v2369_v23  ;;  %v2366_v51 = vmul.f32 %v4779_v19, %v2338_v37  ;;  %v2367_v10 = vmul.f32 %v4780_v57, %v2339_v17  ;;  %v2473_v50 = vsel %vm2466_vm9, %v9990_v35, %v2451_v31  ;;  %v9994_v17 = vld [vmem:[#allocation107_spill] sm:$0xff]  ;;  %v4781_v19 = vld [vmem:[#allocation16 + $0x88] sm:$0xff] }
 0x317   : > { %v2487_v24 = vsel %vm2466_vm9, %v2451_v31, %v9990_v35  ;;  %v9991_v59 = vrot.slane %v7924_v58, 7  ;;  %v9992_v5 = vrot.slane %v7806_v36, 7  ;;  %v9993_v37 = vrot.slane %v7929_v18, 7  ;;  %v2459_v35 = vpop.permute.xlu1 %2458  ;;  %v4784_v16 = vld [vmem:[#allocation26 + $0xa8] sm:$0xff] }
 0x318   : > { %v9995_v20 = vrot.slane %v9994_v17, 7  ;;  %v8227_v47 = vadd.f32 %v2874_v9, %v2565_v63  ;;  %v8229_v62 = vadd.f32 %v2875_v0, %v2566_v39  ;;  %v2507_v57 = vsub.f32 %v2473_v50, %v4781_v19  ;;  %v4785_v17 = vld [vmem:[#allocation16 + $0x40] sm:$0xff] }
 0x319   : > { %v2679_v23 = vsel %vm2639_vm8, %v9992_v5, %v9991_v59  ;;  %v2508_v31 = vsub.f32 %v2487_v24, %v4782_v60  ;;  %v4783_v59 = vld [vmem:[#allocation26 + $0xa0] sm:$0xff]  ;;  %v2375_v3 = vmul.f32 %v4784_v16, %v2347_v7  ;;  %v8238_v60 = vpop.permute.xlu2 %2978  ;;  %4009 = vrot.lane.b32.xlu2 %v8195_v29, %s5098_s9 }
 0x31a   : > { %v2681_v15 = vsel %vm2639_vm8, %v9995_v20, %v9993_v37  ;;  %v2742_v48 = vsub.f32 %v7924_v58, %v2679_v23  ;;  %v2374_v5 = vmul.f32 %v4783_v59, %v2346_v27  ;;  %2930 = vst [vmem:[#allocation13 + $0x70] sm:$0xff] %v8227_v47  ;;  %v2535_v63 = vmul.f32 %v2507_v57, %v2394_v4  ;;  %v2402_v58 = vld [vmem:[#allocation6 + $0x90] sm:$0xff]  ;;  %v9997_v7 = vld [vmem:[#allocation100_spill] sm:$0xff]  ;;  %v2598_v57 = vld [vmem:[#allocation7 + $0xc8] sm:$0xff] }
 0x31b   : > { %v2743_v36 = vsub.f32 %v7929_v18, %v2681_v15  ;;  %v2536_v39 = vmul.f32 %v2508_v31, %v2395_v38  ;;  %3989 = vrot.lane.b32.xlu1 %v8227_v47, %s5098_s9  ;;  %9996 = vst [vmem:[#allocation75_spill] sm:$0xff] %v8238_v60  ;;  %v2599_v18 = vld [vmem:[#allocation7 + $0xd8] sm:$0xff]  ;;  %v2600_v27 = vld [vmem:[#allocation7 + $0x30] sm:$0xff]  ;;  %v2477_v24 = vsel %vm2466_vm9, %v9997_v7, %v2459_v35  ;;  %v2403_v37 = vld [vmem:[#allocation6 + $0x80] sm:$0xff] }
 0x31c   : > { %2931 = vst [vmem:[#allocation13 + $0x78] sm:$0xff] %v8229_v62  ;;  %v2816_v50 = vrot.slane %v2742_v48, 1  ;;  %v2491_v4 = vsel %vm2466_vm9, %v2459_v35, %v9997_v7  ;;  %v2563_v38 = vadd.f32 %v2535_v63, %v2366_v51  ;;  %v2515_v20 = vsub.f32 %v2477_v24, %v4785_v17  ;;  %v4786_v15 = vld [vmem:[#allocation16 + $0xa8] sm:$0xff]  ;;  %v2597_v48 = vld [vmem:[#allocation7 + $0x20] sm:$0xff]  ;;  %v2344_v59 = vld [vmem:[#allocation13 + $0x90] sm:$0xff]  ;;  %v2457_v17 = vpop.permute.xlu0 %2456 }
 0x31d   : > { %v2818_v16 = vrot.slane %v2743_v36, 1  ;;  %v2564_v23 = vadd.f32 %v2536_v39, %v2367_v10  ;;  %v2516_v19 = vsub.f32 %v2491_v4, %v4786_v15  ;;  %v2345_v35 = vld [vmem:[#allocation13 + $0x98] sm:$0xff]  ;;  %v9998_v7 = vld [vmem:[#allocation113_spill] sm:$0xff]  ;;  %v9999_v51 = vld [vmem:[#allocation88_spill] sm:$0xff] }
 0x31e   : > { %v2821_v31 = vsel %vm2103_vm6, %v2816_v50, %v8008_v11  ;;  %v2817_v0 = vsel %vm2103_vm6, %v9998_v7, %v2816_v50  ;;  %v8258_v63 = vadd.f32 %v8206_v21, %v2563_v38  ;;  %v2543_v11 = vmul.f32 %v2515_v20, %v2402_v58  ;;  %v4788_v21 = vld [vmem:[#allocation26 + $0x98] sm:$0xff]  ;;  %v4796_v7 = vld [vmem:[#allocation26 + $0xc8] sm:$0xff] }
 0x31f   : > { %v2823_v36 = vsel %vm2103_vm6, %v2818_v16, %v8016_v1  ;;  %v2819_v10 = vsel %vm2103_vm6, %v9999_v51, %v2818_v16  ;;  %v8260_v39 = vadd.f32 %v2873_v30, %v2564_v23  ;;  %v2880_v24 = vmul.f32 %v2821_v31, %v2599_v18  ;;  %v4787_v16 = vld [vmem:[#allocation26 + $0x90] sm:$0xff]  ;;  %v2325_v30 = vld [vmem:[#allocation15 + $0xd8] sm:$0x3]  ;;  %v10000_v23 = vld [vmem:[#allocation109_spill] sm:$0xff] }
 0x320   : > { %v2881_v4 = vmul.f32 %v2823_v36, %v2600_v27  ;;  %v2544_v15 = vmul.f32 %v2516_v19, %v2403_v37  ;;  %v2878_v9 = vmul.f32 %v2817_v0, %v2597_v48  ;;  %v2879_v1 = vmul.f32 %v2819_v10, %v2598_v57  ;;  %2928 = vst [vmem:[#allocation13 + $0x60] sm:$0xff] %v8258_v63  ;;  %v2400_v18 = vld [vmem:[#allocation6 + $0x98] sm:$0xff]  ;;  %v2401_v27 = vld [vmem:[#allocation6 + $0xa8] sm:$0xff]  ;;  %v4790_v57 = vld [vmem:[#allocation16 + $0xb0] sm:$0xff] }
 0x321   : > { %v2372_v51 = vmul.f32 %v4787_v16, %v2344_v59  ;;  %v2373_v38 = vmul.f32 %v4788_v21, %v2345_v35  ;;  %3987 = vrot.lane.b32.xlu0 %v8258_v63, %s5098_s9  ;;  %2929 = vst [vmem:[#allocation13 + $0x68] sm:$0xff] %v8260_v39  ;;  %v2571_v58 = vadd.f32 %v2543_v11, %v2374_v5  ;;  %v4789_v19 = vld [vmem:[#allocation16 + $0xd8] sm:$0xff]  ;;  %v2607_v36 = vrot.slane %v7860_v26, 6  ;;  %v8282_v11 = vpop.permute.xlu2 %2984  ;;  %v2352_v16 = vld [vmem:[#allocation13 + $0xd0] sm:$0x3] }
 0x322   : > { %v2572_v0 = vadd.f32 %v2544_v15, %v2375_v3  ;;  %v2476_v37 = vsel %vm2466_vm9, %v10000_v23, %v2457_v17  ;;  %v2490_v20 = vsel %vm2466_vm9, %v2457_v17, %v10000_v23  ;;  %v2608_v59 = vrot.slane %v7873_v54, 6  ;;  %10001 = vst [vmem:[#allocation97_spill] sm:$0xff] %v8282_v11  ;;  %v2353_v21 = vld [vmem:[#allocation13 + $0xd8] sm:$0x3]  ;;  %v2465_v54 = vpop.permute.xlu1 %2464  ;;  %4015 = vrot.lane.b32.xlu2 %v8260_v39, %s5098_s9 }
 0x323   : > { %v2513_v48 = vsub.f32 %v2476_v37, %v4789_v19  ;;  %v2514_v31 = vsub.f32 %v2490_v20, %v4790_v57  ;;  %v8276_v5 = vadd.f32 %v2880_v24, %v2571_v58  ;;  %v2690_v35 = vrot.slane %v2324_v61, 7  ;;  %v2350_v19 = vld [vmem:[#allocation13 + $0xc0] sm:$0xff]  ;;  %v2605_v57 = vld [vmem:[#allocation7 + $0x90] sm:$0x3]  ;;  %v4514_v8 = vld [vmem:[#allocation13 + $0x38] sm:$0xff] (%p1649_p0) }
 0x324   : > { %v8278_v3 = vadd.f32 %v2881_v4, %v2572_v0  ;;  %v2692_v10 = vrot.slane %v2325_v30, 7  ;;  %v2609_v23 = vsel %vm2018_vm5, %v2607_v36, %v2324_v61  ;;  %v2610_v26 = vsel %vm2018_vm5, %v2608_v59, %v2325_v30  ;;  %v4792_v59 = vld [vmem:[#allocation26 + $0xd8] sm:$0x3]  ;;  %v4795_v4 = vld [vmem:[#allocation26 + $0xc0] sm:$0xff]  ;;  %4542 = vst [vmem:[#allocation28 + $0x38] sm:$0xff] (%p1649_p0), %v4514_v8 }
 0x325   : > { %v2541_v17 = vmul.f32 %v2513_v48, %v2400_v18  ;;  %v2542_v15 = vmul.f32 %v2514_v31, %v2401_v27  ;;  %2936 = vst [vmem:[#allocation13 + $0xa0] sm:$0xff] %v8276_v5  ;;  %v10002_v58 = vrot.slane %v7949_v44, 7  ;;  %v10003_v18 = vrot.slane %v7951_v46, 7  ;;  %3995 = vrot.lane.b32.xlu1 %v8276_v5, %s5098_s9  ;;  %v2351_v48 = vld [vmem:[#allocation13 + $0xc8] sm:$0xff]  ;;  %v2606_v31 = vld [vmem:[#allocation7 + $0xb0] sm:$0x3] }
 0x326   : > { %2937 = vst [vmem:[#allocation13 + $0xa8] sm:$0xff] %v8278_v3  ;;  %v4791_v44 = vld [vmem:[#allocation26 + $0xd0] sm:$0x3]  ;;  %v10004_v46 = vld [vmem:[#allocation103_spill] sm:$0xff]  ;;  %v2378_v24 = vmul.f32 %v4795_v4, %v2350_v19  ;;  %v2379_v50 = vmul.f32 %v4796_v7, %v2351_v48  ;;  %v2406_v48 = vld [vmem:[#allocation6 + $0x8] sm:$0xff] }
 0x327   : > { %v2691_v0 = vsel %vm2639_vm8, %v10002_v58, %v2690_v35  ;;  %v2693_v27 = vsel %vm2639_vm8, %v10003_v18, %v2692_v10  ;;  %v2569_v61 = vadd.f32 %v2541_v17, %v2372_v51  ;;  %v2570_v30 = vadd.f32 %v2542_v15, %v2373_v38  ;;  %v2408_v17 = vld [vmem:[#allocation6 + $0x48] sm:$0x3]  ;;  %v2409_v15 = vld [vmem:[#allocation6 + $0x20] sm:$0x3]  ;;  %v10008_v19 = vld [vmem:[#allocation78_spill] sm:$0xff] }
 0x328   : > { %v2748_v37 = vsub.f32 %v2609_v23, %v2691_v0  ;;  %v2749_v20 = vsub.f32 %v2610_v26, %v2693_v27  ;;  %v2380_v36 = vmul.f32 %v4791_v44, %v2352_v16  ;;  %v2381_v35 = vmul.f32 %v4792_v59, %v2353_v21  ;;  %v2463_v0 = vpop.permute.xlu0 %2462  ;;  %v4793_v16 = vld [vmem:[#allocation16] sm:$0x3]  ;;  %v4794_v21 = vld [vmem:[#allocation16 + $0x48] sm:$0x3]  ;;  %v2604_v59 = vld [vmem:[#allocation7 + $0xd0] sm:$0xff] }
 0x329   : > { %v2480_v10 = vsel %vm2466_vm9, %v10004_v46, %v2465_v54  ;;  %v2494_v58 = vsel %vm2466_vm9, %v2465_v54, %v10004_v46  ;;  %v8304_v51 = vadd.f32 %v2878_v9, %v2569_v61  ;;  %v8306_v38 = vadd.f32 %v2879_v1, %v2570_v30  ;;  %v2603_v44 = vld [vmem:[#allocation7 + $0x80] sm:$0xff]  ;;  %v2407_v46 = vld [vmem:[#allocation6 + $0x10] sm:$0xff] }
 0x32a   : > { %v2828_v23 = vrot.slane %v2748_v37, 1  ;;  %v2830_v26 = vrot.slane %v2749_v20, 1  ;;  %v2521_v18 = vsub.f32 %v2480_v10, %v4793_v16  ;;  %v2522_v27 = vsub.f32 %v2494_v58, %v4794_v21  ;;  %v10007_v20 = vld [vmem:[#allocation96_spill] sm:$0xff]  ;;  %v10009_v16 = vld [vmem:[#allocation81_spill] sm:$0xff]  ;;  %v4798_v21 = vld [vmem:[#allocation16 + $0x70] sm:$0xff] }
 0x32b   : > { %10005 = vst [vmem:[#allocation79_spill] sm:$0xff] %v8304_v51  ;;  %3993 = vrot.lane.b32.xlu0 %v8304_v51, %s5098_s9  ;;  %4021 = vrot.lane.b32.xlu2 %v8306_v38, %s5098_s9 }
 0x32c   : > { %10006 = vst [vmem:[#allocation77_spill] sm:$0xff] %v8306_v38  ;;  %v2886_v54 = vmul.f32 %v2828_v23, %v2605_v57  ;;  %v2887_v61 = vmul.f32 %v2830_v26, %v2606_v31  ;;  %v2549_v30 = vmul.f32 %v2521_v18, %v2408_v17  ;;  %v2550_v37 = vmul.f32 %v2522_v27, %v2409_v15  ;;  %v2991_v17 = vpop.permute.xlu2 %2990  ;;  %v4797_v18 = vld [vmem:[#allocation16 + $0x8] sm:$0xff] }
 0x32d   : > { %2934 = vst [vmem:[#allocation13 + $0x90] sm:$0xff] %v8304_v51  ;;  %v2829_v4 = vsel %vm2103_vm6, %v10007_v20, %v2828_v23  ;;  %v2831_v7 = vsel %vm2103_vm6, %v10008_v19, %v2830_v26  ;;  %v2479_v57 = vsel %vm2466_vm9, %v10009_v16, %v2463_v0  ;;  %v2493_v31 = vsel %vm2466_vm9, %v2463_v0, %v10009_v16  ;;  %v10013_v0 = vld [vmem:[#allocation111_spill] sm:$0xff] }
 0x32e   : > { %2935 = vst [vmem:[#allocation13 + $0x98] sm:$0xff] %v8306_v38  ;;  %v2884_v10 = vmul.f32 %v2829_v4, %v2603_v44  ;;  %v2885_v58 = vmul.f32 %v2831_v7, %v2604_v59  ;;  %v2577_v15 = vadd.f32 %v2549_v30, %v2380_v36  ;;  %v2578_v23 = vadd.f32 %v2550_v37, %v2381_v35  ;;  %v10010_v44 = vld [vmem:[#allocation110_spill] sm:$0xff] }
 0x32f   : > { %v2519_v26 = vsub.f32 %v2479_v57, %v4797_v18  ;;  %v2520_v27 = vsub.f32 %v2493_v31, %v4798_v21  ;;  %v10011_v59 = vrot.slane %v10010_v44, 6  ;;  %v10014_v4 = vrot.slane %v10013_v0, 6 }
 0x330   : > { %v8345_v36 = vsel %vm2018_vm5, %v3132_v13, %v3128_v28  ;;  %v8352_v35 = vsel %vm2018_vm5, %v3133_v2, %v3130_v52  ;;  %v8354_v30 = vadd.f32 %v2886_v54, %v2577_v15  ;;  %v8356_v37 = vadd.f32 %v2887_v61, %v2578_v23  ;;  %v2963_v18 = vpop.permute.xlu0 %2962 }
 0x331   : > { %v8331_v20 = vsel %vm2018_vm5, %v10011_v59, %v3132_v13  ;;  %v8338_v19 = vsel %vm2018_vm5, %v10014_v4, %v3133_v2  ;;  %v2547_v7 = vmul.f32 %v2519_v26, %v2406_v48  ;;  %v2548_v16 = vmul.f32 %v2520_v27, %v2407_v46  ;;  %v4800_v27 = vld [vmem:[#allocation12 + $0x30] sm:$0xff]  ;;  %v8388_v4 = vpop.permute.xlu1 %2964 }
 0x332   : > { %10012 = vst [vmem:[#allocation95_spill] sm:$0xff] %v8331_v20  ;;  %v9518_v57 = vrot.slane %v8331_v20, 1  ;;  %v9517_v31 = vrot.slane %v8338_v19, 1  ;;  %v9520_v13 = vrot.slane %v8345_v36, 1  ;;  %v9521_v21 = vrot.slane %v8352_v35, 1  ;;  %4001 = vrot.lane.b32.xlu1 %v8354_v30, %s5098_s9  ;;  %v3330_v20 = vld [vmem:[#allocation11 + $0xc8] sm:$0xff] }
 0x333   : > { %10015 = vst [vmem:[#allocation101_spill] sm:$0xff] %v8338_v19  ;;  %v8367_v2 = vsel %vm2018_vm5, %v3128_v28, %v8354_v30  ;;  %v8373_v54 = vsel %vm2018_vm5, %v3130_v52, %v8356_v37  ;;  %v2575_v61 = vadd.f32 %v2547_v7, %v2378_v24  ;;  %v2576_v48 = vadd.f32 %v2548_v16, %v2379_v50  ;;  %v3075_v28 = vld [vmem:[#allocation10 + $0x90] sm:$0xff]  ;;  %v4799_v24 = vld [vmem:[#allocation12 + $0x80] sm:$0xff] }
 0x334   : > { %10016 = vst [vmem:[#allocation105_spill] sm:$0xff] %v8354_v30  ;;  %v3017_v23 = vsel %vm2466_vm9, %v2963_v18, %v2991_v17  ;;  %v3031_v32 = vsel %vm2466_vm9, %v2991_v17, %v2963_v18  ;;  %v3324_v7 = vld [vmem:[#allocation11 + $0xb0] sm:$0xff]  ;;  %v3325_v16 = vld [vmem:[#allocation11 + $0x20] sm:$0xff]  ;;  %v3219_v15 = vsel %vm2103_vm6, %v9520_v13, %v9518_v57  ;;  %v10021_v18 = vrot.slane %v8195_v29, 6  ;;  %v2997_v46 = vpop.permute.xlu2 %2996  ;;  %v3331_v29 = vld [vmem:[#allocation11 + $0x28] sm:$0xff] }
 0x335   : > { %10017 = vst [vmem:[#allocation107_spill] sm:$0xff] %v8356_v37  ;;  %v8384_v52 = vadd.f32 %v2884_v10, %v2575_v61  ;;  %v8386_v50 = vadd.f32 %v2885_v58, %v2576_v48  ;;  %v3046_v26 = vsub.f32 %v3017_v23, %v4799_v24  ;;  %v3047_v59 = vsub.f32 %v3031_v32, %v4800_v27  ;;  %v3520_v24 = vld [vmem:[#allocation2 + $0xd8] sm:$0xff]  ;;  %v3576_v13 = vld [vmem:[#allocation14 + $0x10] sm:$0xff] }
 0x336   : > { %2942 = vst [vmem:[#allocation13 + $0xd0] sm:$0x3] %v8354_v30  ;;  %v3221_v10 = vsel %vm2103_vm6, %v9521_v21, %v9517_v31  ;;  %v10020_v58 = vrot.slane %v8169_v41, 6  ;;  %v10022_v61 = vrot.slane %v8173_v6, 6  ;;  %v3521_v27 = vld [vmem:[#allocation2 + $0x18] sm:$0xff]  ;;  %v10023_v32 = vrot.slane %v8169_v41, 6 }
 0x337   : > { %2943 = vst [vmem:[#allocation13 + $0xd8] sm:$0x3] %v8356_v37  ;;  %3999 = vrot.lane.b32.xlu0 %v8384_v52, %s5098_s9  ;;  %v3102_v31 = vmul.f32 %v3074_v42, %v3046_v26  ;;  %v3103_v57 = vmul.f32 %v3075_v28, %v3047_v59  ;;  %v3297_v21 = vsub.f32 %v8095_v25, %v3221_v10  ;;  %v10024_v23 = vrot.slane %v7976_v53, 6  ;;  %v10027_v28 = vld [vmem:[#allocation74_spill] sm:$0xff] }
 0x338   : > { %10018 = vst [vmem:[#allocation100_spill] sm:$0xff] %v8386_v50  ;;  %v8407_v17 = vsel %vm2018_vm5, %v10020_v58, %v9519_v22  ;;  %v8414_v48 = vsel %vm2018_vm5, %v10022_v61, %v10021_v18  ;;  %v3548_v58 = vld [vmem:[#allocation3 + $0x58] sm:$0xff]  ;;  %v3549_v22 = vld [vmem:[#allocation3 + $0x50] sm:$0xff]  ;;  %v3296_v61 = vsub.f32 %v8092_v49, %v3219_v15  ;;  %v10026_v42 = vrot.slane %v8173_v6, 6  ;;  %v2969_v40 = vpop.permute.xlu0 %2968  ;;  %4027 = vrot.lane.b32.xlu2 %v8386_v50, %s5098_s9 }
 0x339   : > { %10019 = vst [vmem:[#allocation113_spill] sm:$0xff] %v8388_v4  ;;  %v3577_v18 = vld [vmem:[#allocation14 + $0x18] sm:$0xff]  ;;  %v8429_v1 = vsel %vm2018_vm5, %v10024_v23, %v10023_v32  ;;  %v10028_v26 = vrot.slane %v10027_v28, 6  ;;  %v3604_v9 = vmul.f32 %v3520_v24, %v3102_v31  ;;  %v3605_v56 = vmul.f32 %v3521_v27, %v3103_v57 }
 0x33a   : > { %2940 = vst [vmem:[#allocation13 + $0xc0] sm:$0xff] %v8384_v52  ;;  %v3828_v49 = vmul.f32 %v3548_v58, %v3102_v31  ;;  %v3829_v15 = vmul.f32 %v3549_v22, %v3103_v57  ;;  %v3352_v10 = vmul.f32 %v3324_v7, %v3296_v61  ;;  %v3353_v12 = vmul.f32 %v3325_v16, %v3297_v21  ;;  %v3408_v16 = vld [vmem:[#allocation31 + $0x10] sm:$0xff]  ;;  %v3409_v61 = vld [vmem:[#allocation31 + $0x18] sm:$0xff] }
 0x33b   : > { %2941 = vst [vmem:[#allocation13 + $0xc8] sm:$0xff] %v8386_v50  ;;  %v8436_v59 = vsel %vm2018_vm5, %v10028_v26, %v10026_v42  ;;  %v3632_v33 = vadd.f32 %v3604_v9, %v3576_v13  ;;  %v3633_v23 = vadd.f32 %v3605_v56, %v3577_v18  ;;  %v9536_v32 = vrot.slane %v8429_v1, 1  ;;  %4007 = vrot.lane.b32.xlu1 %v10013_v0, %s5098_s9  ;;  %v3744_v42 = vld [vmem:[#allocation15 + $0x10] sm:$0xff]  ;;  %v3745_v26 = vld [vmem:[#allocation15 + $0x18] sm:$0xff] }
 0x33c   : > { %10025 = vst [vmem:[#allocation88_spill] sm:$0xff] %v8429_v1  ;;  %v9535_v53 = vrot.slane %v8436_v59, 1  ;;  %v3380_v19 = vadd.f32 %v3352_v10, %v3102_v31  ;;  %v3381_v4 = vadd.f32 %v3353_v12, %v3103_v57  ;;  %v3660_v7 = vmul.f32 %v3548_v58, %v3352_v10 }
 0x33d   : > { %10029 = vst [vmem:[#allocation109_spill] sm:$0xff] %v8436_v59  ;;  %v3661_v21 = vmul.f32 %v3549_v22, %v3353_v12  ;;  %v3772_v11 = vmul.f32 %v3520_v24, %v3352_v10  ;;  %v3773_v60 = vmul.f32 %v3521_v27, %v3353_v12  ;;  %v10030_v56 = vrot.slane %v8407_v17, 1 }
 0x33e   : > { %v10031_v13 = vrot.slane %v8414_v48, 1  ;;  %v3436_v31 = vmul.f32 %v3380_v19, %v3380_v19  ;;  %v3437_v57 = vmul.f32 %v3381_v4, %v3381_v4  ;;  %v3688_v58 = vadd.f32 %v3660_v7, %v3632_v33  ;;  %v8460_v33 = vpop.permute.xlu1 %2970  ;;  %v3527_v4 = vld [vmem:[#allocation2 + $0x88] sm:$0xff]  ;;  %v3555_v7 = vld [vmem:[#allocation3 + $0x70] sm:$0xff] }
 0x33f   : > { %v3231_v9 = vsel %vm2103_vm6, %v10030_v56, %v9536_v32  ;;  %v3689_v22 = vadd.f32 %v3661_v21, %v3633_v23  ;;  %4005 = vrot.lane.b32.xlu0 %v8095_v25, %s5098_s9  ;;  %v3800_v12 = vadd.f32 %v3772_v11, %v3744_v42  ;;  %v3801_v24 = vadd.f32 %v3773_v60, %v3745_v26  ;;  %v3526_v56 = vld [vmem:[#allocation2 + $0x80] sm:$0xff]  ;;  %v3554_v23 = vld [vmem:[#allocation3 + $0xa8] sm:$0xff]  ;;  %v3080_v11 = vld [vmem:[#allocation10 + $0x58] sm:$0xff] }
 0x340   : > { %v3233_v18 = vsel %vm2103_vm6, %v10031_v13, %v9535_v53  ;;  %v3302_v27 = vsub.f32 %v8169_v41, %v3231_v9  ;;  %v3464_v13 = vadd.f32 %v3436_v31, %v3408_v16  ;;  %v3465_v19 = vadd.f32 %v3437_v57, %v3409_v61  ;;  %3716 = vst [vmem:[#allocation14 + $0x10] sm:$0xff] %v3688_v58  ;;  %v3081_v42 = vld [vmem:[#allocation10 + $0x28] sm:$0xff]  ;;  %v3750_v61 = vld [vmem:[#allocation15 + $0x40] sm:$0xff]  ;;  %v4802_v57 = vld [vmem:[#allocation12 + $0x50] sm:$0xff]  ;;  %v3003_v53 = vpop.permute.xlu2 %3002 }
 0x341   : > { %v3303_v10 = vsub.f32 %v8173_v6, %v3233_v18  ;;  %v3020_v21 = vsel %vm2466_vm9, %v2969_v40, %v2997_v46  ;;  %v3034_v25 = vsel %vm2466_vm9, %v2997_v46, %v2969_v40  ;;  %3717 = vst [vmem:[#allocation14 + $0x18] sm:$0xff] %v3689_v22  ;;  %v3856_v60 = vadd.f32 %v3828_v49, %v3800_v12  ;;  %v3751_v9 = vld [vmem:[#allocation15 + $0x48] sm:$0xff]  ;;  %v4801_v18 = vld [vmem:[#allocation12 + $0x90] sm:$0xff] }
 0x342   : > { %v3857_v41 = vadd.f32 %v3829_v15, %v3801_v24  ;;  %v3358_v26 = vmul.f32 %v3330_v20, %v3302_v27  ;;  %3492 = vst [vmem:[#allocation31 + $0x10] sm:$0xff] %v3464_v13  ;;  %v3052_v31 = vsub.f32 %v3020_v21, %v4801_v18  ;;  %v3053_v58 = vsub.f32 %v3034_v25, %v4802_v57  ;;  %v3582_v21 = vld [vmem:[#allocation14 + $0x40] sm:$0xff]  ;;  %v3583_v25 = vld [vmem:[#allocation14 + $0x48] sm:$0xff]  ;;  %v3415_v13 = vld [vmem:[#allocation31 + $0x48] sm:$0xff] }
 0x343   : > { %v3359_v16 = vmul.f32 %v3331_v29, %v3303_v10  ;;  %v10032_v32 = vrot.slane %v8258_v63, 6  ;;  %v10033_v59 = vrot.slane %v8227_v47, 6  ;;  %v10034_v46 = vrot.slane %v8260_v39, 6  ;;  %3493 = vst [vmem:[#allocation31 + $0x18] sm:$0xff] %v3465_v19  ;;  %4013 = vrot.lane.b32.xlu1 %v10027_v28, %s5098_s9  ;;  %v2975_v19 = vpop.permute.xlu0 %2974 }
 0x344   : > { %v10035_v20 = vrot.slane %v8229_v62, 6  ;;  %v3666_v49 = vmul.f32 %v3554_v23, %v3358_v26  ;;  %v3778_v22 = vmul.f32 %v3526_v56, %v3358_v26  ;;  %3884 = vst [vmem:[#allocation15 + $0x10] sm:$0xff] %v3856_v60  ;;  %v3108_v24 = vmul.f32 %v3080_v11, %v3052_v31 }
 0x345   : > { %v8471_v40 = vsel %vm2018_vm5, %v10033_v59, %v10032_v32  ;;  %v3667_v15 = vmul.f32 %v3555_v7, %v3359_v16  ;;  %v3779_v12 = vmul.f32 %v3527_v4, %v3359_v16  ;;  %v3109_v27 = vmul.f32 %v3081_v42, %v3053_v58  ;;  %3885 = vst [vmem:[#allocation15 + $0x18] sm:$0xff] %v3857_v41  ;;  %v3414_v41 = vld [vmem:[#allocation31 + $0x40] sm:$0xff] }
 0x346   : > { %v8478_v29 = vsel %vm2018_vm5, %v10035_v20, %v10034_v46  ;;  %v10036_v32 = vrot.slane %v8043_v55, 6  ;;  %v3806_v18 = vadd.f32 %v3778_v22, %v3750_v61  ;;  %v10038_v57 = vmov %v10035_v20  ;;  %v10039_v46 = vld [vmem:[#allocation114_spill] sm:$0xff] }
 0x347   : > { %v3807_v60 = vadd.f32 %v3779_v12, %v3751_v9  ;;  %v10040_v11 = vrot.slane %v10039_v46, 6  ;;  %v3386_v58 = vadd.f32 %v3358_v26, %v3108_v24  ;;  %v3387_v20 = vadd.f32 %v3359_v16, %v3109_v27  ;;  %4011 = vrot.lane.b32.xlu0 %v8173_v6, %s5098_s9 }
 0x348   : > { %v8487_v10 = vsel %vm2018_vm5, %v10036_v32, %v10033_v59  ;;  %v3610_v59 = vmul.f32 %v3526_v56, %v3108_v24  ;;  %v3611_v32 = vmul.f32 %v3527_v4, %v3109_v27  ;;  %v3834_v61 = vmul.f32 %v3554_v23, %v3108_v24 }
 0x349   : > { %10037 = vst [vmem:[#allocation103_spill] sm:$0xff] %v8487_v10  ;;  %v8495_v42 = vsel %vm2018_vm5, %v10040_v11, %v10038_v57  ;;  %v3835_v9 = vmul.f32 %v3555_v7, %v3109_v27  ;;  %v9541_v22 = vrot.slane %v8487_v10, 1  ;;  %v3442_v55 = vmul.f32 %v3386_v58, %v3386_v58  ;;  %v3087_v58 = vld [vmem:[#allocation10 + $0x48] sm:$0xff] }
 0x34a   : > { %10041 = vst [vmem:[#allocation96_spill] sm:$0xff] %v8495_v42  ;;  %v9540_v12 = vrot.slane %v8495_v42, 1  ;;  %v3443_v57 = vmul.f32 %v3387_v20, %v3387_v20  ;;  %v3638_v11 = vadd.f32 %v3610_v59, %v3582_v21  ;;  %v3639_v1 = vadd.f32 %v3611_v32, %v3583_v25  ;;  %v8512_v21 = vpop.permute.xlu1 %2976  ;;  %v3336_v25 = vld [vmem:[#allocation11 + $0x30] sm:$0xff] }
 0x34b   : > { %v3862_v31 = vadd.f32 %v3834_v61, %v3806_v18  ;;  %v3863_v26 = vadd.f32 %v3835_v9, %v3807_v60  ;;  %v10042_v56 = vrot.slane %v8471_v40, 1  ;;  %v10043_v4 = vrot.slane %v8478_v29, 1  ;;  %10044 = vst [vmem:[#allocation78_spill] sm:$0xff] %v8512_v21  ;;  %v3337_v18 = vld [vmem:[#allocation11 + $0x68] sm:$0xff]  ;;  %4019 = vrot.lane.b32.xlu1 %v10039_v46, %s5098_s9 }
 0x34c   : > { %v3470_v7 = vadd.f32 %v3442_v55, %v3414_v41  ;;  %v3471_v16 = vadd.f32 %v3443_v57, %v3415_v13  ;;  %v3694_v24 = vadd.f32 %v3666_v49, %v3638_v11  ;;  %v3695_v27 = vadd.f32 %v3667_v15, %v3639_v1  ;;  %v3086_v60 = vld [vmem:[#allocation10 + $0x88] sm:$0xff]  ;;  %v3532_v1 = vld [vmem:[#allocation2 + $0x78] sm:$0xff]  ;;  %v3561_v15 = vld [vmem:[#allocation3 + $0x40] sm:$0xff] }
 0x34d   : > { %v3243_v6 = vsel %vm2103_vm6, %v10042_v56, %v9541_v22  ;;  %v3245_v23 = vsel %vm2103_vm6, %v10043_v4, %v9540_v12  ;;  %3890 = vst [vmem:[#allocation15 + $0x40] sm:$0xff] %v3862_v31  ;;  %v3023_v32 = vsel %vm2466_vm9, %v2975_v19, %v3003_v53  ;;  %v3037_v55 = vsel %vm2466_vm9, %v3003_v53, %v2975_v19  ;;  %v3560_v49 = vld [vmem:[#allocation3 + $0x28] sm:$0xff]  ;;  %v4803_v13 = vld [vmem:[#allocation12 + $0xd8] sm:$0xff]  ;;  %v8531_v53 = vpop.permute.xlu0 %2980 }
 0x34e   : > { %v3308_v20 = vsub.f32 %v8227_v47, %v3243_v6  ;;  %v3309_v59 = vsub.f32 %v8229_v62, %v3245_v23  ;;  %3498 = vst [vmem:[#allocation31 + $0x40] sm:$0xff] %v3470_v7  ;;  %v3058_v31 = vsub.f32 %v3023_v32, %v4803_v13  ;;  %v4804_v41 = vld [vmem:[#allocation12 + $0xc8] sm:$0xff]  ;;  %v8522_v47 = vpop.permute.xlu2 %3008  ;;  %v10045_v9 = vrot.slane %v8304_v51, 6  ;;  %v3533_v4 = vld [vmem:[#allocation2 + $0xb8] sm:$0xff] }
 0x34f   : > { %v3059_v61 = vsub.f32 %v3037_v55, %v4804_v41  ;;  %v10046_v57 = vrot.slane %v8276_v5, 6  ;;  %3499 = vst [vmem:[#allocation31 + $0x48] sm:$0xff] %v3471_v16  ;;  %v10047_v23 = vrot.slane %v8306_v38, 6  ;;  %v10048_v7 = vrot.slane %v8278_v3, 6  ;;  %4017 = vrot.lane.b32.xlu0 %v8229_v62, %s5098_s9  ;;  %v3421_v22 = vld [vmem:[#allocation31 + $0x78] sm:$0xff] }
 0x350   : > { %v3364_v56 = vmul.f32 %v3336_v25, %v3308_v20  ;;  %v3365_v6 = vmul.f32 %v3337_v18, %v3309_v59  ;;  %v10050_v13 = vrot.slane %v8107_v43, 6  ;;  %3722 = vst [vmem:[#allocation14 + $0x40] sm:$0xff] %v3694_v24  ;;  %v3114_v16 = vmul.f32 %v3086_v60, %v3058_v31  ;;  %v3757_v24 = vld [vmem:[#allocation15 + $0x78] sm:$0xff] }
 0x351   : > { %v8529_v11 = vsel %vm2018_vm5, %v10046_v57, %v10045_v9  ;;  %v8539_v32 = vsel %vm2018_vm5, %v10048_v7, %v10047_v23  ;;  %v10049_v55 = vmov %v10046_v57  ;;  %v3756_v9 = vld [vmem:[#allocation15 + $0x70] sm:$0xff]  ;;  %v3115_v25 = vmul.f32 %v3087_v58, %v3059_v61  ;;  %3723 = vst [vmem:[#allocation14 + $0x48] sm:$0xff] %v3695_v27  ;;  %v3589_v58 = vld [vmem:[#allocation14 + $0x78] sm:$0xff] }
 0x352   : > { %v8546_v41 = vsel %vm2018_vm5, %v10050_v13, %v10049_v55  ;;  %v10052_v18 = vmov %v10048_v7  ;;  %v10053_v20 = vrot.slane %v8113_v45, 6  ;;  %v3588_v23 = vld [vmem:[#allocation14 + $0x70] sm:$0xff]  ;;  %v3672_v7 = vmul.f32 %v3560_v49, %v3364_v56  ;;  %3891 = vst [vmem:[#allocation15 + $0x48] sm:$0xff] %v3863_v26 }
 0x353   : > { %10051 = vst [vmem:[#allocation81_spill] sm:$0xff] %v8546_v41  ;;  %v3673_v55 = vmul.f32 %v3561_v15, %v3365_v6  ;;  %v3784_v13 = vmul.f32 %v3532_v1, %v3364_v56  ;;  %v3785_v31 = vmul.f32 %v3533_v4, %v3365_v6  ;;  %v3392_v61 = vadd.f32 %v3364_v56, %v3114_v16 }
 0x354   : > { %v8553_v59 = vsel %vm2018_vm5, %v10053_v20, %v10052_v18  ;;  %v3393_v12 = vadd.f32 %v3365_v6, %v3115_v25  ;;  %v3616_v18 = vmul.f32 %v3532_v1, %v3114_v16  ;;  %v3420_v20 = vld [vmem:[#allocation31 + $0x70] sm:$0xff]  ;;  %v3617_v27 = vmul.f32 %v3533_v4, %v3115_v25  ;;  %4025 = vrot.lane.b32.xlu1 %v8113_v45, %s5098_s9  ;;  %v8563_v4 = vpop.permute.xlu1 %2982 }
 0x355   : > { %10054 = vst [vmem:[#allocation110_spill] sm:$0xff] %v8553_v59  ;;  %v3812_v19 = vadd.f32 %v3784_v13, %v3756_v9  ;;  %v3840_v57 = vmul.f32 %v3560_v49, %v3114_v16  ;;  %v3841_v43 = vmul.f32 %v3561_v15, %v3115_v25  ;;  %v3813_v62 = vadd.f32 %v3785_v31, %v3757_v24  ;;  %v2987_v49 = vpop.permute.xlu0 %2986  ;;  %v3538_v25 = vld [vmem:[#allocation2 + $0xd0] sm:$0xff]  ;;  %v3539_v24 = vld [vmem:[#allocation2 + $0xa8] sm:$0xff] }
 0x356   : > { %v3448_v42 = vmul.f32 %v3392_v61, %v3392_v61  ;;  %v3449_v10 = vmul.f32 %v3393_v12, %v3393_v12  ;;  %v3644_v21 = vadd.f32 %v3616_v18, %v3588_v23  ;;  %v3645_v38 = vadd.f32 %v3617_v27, %v3589_v58  ;;  %10055 = vst [vmem:[#allocation111_spill] sm:$0xff] %v8563_v4  ;;  %v3092_v12 = vld [vmem:[#allocation10 + $0x38] sm:$0xff]  ;;  %v3567_v13 = vld [vmem:[#allocation3 + $0xd0] sm:$0xff]  ;;  %v4806_v58 = vld [vmem:[#allocation12 + $0xa0] sm:$0xff] }
 0x357   : > { %v3868_v46 = vadd.f32 %v3840_v57, %v3812_v19  ;;  %v9550_v60 = vrot.slane %v8546_v41, 1  ;;  %v9549_v26 = vrot.slane %v8553_v59, 1  ;;  %v3869_v1 = vadd.f32 %v3841_v43, %v3813_v62  ;;  %v4805_v23 = vld [vmem:[#allocation12 + $0x38] sm:$0xff]  ;;  %4023 = vrot.lane.b32.xlu0 %v8278_v3, %s5098_s9  ;;  %v10058_v27 = vld [vmem:[#allocation94_spill] sm:$0xff]  ;;  %v8608_v4 = vld [vmem:[#allocation2 + $0xc8] sm:$0x3] }
 0x358   : > { %v3476_v51 = vadd.f32 %v3448_v42, %v3420_v20  ;;  %v3477_v56 = vadd.f32 %v3449_v10, %v3421_v22  ;;  %v3700_v6 = vadd.f32 %v3672_v7, %v3644_v21  ;;  %v3701_v15 = vadd.f32 %v3673_v55, %v3645_v38  ;;  %v3342_v42 = vld [vmem:[#allocation11 + $0x58] sm:$0xff]  ;;  %v3343_v22 = vld [vmem:[#allocation11 + $0x40] sm:$0xff]  ;;  %v3015_v55 = vpop.permute.xlu2 %3014 }
 0x359   : > { %3896 = vst [vmem:[#allocation15 + $0x70] sm:$0xff] %v3868_v46  ;;  %v10056_v19 = vrot.slane %v8529_v11, 1  ;;  %v10057_v10 = vrot.slane %v8539_v32, 1  ;;  %v3026_v38 = vsel %vm2466_vm9, %v8531_v53, %v8522_v47  ;;  %v3093_v46 = vld [vmem:[#allocation10 + $0x98] sm:$0xff]  ;;  %v3040_v57 = vsel %vm2466_vm9, %v8522_v47, %v8531_v53 }
 0x35a   : > { %3504 = vst [vmem:[#allocation31 + $0x70] sm:$0xff] %v3476_v51  ;;  %v3064_v7 = vsub.f32 %v3026_v38, %v4805_v23  ;;  %v3566_v51 = vld [vmem:[#allocation3 + $0x78] sm:$0xff]  ;;  %v3029_v31 = vsel %vm2466_vm9, %v2987_v49, %v3015_v55  ;;  %v3043_v61 = vsel %vm2466_vm9, %v3015_v55, %v2987_v49  ;;  %v10061_v38 = vrot.slane %v8367_v2, 6 }
 0x35b   : > { %v3255_v9 = vsel %vm2103_vm6, %v10056_v19, %v9550_v60  ;;  %v3257_v43 = vsel %vm2103_vm6, %v10057_v10, %v9549_v26  ;;  %3505 = vst [vmem:[#allocation31 + $0x78] sm:$0xff] %v3477_v56  ;;  %v3070_v62 = vsub.f32 %v3029_v31, %v10058_v27  ;;  %v3763_v56 = vld [vmem:[#allocation15 + $0xa8] sm:$0xff]  ;;  %v3099_v31 = vld [vmem:[#allocation10] sm:$0x3] }
 0x35c   : > { %v3314_v21 = vsub.f32 %v8276_v5, %v3255_v9  ;;  %v3315_v16 = vsub.f32 %v8278_v3, %v3257_v43  ;;  %v3065_v5 = vsub.f32 %v3040_v57, %v4806_v58  ;;  %3728 = vst [vmem:[#allocation14 + $0x70] sm:$0xff] %v3700_v6  ;;  %v3120_v20 = vmul.f32 %v3092_v12, %v3064_v7  ;;  %v3762_v3 = vld [vmem:[#allocation15 + $0xa0] sm:$0xff]  ;;  %v10059_v9 = vld [vmem:[#allocation93_spill] sm:$0xff] }
 0x35d   : > { %3729 = vst [vmem:[#allocation14 + $0x78] sm:$0xff] %v3701_v15  ;;  %v3071_v10 = vsub.f32 %v3043_v61, %v10059_v9  ;;  %v10060_v43 = vrot.slane %v8384_v52, 6  ;;  %v10062_v6 = vrot.slane %v8386_v50, 6  ;;  %v3594_v15 = vld [vmem:[#allocation14 + $0xa0] sm:$0xff]  ;;  %v3426_v61 = vld [vmem:[#allocation31 + $0xa0] sm:$0xff] }
 0x35e   : > { %v3370_v53 = vmul.f32 %v3342_v42, %v3314_v21  ;;  %v3371_v18 = vmul.f32 %v3343_v22, %v3315_v16  ;;  %v3121_v19 = vmul.f32 %v3093_v46, %v3065_v5  ;;  %v10063_v42 = vrot.slane %v8373_v54, 6  ;;  %3897 = vst [vmem:[#allocation15 + $0x78] sm:$0xff] %v3869_v1  ;;  %v3595_v22 = vld [vmem:[#allocation14 + $0xa8] sm:$0xff]  ;;  %v3098_v5 = vld [vmem:[#allocation10 + $0xc0] sm:$0x3] }
 0x35f   : > { %v8599_v49 = vsel %vm2018_vm5, %v10061_v38, %v10060_v43  ;;  %v3622_v55 = vmul.f32 %v3538_v25, %v3120_v20  ;;  %v3427_v43 = vld [vmem:[#allocation31 + $0xa8] sm:$0xff]  ;;  %v3846_v60 = vmul.f32 %v3566_v51, %v3120_v20  ;;  %4029 = vrot.lane.b32.xlu0 %v8356_v37, %s5098_s9 }
 0x360   : > { %v8606_v12 = vsel %vm2018_vm5, %v10063_v42, %v10062_v6  ;;  %v3678_v46 = vmul.f32 %v3566_v51, %v3370_v53  ;;  %v3679_v21 = vmul.f32 %v3567_v13, %v3371_v18  ;;  %v3790_v16 = vmul.f32 %v3538_v25, %v3370_v53  ;;  %v3572_v51 = vld [vmem:[#allocation3 + $0x80] sm:$0x3] }
 0x361   : > { %v3791_v57 = vmul.f32 %v3539_v24, %v3371_v18  ;;  %v3398_v23 = vadd.f32 %v3370_v53, %v3120_v20  ;;  %v3399_v7 = vadd.f32 %v3371_v18, %v3121_v19  ;;  %v3623_v58 = vmul.f32 %v3539_v24, %v3121_v19  ;;  %v8610_v53 = vld [vmem:[#allocation2 + $0x70] sm:$0x3]  ;;  %v2989_v18 = vpop.permute.xlu1 %2988  ;;  %v3601_v20 = vld [vmem:[#allocation14 + $0xd8] sm:$0x3] }
 0x362   : > { %v3818_v38 = vadd.f32 %v3790_v16, %v3762_v3  ;;  %v3847_v6 = vmul.f32 %v3567_v13, %v3121_v19  ;;  %v3650_v47 = vadd.f32 %v3622_v55, %v3594_v15  ;;  %v3126_v25 = vmul.f32 %v3098_v5, %v3070_v62  ;;  %v3600_v13 = vld [vmem:[#allocation14 + $0xd0] sm:$0x3] }
 0x363   : > { %v3819_v26 = vadd.f32 %v3791_v57, %v3763_v56  ;;  %v3454_v42 = vmul.f32 %v3398_v23, %v3398_v23  ;;  %v3455_v1 = vmul.f32 %v3399_v7, %v3399_v7  ;;  %v3651_v27 = vadd.f32 %v3623_v58, %v3595_v22  ;;  %v3323_v7 = vld [vmem:[#allocation11 + $0xc0] sm:$0xff] }
 0x364   : > { %v3874_v9 = vadd.f32 %v3846_v60, %v3818_v38  ;;  %v3127_v24 = vmul.f32 %v3099_v31, %v3071_v10  ;;  %v3706_v45 = vadd.f32 %v3678_v46, %v3650_v47  ;;  %v3573_v60 = vld [vmem:[#allocation3 + $0x10] sm:$0x3]  ;;  %v3264_v56 = vrot.slane %v8606_v12, 1  ;;  %v3348_v10 = vld [vmem:[#allocation11 + $0xd8] sm:$0x3]  ;;  %v10134_v12 = vld [vmem:[#allocation97_spill] sm:$0xff] }
 0x365   : > { %v3875_v59 = vadd.f32 %v3847_v6, %v3819_v26  ;;  %v3482_v41 = vadd.f32 %v3454_v42, %v3426_v61  ;;  %v3483_v50 = vadd.f32 %v3455_v1, %v3427_v43  ;;  %v3707_v3 = vadd.f32 %v3679_v21, %v3651_v27  ;;  %v3349_v47 = vld [vmem:[#allocation11 + $0x90] sm:$0x3]  ;;  %v3519_v42 = vld [vmem:[#allocation2] sm:$0xff] }
 0x366   : > { %3902 = vst [vmem:[#allocation15 + $0xa0] sm:$0xff] %v3874_v9  ;;  %v9557_v26 = vrot.slane %v8599_v49, 1  ;;  %v3628_v62 = vmul.f32 %v8608_v4, %v3126_v25  ;;  %v3629_v19 = vmul.f32 %v8610_v53, %v3127_v24  ;;  %v8618_v27 = vmul.f32 %v3572_v51, %v3126_v25  ;;  %v3547_v1 = vld [vmem:[#allocation3 + $0xc0] sm:$0xff] }
 0x367   : > { %3510 = vst [vmem:[#allocation31 + $0xa0] sm:$0xff] %v3482_v41  ;;  %v8620_v15 = vmul.f32 %v3573_v60, %v3127_v24  ;;  %v10064_v22 = vrot.slane %v8352_v35, 1  ;;  %v10065_v9 = vrot.slane %v8373_v54, 1  ;;  %v3016_v21 = vsel %vm2466_vm9, %v8105_v34, %v2989_v18  ;;  %v3072_v35 = vld [vmem:[#allocation10 + $0x50] sm:$0xff]  ;;  %v4807_v54 = vld [vmem:[#allocation13 + $0x8] sm:$0xff] }
 0x368   : > { %3511 = vst [vmem:[#allocation31 + $0xa8] sm:$0xff] %v3483_v50  ;;  %v3320_v41 = vsub.f32 %v8354_v30, %v9557_v26  ;;  %v3321_v16 = vsub.f32 %v8356_v37, %v3264_v56  ;;  %v3656_v57 = vadd.f32 %v3628_v62, %v3600_v13  ;;  %v3657_v23 = vadd.f32 %v3629_v19, %v3601_v20  ;;  %v4808_v50 = vld [vmem:[#allocation12 + $0xb8] sm:$0xff]  ;;  %v4810_v20 = vld [vmem:[#allocation13] sm:$0xff]  ;;  %v3768_v19 = vld [vmem:[#allocation15 + $0xd0] sm:$0x3] }
 0x369   : > { %v3217_v46 = vsel %vm2103_vm6, %v10065_v9, %v10064_v22  ;;  %3734 = vst [vmem:[#allocation14 + $0xa0] sm:$0xff] %v3706_v45  ;;  %v3030_v58 = vsel %vm2466_vm9, %v2989_v18, %v8105_v34  ;;  %v3044_v5 = vsub.f32 %v3016_v21, %v4808_v50  ;;  %v10066_v31 = vrot.slane %v8345_v36, 1  ;;  %v4809_v45 = vld [vmem:[#allocation12 + $0x70] sm:$0xff]  ;;  %v3429_v30 = vld [vmem:[#allocation31 + $0xb8] sm:$0xff] }
 0x36a   : > { %v3295_v55 = vsub.f32 %v4807_v54, %v3217_v46  ;;  %v10067_v61 = vrot.slane %v8367_v2, 1  ;;  %3735 = vst [vmem:[#allocation14 + $0xa8] sm:$0xff] %v3707_v3  ;;  %v3376_v38 = vmul.f32 %v3348_v10, %v3320_v41  ;;  %v3377_v6 = vmul.f32 %v3349_v47, %v3321_v16  ;;  %v10071_v10 = vld [vmem:[#allocation108_spill] sm:$0xff]  ;;  %v3769_v46 = vld [vmem:[#allocation15 + $0xd8] sm:$0x3]  ;;  %v3543_v26 = vld [vmem:[#allocation2 + $0x10] sm:$0xff] }
 0x36b   : > { %v3045_v13 = vsub.f32 %v3030_v58, %v4809_v45  ;;  %3903 = vst [vmem:[#allocation15 + $0xa8] sm:$0xff] %v3875_v59  ;;  %v3100_v18 = vmul.f32 %v3072_v35, %v3044_v5  ;;  %v10068_v22 = vrot.slane %v10010_v44, 6  ;;  %v10069_v36 = vrot.slane %v8193_v14, 6  ;;  %v3073_v35 = vld [vmem:[#allocation10 + $0x10] sm:$0xff]  ;;  %v3432_v44 = vld [vmem:[#allocation31 + $0xd0] sm:$0x3] }
 0x36c   : > { %v3214_v43 = vsel %vm2103_vm6, %v10067_v61, %v10066_v31  ;;  %v3351_v34 = vmul.f32 %v3323_v7, %v3295_v55  ;;  %v10070_v3 = vrot.slane %v10013_v0, 6  ;;  %v10072_v47 = vrot.slane %v10071_v10, 6  ;;  %v3743_v7 = vld [vmem:[#allocation15 + $0x8] sm:$0xff] }
 0x36d   : > { %v3294_v62 = vsub.f32 %v4810_v20, %v3214_v43  ;;  %v8649_v2 = vsel %vm2018_vm5, %v10069_v36, %v10068_v22  ;;  %v3404_v21 = vadd.f32 %v3376_v38, %v3126_v25  ;;  %v3405_v59 = vadd.f32 %v3377_v6, %v3127_v24  ;;  %v3433_v54 = vld [vmem:[#allocation31 + $0xd8] sm:$0x3]  ;;  %v3518_v24 = vld [vmem:[#allocation2 + $0xb0] sm:$0xff] }
 0x36e   : > { %v8656_v9 = vsel %vm2018_vm5, %v10072_v47, %v10070_v3  ;;  %v3684_v41 = vmul.f32 %v3572_v51, %v3376_v38  ;;  %v3685_v16 = vmul.f32 %v3573_v60, %v3377_v6  ;;  %v3796_v14 = vmul.f32 %v8608_v4, %v3376_v38  ;;  %v3322_v58 = vld [vmem:[#allocation11 + $0x48] sm:$0xff]  ;;  %v3546_v51 = vld [vmem:[#allocation3] sm:$0xff]  ;;  %v3407_v47 = vld [vmem:[#allocation31 + $0x8] sm:$0xff] }
 0x36f   : > { %v3797_v55 = vmul.f32 %v8610_v53, %v3377_v6  ;;  %v3659_v0 = vmul.f32 %v3547_v1, %v3351_v34  ;;  %v3771_v50 = vmul.f32 %v3519_v42, %v3351_v34  ;;  %v3460_v5 = vmul.f32 %v3404_v21, %v3404_v21  ;;  %v3574_v60 = vld [vmem:[#allocation14] sm:$0xff]  ;;  %v3575_v4 = vld [vmem:[#allocation14 + $0x8] sm:$0xff] }
 0x370   : > { %v3461_v31 = vmul.f32 %v3405_v59, %v3405_v59  ;;  %v3712_v61 = vadd.f32 %v3684_v41, %v3656_v57  ;;  %v3713_v43 = vadd.f32 %v3685_v16, %v3657_v23  ;;  %v3824_v45 = vadd.f32 %v3796_v14, %v3768_v19  ;;  %v3742_v57 = vld [vmem:[#allocation15] sm:$0xff]  ;;  %v3406_v41 = vld [vmem:[#allocation31] sm:$0xff] }
 0x371   : > { %v3825_v25 = vadd.f32 %v3797_v55, %v3769_v46  ;;  %v3799_v20 = vadd.f32 %v3771_v50, %v3743_v7  ;;  %v3101_v22 = vmul.f32 %v3073_v35, %v3045_v13  ;;  %v3488_v36 = vadd.f32 %v3460_v5, %v3432_v44  ;;  %v2993_v44 = vpop.permute.xlu0 %2992 }
 0x372   : > { %v3489_v3 = vadd.f32 %v3461_v31, %v3433_v54  ;;  %3740 = vst [vmem:[#allocation14 + $0xd0] sm:$0x3] %v3712_v61  ;;  %v3350_v38 = vmul.f32 %v3322_v58, %v3294_v62  ;;  %v3602_v53 = vmul.f32 %v3518_v24, %v3100_v18  ;;  %v3880_v6 = vadd.f32 %v8618_v27, %v3824_v45  ;;  %v3076_v31 = vld [vmem:[#allocation10 + $0x70] sm:$0xff]  ;;  %v10073_v61 = vld [vmem:[#allocation95_spill] sm:$0xff]  ;;  %v10075_v45 = vld [vmem:[#allocation113_spill] sm:$0xff] }
 0x373   : > { %3741 = vst [vmem:[#allocation14 + $0xd8] sm:$0x3] %v3713_v43  ;;  %v3881_v10 = vadd.f32 %v8620_v15, %v3825_v25  ;;  %v3379_v23 = vadd.f32 %v3351_v34, %v3101_v22  ;;  %v3603_v19 = vmul.f32 %v3519_v42, %v3101_v22  ;;  %v3826_v62 = vmul.f32 %v3546_v51, %v3100_v18  ;;  %v3326_v43 = vld [vmem:[#allocation11 + $0x88] sm:$0xff] }
 0x374   : > { %3516 = vst [vmem:[#allocation31 + $0xd0] sm:$0x3] %v3488_v36  ;;  %v3378_v46 = vadd.f32 %v3350_v38, %v3100_v18  ;;  %v3630_v21 = vadd.f32 %v3602_v53, %v3574_v60  ;;  %v3658_v59 = vmul.f32 %v3546_v51, %v3350_v38  ;;  %v3770_v13 = vmul.f32 %v3518_v24, %v3350_v38  ;;  %v10076_v24 = vld [vmem:[#allocation101_spill] sm:$0xff]  ;;  %v4812_v36 = vld [vmem:[#allocation12 + $0x78] sm:$0xff] }
 0x375   : > { %3517 = vst [vmem:[#allocation31 + $0xd8] sm:$0x3] %v3489_v3  ;;  %v3435_v16 = vmul.f32 %v3379_v23, %v3379_v23  ;;  %v3631_v35 = vadd.f32 %v3603_v19, %v3575_v4  ;;  %v3827_v7 = vmul.f32 %v3547_v1, %v3101_v22  ;;  %v3222_v34 = vrot.slane %v8649_v2, 1  ;;  %v3077_v2 = vld [vmem:[#allocation10 + $0xd8] sm:$0xff]  ;;  %v2995_v4 = vpop.permute.xlu1 %2994  ;;  %v4813_v38 = vld [vmem:[#allocation13 + $0x28] sm:$0xff] }
 0x376   : > { %3908 = vst [vmem:[#allocation15 + $0xd0] sm:$0x3] %v3880_v6  ;;  %v3434_v27 = vmul.f32 %v3378_v46, %v3378_v46  ;;  %v3686_v54 = vadd.f32 %v3658_v59, %v3630_v21  ;;  %v3798_v15 = vadd.f32 %v3770_v13, %v3742_v57  ;;  %v3224_v58 = vrot.slane %v8656_v9, 1  ;;  %v4811_v9 = vld [vmem:[#allocation13 + $0x20] sm:$0xff]  ;;  %v3522_v6 = vld [vmem:[#allocation2 + $0x50] sm:$0xff]  ;;  %v4814_v57 = vld [vmem:[#allocation12 + $0x68] sm:$0xff] }
 0x377   : > { %3909 = vst [vmem:[#allocation15 + $0xd8] sm:$0x3] %v3881_v10  ;;  %v3463_v42 = vadd.f32 %v3435_v16, %v3407_v47  ;;  %v3687_v14 = vadd.f32 %v3659_v0, %v3631_v35  ;;  %v3855_v55 = vadd.f32 %v3827_v7, %v3799_v20  ;;  %v10074_v18 = vrot.slane %v10073_v61, 1  ;;  %v3327_v20 = vld [vmem:[#allocation11 + $0x38] sm:$0xff]  ;;  %v3523_v13 = vld [vmem:[#allocation2 + $0x68] sm:$0xff]  ;;  %v4815_v35 = vld [vmem:[#allocation13 + $0x30] sm:$0xff] }
 0x378   : > { %v3462_v50 = vadd.f32 %v3434_v27, %v3406_v41  ;;  %3714 = vst [vmem:[#allocation14] sm:$0xff] %v3686_v54  ;;  %v3854_v5 = vadd.f32 %v3826_v62, %v3798_v15  ;;  %v3018_v25 = vsel %vm2466_vm9, %v10075_v45, %v2993_v44  ;;  %v10077_v0 = vrot.slane %v10076_v24, 1  ;;  %v3550_v10 = vld [vmem:[#allocation3 + $0xb8] sm:$0xff]  ;;  %v3551_v41 = vld [vmem:[#allocation3 + $0x88] sm:$0xff]  ;;  %v3578_v54 = vld [vmem:[#allocation14 + $0x20] sm:$0xff] }
 0x379   : > { %v3223_v1 = vsel %vm2103_vm6, %v10074_v18, %v3222_v34  ;;  %3491 = vst [vmem:[#allocation31 + $0x8] sm:$0xff] %v3463_v42  ;;  %v3032_v22 = vsel %vm2466_vm9, %v2993_v44, %v10075_v45  ;;  %v3048_v3 = vsub.f32 %v3018_v25, %v4812_v36  ;;  %v10078_v19 = vrot.slane %v8407_v17, 1  ;;  %v4816_v7 = vld [vmem:[#allocation13 + $0x38] sm:$0xff]  ;;  %v3746_v17 = vld [vmem:[#allocation15 + $0x20] sm:$0xff] }
 0x37a   : > { %v3225_v51 = vsel %vm2103_vm6, %v10077_v0, %v3224_v58  ;;  %v3298_v60 = vsub.f32 %v4811_v9, %v3223_v1  ;;  %3490 = vst [vmem:[#allocation31] sm:$0xff] %v3462_v50  ;;  %v3049_v23 = vsub.f32 %v3032_v22, %v4814_v57  ;;  %v10079_v46 = vrot.slane %v8414_v48, 1  ;;  %v3747_v50 = vld [vmem:[#allocation15 + $0x28] sm:$0xff]  ;;  %v3411_v24 = vld [vmem:[#allocation31 + $0x28] sm:$0xff] }
 0x37b   : > { %v3299_v53 = vsub.f32 %v4813_v38, %v3225_v51  ;;  %v3227_v47 = vsel %vm2103_vm6, %v3222_v34, %v10078_v19  ;;  %3715 = vst [vmem:[#allocation14 + $0x8] sm:$0xff] %v3687_v14  ;;  %v3104_v16 = vmul.f32 %v3076_v31, %v3048_v3  ;;  %v10080_v34 = vld [vmem:[#allocation117_spill] sm:$0xff]  ;;  %v3552_v38 = vld [vmem:[#allocation3 + $0xb0] sm:$0xff] }
 0x37c   : > { %v3229_v21 = vsel %vm2103_vm6, %v3224_v58, %v10079_v46  ;;  %v3354_v59 = vmul.f32 %v3326_v43, %v3298_v60  ;;  %v3300_v62 = vsub.f32 %v4815_v35, %v3227_v47  ;;  %3882 = vst [vmem:[#allocation15] sm:$0xff] %v3854_v5  ;;  %v3105_v15 = vmul.f32 %v3077_v2, %v3049_v23  ;;  %v3579_v14 = vld [vmem:[#allocation14 + $0x28] sm:$0xff]  ;;  %v3410_v5 = vld [vmem:[#allocation31 + $0x20] sm:$0xff]  ;;  %v3328_v2 = vld [vmem:[#allocation11 + $0xa0] sm:$0xff] }
 0x37d   : > { %v3301_v44 = vsub.f32 %v4816_v7, %v3229_v21  ;;  %v3355_v27 = vmul.f32 %v3327_v20, %v3299_v53  ;;  %v3019_v48 = vsel %vm2466_vm9, %v10080_v34, %v2995_v4  ;;  %v3033_v42 = vsel %vm2466_vm9, %v2995_v4, %v10080_v34  ;;  %3883 = vst [vmem:[#allocation15 + $0x8] sm:$0xff] %v3855_v55  ;;  %v3329_v55 = vld [vmem:[#allocation11 + $0xd0] sm:$0xff]  ;;  %v3525_v19 = vld [vmem:[#allocation2 + $0x48] sm:$0xff]  ;;  %v3553_v47 = vld [vmem:[#allocation3 + $0x98] sm:$0xff]  ;;  %v8696_v34 = vpop.permute.xlu0 %2998 }
 0x37e   : > { %v3662_v58 = vmul.f32 %v3550_v10, %v3354_v59  ;;  %v3774_v31 = vmul.f32 %v3522_v6, %v3354_v59  ;;  %v3382_v61 = vadd.f32 %v3354_v59, %v3104_v16  ;;  %v3606_v18 = vmul.f32 %v3522_v6, %v3104_v16  ;;  %v3524_v4 = vld [vmem:[#allocation2 + $0x30] sm:$0xff] }
 0x37f   : > { %v3663_v1 = vmul.f32 %v3551_v41, %v3355_v27  ;;  %v3775_v43 = vmul.f32 %v3523_v13, %v3355_v27  ;;  %v3383_v45 = vadd.f32 %v3355_v27, %v3105_v15  ;;  %v3607_v25 = vmul.f32 %v3523_v13, %v3105_v15  ;;  %v3078_v13 = vld [vmem:[#allocation10 + $0x60] sm:$0xff]  ;;  %v3748_v35 = vld [vmem:[#allocation15 + $0x30] sm:$0xff] }
 0x380   : > { %v3802_v0 = vadd.f32 %v3774_v31, %v3746_v17  ;;  %v3438_v51 = vmul.f32 %v3382_v61, %v3382_v61  ;;  %v3634_v9 = vadd.f32 %v3606_v18, %v3578_v54  ;;  %v3830_v60 = vmul.f32 %v3550_v10, %v3104_v16  ;;  %v3079_v10 = vld [vmem:[#allocation10 + $0x30] sm:$0xff]  ;;  %v8690_v54 = vld [vmem:[#allocation12 + $0x18] sm:$0xff]  ;;  %v10084_v31 = vld [vmem:[#allocation68_spill] sm:$0xff] }
 0x381   : > { %v3803_v20 = vadd.f32 %v3775_v43, %v3747_v50  ;;  %v3439_v22 = vmul.f32 %v3383_v45, %v3383_v45  ;;  %v3635_v36 = vadd.f32 %v3607_v25, %v3579_v14  ;;  %v3831_v3 = vmul.f32 %v3551_v41, %v3105_v15  ;;  %v3749_v41 = vld [vmem:[#allocation15 + $0x38] sm:$0xff]  ;;  %v8693_v15 = vld [vmem:[#allocation12 + $0x48] sm:$0xff] }
 0x382   : > { %v3466_v53 = vadd.f32 %v3438_v51, %v3410_v5  ;;  %v3690_v6 = vadd.f32 %v3662_v58, %v3634_v9  ;;  %v3858_v57 = vadd.f32 %v3830_v60, %v3802_v0  ;;  %v3356_v23 = vmul.f32 %v3328_v2, %v3300_v62  ;;  %v2945_v43 = vld [vmem:[#allocation13 + $0x51] ss:$8 sm:$0x3] }
 0x383   : > { %v3467_v46 = vadd.f32 %v3439_v22, %v3411_v24  ;;  %v3691_v21 = vadd.f32 %v3663_v1, %v3635_v36  ;;  %v3859_v59 = vadd.f32 %v3831_v3, %v3803_v20  ;;  %v3357_v16 = vmul.f32 %v3329_v55, %v3301_v44  ;;  %v3580_v24 = vld [vmem:[#allocation14 + $0x30] sm:$0xff]  ;;  %v3581_v0 = vld [vmem:[#allocation14 + $0x38] sm:$0xff]  ;;  %v3412_v22 = vld [vmem:[#allocation31 + $0x30] sm:$0xff] }
 0x384   : > { %3494 = vst [vmem:[#allocation31 + $0x20] sm:$0xff] %v3466_v53  ;;  %v3664_v7 = vmul.f32 %v3552_v38, %v3356_v23  ;;  %v3776_v27 = vmul.f32 %v3524_v4, %v3356_v23  ;;  %v3050_v17 = vsub.f32 %v3019_v48, %v8690_v54  ;;  %v3051_v62 = vsub.f32 %v3033_v42, %v8693_v15  ;;  %v3413_v36 = vld [vmem:[#allocation31 + $0x38] sm:$0xff]  ;;  %v3557_v50 = vld [vmem:[#allocation3 + $0x18] sm:$0xff] }
 0x385   : > { %3495 = vst [vmem:[#allocation31 + $0x28] sm:$0xff] %v3467_v46  ;;  %v3665_v44 = vmul.f32 %v3553_v47, %v3357_v16  ;;  %v3777_v14 = vmul.f32 %v3525_v19, %v3357_v16  ;;  %v10081_v58 = vlaneseq  ;;  %v10085_v61 = vrot.slane %v10084_v31, 6  ;;  %v8736_v31 = vpop.permute.xlu2 %3979 }
 0x386   : > { %v10086_v48 = vrot.slane %v8258_v63, 6  ;;  %3718 = vst [vmem:[#allocation14 + $0x20] sm:$0xff] %v3690_v6  ;;  %v3804_v42 = vadd.f32 %v3776_v27, %v3748_v35  ;;  %v3106_v5 = vmul.f32 %v3078_v13, %v3050_v17  ;;  %v3107_v1 = vmul.f32 %v3079_v10, %v3051_v62  ;;  %v10089_v6 = vld [vmem:[#allocation88_spill] sm:$0xff]  ;;  %v10091_v13 = vld [vmem:[#allocation109_spill] sm:$0xff]  ;;  %v3332_v27 = vld [vmem:[#allocation11 + $0x10] sm:$0xff] }
 0x387   : > { %vm8701_vm10 = vcmp.lt.s32.totalorder %v10081_v58, 256  ;;  %v10087_v45 = vrot.slane %v10027_v28, 6  ;;  %v10088_v25 = vrot.slane %v8260_v39, 6  ;;  %3719 = vst [vmem:[#allocation14 + $0x28] sm:$0xff] %v3691_v21  ;;  %v3805_v63 = vadd.f32 %v3777_v14, %v3749_v41  ;;  %v4820_v17 = vld [vmem:[#allocation13 + $0x58] sm:$0xff]  ;;  %v3528_v14 = vld [vmem:[#allocation2 + $0x8] sm:$0xff]  ;;  %v8734_v58 = vpop.permute.xlu1 %3000 }
 0x388   : > { %v8710_v18 = vsel %vm2018_vm5, %v10086_v48, %v10085_v61  ;;  %v3021_v60 = vsel %vm2466_vm9, %v8460_v33, %v8696_v34  ;;  %3886 = vst [vmem:[#allocation15 + $0x20] sm:$0xff] %v3858_v57  ;;  %v3384_v28 = vadd.f32 %v3356_v23, %v3106_v5  ;;  %v3385_v55 = vadd.f32 %v3357_v16, %v3107_v1 }
 0x389   : > { %v3169_v2 = vsel %vm2018_vm5, %v10088_v25, %v10087_v45  ;;  %v3234_v51 = vrot.slane %v8710_v18, 1  ;;  %v3608_v39 = vmul.f32 %v3524_v4, %v3106_v5  ;;  %v3609_v20 = vmul.f32 %v3525_v19, %v3107_v1  ;;  %3887 = vst [vmem:[#allocation15 + $0x28] sm:$0xff] %v3859_v59  ;;  %v3333_v4 = vld [vmem:[#allocation11 + $0x78] sm:$0xff]  ;;  %v3556_v45 = vld [vmem:[#allocation3 + $0x8] sm:$0xff] }
 0x38a   : > { %v3236_v9 = vrot.slane %v3169_v2, 1  ;;  %v3832_v3 = vmul.f32 %v3552_v38, %v3106_v5  ;;  %v3833_v53 = vmul.f32 %v3553_v47, %v3107_v1  ;;  %v10090_v46 = vrot.slane %v10089_v6, 1  ;;  %2958 = vst.msk [vmem:[%s2957_s1] ss:$8 sm:$0x3] %vm8701_vm10, %v2945_v43  ;;  %v4819_v47 = vld [vmem:[#allocation13 + $0x50] sm:$0xff] }
 0x38b   : > { %v10092_v10 = vrot.slane %v10091_v13, 1  ;;  %v3440_v41 = vmul.f32 %v3384_v28, %v3384_v28  ;;  %v3441_v57 = vmul.f32 %v3385_v55, %v3385_v55  ;;  %v3636_v23 = vadd.f32 %v3608_v39, %v3580_v24  ;;  %v3529_v1 = vld [vmem:[#allocation2 + $0x58] sm:$0xff]  ;;  %v3083_v43 = vld [vmem:[#allocation10 + $0x68] sm:$0xff]  ;;  %v3752_v28 = vld [vmem:[#allocation15 + $0x50] sm:$0xff]  ;;  %4586 = dma.vmem_to_hbm [thread:$0]  (%p1649_p0), %s4582_s21, 256, %s4584_s17, [#allocation30]  }
 0x38c   : > { %v3235_v21 = vsel %vm2103_vm6, %v10090_v46, %v3234_v51  ;;  %v3637_v16 = vadd.f32 %v3609_v20, %v3581_v0  ;;  %v3860_v38 = vadd.f32 %v3832_v3, %v3804_v42  ;;  %v3861_v19 = vadd.f32 %v3833_v53, %v3805_v63  ;;  %v3082_v42 = vld [vmem:[#allocation10 + $0x20] sm:$0xff]  ;;  %v4821_v0 = vld [vmem:[#allocation12 + $0xa8] sm:$0xff] }
 0x38d   : > { %v3237_v35 = vsel %vm2103_vm6, %v10092_v10, %v3236_v9  ;;  %v3304_v59 = vsub.f32 %v4819_v47, %v3235_v21  ;;  %v3468_v61 = vadd.f32 %v3440_v41, %v3412_v22  ;;  %v3469_v48 = vadd.f32 %v3441_v57, %v3413_v36  ;;  %v10095_v21 = vld [vmem:[#allocation42_spill] sm:$0xff]  ;;  %v8752_v10 = vld [vmem:[#allocation13 + $0x60] sm:$0xff] }
 0x38e   : > { %v3305_v62 = vsub.f32 %v4820_v17, %v3237_v35  ;;  %v3692_v18 = vadd.f32 %v3664_v7, %v3636_v23  ;;  %v3693_v5 = vadd.f32 %v3665_v44, %v3637_v16  ;;  %3888 = vst [vmem:[#allocation15 + $0x30] sm:$0xff] %v3860_v38  ;;  %v3035_v24 = vsel %vm2466_vm9, %v8696_v34, %v8460_v33  ;;  %v3753_v7 = vld [vmem:[#allocation15 + $0x58] sm:$0xff]  ;;  %v4822_v44 = vld [vmem:[#allocation12] sm:$0xff]  ;;  %v8755_v23 = vld [vmem:[#allocation13 + $0x68] sm:$0xff] }
 0x38f   : > { %v3360_v25 = vmul.f32 %v3332_v27, %v3304_v59  ;;  %v3054_v63 = vsub.f32 %v3021_v60, %v4821_v0  ;;  %3496 = vst [vmem:[#allocation31 + $0x30] sm:$0xff] %v3468_v61  ;;  %v3055_v55 = vsub.f32 %v3035_v24, %v4822_v44  ;;  %v3911_v39 = vstv %s8718_s14  ;;  %v3335_v35 = vld [vmem:[#allocation11] sm:$0xff]  ;;  %v10096_v27 = vld [vmem:[#allocation83_spill] sm:$0xff]  ;;  %v3559_v61 = vld [vmem:[#allocation3 + $0x68] sm:$0xff] }
 0x390   : > { %v3361_v2 = vmul.f32 %v3333_v4, %v3305_v62  ;;  %v10093_v20 = vrot.slane %v8471_v40, 1  ;;  %v10094_v36 = vrot.slane %v8478_v29, 1  ;;  %3497 = vst [vmem:[#allocation31 + $0x38] sm:$0xff] %v3469_v48  ;;  %v8750_v13 = vmul.f32 %v10095_v21, %v3911_v39  ;;  %v3584_v29 = vld [vmem:[#allocation14 + $0x50] sm:$0xff]  ;;  %v3558_v62 = vld [vmem:[#allocation3 + $0x20] sm:$0xff]  ;;  %v3530_v44 = vld [vmem:[#allocation2 + $0x38] sm:$0xff] }
 0x391   : > { %v3668_v53 = vmul.f32 %v3556_v45, %v3360_v25  ;;  %v3780_v33 = vmul.f32 %v3528_v14, %v3360_v25  ;;  %3720 = vst [vmem:[#allocation14 + $0x30] sm:$0xff] %v3692_v18  ;;  %v3110_v60 = vmul.f32 %v3082_v42, %v3054_v63  ;;  %v3111_v46 = vmul.f32 %v3083_v43, %v3055_v55  ;;  %v3416_v48 = vld [vmem:[#allocation31 + $0x50] sm:$0xff]  ;;  %v3417_v18 = vld [vmem:[#allocation31 + $0x58] sm:$0xff]  ;;  %v3531_v55 = vld [vmem:[#allocation2 + $0x90] sm:$0xff] }
 0x392   : > { %v3239_v22 = vsel %vm2103_vm6, %v3234_v51, %v10093_v20  ;;  %v3241_v3 = vsel %vm2103_vm6, %v3236_v9, %v10094_v36  ;;  %v3669_v6 = vmul.f32 %v3557_v50, %v3361_v2  ;;  %v3781_v34 = vmul.f32 %v3529_v1, %v3361_v2  ;;  %v3334_v51 = vld [vmem:[#allocation11 + $0x8] sm:$0xff]  ;;  %3721 = vst [vmem:[#allocation14 + $0x38] sm:$0xff] %v3693_v5  ;;  %v3585_v9 = vld [vmem:[#allocation14 + $0x58] sm:$0xff]  ;;  %v8768_v20 = vpop.permute.xlu2 %3985 }
 0x393   : > { %v3306_v40 = vsub.f32 %v8752_v10, %v3239_v22  ;;  %v3808_v41 = vadd.f32 %v3780_v33, %v3752_v28  ;;  %v3307_v16 = vsub.f32 %v8755_v23, %v3241_v3  ;;  %v3022_v4 = vsel %vm2466_vm9, %v10096_v27, %v8734_v58  ;;  %3889 = vst [vmem:[#allocation15 + $0x38] sm:$0xff] %v3861_v19  ;;  %v3084_v3 = vld [vmem:[#allocation10 + $0x80] sm:$0xff] }
 0x394   : > { %v3809_v57 = vadd.f32 %v3781_v34, %v3753_v7  ;;  %v3388_v38 = vadd.f32 %v3360_v25, %v3110_v60  ;;  %v3389_v47 = vadd.f32 %v3361_v2, %v3111_v46  ;;  %v3612_v59 = vmul.f32 %v3528_v14, %v3110_v60  ;;  %v8766_v2 = vpop.permute.xlu1 %3006  ;;  %10097 = vst [vmem:[#allocation74_spill] sm:$0xff] %v8768_v20  ;;  %v3754_v33 = vld [vmem:[#allocation15 + $0x60] sm:$0xff]  ;;  %v3755_v34 = vld [vmem:[#allocation15 + $0x68] sm:$0xff] }
 0x395   : > { %v3613_v17 = vmul.f32 %v3529_v1, %v3111_v46  ;;  %v3836_v5 = vmul.f32 %v3556_v45, %v3110_v60  ;;  %v3837_v42 = vmul.f32 %v3557_v50, %v3111_v46  ;;  %v3362_v43 = vmul.f32 %v3334_v51, %v3306_v40  ;;  %v3005_v1 = vpop.permute.xlu0 %3004  ;;  %v3085_v60 = vld [vmem:[#allocation10 + $0xb8] sm:$0xff]  ;;  %v8774_v51 = vld [vmem:[#allocation12 + $0xb0] sm:$0xff] }
 0x396   : > { %v3363_v24 = vmul.f32 %v3335_v35, %v3307_v16  ;;  %v3444_v0 = vmul.f32 %v3388_v38, %v3388_v38  ;;  %v3445_v63 = vmul.f32 %v3389_v47, %v3389_v47  ;;  %v3640_v28 = vadd.f32 %v3612_v59, %v3584_v29  ;;  %v8777_v29 = vld [vmem:[#allocation12 + $0x40] sm:$0xff]  ;;  %v10102_v38 = vld [vmem:[#allocation114_spill] sm:$0xff]  ;;  %v10104_v59 = vld [vmem:[#allocation77_spill] sm:$0xff] }
 0x397   : > { %v3641_v7 = vadd.f32 %v3613_v17, %v3585_v9  ;;  %v3864_v39 = vadd.f32 %v3836_v5, %v3808_v41  ;;  %v3865_v19 = vadd.f32 %v3837_v42, %v3809_v57  ;;  %v8762_v25 = vmul.f32 %v3558_v62, %v3362_v43  ;;  %v10100_v41 = vld [vmem:[#allocation79_spill] sm:$0xff] }
 0x398   : > { %v8764_v14 = vmul.f32 %v3559_v61, %v3363_v24  ;;  %v3472_v45 = vadd.f32 %v3444_v0, %v3416_v48  ;;  %v3473_v50 = vadd.f32 %v3445_v63, %v3417_v18  ;;  %v3696_v22 = vadd.f32 %v3668_v53, %v3640_v28  ;;  %v3586_v0 = vld [vmem:[#allocation14 + $0x60] sm:$0xff] }
 0x399   : > { %v3697_v36 = vadd.f32 %v3669_v6, %v3641_v7  ;;  %3892 = vst [vmem:[#allocation15 + $0x50] sm:$0xff] %v3864_v39  ;;  %v3782_v46 = vmul.f32 %v3530_v44, %v3362_v43  ;;  %v3783_v21 = vmul.f32 %v3531_v55, %v3363_v24  ;;  %v3036_v40 = vsel %vm2466_vm9, %v8734_v58, %v10096_v27  ;;  %v10098_v6 = vld [vmem:[#allocation91_spill] sm:$0xff] }
 0x39a   : > { %v3056_v35 = vsub.f32 %v3022_v4, %v8774_v51  ;;  %3500 = vst [vmem:[#allocation31 + $0x50] sm:$0xff] %v3472_v45  ;;  %v3057_v53 = vsub.f32 %v3036_v40, %v8777_v29  ;;  %v10099_v9 = vrot.slane %v10098_v6, 6  ;;  %v10101_v57 = vrot.slane %v10100_v41, 6  ;;  %v10106_v4 = vld [vmem:[#allocation78_spill] sm:$0xff]  ;;  %v4827_v39 = vld [vmem:[#allocation12 + $0x98] sm:$0xff] }
 0x39b   : > { %v10103_v47 = vrot.slane %v10102_v38, 6  ;;  %v10105_v58 = vrot.slane %v10104_v59, 6  ;;  %v8797_v17 = vsel %vm2466_vm9, %v10106_v4, %v3005_v1  ;;  %3501 = vst [vmem:[#allocation31 + $0x58] sm:$0xff] %v3473_v50  ;;  %v3810_v48 = vadd.f32 %v3782_v46, %v3754_v33  ;;  %v3587_v50 = vld [vmem:[#allocation14 + $0x68] sm:$0xff]  ;;  %v10107_v46 = vld [vmem:[#allocation103_spill] sm:$0xff] }
 0x39c   : > { %v8785_v16 = vsel %vm2018_vm5, %v10101_v57, %v10099_v9  ;;  %v3811_v18 = vadd.f32 %v3783_v21, %v3755_v34  ;;  %v3112_v5 = vmul.f32 %v3084_v3, %v3056_v35  ;;  %3724 = vst [vmem:[#allocation14 + $0x50] sm:$0xff] %v3696_v22  ;;  %v3113_v63 = vmul.f32 %v3085_v60, %v3057_v53  ;;  %v3418_v60 = vld [vmem:[#allocation31 + $0x60] sm:$0xff]  ;;  %v3419_v41 = vld [vmem:[#allocation31 + $0x68] sm:$0xff]  ;;  %v3088_v57 = vld [vmem:[#allocation10 + $0xc8] sm:$0xff] }
 0x39d   : > { %v8792_v27 = vsel %vm2018_vm5, %v10105_v58, %v10103_v47  ;;  %v3246_v42 = vrot.slane %v8785_v16, 1  ;;  %v8804_v7 = vsel %vm2466_vm9, %v3005_v1, %v10106_v4  ;;  %v3060_v45 = vsub.f32 %v8797_v17, %v4827_v39  ;;  %3725 = vst [vmem:[#allocation14 + $0x58] sm:$0xff] %v3697_v36  ;;  %v10109_v1 = vld [vmem:[#allocation96_spill] sm:$0xff]  ;;  %v3339_v47 = vld [vmem:[#allocation11 + $0x50] sm:$0xff] }
 0x39e   : > { %v3248_v28 = vrot.slane %v8792_v27, 1  ;;  %v3390_v33 = vadd.f32 %v3362_v43, %v3112_v5  ;;  %v3614_v34 = vmul.f32 %v3530_v44, %v3112_v5  ;;  %v3838_v3 = vmul.f32 %v3558_v62, %v3112_v5  ;;  %3893 = vst [vmem:[#allocation15 + $0x58] sm:$0xff] %v3865_v19  ;;  %v3338_v36 = vld [vmem:[#allocation11 + $0x80] sm:$0xff] }
 0x39f   : > { %v10108_v21 = vrot.slane %v10107_v46, 1  ;;  %v3391_v40 = vadd.f32 %v3363_v24, %v3113_v63  ;;  %v3615_v35 = vmul.f32 %v3531_v55, %v3113_v63  ;;  %v3839_v53 = vmul.f32 %v3559_v61, %v3113_v63  ;;  %v4828_v16 = vld [vmem:[#allocation13 + $0x80] sm:$0xff]  ;;  %v4829_v61 = vld [vmem:[#allocation13 + $0x88] sm:$0xff]  ;;  %v8819_v46 = vpop.permute.xlu1 %3012 }
 0x3a0   : > { %v10110_v6 = vrot.slane %v10109_v1, 1  ;;  %v3446_v43 = vmul.f32 %v3390_v33, %v3390_v33  ;;  %v3642_v44 = vadd.f32 %v3614_v34, %v3586_v0  ;;  %v3866_v62 = vadd.f32 %v3838_v3, %v3810_v48  ;;  %v3916_v19 = vld [vmem:[#allocation15 + $0x52] ss:$0 sm:$0xff]  ;;  %v3534_v4 = vld [vmem:[#allocation2 + $0x40] sm:$0xff]  ;;  %v3089_v0 = vld [vmem:[#allocation10 + $0x78] sm:$0xff]  ;;  %v8817_v3 = vpop.permute.xlu0 %3010 }
 0x3a1   : > { %v3247_v22 = vsel %vm2103_vm6, %v10108_v21, %v3246_v42  ;;  %v3447_v59 = vmul.f32 %v3391_v40, %v3391_v40  ;;  %v3643_v24 = vadd.f32 %v3615_v35, %v3587_v50  ;;  %v3867_v55 = vadd.f32 %v3839_v53, %v3811_v18  ;;  %v3562_v17 = vld [vmem:[#allocation3 + $0x60] sm:$0xff]  ;;  %v3535_v33 = vld [vmem:[#allocation2 + $0x28] sm:$0xff]  ;;  %v3563_v34 = vld [vmem:[#allocation3 + $0x30] sm:$0xff]  ;;  %v8822_v21 = vpop.permute.xlu2 %3991 }
 0x3a2   : > { %v3249_v9 = vsel %vm2103_vm6, %v10110_v6, %v3248_v28  ;;  %v3310_v38 = vsub.f32 %v4828_v16, %v3247_v22  ;;  %v3917_v5 = vadd.f32 %v3916_v19, %v8750_v13  ;;  %v3474_v63 = vadd.f32 %v3446_v43, %v3418_v60  ;;  %3894 = vst [vmem:[#allocation15 + $0x60] sm:$0xff] %v3866_v62  ;;  %v3758_v40 = vld [vmem:[#allocation15 + $0x80] sm:$0xff]  ;;  %v8824_v60 = vld [vmem:[#allocation12 + $0x28] sm:$0xff] }
 0x3a3   : > { %v3311_v58 = vsub.f32 %v4829_v61, %v3249_v9  ;;  %v3698_v39 = vadd.f32 %v8762_v25, %v3642_v44  ;;  %v3475_v50 = vadd.f32 %v3447_v59, %v3419_v41  ;;  %v3699_v18 = vadd.f32 %v8764_v14, %v3643_v24  ;;  %3895 = vst [vmem:[#allocation15 + $0x68] sm:$0xff] %v3867_v55  ;;  %v3913_v35 = vld [vmem:[#allocation14 + $0x52] ss:$0 sm:$0xff]  ;;  %v3759_v1 = vld [vmem:[#allocation15 + $0x88] sm:$0xff]  ;;  %v3590_v43 = vld [vmem:[#allocation14 + $0x80] sm:$0xff] }
 0x3a4   : > { %v3366_v48 = vmul.f32 %v3338_v36, %v3310_v38  ;;  %10111 = vst [vmem:[#allocation108_spill] sm:$0xff] %v8822_v21  ;;  %v3061_v25 = vsub.f32 %v8804_v7, %v8824_v60  ;;  %v3116_v9 = vmul.f32 %v3088_v57, %v3060_v45  ;;  %v10113_v36 = vrot.slane %v8529_v11, 1  ;;  %v3591_v38 = vld [vmem:[#allocation14 + $0x88] sm:$0xff]  ;;  %v3422_v24 = vld [vmem:[#allocation31 + $0x80] sm:$0xff]  ;;  %v3536_v27 = vld [vmem:[#allocation2 + $0xc0] sm:$0xff] }
 0x3a5   : > { %v3367_v22 = vmul.f32 %v3339_v47, %v3311_v58  ;;  %10112 = vst [vmem:[#allocation95_spill] sm:$0xff] %v8824_v60  ;;  %v3914_v41 = vadd.f32 %v3913_v35, %v8750_v13  ;;  %v10170_v21 = vld [vmem:[#allocation87_spill] sm:$0xff] }
 0x3a6   : > { %3918 = vst [vmem:[#allocation15 + $0x52] sm:$0x1] %v3917_v5  ;;  %v3674_v53 = vmul.f32 %v3562_v17, %v3366_v48  ;;  %v3786_v6 = vmul.f32 %v3534_v4, %v3366_v48  ;;  %v3251_v14 = vsel %vm2103_vm6, %v3246_v42, %v10113_v36  ;;  %v3117_v16 = vmul.f32 %v3089_v0, %v3061_v25  ;;  %v3423_v42 = vld [vmem:[#allocation31 + $0x88] sm:$0xff] }
 0x3a7   : > { %3502 = vst [vmem:[#allocation31 + $0x60] sm:$0xff] %v3474_v63  ;;  %v3675_v44 = vmul.f32 %v3563_v34, %v3367_v22  ;;  %v3787_v62 = vmul.f32 %v3535_v33, %v3367_v22  ;;  %v3394_v47 = vadd.f32 %v3366_v48, %v3116_v9  ;;  %v3618_v19 = vmul.f32 %v3534_v4, %v3116_v9  ;;  %v3340_v0 = vld [vmem:[#allocation11 + $0x18] sm:$0xff] }
 0x3a8   : > { %3503 = vst [vmem:[#allocation31 + $0x68] sm:$0xff] %v3475_v50  ;;  %v3814_v7 = vadd.f32 %v3786_v6, %v3758_v40  ;;  %v3842_v59 = vmul.f32 %v3562_v17, %v3116_v9  ;;  %v3395_v57 = vadd.f32 %v3367_v22, %v3117_v16  ;;  %v3619_v11 = vmul.f32 %v3535_v33, %v3117_v16  ;;  %v8837_v50 = vld [vmem:[#allocation13 + $0x90] sm:$0xff]  ;;  %v3090_v40 = vld [vmem:[#allocation10 + $0x40] sm:$0xff]  ;;  %v8840_v25 = vld [vmem:[#allocation13 + $0x98] sm:$0xff] }
 0x3a9   : > { %3915 = vst [vmem:[#allocation14 + $0x52] sm:$0x1] %v3914_v41  ;;  %v3815_v45 = vadd.f32 %v3787_v62, %v3759_v1  ;;  %v3843_v55 = vmul.f32 %v3563_v34, %v3117_v16  ;;  %v3450_v13 = vmul.f32 %v3394_v47, %v3394_v47  ;;  %v3646_v61 = vadd.f32 %v3618_v19, %v3590_v43  ;;  %v3091_v9 = vld [vmem:[#allocation10 + $0xb0] sm:$0xff]  ;;  %v10116_v47 = vld [vmem:[#allocation115_spill] sm:$0xff] }
 0x3aa   : > { %3726 = vst [vmem:[#allocation14 + $0x60] sm:$0xff] %v3698_v39  ;;  %v3870_v58 = vadd.f32 %v3842_v59, %v3814_v7  ;;  %v10114_v5 = vrot.slane %v8539_v32, 1  ;;  %v3451_v4 = vmul.f32 %v3395_v57, %v3395_v57  ;;  %v3647_v17 = vadd.f32 %v3619_v11, %v3591_v38  ;;  %v3341_v39 = vld [vmem:[#allocation11 + $0x70] sm:$0xff]  ;;  %v8854_v7 = vld [vmem:[#allocation12 + $0x58] sm:$0xff] }
 0x3ab   : > { %3727 = vst [vmem:[#allocation14 + $0x68] sm:$0xff] %v3699_v18  ;;  %v3871_v48 = vadd.f32 %v3843_v55, %v3815_v45  ;;  %v3312_v33 = vsub.f32 %v8837_v50, %v3251_v14  ;;  %v3478_v34 = vadd.f32 %v3450_v13, %v3422_v24  ;;  %v3702_v22 = vadd.f32 %v3674_v53, %v3646_v61  ;;  %v10115_v18 = vld [vmem:[#allocation75_spill] sm:$0xff]  ;;  %v3537_v14 = vld [vmem:[#allocation2 + $0x60] sm:$0xff]  ;;  %v3565_v53 = vld [vmem:[#allocation3 + $0x48] sm:$0xff]  ;;  %v8864_v45 = vpop.permute.xlu1 %3977 }
 0x3ac   : > { %v3253_v63 = vsel %vm2103_vm6, %v3248_v28, %v10114_v5  ;;  %3898 = vst [vmem:[#allocation15 + $0x80] sm:$0xff] %v3870_v58  ;;  %v3564_v28 = vld [vmem:[#allocation3 + $0x38] sm:$0xff]  ;;  %v3025_v35 = vsel %vm2466_vm9, %v10115_v18, %v8766_v2  ;;  %v3479_v1 = vadd.f32 %v3451_v4, %v3423_v42  ;;  %v3703_v6 = vadd.f32 %v3675_v44, %v3647_v17  ;;  %v3760_v62 = vld [vmem:[#allocation15 + $0x90] sm:$0xff]  ;;  %v8868_v42 = vpop.permute.xlu2 %3997  ;;  %v10120_v13 = vld [vmem:[#allocation116_spill] sm:$0xff] }
 0x3ad   : > { %v3313_v32 = vsub.f32 %v8840_v25, %v3253_v63  ;;  %3899 = vst [vmem:[#allocation15 + $0x88] sm:$0xff] %v3871_v48  ;;  %v3368_v36 = vmul.f32 %v3340_v0, %v3312_v33  ;;  %v3039_v41 = vsel %vm2466_vm9, %v8766_v2, %v10115_v18  ;;  %v8851_v16 = vld [vmem:[#allocation12 + $0x10] sm:$0xff]  ;;  %v10117_v19 = vrot.slane %v10116_v47, 6  ;;  %v8866_v2 = vpop.permute.xlu0 %3975  ;;  %v3761_v11 = vld [vmem:[#allocation15 + $0x98] sm:$0xff]  ;;  %v10122_v58 = vld [vmem:[#allocation100_spill] sm:$0xff] }
 0x3ae   : > { %3506 = vst [vmem:[#allocation31 + $0x80] sm:$0xff] %v3478_v34  ;;  %v3062_v38 = vsub.f32 %v3025_v35, %v8851_v16  ;;  %v3063_v44 = vsub.f32 %v3039_v41, %v8854_v7  ;;  %v10118_v59 = vrot.slane %v8384_v52, 6  ;;  %v10121_v61 = vrot.slane %v10120_v13, 6  ;;  %v3592_v33 = vld [vmem:[#allocation14 + $0x90] sm:$0xff]  ;;  %v10124_v34 = vld [vmem:[#allocation81_spill] sm:$0xff] }
 0x3af   : > { %v3369_v43 = vmul.f32 %v3341_v39, %v3313_v32  ;;  %3507 = vst [vmem:[#allocation31 + $0x88] sm:$0xff] %v3479_v1  ;;  %v3676_v57 = vmul.f32 %v3564_v28, %v3368_v36  ;;  %v3788_v55 = vmul.f32 %v3536_v27, %v3368_v36  ;;  %v10123_v5 = vrot.slane %v10122_v58, 6  ;;  %v10126_v1 = vld [vmem:[#allocation111_spill] sm:$0xff] }
 0x3b0   : > { %v8862_v24 = vsel %vm2018_vm5, %v10118_v59, %v10117_v19  ;;  %10119 = vst [vmem:[#allocation113_spill] sm:$0xff] %v8868_v42  ;;  %v3118_v17 = vmul.f32 %v3090_v40, %v3062_v38  ;;  %v3119_v48 = vmul.f32 %v3091_v9, %v3063_v44  ;;  %v10125_v32 = vrot.slane %v10124_v34, 1  ;;  %v3425_v38 = vld [vmem:[#allocation31 + $0x98] sm:$0xff]  ;;  %v3344_v58 = vld [vmem:[#allocation11 + $0xb8] sm:$0xff]  ;;  %v3096_v42 = vld [vmem:[#allocation10 + $0xd0] sm:$0xff] }
 0x3b1   : > { %v3181_v63 = vsel %vm2018_vm5, %v10123_v5, %v10121_v61  ;;  %v9556_v52 = vrot.slane %v8862_v24, 1  ;;  %3730 = vst [vmem:[#allocation14 + $0x80] sm:$0xff] %v3702_v22  ;;  %v3677_v0 = vmul.f32 %v3565_v53, %v3369_v43  ;;  %v3789_v4 = vmul.f32 %v3537_v14, %v3369_v43  ;;  %v3593_v22 = vld [vmem:[#allocation14 + $0x98] sm:$0xff] }
 0x3b2   : > { %3731 = vst [vmem:[#allocation14 + $0x88] sm:$0xff] %v3703_v6  ;;  %v3816_v39 = vadd.f32 %v3788_v55, %v3760_v62  ;;  %v3260_v35 = vrot.slane %v3181_v63, 1  ;;  %v3027_v41 = vsel %vm2466_vm9, %v10126_v1, %v8817_v3  ;;  %v3396_v19 = vadd.f32 %v3368_v36, %v3118_v17  ;;  %v3424_v6 = vld [vmem:[#allocation31 + $0x90] sm:$0xff]  ;;  %v10127_v55 = vld [vmem:[#allocation110_spill] sm:$0xff]  ;;  %v3345_v36 = vld [vmem:[#allocation11 + $0x98] sm:$0xff] }
 0x3b3   : > { %v3259_v18 = vsel %vm2103_vm6, %v10125_v32, %v9556_v52  ;;  %v3817_v47 = vadd.f32 %v3789_v4, %v3761_v11  ;;  %v3397_v40 = vadd.f32 %v3369_v43, %v3119_v48  ;;  %v3620_v9 = vmul.f32 %v3536_v27, %v3118_v17  ;;  %v8888_v32 = vld [vmem:[#allocation13 + $0xb0] sm:$0xff]  ;;  %v8891_v52 = vld [vmem:[#allocation13 + $0xb8] sm:$0xff] }
 0x3b4   : > { %v3621_v62 = vmul.f32 %v3537_v14, %v3119_v48  ;;  %v3844_v44 = vmul.f32 %v3564_v28, %v3118_v17  ;;  %v3845_v59 = vmul.f32 %v3565_v53, %v3119_v48  ;;  %v10128_v13 = vrot.slane %v10127_v55, 1  ;;  %10129 = vst [vmem:[#allocation101_spill] sm:$0xff] %v8888_v32  ;;  %v3540_v14 = vld [vmem:[#allocation2 + $0x98] sm:$0xff]  ;;  %v3568_v53 = vld [vmem:[#allocation3 + $0xc8] sm:$0xff] }
 0x3b5   : > { %v3452_v5 = vmul.f32 %v3396_v19, %v3396_v19  ;;  %v3453_v63 = vmul.f32 %v3397_v40, %v3397_v40  ;;  %v3648_v34 = vadd.f32 %v3620_v9, %v3592_v33  ;;  %v3316_v11 = vsub.f32 %v8888_v32, %v3259_v18  ;;  %10130 = vst [vmem:[#allocation117_spill] sm:$0xff] %v8891_v52  ;;  %v3094_v19 = vld [vmem:[#allocation10 + $0xa8] sm:$0xff]  ;;  %v3541_v33 = vld [vmem:[#allocation2 + $0xa0] sm:$0xff] }
 0x3b6   : > { %v3261_v61 = vsel %vm2103_vm6, %v10128_v13, %v3260_v35  ;;  %v3649_v43 = vadd.f32 %v3621_v62, %v3593_v22  ;;  %v3872_v27 = vadd.f32 %v3844_v44, %v3816_v39  ;;  %v3873_v4 = vadd.f32 %v3845_v59, %v3817_v47  ;;  %v3569_v9 = vld [vmem:[#allocation3 + $0xa0] sm:$0xff]  ;;  %v8894_v13 = vpop.permute.xlu0 %3981  ;;  %v3095_v22 = vld [vmem:[#allocation10 + $0x8] sm:$0xff]  ;;  %v3764_v47 = vld [vmem:[#allocation15 + $0xb0] sm:$0xff] }
 0x3b7   : > { %v3317_v28 = vsub.f32 %v8891_v52, %v3261_v61  ;;  %v3480_v17 = vadd.f32 %v3452_v5, %v3424_v6  ;;  %v3481_v48 = vadd.f32 %v3453_v63, %v3425_v38  ;;  %v3704_v55 = vadd.f32 %v3676_v57, %v3648_v34  ;;  %v8900_v44 = vld [vmem:[#allocation12 + $0xc0] sm:$0xff]  ;;  %v3765_v38 = vld [vmem:[#allocation15 + $0xb8] sm:$0xff]  ;;  %v8903_v61 = vld [vmem:[#allocation12 + $0x8] sm:$0xff]  ;;  %v8909_v5 = vpop.permute.xlu1 %3983 }
 0x3b8   : > { %v3372_v40 = vmul.f32 %v3344_v58, %v3316_v11  ;;  %v3705_v18 = vadd.f32 %v3677_v0, %v3649_v43  ;;  %3900 = vst [vmem:[#allocation15 + $0x90] sm:$0xff] %v3872_v27  ;;  %v3041_v62 = vsel %vm2466_vm9, %v8817_v3, %v10126_v1  ;;  %v3066_v57 = vsub.f32 %v3027_v41, %v8900_v44  ;;  %v8911_v34 = vld [vmem:[#allocation13 + $0xc8] sm:$0xff]  ;;  %v3596_v43 = vld [vmem:[#allocation14 + $0xb0] sm:$0xff] }
 0x3b9   : > { %v3373_v39 = vmul.f32 %v3345_v36, %v3317_v28  ;;  %10131 = vst [vmem:[#allocation68_spill] sm:$0xff] %v8900_v44  ;;  %v3067_v0 = vsub.f32 %v3041_v62, %v8903_v61  ;;  %v3265_v58 = vsel %vm2103_vm6, %v3260_v35, %v3264_v56  ;;  %v3347_v11 = vld [vmem:[#allocation11 + $0xa8] sm:$0xff]  ;;  %v8914_v36 = vpop.permute.xlu2 %4003  ;;  %v3028_v56 = vsel %vm2466_vm9, %v10134_v12, %v8819_v46  ;;  %v3919_v44 = vld [vmem:[#allocation16 + $0x98] sm:$0xff] }
 0x3ba   : > { %3508 = vst [vmem:[#allocation31 + $0x90] sm:$0xff] %v3480_v17  ;;  %v3680_v6 = vmul.f32 %v3568_v53, %v3372_v40  ;;  %v3792_v59 = vmul.f32 %v3540_v14, %v3372_v40  ;;  %v3122_v63 = vmul.f32 %v3094_v19, %v3066_v57  ;;  %v3319_v41 = vsub.f32 %v8911_v34, %v3265_v58  ;;  %v3597_v17 = vld [vmem:[#allocation14 + $0xb8] sm:$0xff] }
 0x3bb   : > { %10132 = vst [vmem:[#allocation88_spill] sm:$0xff] %v8903_v61  ;;  %v3681_v3 = vmul.f32 %v3569_v9, %v3373_v39  ;;  %v3793_v1 = vmul.f32 %v3541_v33, %v3373_v39  ;;  %v3123_v28 = vmul.f32 %v3095_v22, %v3067_v0  ;;  %v3042_v35 = vsel %vm2466_vm9, %v8819_v46, %v10134_v12  ;;  %v8924_v46 = vld [vmem:[#allocation12 + $0xd0] sm:$0xff] }
 0x3bc   : > { %10133 = vst [vmem:[#allocation109_spill] sm:$0xff] %v8909_v5  ;;  %v3820_v27 = vadd.f32 %v3792_v59, %v3764_v47  ;;  %v3400_v19 = vadd.f32 %v3372_v40, %v3122_v63  ;;  %v3624_v62 = vmul.f32 %v3540_v14, %v3122_v63  ;;  %v3848_v57 = vmul.f32 %v3568_v53, %v3122_v63  ;;  %v3428_v47 = vld [vmem:[#allocation31 + $0xb0] sm:$0xff] }
 0x3bd   : > { %3509 = vst [vmem:[#allocation31 + $0x98] sm:$0xff] %v3481_v48  ;;  %v3821_v48 = vadd.f32 %v3793_v1, %v3765_v38  ;;  %v3401_v22 = vadd.f32 %v3373_v39, %v3123_v28  ;;  %v3625_v59 = vmul.f32 %v3541_v33, %v3123_v28  ;;  %v3849_v0 = vmul.f32 %v3569_v9, %v3123_v28  ;;  %v3097_v38 = vld [vmem:[#allocation10 + $0x18] sm:$0xff]  ;;  %v3767_v1 = vld [vmem:[#allocation15 + $0xc8] sm:$0xff]  ;;  %v8927_v63 = vld [vmem:[#allocation12 + $0x60] sm:$0xff] }
 0x3be   : > { %3732 = vst [vmem:[#allocation14 + $0x90] sm:$0xff] %v3704_v55  ;;  %v3571_v55 = vld [vmem:[#allocation3 + $0x90] sm:$0xff]  ;;  %v3375_v58 = vmul.f32 %v3347_v11, %v3319_v41  ;;  %v3456_v37 = vmul.f32 %v3400_v19, %v3400_v19  ;;  %v3652_v32 = vadd.f32 %v3624_v62, %v3596_v43  ;;  %v3876_v52 = vadd.f32 %v3848_v57, %v3820_v27  ;;  %v8930_v11 = vpop.permute.xlu0 %3987  ;;  %v3346_v28 = vld [vmem:[#allocation11 + $0x60] sm:$0xff] }
 0x3bf   : > { %3733 = vst [vmem:[#allocation14 + $0x98] sm:$0xff] %v3705_v18  ;;  %v3068_v18 = vsub.f32 %v3028_v56, %v8924_v46  ;;  %v3457_v40 = vmul.f32 %v3401_v22, %v3401_v22  ;;  %v3653_v14 = vadd.f32 %v3625_v59, %v3597_v17  ;;  %v3877_v53 = vadd.f32 %v3849_v0, %v3821_v48  ;;  %v8951_v22 = vpop.permute.xlu1 %3989 }
 0x3c0   : > { %3901 = vst [vmem:[#allocation15 + $0x98] sm:$0xff] %v3873_v4  ;;  %v3683_v4 = vmul.f32 %v3571_v55, %v3375_v58  ;;  %v3484_v39 = vadd.f32 %v3456_v37, %v3428_v47  ;;  %v3708_v33 = vadd.f32 %v3680_v6, %v3652_v32  ;;  %v3795_v9 = vmul.f32 %v3543_v26, %v3375_v58  ;;  %v3570_v32 = vld [vmem:[#allocation3 + $0xd8] sm:$0xff]  ;;  %v3598_v6 = vld [vmem:[#allocation14 + $0xc0] sm:$0xff] }
 0x3c1   : > { %3904 = vst [vmem:[#allocation15 + $0xb0] sm:$0xff] %v3876_v52  ;;  %v3069_v41 = vsub.f32 %v3042_v35, %v8927_v63  ;;  %v3485_v43 = vadd.f32 %v3457_v40, %v3429_v30  ;;  %v3709_v27 = vadd.f32 %v3681_v3, %v3653_v14  ;;  %v3124_v12 = vmul.f32 %v3096_v42, %v3068_v18  ;;  %v3542_v52 = vld [vmem:[#allocation2 + $0x20] sm:$0xff]  ;;  %v8940_v3 = vld [vmem:[#allocation12 + $0x70] sm:$0xff]  ;;  %v8953_v14 = vpop.permute.xlu2 %4009 }
 0x3c2   : > { %3905 = vst [vmem:[#allocation15 + $0xb8] sm:$0xff] %v3877_v53  ;;  %v10135_v56 = vrot.slane %v8599_v49, 1  ;;  %v10136_v17 = vrot.slane %v8862_v24, 1  ;;  %v3823_v48 = vadd.f32 %v3795_v9, %v3767_v1  ;;  %v8937_v35 = vld [vmem:[#allocation13 + $0xc0] sm:$0xff]  ;;  %v4204_v42 = vrot.slane %v8940_v3, 7  ;;  %v3599_v49 = vld [vmem:[#allocation14 + $0xc8] sm:$0xff] }
 0x3c3   : > { %3512 = vst [vmem:[#allocation31 + $0xb0] sm:$0xff] %v3484_v39  ;;  %v3125_v19 = vmul.f32 %v3097_v38, %v3069_v41  ;;  %v3626_v62 = vmul.f32 %v3542_v52, %v3124_v12  ;;  %v3850_v24 = vmul.f32 %v3570_v32, %v3124_v12  ;;  %v4031_v57 = vsel %vm1877_vm7, %v8866_v2, %v8914_v36  ;;  %v3431_v53 = vld [vmem:[#allocation31 + $0xc8] sm:$0xff]  ;;  %v10138_v1 = vld [vmem:[#allocation102_spill] sm:$0xff] }
 0x3c4   : > { %v3263_v37 = vsel %vm2103_vm6, %v10136_v17, %v10135_v56  ;;  %3513 = vst [vmem:[#allocation31 + $0xb8] sm:$0xff] %v3485_v43  ;;  %v4045_v47 = vsel %vm1877_vm7, %v8914_v36, %v8866_v2  ;;  %v10139_v39 = vrot.slane %v10138_v1, 7  ;;  %v4286_v41 = vsub.f32 %v8940_v3, %v4204_v42  ;;  %v4844_v43 = vld [vmem:[#allocation13] sm:$0xff] }
 0x3c5   : > { %v3318_v30 = vsub.f32 %v8937_v35, %v3263_v37  ;;  %10137 = vst [vmem:[#allocation83_spill] sm:$0xff] %v8951_v22  ;;  %v3403_v0 = vadd.f32 %v3375_v58, %v3125_v19  ;;  %v3627_v18 = vmul.f32 %v3543_v26, %v3125_v19  ;;  %v3851_v40 = vmul.f32 %v3571_v55, %v3125_v19  ;;  %v3766_v36 = vld [vmem:[#allocation15 + $0xc0] sm:$0xff]  ;;  %v3430_v55 = vld [vmem:[#allocation31 + $0xc0] sm:$0xff] }
 0x3c6   : > { %3736 = vst [vmem:[#allocation14 + $0xb0] sm:$0xff] %v3708_v33  ;;  %v3654_v38 = vadd.f32 %v3626_v62, %v3598_v6  ;;  %v4208_v9 = vsel %vm2639_vm8, %v4204_v42, %v10139_v39  ;;  %v4059_v2 = vsub.f32 %v4844_v43, %v4045_v47  ;;  %v3947_v26 = vld [vmem:[#allocation8 + $0x40] sm:$0xff]  ;;  %v4344_v6 = vrot.slane %v4286_v41, 1  ;;  %v3948_v42 = vld [vmem:[#allocation8 + $0xd8] sm:$0xff]  ;;  %v4144_v47 = vld [vmem:[#allocation9 + $0xa8] sm:$0xff] }
 0x3c7   : > { %v3374_v59 = vmul.f32 %v3346_v28, %v3318_v30  ;;  %3737 = vst [vmem:[#allocation14 + $0xb8] sm:$0xff] %v3709_v27  ;;  %v3459_v33 = vmul.f32 %v3403_v0, %v3403_v0  ;;  %v3655_v28 = vadd.f32 %v3627_v18, %v3599_v49  ;;  %v3879_v37 = vadd.f32 %v3851_v40, %v3823_v48  ;;  %v4845_v27 = vld [vmem:[#allocation12 + $0x30] sm:$0xff]  ;;  %v4846_v49 = vld [vmem:[#allocation13 + $0x8] sm:$0xff]  ;;  %v8961_v48 = vld [vmem:[#allocation12 + $0xb8] sm:$0xff] }
 0x3c8   : > { %v4288_v19 = vsub.f32 %v4845_v27, %v4208_v9  ;;  %v4087_v0 = vmul.f32 %v4059_v2, %v3947_v26  ;;  %v10140_v40 = vld [vmem:[#allocation89_spill] sm:$0xff]  ;;  %v10144_v41 = vld [vmem:[#allocation112_spill] sm:$0xff]  ;;  %v8974_v2 = vpop.permute.xlu0 %3993 }
 0x3c9   : > { %v3402_v56 = vadd.f32 %v3374_v59, %v3124_v12  ;;  %v3682_v58 = vmul.f32 %v3570_v32, %v3374_v59  ;;  %v3794_v17 = vmul.f32 %v3542_v52, %v3374_v59  ;;  %v3487_v62 = vadd.f32 %v3459_v33, %v3431_v53  ;;  %3907 = vst [vmem:[#allocation15 + $0xc8] sm:$0xff] %v3879_v37  ;;  %v3920_v52 = vld [vmem:[#allocation16 + $0x10] sm:$0xff] }
 0x3ca   : > { %v3711_v39 = vadd.f32 %v3683_v4, %v3655_v28  ;;  %v8959_v12 = vrot.slane %v4288_v19, 1  ;;  %v4060_v32 = vsub.f32 %v4846_v49, %v4031_v57  ;;  %v4203_v59 = vrot.slane %v8961_v48, 7  ;;  %v10142_v4 = vld [vmem:[#allocation90_spill] sm:$0xff] }
 0x3cb   : > { %v3458_v30 = vmul.f32 %v3402_v56, %v3402_v56  ;;  %v3710_v61 = vadd.f32 %v3682_v58, %v3654_v38  ;;  %v3822_v22 = vadd.f32 %v3794_v17, %v3766_v36  ;;  %3515 = vst [vmem:[#allocation31 + $0xc8] sm:$0xff] %v3487_v62  ;;  %v10141_v53 = vrot.slane %v10140_v40, 7  ;;  %v10146_v36 = vld [vmem:[#allocation104_spill] sm:$0xff]  ;;  %v10148_v17 = vld [vmem:[#allocation98_spill] sm:$0xff] }
 0x3cc   : > { %v10143_v38 = vrot.slane %v10142_v4, 7  ;;  %v10145_v43 = vrot.slane %v10144_v41, 7  ;;  %v10147_v56 = vrot.slane %v10146_v36, 7  ;;  %v4346_v28 = vsel %vm2103_vm6, %v4344_v6, %v8959_v12  ;;  %3739 = vst [vmem:[#allocation14 + $0xc8] sm:$0xff] %v3711_v39  ;;  %v4850_v39 = vld [vmem:[#allocation12 + $0x50] sm:$0xff]  ;;  %v3953_v41 = vld [vmem:[#allocation8] sm:$0xff] }
 0x3cd   : > { %v3486_v18 = vadd.f32 %v3458_v30, %v3430_v55  ;;  %3738 = vst [vmem:[#allocation14 + $0xc0] sm:$0xff] %v3710_v61  ;;  %v3878_v33 = vadd.f32 %v3850_v24, %v3822_v22  ;;  %v4088_v58 = vmul.f32 %v4060_v32, %v3948_v42  ;;  %v4115_v26 = vadd.f32 %v4087_v0, %v3919_v44  ;;  %v10150_v30 = vld [vmem:[#allocation92_spill] sm:$0xff]  ;;  %v10153_v42 = vld [vmem:[#allocation70_spill] sm:$0xff] }
 0x3ce   : > { %v4214_v9 = vsel %vm2639_vm8, %v10143_v38, %v10141_v53  ;;  %v4216_v57 = vsel %vm2639_vm8, %v10147_v56, %v10145_v43  ;;  %v4424_v55 = vmul.f32 %v4346_v28, %v4144_v47  ;;  %v10149_v37 = vrot.slane %v10148_v17, 7  ;;  %v4848_v22 = vld [vmem:[#allocation12 + $0x80] sm:$0xff] }
 0x3cf   : > { %3514 = vst [vmem:[#allocation31 + $0xc0] sm:$0xff] %v3486_v18  ;;  %v4285_v19 = vsub.f32 %v8961_v48, %v4203_v59  ;;  %v10151_v62 = vrot.slane %v10150_v30, 7  ;;  %v10152_v49 = vmov %v10141_v53  ;;  %v4116_v24 = vadd.f32 %v4088_v58, %v3920_v52  ;;  %v8993_v18 = vpop.permute.xlu1 %3995  ;;  %v4849_v53 = vld [vmem:[#allocation12 + $0x90] sm:$0xff]  ;;  %v4143_v56 = vld [vmem:[#allocation9 + $0x60] sm:$0xff] }
 0x3d0   : > { %v4206_v27 = vsel %vm2639_vm8, %v4203_v59, %v10149_v37  ;;  %v10154_v44 = vrot.slane %v10153_v42, 7  ;;  %v10155_v47 = vmov %v10145_v43  ;;  %v4291_v0 = vsub.f32 %v8690_v54, %v4214_v9  ;;  %10156 = vst [vmem:[#allocation91_spill] sm:$0xff] %v8993_v18  ;;  %v4016_v43 = vpop.permute.xlu2 %4015  ;;  %v3954_v9 = vld [vmem:[#allocation8 + $0x20] sm:$0xff]  ;;  %4599 = dma.vmem_to_hbm [thread:$0]  (%p1649_p0), %s4592_s3, 3584, %s4594_s7, [#allocation30], %s5091_s19, %s5091_s19, %s5092_s20  }
 0x3d1   : > { %v4218_v61 = vsel %vm2639_vm8, %v10152_v49, %v10151_v62  ;;  %v4287_v6 = vsub.f32 %v4848_v22, %v4206_v27  ;;  %3906 = vst [vmem:[#allocation15 + $0xc0] sm:$0xff] %v3878_v33  ;;  %v4341_v59 = vrot.slane %v4285_v19, 1  ;;  %v4292_v40 = vsub.f32 %v8693_v15, %v4216_v57  ;;  %v4149_v33 = vld [vmem:[#allocation9 + $0x90] sm:$0xff]  ;;  %v4150_v15 = vld [vmem:[#allocation9 + $0x20] sm:$0xff] }
 0x3d2   : > { %v4220_v32 = vsel %vm2639_vm8, %v10155_v47, %v10154_v44  ;;  %v4293_v38 = vsub.f32 %v4849_v53, %v4218_v61  ;;  %v4452_v58 = vadd.f32 %v4424_v55, %v4116_v24  ;;  %v8998_v37 = vrot.slane %v4291_v0, 1  ;;  %v4851_v49 = vld [vmem:[#allocation13 + $0x30] sm:$0xff]  ;;  %v4852_v24 = vld [vmem:[#allocation13 + $0x38] sm:$0xff]  ;;  %v10161_v47 = vld [vmem:[#allocation65_spill] sm:$0xff] }
 0x3d3   : > { %v4294_v52 = vsub.f32 %v4850_v39, %v4220_v32  ;;  %v8996_v28 = vrot.slane %v4287_v6, 1  ;;  %v4034_v54 = vsel %vm1877_vm7, %v8894_v13, %v8953_v14  ;;  %v9004_v57 = vrot.slane %v4292_v40, 1  ;;  %v10159_v6 = vld [vmem:[#allocation99_spill] sm:$0xff]  ;;  %v3925_v53 = vld [vmem:[#allocation16 + $0xc8] sm:$0xff] }
 0x3d4   : > { %v9006_v27 = vrot.slane %v4293_v38, 1  ;;  %v4048_v55 = vsel %vm1877_vm7, %v8953_v14, %v8894_v13  ;;  %4480 = vst [vmem:[#allocation16 + $0x10] sm:$0xff] %v4452_v58  ;;  %v4066_v22 = vsub.f32 %v4852_v24, %v4034_v54  ;;  %v10160_v44 = vrot.slane %v10159_v6, 7  ;;  %v3926_v38 = vld [vmem:[#allocation16 + $0x90] sm:$0xff] }
 0x3d5   : > { %v9008_v19 = vrot.slane %v4294_v52, 1  ;;  %v4343_v62 = vsel %vm2103_vm6, %v4341_v59, %v8996_v28  ;;  %v4065_v61 = vsub.f32 %v4851_v49, %v4048_v55  ;;  %v10162_v32 = vrot.slane %v10161_v47, 7  ;;  %v10163_v59 = vld [vmem:[#allocation86_spill] sm:$0xff]  ;;  %v10165_v52 = vld [vmem:[#allocation71_spill] sm:$0xff] }
 0x3d6   : > { %10157 = vst [vmem:[#allocation79_spill] sm:$0xff] %v9006_v27  ;;  %v4423_v40 = vmul.f32 %v4343_v62, %v4143_v56  ;;  %v4356_v13 = vsel %vm2103_vm6, %v8998_v37, %v9006_v27  ;;  %v10164_v39 = vrot.slane %v10163_v59, 7  ;;  %v10166_v58 = vrot.slane %v10165_v52, 7 }
 0x3d7   : > { %10158 = vst [vmem:[#allocation114_spill] sm:$0xff] %v9008_v19  ;;  %v4226_v0 = vsel %vm2639_vm8, %v10162_v32, %v10160_v44  ;;  %v4358_v14 = vsel %vm2103_vm6, %v9004_v57, %v9008_v19  ;;  %v4429_v55 = vmul.f32 %v4356_v13, %v4149_v33  ;;  %v4093_v24 = vmul.f32 %v4065_v61, %v3953_v41  ;;  %v10167_v44 = vld [vmem:[#allocation72_spill] sm:$0xff]  ;;  %v4854_v61 = vld [vmem:[#allocation12 + $0xc8] sm:$0xff] }
 0x3d8   : > { %v4228_v54 = vsel %vm2639_vm8, %v10166_v58, %v10164_v39  ;;  %v4430_v49 = vmul.f32 %v4358_v14, %v4150_v15  ;;  %v4094_v56 = vmul.f32 %v4066_v22, %v3954_v9  ;;  %v4451_v62 = vadd.f32 %v4423_v40, %v4115_v26  ;;  %v4853_v9 = vld [vmem:[#allocation12 + $0xd8] sm:$0xff]  ;;  %v3960_v40 = vld [vmem:[#allocation8 + $0x50] sm:$0xff]  ;;  %v4022_v59 = vpop.permute.xlu2 %4021 }
 0x3d9   : > { %v10168_v32 = vrot.slane %v10167_v44, 7  ;;  %v10169_v18 = vrot.slane %v10159_v6, 7  ;;  %v10171_v27 = vrot.slane %v10170_v21, 7  ;;  %v10172_v19 = vmov %v10164_v39  ;;  %v9043_v39 = vpop.permute.xlu0 %3999  ;;  %v10177_v58 = vld [vmem:[#allocation106_spill] sm:$0xff] }
 0x3da   : > { %v4297_v20 = vsub.f32 %v8774_v51, %v4226_v0  ;;  %v4121_v33 = vadd.f32 %v4093_v24, %v3925_v53  ;;  %v4122_v41 = vadd.f32 %v4094_v56, %v3926_v38  ;;  %v4298_v26 = vsub.f32 %v8777_v29, %v4228_v54  ;;  %4479 = vst [vmem:[#allocation16 + $0x98] sm:$0xff] %v4451_v62  ;;  %v3959_v0 = vld [vmem:[#allocation8 + $0x28] sm:$0xff]  ;;  %v4155_v29 = vld [vmem:[#allocation9 + $0x10] sm:$0xff]  ;;  %v10179_v62 = vld [vmem:[#allocation76_spill] sm:$0xff] }
 0x3db   : > { %v4230_v60 = vsel %vm2639_vm8, %v10169_v18, %v10168_v32  ;;  %v4232_v5 = vsel %vm2639_vm8, %v10172_v19, %v10171_v27  ;;  %v4037_v6 = vsel %vm1877_vm7, %v8930_v11, %v4016_v43  ;;  %v4051_v51 = vsel %vm1877_vm7, %v4016_v43, %v8930_v11  ;;  %v10175_v11 = vld [vmem:[#allocation69_spill] sm:$0xff]  ;;  %v3932_v24 = vld [vmem:[#allocation16 + $0xd0] sm:$0xff] }
 0x3dc   : > { %v4299_v15 = vsub.f32 %v4853_v9, %v4230_v60  ;;  %v4300_v22 = vsub.f32 %v4854_v61, %v4232_v5  ;;  %v9046_v18 = vrot.slane %v4297_v20, 1  ;;  %v4457_v27 = vadd.f32 %v4429_v55, %v4121_v33  ;;  %v9058_v5 = vpop.permute.xlu1 %4001  ;;  %v4156_v20 = vld [vmem:[#allocation9 + $0xb0] sm:$0xff]  ;;  %v10181_v33 = vld [vmem:[#allocation67_spill] sm:$0xff] }
 0x3dd   : > { %v4458_v19 = vadd.f32 %v4430_v49, %v4122_v41  ;;  %v9054_v53 = vrot.slane %v4298_v26, 1  ;;  %10174 = vst [vmem:[#allocation78_spill] sm:$0xff] %v9058_v5  ;;  %v4071_v13 = vsub.f32 %v8752_v10, %v4051_v51  ;;  %v4072_v14 = vsub.f32 %v8755_v23, %v4037_v6  ;;  %v3931_v49 = vld [vmem:[#allocation16 + $0x88] sm:$0xff]  ;;  %v10186_v61 = vld [vmem:[#allocation82_spill] sm:$0xff] }
 0x3de   : > { %v9056_v60 = vrot.slane %v4299_v15, 1  ;;  %v9060_v38 = vrot.slane %v4300_v22, 1  ;;  %v10176_v43 = vrot.slane %v10175_v11, 7  ;;  %v10178_v54 = vrot.slane %v10177_v58, 7  ;;  %4485 = vst [vmem:[#allocation16 + $0xc8] sm:$0xff] %v4457_v27  ;;  %v10183_v41 = vld [vmem:[#allocation73_spill] sm:$0xff] }
 0x3df   : > { %v10180_v32 = vrot.slane %v10179_v62, 7  ;;  %v10182_v10 = vrot.slane %v10181_v33, 7  ;;  %v10184_v26 = vrot.slane %v10183_v41, 7  ;;  %v10187_v22 = vrot.slane %v10186_v61, 7  ;;  %4486 = vst [vmem:[#allocation16 + $0x90] sm:$0xff] %v4458_v19  ;;  %v4856_v62 = vld [vmem:[#allocation12 + $0xa0] sm:$0xff] }
 0x3e0   : > { %10173 = vst [vmem:[#allocation77_spill] sm:$0xff] %v9056_v60  ;;  %v4238_v55 = vsel %vm2639_vm8, %v10178_v54, %v10176_v43  ;;  %v4368_v56 = vsel %vm2103_vm6, %v9046_v18, %v9056_v60  ;;  %v10185_v9 = vmov %v10176_v43  ;;  %v4370_v27 = vsel %vm2103_vm6, %v9054_v53, %v9060_v38 }
 0x3e1   : > { %v4240_v23 = vsel %vm2639_vm8, %v10182_v10, %v10180_v32  ;;  %v4242_v15 = vsel %vm2639_vm8, %v10185_v9, %v10184_v26  ;;  %v10188_v6 = vmov %v10180_v32  ;;  %v4435_v43 = vmul.f32 %v4368_v56, %v4155_v29  ;;  %v4855_v26 = vld [vmem:[#allocation12 + $0x38] sm:$0xff] }
 0x3e2   : > { %v4244_v51 = vsel %vm2639_vm8, %v10188_v6, %v10187_v22  ;;  %v4099_v54 = vmul.f32 %v4071_v13, %v3959_v0  ;;  %v4100_v32 = vmul.f32 %v4072_v14, %v3960_v40  ;;  %v4436_v10 = vmul.f32 %v4370_v27, %v4156_v20  ;;  %v3965_v22 = vld [vmem:[#allocation8 + $0xa8] sm:$0xff]  ;;  %v4161_v6 = vld [vmem:[#allocation9 + $0x30] sm:$0xff]  ;;  %v3966_v13 = vld [vmem:[#allocation8 + $0x98] sm:$0xff] }
 0x3e3   : > { %v4303_v5 = vsub.f32 %v8851_v16, %v4238_v55  ;;  %v4304_v11 = vsub.f32 %v8854_v7, %v4240_v23  ;;  %v4305_v9 = vsub.f32 %v4855_v26, %v4242_v15  ;;  %v4306_v60 = vsub.f32 %v4856_v62, %v4244_v51  ;;  %v4162_v14 = vld [vmem:[#allocation9 + $0x48] sm:$0xff]  ;;  %v3938_v51 = vld [vmem:[#allocation16 + $0xb0] sm:$0xff] }
 0x3e4   : > { %v4127_v61 = vadd.f32 %v4099_v54, %v3931_v49  ;;  %v4128_v41 = vadd.f32 %v4100_v32, %v3932_v24  ;;  %v4040_v19 = vsel %vm1877_vm7, %v8974_v2, %v4022_v59  ;;  %v4054_v16 = vsel %vm1877_vm7, %v4022_v59, %v8974_v2  ;;  %v9107_v24 = vpop.permute.xlu0 %4005  ;;  %v10189_v2 = vld [vmem:[#allocation80_spill] sm:$0xff] }
 0x3e5   : > { %v9095_v29 = vrot.slane %v4303_v5, 1  ;;  %v9097_v0 = vrot.slane %v4304_v11, 1  ;;  %v9099_v40 = vrot.slane %v4305_v9, 1  ;;  %v9104_v55 = vrot.slane %v4306_v60, 1  ;;  %v3937_v5 = vld [vmem:[#allocation16 + $0xd8] sm:$0xff]  ;;  %v10193_v54 = vld [vmem:[#allocation84_spill] sm:$0xff] }
 0x3e6   : > { %v4463_v7 = vadd.f32 %v4435_v43, %v4127_v61  ;;  %v4464_v20 = vadd.f32 %v4436_v10, %v4128_v41  ;;  %v4077_v49 = vsub.f32 %v8837_v50, %v4054_v16  ;;  %v4078_v23 = vsub.f32 %v8840_v25, %v4040_v19  ;;  %v10191_v41 = vld [vmem:[#allocation85_spill] sm:$0xff]  ;;  %v10195_v10 = vld [vmem:[#allocation66_spill] sm:$0xff] }
 0x3e7   : > { %v4380_v56 = vsel %vm2103_vm6, %v9095_v29, %v9099_v40  ;;  %v4172_v15 = vrot.slane %v8940_v3, 6  ;;  %v10190_v59 = vrot.slane %v10189_v2, 7  ;;  %v10192_v61 = vrot.slane %v10191_v41, 7  ;;  %v10197_v9 = vld [vmem:[#allocation93_spill] sm:$0xff]  ;;  %v10198_v19 = vld [vmem:[#allocation94_spill] sm:$0xff] }
 0x3e8   : > { %4491 = vst [vmem:[#allocation16 + $0x88] sm:$0xff] %v4463_v7  ;;  %v4382_v50 = vsel %vm2103_vm6, %v9097_v0, %v9104_v55  ;;  %v4441_v27 = vmul.f32 %v4380_v56, %v4161_v6  ;;  %v4105_v43 = vmul.f32 %v4077_v49, %v3965_v22  ;;  %v10194_v32 = vrot.slane %v10193_v54, 7  ;;  %v4008_v6 = vpop.permute.xlu1 %4007  ;;  %v4028_v49 = vpop.permute.xlu2 %4027 }
 0x3e9   : > { %v4250_v60 = vsel %vm2639_vm8, %v10192_v61, %v10190_v59  ;;  %v10196_v25 = vrot.slane %v10195_v10, 7  ;;  %4492 = vst [vmem:[#allocation16 + $0xd0] sm:$0xff] %v4464_v20  ;;  %v4442_v11 = vmul.f32 %v4382_v50, %v4162_v14  ;;  %v4106_v26 = vmul.f32 %v4078_v23, %v3966_v13 }
 0x3ea   : > { %v4174_v62 = vsel %vm2018_vm5, %v4172_v15, %v10197_v9  ;;  %v10199_v16 = vrot.slane %v10198_v19, 7  ;;  %v10200_v7 = vmov %v10190_v59  ;;  %v4133_v22 = vadd.f32 %v4105_v43, %v3937_v5  ;;  %v3971_v15 = vld [vmem:[#allocation8 + $0x80] sm:$0xff] }
 0x3eb   : > { %v4252_v3 = vsel %vm2639_vm8, %v10196_v25, %v10194_v32  ;;  %v10201_v56 = vrot.slane %v10197_v9, 7  ;;  %v10202_v61 = vmov %v10194_v32  ;;  %v4309_v13 = vsub.f32 %v8924_v46, %v4250_v60  ;;  %v3972_v32 = vld [vmem:[#allocation8 + $0x8] sm:$0xff] }
 0x3ec   : > { %v4254_v59 = vsel %vm2639_vm8, %v10200_v7, %v10199_v16  ;;  %v4310_v14 = vsub.f32 %v8927_v63, %v4252_v3  ;;  %v4134_v23 = vadd.f32 %v4106_v26, %v3938_v51  ;;  %v4043_v2 = vsel %vm1877_vm7, %v9043_v39, %v4028_v49  ;;  %v3943_v60 = vld [vmem:[#allocation16 + $0x8] sm:$0xff]  ;;  %v4168_v51 = vld [vmem:[#allocation9 + $0xa0] sm:$0xff] }
 0x3ed   : > { %v4256_v20 = vsel %vm2639_vm8, %v10202_v61, %v10201_v56  ;;  %v4057_v5 = vsel %vm1877_vm7, %v4028_v49, %v9043_v39  ;;  %v4469_v43 = vadd.f32 %v4441_v27, %v4133_v22  ;;  %v9147_v54 = vrot.slane %v4309_v13, 1  ;;  %v4857_v49 = vld [vmem:[#allocation12 + $0x78] sm:$0xff]  ;;  %v4858_v13 = vld [vmem:[#allocation12 + $0x68] sm:$0xff] }
 0x3ee   : > { %v4312_v50 = vsub.f32 %v4174_v62, %v4256_v20  ;;  %v9149_v25 = vrot.slane %v4310_v14, 1  ;;  %v4083_v46 = vsub.f32 %v8937_v35, %v4057_v5  ;;  %v4470_v63 = vadd.f32 %v4442_v11, %v4134_v23  ;;  %v3944_v62 = vld [vmem:[#allocation16 + $0x70] sm:$0xff]  ;;  %v3952_v20 = vld [vmem:[#allocation8 + $0xc8] sm:$0xff]  ;;  %v9174_v23 = vpop.permute.xlu0 %4011 }
 0x3ef   : > { %v4084_v26 = vsub.f32 %v8911_v34, %v4043_v2  ;;  %v4171_v9 = vrot.slane %v8961_v48, 6  ;;  %4497 = vst [vmem:[#allocation16 + $0xd8] sm:$0xff] %v4469_v43  ;;  %v10203_v27 = vrot.slane %v10142_v4, 7  ;;  %v10204_v16 = vrot.slane %v10148_v17, 7  ;;  %v4147_v2 = vld [vmem:[#allocation9 + $0x68] sm:$0xff] }
 0x3f0   : > { %v9152_v3 = vrot.slane %v4312_v50, 1  ;;  %v4111_v39 = vmul.f32 %v4083_v46, %v3971_v15  ;;  %v10205_v35 = vrot.slane %v10146_v36, 7  ;;  %v10206_v11 = vrot.slane %v10138_v1, 7  ;;  %4498 = vst [vmem:[#allocation16 + $0xb0] sm:$0xff] %v4470_v63  ;;  %v3951_v50 = vld [vmem:[#allocation8 + $0x38] sm:$0xff]  ;;  %v4167_v46 = vld [vmem:[#allocation9 + $0x50] sm:$0xff] }
 0x3f1   : > { %v4210_v7 = vsel %vm2639_vm8, %v10204_v16, %v10203_v27  ;;  %v4033_v34 = vsel %vm1877_vm7, %v8736_v31, %v4008_v6  ;;  %v4112_v4 = vmul.f32 %v4084_v26, %v3972_v32  ;;  %v4173_v17 = vsel %vm2018_vm5, %v4171_v9, %v10198_v19  ;;  %v4859_v32 = vld [vmem:[#allocation13 + $0x28] sm:$0xff]  ;;  %v4860_v26 = vld [vmem:[#allocation13 + $0x20] sm:$0xff]  ;;  %v4146_v16 = vld [vmem:[#allocation9 + $0x78] sm:$0xff] }
 0x3f2   : > { %v4212_v22 = vsel %vm2639_vm8, %v10206_v11, %v10205_v35  ;;  %v4394_v48 = vsel %vm2103_vm6, %v9149_v25, %v9152_v3  ;;  %v4289_v56 = vsub.f32 %v4857_v49, %v4210_v7  ;;  %v4139_v61 = vadd.f32 %v4111_v39, %v3943_v60  ;;  %v3924_v60 = vld [vmem:[#allocation16 + $0x38] sm:$0xff]  ;;  %v3923_v27 = vld [vmem:[#allocation16 + $0x68] sm:$0xff]  ;;  %v4014_v35 = vpop.permute.xlu1 %4013  ;;  %v3949_v49 = vld [vmem:[#allocation8 + $0x70] sm:$0xff] }
 0x3f3   : > { %v4448_v36 = vmul.f32 %v4394_v48, %v4168_v51  ;;  %v4311_v1 = vsub.f32 %v4173_v17, %v4254_v59  ;;  %v4290_v14 = vsub.f32 %v4858_v13, %v4212_v22  ;;  %v4140_v15 = vadd.f32 %v4112_v4, %v3944_v62  ;;  %v4148_v59 = vld [vmem:[#allocation9] sm:$0xff] }
 0x3f4   : > { %v4347_v5 = vrot.slane %v4289_v56, 1  ;;  %v4047_v43 = vsel %vm1877_vm7, %v4008_v6, %v8736_v31  ;;  %v4064_v19 = vsub.f32 %v4859_v32, %v4033_v34  ;;  %v4032_v62 = vsel %vm1877_vm7, %v8864_v45, %v9107_v24  ;;  %v3950_v56 = vld [vmem:[#allocation8 + $0x18] sm:$0xff] }
 0x3f5   : > { %v9179_v63 = vrot.slane %v4311_v1, 1  ;;  %v4349_v51 = vrot.slane %v4290_v14, 1  ;;  %v4063_v9 = vsub.f32 %v4860_v26, %v4047_v43  ;;  %v4476_v39 = vadd.f32 %v4448_v36, %v4140_v15  ;;  %v4145_v36 = vld [vmem:[#allocation9 + $0xd0] sm:$0xff]  ;;  %v4862_v14 = vld [vmem:[#allocation13 + $0x18] sm:$0xff] }
 0x3f6   : > { %v4352_v31 = vsel %vm2103_vm6, %v4347_v5, %v8998_v37  ;;  %v4092_v6 = vmul.f32 %v4064_v19, %v3952_v20  ;;  %v4046_v7 = vsel %vm1877_vm7, %v9107_v24, %v8864_v45  ;;  %v4861_v20 = vld [vmem:[#allocation13 + $0x10] sm:$0xff]  ;;  %v4062_v15 = vsub.f32 %v4862_v14, %v4032_v62 }
 0x3f7   : > { %v4392_v11 = vsel %vm2103_vm6, %v9147_v54, %v9179_v63  ;;  %v4354_v22 = vsel %vm2103_vm6, %v4349_v51, %v9004_v57  ;;  %v4427_v34 = vmul.f32 %v4352_v31, %v4147_v2  ;;  %v4091_v48 = vmul.f32 %v4063_v9, %v3951_v50  ;;  %4504 = vst [vmem:[#allocation16 + $0x70] sm:$0xff] %v4476_v39  ;;  %v3921_v2 = vld [vmem:[#allocation16 + $0x80] sm:$0xff]  ;;  %v3922_v50 = vld [vmem:[#allocation16 + $0x50] sm:$0xff]  ;;  %v3957_v9 = vld [vmem:[#allocation8 + $0x88] sm:$0xff] }
 0x3f8   : > { %v4447_v4 = vmul.f32 %v4392_v11, %v4167_v46  ;;  %v4428_v37 = vmul.f32 %v4354_v22, %v4148_v59  ;;  %v4120_v17 = vadd.f32 %v4092_v6, %v3924_v60  ;;  %v4350_v45 = vsel %vm2103_vm6, %v8959_v12, %v4349_v51  ;;  %v4865_v11 = vld [vmem:[#allocation13 + $0x50] sm:$0xff]  ;;  %v9216_v22 = vpop.permute.xlu0 %4017 }
 0x3f9   : > { %v4119_v24 = vadd.f32 %v4091_v48, %v3923_v27  ;;  %v4426_v1 = vmul.f32 %v4350_v45, %v4146_v16  ;;  %v4061_v13 = vsub.f32 %v4861_v20, %v4046_v7  ;;  %v4348_v32 = vsel %vm2103_vm6, %v8996_v28, %v4347_v5  ;;  %v4863_v27 = vld [vmem:[#allocation12 + $0xa8] sm:$0xff]  ;;  %v10211_v5 = vld [vmem:[#allocation74_spill] sm:$0xff]  ;;  %v3958_v16 = vld [vmem:[#allocation8 + $0xa0] sm:$0xff] }
 0x3fa   : > { %v4475_v43 = vadd.f32 %v4447_v4, %v4139_v61  ;;  %v4456_v57 = vadd.f32 %v4428_v37, %v4120_v17  ;;  %v10207_v19 = vrot.slane %v10161_v47, 7  ;;  %v10208_v46 = vrot.slane %v10150_v30, 7  ;;  %v4864_v7 = vld [vmem:[#allocation12] sm:$0xff]  ;;  %v3930_v48 = vld [vmem:[#allocation16 + $0x28] sm:$0xff]  ;;  %v4866_v17 = vld [vmem:[#allocation13 + $0x58] sm:$0xff] }
 0x3fb   : > { %v4455_v12 = vadd.f32 %v4427_v34, %v4119_v24  ;;  %v4089_v59 = vmul.f32 %v4061_v13, %v3949_v49  ;;  %v4090_v51 = vmul.f32 %v4062_v15, %v3950_v56  ;;  %v4425_v26 = vmul.f32 %v4348_v32, %v4145_v36  ;;  %v3929_v34 = vld [vmem:[#allocation16 + $0x78] sm:$0xff]  ;;  %v4153_v4 = vld [vmem:[#allocation9 + $0xc8] sm:$0xff]  ;;  %v4154_v20 = vld [vmem:[#allocation9 + $0x40] sm:$0xff] }
 0x3fc   : > { %v4222_v60 = vsel %vm2639_vm8, %v10208_v46, %v10207_v19  ;;  %4503 = vst [vmem:[#allocation16 + $0x8] sm:$0xff] %v4475_v43  ;;  %v10209_v61 = vrot.slane %v10165_v52, 7  ;;  %v10210_v62 = vrot.slane %v10153_v42, 7  ;;  %v4036_v30 = vsel %vm1877_vm7, %v10211_v5, %v4014_v35  ;;  %v10212_v56 = vld [vmem:[#allocation109_spill] sm:$0xff]  ;;  %v4151_v15 = vld [vmem:[#allocation9 + $0xb8] sm:$0xff]  ;;  %v4152_v43 = vld [vmem:[#allocation9 + $0x80] sm:$0xff] }
 0x3fd   : > { %v4295_v28 = vsub.f32 %v4863_v27, %v4222_v60  ;;  %v4050_v47 = vsel %vm1877_vm7, %v4014_v35, %v10211_v5  ;;  %4483 = vst [vmem:[#allocation16 + $0x68] sm:$0xff] %v4455_v12  ;;  %v4117_v31 = vadd.f32 %v4089_v59, %v3921_v2  ;;  %v4118_v6 = vadd.f32 %v4090_v51, %v3922_v50  ;;  %v3955_v50 = vld [vmem:[#allocation8 + $0x90] sm:$0xff]  ;;  %v10213_v32 = vld [vmem:[#allocation79_spill] sm:$0xff]  ;;  %v4867_v46 = vld [vmem:[#allocation13 + $0x40] sm:$0xff]  ;;  %v4020_v12 = vpop.permute.xlu1 %4019 }
 0x3fe   : > { %v4224_v39 = vsel %vm2639_vm8, %v10210_v62, %v10209_v61  ;;  %v4069_v42 = vsub.f32 %v4865_v11, %v4050_v47  ;;  %4484 = vst [vmem:[#allocation16 + $0x38] sm:$0xff] %v4456_v57  ;;  %v4070_v49 = vsub.f32 %v4866_v17, %v4036_v30  ;;  %v4035_v35 = vsel %vm1877_vm7, %v10212_v56, %v9174_v23  ;;  %v10214_v51 = vld [vmem:[#allocation114_spill] sm:$0xff]  ;;  %v3927_v61 = vld [vmem:[#allocation16 + $0xc0] sm:$0xff]  ;;  %v4868_v5 = vld [vmem:[#allocation13 + $0x48] sm:$0xff] }
 0x3ff   : > { %v4296_v52 = vsub.f32 %v4864_v7, %v4224_v39  ;;  %v4359_v37 = vrot.slane %v4295_v28, 1  ;;  %v4049_v36 = vsel %vm1877_vm7, %v9174_v23, %v10212_v56  ;;  %v4453_v45 = vadd.f32 %v4425_v26, %v4117_v31  ;;  %v3956_v62 = vld [vmem:[#allocation8 + $0xd0] sm:$0xff]  ;;  %v10220_v56 = vld [vmem:[#allocation95_spill] sm:$0xff] }
 0x400   : > { %v4454_v24 = vadd.f32 %v4426_v1, %v4118_v6  ;;  %v4097_v14 = vmul.f32 %v4069_v42, %v3957_v9  ;;  %v4098_v2 = vmul.f32 %v4070_v49, %v3958_v16  ;;  %v4067_v60 = vsub.f32 %v4867_v46, %v4049_v36  ;;  %v3928_v7 = vld [vmem:[#allocation16 + $0x30] sm:$0xff]  ;;  %v3964_v49 = vld [vmem:[#allocation8 + $0x60] sm:$0xff] }
 0x401   : > { %v4361_v13 = vrot.slane %v4296_v52, 1  ;;  %v4364_v57 = vsel %vm2103_vm6, %v4359_v37, %v9046_v18  ;;  %v4360_v19 = vsel %vm2103_vm6, %v10213_v32, %v4359_v37  ;;  %4481 = vst [vmem:[#allocation16 + $0x80] sm:$0xff] %v4453_v45  ;;  %v4068_v30 = vsub.f32 %v4868_v5, %v4035_v35  ;;  %v4870_v45 = vld [vmem:[#allocation13 + $0x80] sm:$0xff]  ;;  %v4160_v32 = vld [vmem:[#allocation9 + $0x88] sm:$0xff] }
 0x402   : > { %v4433_v1 = vmul.f32 %v4364_v57, %v4153_v4  ;;  %v4125_v59 = vadd.f32 %v4097_v14, %v3929_v34  ;;  %4482 = vst [vmem:[#allocation16 + $0x50] sm:$0xff] %v4454_v24  ;;  %v4126_v18 = vadd.f32 %v4098_v2, %v3930_v48  ;;  %v4431_v39 = vmul.f32 %v4360_v19, %v4151_v15  ;;  %v4869_v34 = vld [vmem:[#allocation12 + $0x98] sm:$0xff]  ;;  %v10219_v4 = vld [vmem:[#allocation108_spill] sm:$0xff]  ;;  %v3962_v5 = vld [vmem:[#allocation8 + $0x48] sm:$0xff] }
 0x403   : > { %v4366_v23 = vsel %vm2103_vm6, %v4361_v13, %v9054_v53  ;;  %v4362_v26 = vsel %vm2103_vm6, %v10214_v51, %v4361_v13  ;;  %v4095_v47 = vmul.f32 %v4067_v60, %v3955_v50  ;;  %v10215_v31 = vrot.slane %v10177_v58, 7  ;;  %v10221_v14 = vld [vmem:[#allocation83_spill] sm:$0xff]  ;;  %v3935_v2 = vld [vmem:[#allocation16 + $0xa0] sm:$0xff]  ;;  %v4024_v60 = vpop.permute.xlu0 %4023  ;;  %v10222_v51 = vld [vmem:[#allocation77_spill] sm:$0xff] }
 0x404   : > { %v4434_v9 = vmul.f32 %v4366_v23, %v4154_v20  ;;  %v4432_v27 = vmul.f32 %v4362_v26, %v4152_v43  ;;  %v4461_v28 = vadd.f32 %v4433_v1, %v4125_v59  ;;  %v10216_v53 = vrot.slane %v10167_v44, 7  ;;  %v3963_v44 = vld [vmem:[#allocation8 + $0x30] sm:$0xff]  ;;  %v4871_v20 = vld [vmem:[#allocation13 + $0x88] sm:$0xff]  ;;  %v3936_v50 = vld [vmem:[#allocation16 + $0x58] sm:$0xff] }
 0x405   : > { %v10217_v52 = vrot.slane %v10181_v33, 7  ;;  %v10218_v11 = vrot.slane %v10170_v21, 7  ;;  %v4039_v37 = vsel %vm1877_vm7, %v10219_v4, %v4020_v12  ;;  %v4096_v58 = vmul.f32 %v4068_v30, %v3956_v62  ;;  %v4159_v21 = vld [vmem:[#allocation9 + $0xd8] sm:$0xff]  ;;  %v4026_v30 = vpop.permute.xlu1 %4025 }
 0x406   : > { %v4234_v6 = vsel %vm2639_vm8, %v10216_v53, %v10215_v31  ;;  %v4462_v16 = vadd.f32 %v4434_v9, %v4126_v18  ;;  %4489 = vst [vmem:[#allocation16 + $0x78] sm:$0xff] %v4461_v28  ;;  %v4123_v17 = vadd.f32 %v4095_v47, %v3927_v61  ;;  %v4053_v33 = vsel %vm1877_vm7, %v4020_v12, %v10219_v4  ;;  %v4157_v59 = vld [vmem:[#allocation9 + $0x58] sm:$0xff]  ;;  %v4872_v53 = vld [vmem:[#allocation13 + $0x70] sm:$0xff]  ;;  %v3934_v4 = vld [vmem:[#allocation16 + $0x60] sm:$0xff] }
 0x407   : > { %v4236_v42 = vsel %vm2639_vm8, %v10218_v11, %v10217_v52  ;;  %v4301_v48 = vsub.f32 %v4869_v34, %v4234_v6  ;;  %v4075_v24 = vsub.f32 %v4870_v45, %v4053_v33  ;;  %v4076_v13 = vsub.f32 %v4871_v20, %v4039_v37  ;;  %v4158_v47 = vld [vmem:[#allocation9 + $0x38] sm:$0xff]  ;;  %v10227_v37 = vld [vmem:[#allocation82_spill] sm:$0xff] }
 0x408   : > { %v4302_v35 = vsub.f32 %v10220_v56, %v4236_v42  ;;  %4490 = vst [vmem:[#allocation16 + $0x28] sm:$0xff] %v4462_v16  ;;  %v4038_v15 = vsel %vm1877_vm7, %v10221_v14, %v9216_v22  ;;  %v4124_v43 = vadd.f32 %v4096_v58, %v3928_v7  ;;  %v4459_v57 = vadd.f32 %v4431_v39, %v4123_v17  ;;  %v3970_v33 = vld [vmem:[#allocation8 + $0x10] sm:$0xff] }
 0x409   : > { %v4371_v36 = vrot.slane %v4301_v48, 1  ;;  %v4052_v46 = vsel %vm1877_vm7, %v9216_v22, %v10221_v14  ;;  %v4103_v23 = vmul.f32 %v4075_v24, %v3963_v44  ;;  %v4104_v1 = vmul.f32 %v4076_v13, %v3964_v49  ;;  %v3961_v22 = vld [vmem:[#allocation8 + $0xc0] sm:$0xff]  ;;  %v10232_v13 = vld [vmem:[#allocation117_spill] sm:$0xff] }
 0x40a   : > { %v4373_v19 = vrot.slane %v4302_v35, 1  ;;  %v4460_v9 = vadd.f32 %v4432_v27, %v4124_v43  ;;  %4487 = vst [vmem:[#allocation16 + $0xc0] sm:$0xff] %v4459_v57  ;;  %v4073_v6 = vsub.f32 %v4872_v53, %v4052_v46  ;;  %v4873_v27 = vld [vmem:[#allocation13 + $0x78] sm:$0xff]  ;;  %v10223_v7 = vrot.slane %v10191_v41, 7  ;;  %v3933_v48 = vld [vmem:[#allocation16 + $0x20] sm:$0xff]  ;;  %v4163_v53 = vld [vmem:[#allocation9 + $0x28] sm:$0xff] }
 0x40b   : > { %v4376_v12 = vsel %vm2103_vm6, %v4371_v36, %v9095_v29  ;;  %v4372_v26 = vsel %vm2103_vm6, %v10222_v51, %v4371_v36  ;;  %v4131_v39 = vadd.f32 %v4103_v23, %v3935_v2  ;;  %v4132_v28 = vadd.f32 %v4104_v1, %v3936_v50  ;;  %v10229_v44 = vld [vmem:[#allocation68_spill] sm:$0xff]  ;;  %v10231_v36 = vld [vmem:[#allocation113_spill] sm:$0xff]  ;;  %v3942_v57 = vld [vmem:[#allocation16 + $0x18] sm:$0xff] }
 0x40c   : > { %v4378_v18 = vsel %vm2103_vm6, %v4373_v19, %v9097_v0  ;;  %v4439_v61 = vmul.f32 %v4376_v12, %v4159_v21  ;;  %v4374_v29 = vsel %vm2103_vm6, %v9060_v38, %v4373_v19  ;;  %4488 = vst [vmem:[#allocation16 + $0x30] sm:$0xff] %v4460_v9  ;;  %v4437_v31 = vmul.f32 %v4372_v26, %v4157_v59  ;;  %v10224_v0 = vld [vmem:[#allocation73_spill] sm:$0xff]  ;;  %v10230_v41 = vld [vmem:[#allocation88_spill] sm:$0xff]  ;;  %v3969_v2 = vld [vmem:[#allocation8 + $0x58] sm:$0xff] }
 0x40d   : > { %v4440_v62 = vmul.f32 %v4378_v18, %v4160_v32  ;;  %v4074_v16 = vsub.f32 %v4873_v27, %v4038_v15  ;;  %v10225_v52 = vrot.slane %v10224_v0, 7  ;;  %v10226_v38 = vrot.slane %v10195_v10, 7  ;;  %v4166_v50 = vld [vmem:[#allocation9 + $0x8] sm:$0xff]  ;;  %v4165_v12 = vld [vmem:[#allocation9 + $0xc0] sm:$0xff]  ;;  %v10234_v59 = vld [vmem:[#allocation91_spill] sm:$0xff] }
 0x40e   : > { %v4467_v42 = vadd.f32 %v4439_v61, %v4131_v39  ;;  %v10228_v58 = vrot.slane %v10227_v37, 7  ;;  %v4101_v56 = vmul.f32 %v4073_v6, %v3961_v22  ;;  %v4042_v45 = vsel %vm1877_vm7, %v10231_v36, %v4026_v30  ;;  %v10233_v19 = vld [vmem:[#allocation101_spill] sm:$0xff]  ;;  %v3941_v61 = vld [vmem:[#allocation16 + $0xb8] sm:$0xff]  ;;  %v4030_v39 = vpop.permute.xlu0 %4029 }
 0x40f   : > { %v4246_v11 = vsel %vm2639_vm8, %v10225_v52, %v10223_v7  ;;  %v4468_v34 = vadd.f32 %v4440_v62, %v4132_v28  ;;  %v4102_v35 = vmul.f32 %v4074_v16, %v3962_v5  ;;  %v4438_v24 = vmul.f32 %v4374_v29, %v4158_v47  ;;  %v3968_v29 = vld [vmem:[#allocation8 + $0xb8] sm:$0xff]  ;;  %v3939_v47 = vld [vmem:[#allocation16 + $0x40] sm:$0xff]  ;;  %v4875_v27 = vld [vmem:[#allocation13 + $0xa8] sm:$0xff] }
 0x410   : > { %v4248_v17 = vsel %vm2639_vm8, %v10228_v58, %v10226_v38  ;;  %v4307_v49 = vsub.f32 %v10229_v44, %v4246_v11  ;;  %4495 = vst [vmem:[#allocation16 + $0xa0] sm:$0xff] %v4467_v42  ;;  %v4056_v10 = vsel %vm1877_vm7, %v4026_v30, %v10231_v36  ;;  %v4082_v14 = vsub.f32 %v10232_v13, %v4042_v45  ;;  %v3940_v0 = vld [vmem:[#allocation16 + $0xa8] sm:$0xff]  ;;  %v4164_v52 = vld [vmem:[#allocation9 + $0x18] sm:$0xff]  ;;  %v3945_v45 = vld [vmem:[#allocation16] sm:$0x3] }
 0x411   : > { %v4308_v21 = vsub.f32 %v10230_v41, %v4248_v17  ;;  %4496 = vst [vmem:[#allocation16 + $0x58] sm:$0xff] %v4468_v34  ;;  %v4129_v15 = vadd.f32 %v4101_v56, %v3933_v48  ;;  %v4130_v43 = vadd.f32 %v4102_v35, %v3934_v4  ;;  %v4081_v46 = vsub.f32 %v10233_v19, %v4056_v10  ;;  %v3974_v42 = vld [vmem:[#allocation8 + $0x68] sm:$0x3]  ;;  %v10235_v34 = vld [vmem:[#allocation78_spill] sm:$0xff]  ;;  %v10236_v58 = vld [vmem:[#allocation107_spill] sm:$0xff] }
 0x412   : > { %v4383_v20 = vrot.slane %v4307_v49, 1  ;;  %v4110_v1 = vmul.f32 %v4082_v14, %v3970_v33  ;;  %v4041_v51 = vsel %vm1877_vm7, %v10234_v59, %v4024_v60  ;;  %v4055_v26 = vsel %vm1877_vm7, %v4024_v60, %v10234_v59  ;;  %v4874_v60 = vld [vmem:[#allocation13 + $0xa0] sm:$0xff]  ;;  %v3946_v56 = vld [vmem:[#allocation16 + $0x48] sm:$0x3]  ;;  %v4170_v35 = vld [vmem:[#allocation9 + $0x98] sm:$0x3] }
 0x413   : > { %v4385_v32 = vrot.slane %v4308_v21, 1  ;;  %v4465_v9 = vadd.f32 %v4437_v31, %v4129_v15  ;;  %v4466_v18 = vadd.f32 %v4438_v24, %v4130_v43  ;;  %v4109_v22 = vmul.f32 %v4081_v46, %v3969_v2  ;;  %v4169_v24 = vld [vmem:[#allocation9 + $0x70] sm:$0x3]  ;;  %v4507_v19 = vld [vmem:[#allocation13] sm:$0xff] (%p1649_p0)  ;;  %v4508_v46 = vld [vmem:[#allocation13 + $0x8] sm:$0xff] (%p1649_p0) }
 0x414   : > { %v4388_v23 = vsel %vm2103_vm6, %v4383_v20, %v9147_v54  ;;  %v4138_v5 = vadd.f32 %v4110_v1, %v3942_v57  ;;  %v3967_v54 = vld [vmem:[#allocation8 + $0xb0] sm:$0xff]  ;;  %v4384_v6 = vsel %vm2103_vm6, %v9099_v40, %v4383_v20  ;;  %v4079_v31 = vsub.f32 %v4874_v60, %v4055_v26  ;;  %v3973_v40 = vld [vmem:[#allocation8 + $0x78] sm:$0x3]  ;;  %4535 = vst [vmem:[#allocation28] sm:$0xff] (%p1649_p0), %v4507_v19  ;;  %v4515_v59 = vld [vmem:[#allocation13 + $0x40] sm:$0xff] (%p1649_p0) }
 0x415   : > { %v4390_v62 = vsel %vm2103_vm6, %v4385_v32, %v9149_v25  ;;  %4493 = vst [vmem:[#allocation16 + $0x20] sm:$0xff] %v4465_v9  ;;  %v4445_v30 = vmul.f32 %v4388_v23, %v4165_v12  ;;  %v4080_v16 = vsub.f32 %v4875_v27, %v4041_v51  ;;  %v4137_v7 = vadd.f32 %v4109_v22, %v3941_v61  ;;  %v4509_v12 = vld [vmem:[#allocation13 + $0x10] sm:$0xff] (%p1649_p0)  ;;  %v4512_v23 = vld [vmem:[#allocation13 + $0x28] sm:$0xff] (%p1649_p0)  ;;  %v4518_v9 = vld [vmem:[#allocation13 + $0x58] sm:$0xff] (%p1649_p0) }
 0x416   : > { %v4446_v28 = vmul.f32 %v4390_v62, %v4166_v50  ;;  %4494 = vst [vmem:[#allocation16 + $0x60] sm:$0xff] %v4466_v18  ;;  %v4386_v11 = vsel %vm2103_vm6, %v9104_v55, %v4385_v32  ;;  %v4044_v48 = vsel %vm1877_vm7, %v10235_v34, %v4030_v39  ;;  %v4107_v4 = vmul.f32 %v4079_v31, %v3967_v54  ;;  %v10237_v55 = vld [vmem:[#allocation105_spill] sm:$0xff]  ;;  %v4513_v1 = vld [vmem:[#allocation13 + $0x30] sm:$0xff] (%p1649_p0)  ;;  %v4519_v18 = vld [vmem:[#allocation13 + $0x60] sm:$0xff] (%p1649_p0) }
 0x417   : > { %v4108_v38 = vmul.f32 %v4080_v16, %v3968_v29  ;;  %v4058_v37 = vsel %vm1877_vm7, %v4030_v39, %v10235_v34  ;;  %v4086_v17 = vsub.f32 %v10236_v58, %v4044_v48  ;;  %v4473_v44 = vadd.f32 %v4445_v30, %v4137_v7  ;;  %4536 = vst [vmem:[#allocation28 + $0x8] sm:$0xff] (%p1649_p0), %v4508_v46  ;;  %v4516_v51 = vld [vmem:[#allocation13 + $0x48] sm:$0xff] (%p1649_p0)  ;;  %v4517_v26 = vld [vmem:[#allocation13 + $0x50] sm:$0xff] (%p1649_p0)  ;;  %v4522_v39 = vld [vmem:[#allocation13 + $0x78] sm:$0xff] (%p1649_p0) }
 0x418   : > { %v4474_v25 = vadd.f32 %v4446_v28, %v4138_v5  ;;  %v4443_v49 = vmul.f32 %v4384_v6, %v4163_v53  ;;  %v4085_v33 = vsub.f32 %v10237_v55, %v4058_v37  ;;  %v4444_v41 = vmul.f32 %v4386_v11, %v4164_v52  ;;  %4537 = vst [vmem:[#allocation28 + $0x10] sm:$0xff] (%p1649_p0), %v4509_v12  ;;  %v4520_v61 = vld [vmem:[#allocation13 + $0x68] sm:$0xff] (%p1649_p0)  ;;  %v4521_v62 = vld [vmem:[#allocation13 + $0x70] sm:$0xff] (%p1649_p0)  ;;  %v4523_v28 = vld [vmem:[#allocation13 + $0x80] sm:$0xff] (%p1649_p0) }
 0x419   : > { %v4135_v21 = vadd.f32 %v4107_v4, %v3939_v47  ;;  %v4136_v36 = vadd.f32 %v4108_v38, %v3940_v0  ;;  %v4114_v20 = vmul.f32 %v4086_v17, %v3974_v42  ;;  %4501 = vst [vmem:[#allocation16 + $0xb8] sm:$0xff] %v4473_v44  ;;  %v4450_v15 = vmul.f32 %v9152_v3, %v4170_v35  ;;  %v4510_v3 = vld [vmem:[#allocation13 + $0x18] sm:$0xff] (%p1649_p0)  ;;  %v4524_v22 = vld [vmem:[#allocation13 + $0x88] sm:$0xff] (%p1649_p0)  ;;  %v4525_v5 = vld [vmem:[#allocation13 + $0x90] sm:$0xff] (%p1649_p0) }
 0x41a   : > { %4502 = vst [vmem:[#allocation16 + $0x18] sm:$0xff] %v4474_v25  ;;  %v4113_v10 = vmul.f32 %v4085_v33, %v3973_v40  ;;  %v4449_v2 = vmul.f32 %v9179_v63, %v4169_v24  ;;  %v4511_v63 = vld [vmem:[#allocation13 + $0x20] sm:$0xff] (%p1649_p0)  ;;  %v4526_v54 = vld [vmem:[#allocation13 + $0x98] sm:$0xff] (%p1649_p0)  ;;  %v4528_v30 = vld [vmem:[#allocation13 + $0xa8] sm:$0xff] (%p1649_p0) }
 0x41b   : > { %v4471_v13 = vadd.f32 %v4443_v49, %v4135_v21  ;;  %v4472_v14 = vadd.f32 %v4444_v41, %v4136_v36  ;;  %v4142_v43 = vadd.f32 %v4114_v20, %v3946_v56  ;;  %4538 = vst [vmem:[#allocation28 + $0x18] sm:$0xff] (%p1649_p0), %v4510_v3  ;;  %v4527_v29 = vld [vmem:[#allocation13 + $0xa0] sm:$0xff] (%p1649_p0)  ;;  %v4529_v47 = vld [vmem:[#allocation13 + $0xb0] sm:$0xff] (%p1649_p0)  ;;  %v4530_v53 = vld [vmem:[#allocation13 + $0xb8] sm:$0xff] (%p1649_p0) }
 0x41c   : > { %v4141_v57 = vadd.f32 %v4113_v10, %v3945_v45  ;;  %1651 = sbr.rel (!%p1649_p0) target bundleno = 517 (0x205), region = 77  ;;  %4539 = vst [vmem:[#allocation28 + $0x20] sm:$0xff] (%p1649_p0), %v4511_v63  ;;  %v4531_v6 = vld [vmem:[#allocation13 + $0xc0] sm:$0xff] (%p1649_p0)  ;;  %v4532_v60 = vld [vmem:[#allocation13 + $0xc8] sm:$0xff] (%p1649_p0)  ;;  %v4533_v31 = vld [vmem:[#allocation13 + $0xd0] sm:$0x3] (%p1649_p0) }
 0x41d   : > { %4499 = vst [vmem:[#allocation16 + $0x40] sm:$0xff] %v4471_v13  ;;  %v4478_v50 = vadd.f32 %v4450_v15, %v4142_v43  ;;  %v4534_v27 = vld [vmem:[#allocation13 + $0xd8] sm:$0x3] (%p1649_p0) }
 0x41e   : > { %4500 = vst [vmem:[#allocation16 + $0xa8] sm:$0xff] %v4472_v14  ;;  %v4477_v32 = vadd.f32 %v4449_v2, %v4141_v57 }
 0x41f   : > { %4506 = vst [vmem:[#allocation16 + $0x48] sm:$0x3] %v4478_v50 }
 0x420   : > { %4505 = vst [vmem:[#allocation16] sm:$0x3] %v4477_v32 }
 0x421   :  { %4540 = vst [vmem:[#allocation28 + $0x28] sm:$0xff] %v4512_v23 }
 0x422   :  { %4541 = vst [vmem:[#allocation28 + $0x30] sm:$0xff] %v4513_v1 }
 0x423   :  { %4543 = vst [vmem:[#allocation28 + $0x40] sm:$0xff] %v4515_v59 }
 0x424   :  { %4544 = vst [vmem:[#allocation28 + $0x48] sm:$0xff] %v4516_v51 }
 0x425   :  { %4545 = vst [vmem:[#allocation28 + $0x50] sm:$0xff] %v4517_v26 }
 0x426   :  { %4546 = vst [vmem:[#allocation28 + $0x58] sm:$0xff] %v4518_v9 }
 0x427   :  { %4547 = vst [vmem:[#allocation28 + $0x60] sm:$0xff] %v4519_v18 }
 0x428   :  { %4548 = vst [vmem:[#allocation28 + $0x68] sm:$0xff] %v4520_v61 }
 0x429   :  { %4549 = vst [vmem:[#allocation28 + $0x70] sm:$0xff] %v4521_v62 }
 0x42a   :  { %4550 = vst [vmem:[#allocation28 + $0x78] sm:$0xff] %v4522_v39 }
 0x42b   :  { %4551 = vst [vmem:[#allocation28 + $0x80] sm:$0xff] %v4523_v28 }
 0x42c   :  { %4552 = vst [vmem:[#allocation28 + $0x88] sm:$0xff] %v4524_v22 }
 0x42d   :  { %4553 = vst [vmem:[#allocation28 + $0x90] sm:$0xff] %v4525_v5 }
 0x42e   :  { %4554 = vst [vmem:[#allocation28 + $0x98] sm:$0xff] %v4526_v54 }
 0x42f   :  { %4555 = vst [vmem:[#allocation28 + $0xa0] sm:$0xff] %v4527_v29 }
 0x430   :  { %4556 = vst [vmem:[#allocation28 + $0xa8] sm:$0xff] %v4528_v30 }
 0x431   :  { %4557 = vst [vmem:[#allocation28 + $0xb0] sm:$0xff] %v4529_v47 }
 0x432   :  { %4558 = vst [vmem:[#allocation28 + $0xb8] sm:$0xff] %v4530_v53 }
 0x433   :  { %4559 = vst [vmem:[#allocation28 + $0xc0] sm:$0xff] %v4531_v6 }
 0x434   :  { %4560 = vst [vmem:[#allocation28 + $0xc8] sm:$0xff] %v4532_v60 }
 0x435   :  { %4561 = vst [vmem:[#allocation28 + $0xd0] sm:$0x3] %v4533_v31 }
 0x436   :  { %4562 = vst [vmem:[#allocation28 + $0xd8] sm:$0x3] %v4534_v27 }
 0x437   :  { %4575 = dma.vmem_to_hbm [thread:$0]  %s4568_s2, 3584, %s4570_s27, [#allocation22], %s5091_s19, %s5091_s19, %s5092_s20  }
 0x438   :  { %5080 = dma.done.wait [#allocation22], 3584  }
 0x439   :  { %5081 = vsyncadd [#allocation22], 4294963712 }
 0x43a   :  { %5082 = dma.done.wait [#allocation30], 3840  }
 0x43b   :  { %5083 = vsyncadd [#allocation30], 4294963456 }
 0x43c   :  { %4612 = vsyncpa [#allocation21], 1 }
 0x43d   :  { %4613 = vsyncpa [#allocation24], 1 }
 0x43e   :  { %4614 = vsyncpa [#allocation27], 1 }
 0x43f   :  { %4615 = vsyncpa [#allocation22], 1 }
 0x440   :  { %4616 = vsyncpa [#allocation30], 1 }

</bundles_post_ra>
